<compile_context>
chip_gen: v7x
topology: tpu7x:2x2x1
jax: 0.10.0
libtpu: 0.0.40
codegen_flags: <defaults>
</compile_context>

<pallas_src>
import functools

import jax
import jax.numpy as jnp
import numpy as np
from jax import lax
from jax.experimental import pallas as pl
from jax.experimental.pallas import tpu as pltpu

FILTER_SIZE = 3                                   # Evaluate.__init__: self.filter_size = 3
_IN_BOUNDS = lax.GatherScatterMode.PROMISE_IN_BOUNDS

# Cost-computation variants, in order of preference.
_MODES = ("gather_right", "gather_slab", "onehot")
_CONFIG_CACHE = {}        # problem key -> (mode, single_buffer_right)
_FN_CACHE = {}            # (cfg, key)  -> jitted pallas_call


# --------------------------------------------------------------------------- #
# Kernel
# --------------------------------------------------------------------------- #
def _evaluate_kernel(ox_ref, oy_ref, left_ref, right_ref, out_ref, *scratch,
                     mode, h, w, hw, tp, c, num, k, rb, temperature):
    pt = pl.program_id(1)
    w_f = jnp.float32(w)
    inv_t = jnp.float32(1.0 / temperature)

    ox = ox_ref[0]                                  # (num, tp) f32
    oy = oy_ref[0]                                  # (num, tp) f32

    # ---- offset_to_inds (elementwise; p = global pixel index of this tile) ----
    pix_f = (pt * tp + lax.broadcasted_iota(jnp.int32, (1, tp), 1)).astype(jnp.float32)
    bx = jnp.floor(pix_f / w_f)                     # base row
    by = pix_f - bx * w_f                           # base col
    xs = jnp.clip(bx + ox, 0.0, jnp.float32(h - 1))
    ys = jnp.clip(by + oy, 0.0, jnp.float32(w - 1))
    inds_f = jnp.floor(xs * w_f + ys)               # (num, tp) integer-valued f32 (== .long())
    inds_i = inds_f.astype(jnp.int32)

    # ---- match cost (num, tp) ----
    if mode == "gather_right":
        # Preferred path: gather the candidate right columns and contract over C
        # on the VPU.  No (HW, TP) slab, no wasted MXU work.
        left = left_ref[0].astype(jnp.float32)      # (c, tp)
        right = right_ref[...].astype(jnp.float32)  # (c, hw)
        rows = []
        for i in range(num):                        # num is small & static (9)
            idx = jnp.broadcast_to(inds_i[i:i + 1, :], (c, tp))
            r_i = jnp.take_along_axis(right, idx, axis=1, mode=_IN_BOUNDS)  # (c, tp)
            rows.append(jnp.sum(left * r_i, axis=0, keepdims=True))
        cost = jnp.concatenate(rows, axis=0) * inv_t
    elif mode == "gather_slab":
        # bf16 MXU correlation slab s[q, p] = sum_c right[c, q] * left[c, p],
        # then a per-lane sublane gather of the 9 needed rows.
        s = lax.dot_general(right_ref[...], left_ref[0],
                            (((0,), (0,)), ((), ())),
                            preferred_element_type=jnp.float32)             # (hw, tp)
        cost = jnp.take_along_axis(s, inds_i, axis=0, mode=_IN_BOUNDS) * inv_t
    else:  # "onehot" — guaranteed-lowerable fallback (f32 MXU slab + blocked one-hot)
        s_ref = scratch[0]
        s_ref[...] = lax.dot_general(right_ref[...].astype(jnp.float32),
                                     left_ref[0].astype(jnp.float32),
                                     (((0,), (0,)), ((), ())),
                                     preferred_element_type=jnp.float32)    # (hw, tp)

        def body(blk, acc):
            row0 = pl.multiple_of(blk * rb, rb)
            q = row0 + lax.broadcasted_iota(jnp.int32, (rb, 1), 0)          # (rb, 1)
            s_blk = s_ref[pl.ds(row0, rb), :]                               # (rb, tp)
            rows = [jnp.sum(jnp.where(q == inds_i[i:i + 1, :], s_blk, 0.0),
                            axis=0, keepdims=True)
                    for i in range(num)]
            return acc + jnp.concatenate(rows, axis=0)

        cost = lax.fori_loop(0, hw // rb, body,
                             jnp.zeros((num, tp), jnp.float32)) * inv_t

    # ---- softmax over the candidate axis (denominator on the EUP) ----
    m = jnp.max(cost, axis=0, keepdims=True)
    e = jnp.exp(cost - m)
    probs = e * pl.reciprocal(jnp.sum(e, axis=0, keepdims=True), approx=True)

    # ---- in-kernel top-k (k = num // 3): iterative max, lowest-index tie-break ----
    cand_desc = (jnp.float32(num - 1)
                 - lax.broadcasted_iota(jnp.int32, (num, tp), 0).astype(jnp.float32))
    work = cost
    top_p, top_i = [], []
    for _ in range(k):
        vj = jnp.max(work, axis=0, keepdims=True)
        is_max = work == vj
        pick = jnp.max(jnp.where(is_max, cand_desc, -1.0), axis=0, keepdims=True)
        sel = cand_desc == pick                      # exactly one candidate per pixel
        top_p.append(jnp.sum(jnp.where(sel, probs, 0.0), axis=0, keepdims=True))
        top_i.append(jnp.sum(jnp.where(sel, inds_f, 0.0), axis=0, keepdims=True))
        work = jnp.where(sel, jnp.float32(-jnp.inf), work)
    corr = jnp.concatenate(top_p, axis=0)            # (k, tp)
    sel_inds = jnp.concatenate(top_i, axis=0)        # (k, tp)

    # ---- inds_to_offset for the selected candidates ----
    sx = jnp.floor(sel_inds / w_f)
    sy = sel_inds - sx * w_f
    offx = sx - bx
    offy = sy - by

    # packed, lane-dense output block: rows [0:k)=offx, [k:2k)=offy, [2k:3k)=corr
    out_ref[0] = jnp.concatenate([offx, offy, corr], axis=0)


# --------------------------------------------------------------------------- #
# Planning / builders
# --------------------------------------------------------------------------- #
def _vmem_capacity():
    try:
        info = pltpu.get_tpu_info()
        cap = int(getattr(info, "vmem_capacity_bytes", 0) or 0)
        if cap > 0:
            return min(cap, 128 * 1024 * 1024)
    except Exception:
        pass
    return 64 * 1024 * 1024            # conservative (v7x per-TC VMEM)


def _plan(mode, c, hw, num, k):
    """Pick the pixel tile (tp), one-hot row block (rb) and vmem limit from the
    chip's VMEM capacity so v7x (64 MiB) gets smaller tiles than v5e/v6e."""
    cap = _vmem_capacity()
    budget = cap // 2                                   # headroom for temporaries
    fixed = 2 * c * hw * 2 + c * hw * 4                 # right block (bf16 x2) + f32 upcast
    per_col = (2 * c * 2                                # left tile (bf16, double-buffered)
               + 2 * 2 * num * 4                        # offset_x / offset_y tiles
               + 2 * 3 * k * 4                          # packed output tile
               + (num + k) * 16)                        # rough in-kernel temporaries
    if mode != "gather_right":
        per_col += hw * 4                               # correlation slab column
        if mode == "onehot":
            per_col += hw * 4                           # VMEM scratch copy of the slab
    tp = None
    for cand in (1024, 512, 256, 128):
        if hw % cand == 0 and fixed + per_col * cand <= budget:
            tp = cand
            break
    if tp is None:
        tp = hw if hw <= 1024 else (128 if hw % 128 == 0 else hw)
    rb = hw
    for cand in (512, 256, 128, 64, 32, 16, 8):
        if hw % cand == 0:
            rb = cand
            break
    vmem_limit = int(min(max(32 * 1024 * 1024, cap * 7 // 8), 100 * 1024 * 1024))
    return tp, rb, vmem_limit


def _build(mode, single_buffer, b, c, h, w, hw, num, k, tp, rb, temperature, vmem_limit):
    kern = functools.partial(_evaluate_kernel, mode=mode, h=h, w=w, hw=hw, tp=tp,
                             c=c, num=num, k=k, rb=rb, temperature=temperature)
    right_kwargs = {}
    if single_buffer:
        # right only changes with the batch axis -> single-buffer it to save VMEM.
        right_kwargs = dict(pipeline_mode=pl.Buffered(1))
    in_specs = [
        pl.BlockSpec((1, num, tp), lambda bb, pt: (bb, 0, pt)),   # offset_x
        pl.BlockSpec((1, num, tp), lambda bb, pt: (bb, 0, pt)),   # offset_y
        pl.BlockSpec((1, c, tp), lambda bb, pt: (bb, 0, pt)),     # left  (bf16)
        pl.BlockSpec((c, hw), lambda bb, pt: (0, bb), **right_kwargs),  # right (bf16)
    ]
    out_specs = pl.BlockSpec((1, 3 * k, tp), lambda bb, pt: (bb, 0, pt))
    scratch = [pltpu.VMEM((hw, tp), jnp.float32)] if mode == "onehot" else []
    return pl.pallas_call(
        kern,
        out_shape=jax.ShapeDtypeStruct((b, 3 * k, hw), jnp.float32),
        grid_spec=pltpu.PrefetchScalarGridSpec(
            num_scalar_prefetch=0,
            grid=(b, hw // tp),
            in_specs=in_specs,
            out_specs=out_specs,
            scratch_shapes=scratch,
        ),
        compiler_params=pltpu.CompilerParams(
            dimension_semantics=("parallel", "parallel"),
            vmem_limit_bytes=vmem_limit,
        ),
    )


def _get_fn(cfg, key):
    cache_key = (cfg, key)
    fn = _FN_CACHE.get(cache_key)
    if fn is None:
        mode, single_buffer = cfg
        b, c, h, w, num, k, temperature = key
        hw = h * w
        tp, rb, vmem_limit = _plan(mode, c, hw, num, k)
        fn = jax.jit(_build(mode, single_buffer, b, c, h, w, hw, num, k, tp, rb,
                            temperature, vmem_limit))
        _FN_CACHE[cache_key] = fn
    return fn


def _run_config(cfg, key, ox, oy, left, right):
    return _get_fn(cfg, key)(ox, oy, left, right)


def _corr_close(a_packed, b_packed, k):
    a = a_packed[:, 2 * k:, :]
    b = b_packed[:, 2 * k:, :]
    ok = jnp.all(jnp.isfinite(a)) & (jnp.max(jnp.abs(a - b)) < 5e-3)
    return bool(ok)


def _autotune(key, ox, oy, left, right):
    """Try the fast gather variants first; validate them against the always-correct
    one-hot path; fall back gracefully if the local Mosaic rejects a lowering."""
    k = key[5]
    ref_out = None
    last_err = None
    configs = [(m, sb) for m in _MODES for sb in (True, False)]
    for cfg in configs:
        try:
            out = jax.block_until_ready(_run_config(cfg, key, ox, oy, left, right))
        except Exception as e:                # unsupported lowering -> next variant
            last_err = e
            continue
        if cfg[0] == "onehot":
            return out, cfg
        if ref_out is None:
            try:
                ref_out = jax.block_until_ready(
                    _run_config(("onehot", False), key, ox, oy, left, right))
            except Exception:
                return out, cfg               # no reference available; accept
        if _corr_close(out, ref_out, k):
            return out, cfg
    if ref_out is not None:
        return ref_out, ("onehot", False)
    raise last_err if last_err is not None else RuntimeError("no working kernel config")


# --------------------------------------------------------------------------- #
# Public wrapper (Evaluate.forward)
# --------------------------------------------------------------------------- #
def evaluate(left_features, right_features, offset_x, offset_y, temperature):
    """left_features: (B, C, H*W); right_features: (C, B*H*W);
    offset_x/offset_y: (B, num, H, W) float.
    Returns (offset_x, offset_y, corr) with shapes (B, num//3, H, W) x2 and
    (B, num//3, H*W), matching the PyTorch module."""
    b, num, h, w = offset_x.shape
    c = left_features.shape[1]
    hw = h * w
    if hw >= (1 << 24):
        raise ValueError("H*W must stay below 2**24 for exact f32 index arithmetic")
    k = num // FILTER_SIZE

    ox = offset_x.reshape(b, num, hw).astype(jnp.float32)     # free reshape
    oy = offset_y.reshape(b, num, hw).astype(jnp.float32)
    left = left_features.astype(jnp.bfloat16)                 # halve HBM->VMEM DMA
    right = right_features.astype(jnp.bfloat16)

    key = (b, c, h, w, num, k, float(temperature))
    if key in _CONFIG_CACHE:
        packed = _run_config(_CONFIG_CACHE[key], key, ox, oy, left, right)
    else:
        packed, cfg = _autotune(key, ox, oy, left, right)
        _CONFIG_CACHE[key] = cfg

    offx = packed[:, :k, :].reshape(b, k, h, w)
    offy = packed[:, k:2 * k, :].reshape(b, k, h, w)
    corr = packed[:, 2 * k:, :]
    return offx, offy, corr


# --------------------------------------------------------------------------- #
# Self-test
# --------------------------------------------------------------------------- #
if __name__ == "__main__":
    B, C, H, W = 2, 4, 16, 16
    NUM = 9                       # filter_size ** 2 candidate offsets
    TEMPERATURE = 1.0
    HW = H * W
    K = NUM // FILTER_SIZE

    key = jax.random.PRNGKey(0)
    k1, k2, k3, k4 = jax.random.split(key, 4)
    left = jax.random.normal(k1, (B, C, HW), jnp.float32)
    right = jax.random.normal(k2, (C, B * HW), jnp.float32)
    off_x = jax.random.randint(k3, (B, NUM, H, W), -2, 3).astype(jnp.float32)
    off_y = jax.random.randint(k4, (B, NUM, H, W), -2, 3).astype(jnp.float32)

    ox_o, oy_o, corr = jax.block_until_ready(
        evaluate(left, right, off_x, off_y, TEMPERATURE))
    assert ox_o.shape == (B, K, H, W)
    assert oy_o.shape == (B, K, H, W)
    assert corr.shape == (B, K, HW)

    # ---------------- pure-JAX reference (tie-robust verification) ----------------
    # The kernel consumes bf16 features, so the reference uses the identically
    # quantised inputs (upcast to f32 for the math).
    left_q = left.astype(jnp.bfloat16).astype(jnp.float32)
    right_q = right.astype(jnp.bfloat16).astype(jnp.float32)

    def offset_to_inds(offset_x, offset_y):
        _, _, h, w = offset_x.shape
        bx = jnp.arange(h, dtype=offset_x.dtype).reshape(1, 1, h, 1)
        by = jnp.arange(w, dtype=offset_x.dtype).reshape(1, 1, 1, w)
        xs = jnp.clip(bx + offset_x, 0, h - 1)
        ys = jnp.clip(by + offset_y, 0, w - 1)
        return xs * w + ys

    inds_ref = offset_to_inds(off_x, off_y).reshape(B, NUM, HW).astype(jnp.int32)
    right_b = jnp.transpose(right_q.reshape(C, B, HW), (1, 0, 2))          # (B, C, HW)
    gathered = jax.vmap(lambda r, i: r[:, i])(right_b, inds_ref)           # (B, C, NUM, HW)
    cost_ref = jnp.einsum("bcp,bcnp->bnp", left_q, gathered,
                          precision="highest") / TEMPERATURE
    probs_ref = jax.nn.softmax(cost_ref, axis=1)                           # (B, NUM, HW)
    vals_ref, _ = lax.top_k(jnp.transpose(probs_ref, (0, 2, 1)), K)        # (B, HW, K)
    vals_ref = jnp.transpose(vals_ref, (0, 2, 1))                          # (B, K, HW)

    # 1) top-k probabilities match (tie-safe: equal values either way).
    np.testing.assert_allclose(np.asarray(corr), np.asarray(vals_ref),
                               atol=2e-3, rtol=2e-3)

    # 2) emitted offsets point at genuine candidates whose reference probability
    #    equals the emitted corr (robust to top-k tie-breaking differences).
    bx = (jnp.arange(HW, dtype=jnp.float32) // W).reshape(1, 1, HW)
    by = (jnp.arange(HW, dtype=jnp.float32) % W).reshape(1, 1, HW)
    sel_ind = jnp.round((ox_o.reshape(B, K, HW) + bx) * W
                        + (oy_o.reshape(B, K, HW) + by)).astype(jnp.int32)  # (B, K, HW)
    match = inds_ref[:, None, :, :] == sel_ind[:, :, None, :]               # (B, K, NUM, HW)
    assert bool(jnp.all(jnp.any(match, axis=2)))
    prob_at = jnp.max(jnp.where(match, probs_ref[:, None, :, :], -1.0), axis=2)
    np.testing.assert_allclose(np.asarray(prob_at), np.asarray(corr),
                               atol=2e-3, rtol=2e-3)

    print("KERNEL_OK")
</pallas_src>

<mosaic_0001>
module attributes {stable_mosaic.version = 11 : i64} {
  func.func @_evaluate_kernel(%arg0: i32, %arg1: i32, %arg2: memref<1x9x256xf32, #tpu.memory_space<vmem>>, %arg3: memref<1x9x256xf32, #tpu.memory_space<vmem>>, %arg4: memref<1x4x256xbf16, #tpu.memory_space<vmem>>, %arg5: memref<4x256xbf16, #tpu.memory_space<vmem>>, %arg6: memref<1x9x256xf32, #tpu.memory_space<vmem>>) attributes {dimension_semantics = [#tpu.dimension_semantics<parallel>, #tpu.dimension_semantics<parallel>], iteration_bounds = array<i64: 2, 1>, scalar_prefetch = 0 : i64, scratch_operands = 0 : i64, tpu.core_type = #tpu.core_type<tc>, window_params = [{transform_indices = @transform_0, window_bounds = array<i64: 1, 9, 256>}, {transform_indices = @transform_1, window_bounds = array<i64: 1, 9, 256>}, {transform_indices = @transform_2, window_bounds = array<i64: 1, 4, 256>}, {pipeline_mode = #tpu.pipeline_mode<synchronous>, transform_indices = @transform_3, window_bounds = array<i64: 4, 256>}, {transform_indices = @transform_4, window_bounds = array<i64: 1, 9, 256>}]} {
    %c0 = arith.constant 0 : index
    %c0_0 = arith.constant 0 : index
    %c0_1 = arith.constant 0 : index
    %0 = vector.load %arg2[%c0, %c0_0, %c0_1] : memref<1x9x256xf32, #tpu.memory_space<vmem>>, vector<1x9x256xf32>
    %1 = vector.shape_cast %0 : vector<1x9x256xf32> to vector<9x256xf32>
    %c0_2 = arith.constant 0 : index
    %c0_3 = arith.constant 0 : index
    %c0_4 = arith.constant 0 : index
    %2 = vector.load %arg3[%c0_2, %c0_3, %c0_4] : memref<1x9x256xf32, #tpu.memory_space<vmem>>, vector<1x9x256xf32>
    %3 = vector.shape_cast %2 : vector<1x9x256xf32> to vector<9x256xf32>
    %c256_i32 = arith.constant 256 : i32
    %4 = arith.muli %arg1, %c256_i32 : i32
    %5 = tpu.iota {dimensions = array<i32: 1>} : vector<1x256xi32>
    %6 = vector.broadcast %4 : i32 to vector<1x256xi32>
    %7 = arith.addi %6, %5 : vector<1x256xi32>
    %8 = arith.sitofp %7 : vector<1x256xi32> to vector<1x256xf32>
    %cst = arith.constant 1.600000e+01 : f32
    %9 = vector.broadcast %cst : f32 to vector<1x256xf32>
    %10 = arith.divf %8, %9 : vector<1x256xf32>
    %11 = math.floor %10 : vector<1x256xf32>
    %cst_5 = arith.constant 1.600000e+01 : f32
    %12 = vector.broadcast %cst_5 : f32 to vector<1x256xf32>
    %13 = arith.mulf %11, %12 : vector<1x256xf32>
    %14 = arith.subf %8, %13 : vector<1x256xf32>
    %15 = vector.broadcast %11 : vector<1x256xf32> to vector<9x256xf32>
    %16 = arith.addf %15, %1 : vector<9x256xf32>
    %cst_6 = arith.constant 0.000000e+00 : f32
    %cst_7 = arith.constant 1.500000e+01 : f32
    %17 = vector.broadcast %cst_6 : f32 to vector<9x256xf32>
    %18 = arith.maximumf %17, %16 : vector<9x256xf32>
    %19 = vector.broadcast %cst_7 : f32 to vector<9x256xf32>
    %20 = arith.minimumf %19, %18 : vector<9x256xf32>
    %21 = vector.broadcast %14 : vector<1x256xf32> to vector<9x256xf32>
    %22 = arith.addf %21, %3 : vector<9x256xf32>
    %cst_8 = arith.constant 0.000000e+00 : f32
    %cst_9 = arith.constant 1.500000e+01 : f32
    %23 = vector.broadcast %cst_8 : f32 to vector<9x256xf32>
    %24 = arith.maximumf %23, %22 : vector<9x256xf32>
    %25 = vector.broadcast %cst_9 : f32 to vector<9x256xf32>
    %26 = arith.minimumf %25, %24 : vector<9x256xf32>
    %cst_10 = arith.constant 1.600000e+01 : f32
    %27 = vector.broadcast %cst_10 : f32 to vector<9x256xf32>
    %28 = arith.mulf %20, %27 : vector<9x256xf32>
    %29 = arith.addf %28, %26 : vector<9x256xf32>
    %30 = math.floor %29 : vector<9x256xf32>
    %31 = arith.fptosi %30 : vector<9x256xf32> to vector<9x256xi32>
    %c0_11 = arith.constant 0 : index
    %c0_12 = arith.constant 0 : index
    %c0_13 = arith.constant 0 : index
    %32 = vector.load %arg4[%c0_11, %c0_12, %c0_13] : memref<1x4x256xbf16, #tpu.memory_space<vmem>>, vector<1x4x256xbf16>
    %33 = vector.shape_cast %32 : vector<1x4x256xbf16> to vector<4x256xbf16>
    %34 = arith.extf %33 : vector<4x256xbf16> to vector<4x256xf32>
    %c0_14 = arith.constant 0 : index
    %c0_15 = arith.constant 0 : index
    %35 = vector.load %arg5[%c0_14, %c0_15] : memref<4x256xbf16, #tpu.memory_space<vmem>>, vector<4x256xbf16>
    %36 = arith.extf %35 : vector<4x256xbf16> to vector<4x256xf32>
    %37 = vector.extract_strided_slice %31 {offsets = [0, 0], sizes = [1, 256], strides = [1, 1]} : vector<9x256xi32> to vector<1x256xi32>
    %38 = vector.shape_cast %37 : vector<1x256xi32> to vector<1x256xi32>
    %39 = vector.broadcast %38 : vector<1x256xi32> to vector<4x256xi32>
    %c0_i32 = arith.constant 0 : i32
    %40 = vector.broadcast %c0_i32 : i32 to vector<4x256xi32>
    %41 = arith.cmpi slt, %39, %40 : vector<4x256xi32>
    %c256_i32_16 = arith.constant 256 : i32
    %42 = vector.broadcast %c256_i32_16 : i32 to vector<4x256xi32>
    %43 = arith.addi %39, %42 : vector<4x256xi32>
    %44 = arith.select %41, %43, %39 : vector<4x256xi1>, vector<4x256xi32>
    %45 = vector.shape_cast %44 : vector<4x256xi32> to vector<4x256x1xi32>
    %46 = vector.shape_cast %45 : vector<4x256x1xi32> to vector<4x256xi32>
    %47 = tpu.dynamic_gather %36[%46] in [1] : vector<4x256xf32>, vector<4x256xi32> -> vector<4x256xf32>
    %48 = arith.mulf %34, %47 : vector<4x256xf32>
    %cst_17 = arith.constant dense<0.000000e+00> : vector<256xf32>
    %49 = vector.multi_reduction <add>, %48, %cst_17 [0] : vector<4x256xf32> to vector<256xf32>
    %50 = vector.shape_cast %49 : vector<256xf32> to vector<1x256xf32>
    %51 = vector.extract_strided_slice %31 {offsets = [1, 0], sizes = [1, 256], strides = [1, 1]} : vector<9x256xi32> to vector<1x256xi32>
    %52 = vector.shape_cast %51 : vector<1x256xi32> to vector<1x256xi32>
    %53 = vector.broadcast %52 : vector<1x256xi32> to vector<4x256xi32>
    %c0_i32_18 = arith.constant 0 : i32
    %54 = vector.broadcast %c0_i32_18 : i32 to vector<4x256xi32>
    %55 = arith.cmpi slt, %53, %54 : vector<4x256xi32>
    %c256_i32_19 = arith.constant 256 : i32
    %56 = vector.broadcast %c256_i32_19 : i32 to vector<4x256xi32>
    %57 = arith.addi %53, %56 : vector<4x256xi32>
    %58 = arith.select %55, %57, %53 : vector<4x256xi1>, vector<4x256xi32>
    %59 = vector.shape_cast %58 : vector<4x256xi32> to vector<4x256x1xi32>
    %60 = vector.shape_cast %59 : vector<4x256x1xi32> to vector<4x256xi32>
    %61 = tpu.dynamic_gather %36[%60] in [1] : vector<4x256xf32>, vector<4x256xi32> -> vector<4x256xf32>
    %62 = arith.mulf %34, %61 : vector<4x256xf32>
    %cst_20 = arith.constant dense<0.000000e+00> : vector<256xf32>
    %63 = vector.multi_reduction <add>, %62, %cst_20 [0] : vector<4x256xf32> to vector<256xf32>
    %64 = vector.shape_cast %63 : vector<256xf32> to vector<1x256xf32>
    %65 = vector.extract_strided_slice %31 {offsets = [2, 0], sizes = [1, 256], strides = [1, 1]} : vector<9x256xi32> to vector<1x256xi32>
    %66 = vector.shape_cast %65 : vector<1x256xi32> to vector<1x256xi32>
    %67 = vector.broadcast %66 : vector<1x256xi32> to vector<4x256xi32>
    %c0_i32_21 = arith.constant 0 : i32
    %68 = vector.broadcast %c0_i32_21 : i32 to vector<4x256xi32>
    %69 = arith.cmpi slt, %67, %68 : vector<4x256xi32>
    %c256_i32_22 = arith.constant 256 : i32
    %70 = vector.broadcast %c256_i32_22 : i32 to vector<4x256xi32>
    %71 = arith.addi %67, %70 : vector<4x256xi32>
    %72 = arith.select %69, %71, %67 : vector<4x256xi1>, vector<4x256xi32>
    %73 = vector.shape_cast %72 : vector<4x256xi32> to vector<4x256x1xi32>
    %74 = vector.shape_cast %73 : vector<4x256x1xi32> to vector<4x256xi32>
    %75 = tpu.dynamic_gather %36[%74] in [1] : vector<4x256xf32>, vector<4x256xi32> -> vector<4x256xf32>
    %76 = arith.mulf %34, %75 : vector<4x256xf32>
    %cst_23 = arith.constant dense<0.000000e+00> : vector<256xf32>
    %77 = vector.multi_reduction <add>, %76, %cst_23 [0] : vector<4x256xf32> to vector<256xf32>
    %78 = vector.shape_cast %77 : vector<256xf32> to vector<1x256xf32>
    %79 = vector.extract_strided_slice %31 {offsets = [3, 0], sizes = [1, 256], strides = [1, 1]} : vector<9x256xi32> to vector<1x256xi32>
    %80 = vector.shape_cast %79 : vector<1x256xi32> to vector<1x256xi32>
    %81 = vector.broadcast %80 : vector<1x256xi32> to vector<4x256xi32>
    %c0_i32_24 = arith.constant 0 : i32
    %82 = vector.broadcast %c0_i32_24 : i32 to vector<4x256xi32>
    %83 = arith.cmpi slt, %81, %82 : vector<4x256xi32>
    %c256_i32_25 = arith.constant 256 : i32
    %84 = vector.broadcast %c256_i32_25 : i32 to vector<4x256xi32>
    %85 = arith.addi %81, %84 : vector<4x256xi32>
    %86 = arith.select %83, %85, %81 : vector<4x256xi1>, vector<4x256xi32>
    %87 = vector.shape_cast %86 : vector<4x256xi32> to vector<4x256x1xi32>
    %88 = vector.shape_cast %87 : vector<4x256x1xi32> to vector<4x256xi32>
    %89 = tpu.dynamic_gather %36[%88] in [1] : vector<4x256xf32>, vector<4x256xi32> -> vector<4x256xf32>
    %90 = arith.mulf %34, %89 : vector<4x256xf32>
    %cst_26 = arith.constant dense<0.000000e+00> : vector<256xf32>
    %91 = vector.multi_reduction <add>, %90, %cst_26 [0] : vector<4x256xf32> to vector<256xf32>
    %92 = vector.shape_cast %91 : vector<256xf32> to vector<1x256xf32>
    %93 = vector.extract_strided_slice %31 {offsets = [4, 0], sizes = [1, 256], strides = [1, 1]} : vector<9x256xi32> to vector<1x256xi32>
    %94 = vector.shape_cast %93 : vector<1x256xi32> to vector<1x256xi32>
    %95 = vector.broadcast %94 : vector<1x256xi32> to vector<4x256xi32>
    %c0_i32_27 = arith.constant 0 : i32
    %96 = vector.broadcast %c0_i32_27 : i32 to vector<4x256xi32>
    %97 = arith.cmpi slt, %95, %96 : vector<4x256xi32>
    %c256_i32_28 = arith.constant 256 : i32
    %98 = vector.broadcast %c256_i32_28 : i32 to vector<4x256xi32>
    %99 = arith.addi %95, %98 : vector<4x256xi32>
    %100 = arith.select %97, %99, %95 : vector<4x256xi1>, vector<4x256xi32>
    %101 = vector.shape_cast %100 : vector<4x256xi32> to vector<4x256x1xi32>
    %102 = vector.shape_cast %101 : vector<4x256x1xi32> to vector<4x256xi32>
    %103 = tpu.dynamic_gather %36[%102] in [1] : vector<4x256xf32>, vector<4x256xi32> -> vector<4x256xf32>
    %104 = arith.mulf %34, %103 : vector<4x256xf32>
    %cst_29 = arith.constant dense<0.000000e+00> : vector<256xf32>
    %105 = vector.multi_reduction <add>, %104, %cst_29 [0] : vector<4x256xf32> to vector<256xf32>
    %106 = vector.shape_cast %105 : vector<256xf32> to vector<1x256xf32>
    %107 = vector.extract_strided_slice %31 {offsets = [5, 0], sizes = [1, 256], strides = [1, 1]} : vector<9x256xi32> to vector<1x256xi32>
    %108 = vector.shape_cast %107 : vector<1x256xi32> to vector<1x256xi32>
    %109 = vector.broadcast %108 : vector<1x256xi32> to vector<4x256xi32>
    %c0_i32_30 = arith.constant 0 : i32
    %110 = vector.broadcast %c0_i32_30 : i32 to vector<4x256xi32>
    %111 = arith.cmpi slt, %109, %110 : vector<4x256xi32>
    %c256_i32_31 = arith.constant 256 : i32
    %112 = vector.broadcast %c256_i32_31 : i32 to vector<4x256xi32>
    %113 = arith.addi %109, %112 : vector<4x256xi32>
    %114 = arith.select %111, %113, %109 : vector<4x256xi1>, vector<4x256xi32>
    %115 = vector.shape_cast %114 : vector<4x256xi32> to vector<4x256x1xi32>
    %116 = vector.shape_cast %115 : vector<4x256x1xi32> to vector<4x256xi32>
    %117 = tpu.dynamic_gather %36[%116] in [1] : vector<4x256xf32>, vector<4x256xi32> -> vector<4x256xf32>
    %118 = arith.mulf %34, %117 : vector<4x256xf32>
    %cst_32 = arith.constant dense<0.000000e+00> : vector<256xf32>
    %119 = vector.multi_reduction <add>, %118, %cst_32 [0] : vector<4x256xf32> to vector<256xf32>
    %120 = vector.shape_cast %119 : vector<256xf32> to vector<1x256xf32>
    %121 = vector.extract_strided_slice %31 {offsets = [6, 0], sizes = [1, 256], strides = [1, 1]} : vector<9x256xi32> to vector<1x256xi32>
    %122 = vector.shape_cast %121 : vector<1x256xi32> to vector<1x256xi32>
    %123 = vector.broadcast %122 : vector<1x256xi32> to vector<4x256xi32>
    %c0_i32_33 = arith.constant 0 : i32
    %124 = vector.broadcast %c0_i32_33 : i32 to vector<4x256xi32>
    %125 = arith.cmpi slt, %123, %124 : vector<4x256xi32>
    %c256_i32_34 = arith.constant 256 : i32
    %126 = vector.broadcast %c256_i32_34 : i32 to vector<4x256xi32>
    %127 = arith.addi %123, %126 : vector<4x256xi32>
    %128 = arith.select %125, %127, %123 : vector<4x256xi1>, vector<4x256xi32>
    %129 = vector.shape_cast %128 : vector<4x256xi32> to vector<4x256x1xi32>
    %130 = vector.shape_cast %129 : vector<4x256x1xi32> to vector<4x256xi32>
    %131 = tpu.dynamic_gather %36[%130] in [1] : vector<4x256xf32>, vector<4x256xi32> -> vector<4x256xf32>
    %132 = arith.mulf %34, %131 : vector<4x256xf32>
    %cst_35 = arith.constant dense<0.000000e+00> : vector<256xf32>
    %133 = vector.multi_reduction <add>, %132, %cst_35 [0] : vector<4x256xf32> to vector<256xf32>
    %134 = vector.shape_cast %133 : vector<256xf32> to vector<1x256xf32>
    %135 = vector.extract_strided_slice %31 {offsets = [7, 0], sizes = [1, 256], strides = [1, 1]} : vector<9x256xi32> to vector<1x256xi32>
    %136 = vector.shape_cast %135 : vector<1x256xi32> to vector<1x256xi32>
    %137 = vector.broadcast %136 : vector<1x256xi32> to vector<4x256xi32>
    %c0_i32_36 = arith.constant 0 : i32
    %138 = vector.broadcast %c0_i32_36 : i32 to vector<4x256xi32>
    %139 = arith.cmpi slt, %137, %138 : vector<4x256xi32>
    %c256_i32_37 = arith.constant 256 : i32
    %140 = vector.broadcast %c256_i32_37 : i32 to vector<4x256xi32>
    %141 = arith.addi %137, %140 : vector<4x256xi32>
    %142 = arith.select %139, %141, %137 : vector<4x256xi1>, vector<4x256xi32>
    %143 = vector.shape_cast %142 : vector<4x256xi32> to vector<4x256x1xi32>
    %144 = vector.shape_cast %143 : vector<4x256x1xi32> to vector<4x256xi32>
    %145 = tpu.dynamic_gather %36[%144] in [1] : vector<4x256xf32>, vector<4x256xi32> -> vector<4x256xf32>
    %146 = arith.mulf %34, %145 : vector<4x256xf32>
    %cst_38 = arith.constant dense<0.000000e+00> : vector<256xf32>
    %147 = vector.multi_reduction <add>, %146, %cst_38 [0] : vector<4x256xf32> to vector<256xf32>
    %148 = vector.shape_cast %147 : vector<256xf32> to vector<1x256xf32>
    %149 = vector.extract_strided_slice %31 {offsets = [8, 0], sizes = [1, 256], strides = [1, 1]} : vector<9x256xi32> to vector<1x256xi32>
    %150 = vector.shape_cast %149 : vector<1x256xi32> to vector<1x256xi32>
    %151 = vector.broadcast %150 : vector<1x256xi32> to vector<4x256xi32>
    %c0_i32_39 = arith.constant 0 : i32
    %152 = vector.broadcast %c0_i32_39 : i32 to vector<4x256xi32>
    %153 = arith.cmpi slt, %151, %152 : vector<4x256xi32>
    %c256_i32_40 = arith.constant 256 : i32
    %154 = vector.broadcast %c256_i32_40 : i32 to vector<4x256xi32>
    %155 = arith.addi %151, %154 : vector<4x256xi32>
    %156 = arith.select %153, %155, %151 : vector<4x256xi1>, vector<4x256xi32>
    %157 = vector.shape_cast %156 : vector<4x256xi32> to vector<4x256x1xi32>
    %158 = vector.shape_cast %157 : vector<4x256x1xi32> to vector<4x256xi32>
    %159 = tpu.dynamic_gather %36[%158] in [1] : vector<4x256xf32>, vector<4x256xi32> -> vector<4x256xf32>
    %160 = arith.mulf %34, %159 : vector<4x256xf32>
    %cst_41 = arith.constant dense<0.000000e+00> : vector<256xf32>
    %161 = vector.multi_reduction <add>, %160, %cst_41 [0] : vector<4x256xf32> to vector<256xf32>
    %162 = vector.shape_cast %161 : vector<256xf32> to vector<1x256xf32>
    %163 = tpu.concatenate %50, %64, %78, %92, %106, %120, %134, %148, %162 in 0 : vector<1x256xf32>, vector<1x256xf32>, vector<1x256xf32>, vector<1x256xf32>, vector<1x256xf32>, vector<1x256xf32>, vector<1x256xf32>, vector<1x256xf32>, vector<1x256xf32> -> vector<9x256xf32>
    %cst_42 = arith.constant 1.000000e+00 : f32
    %164 = vector.broadcast %cst_42 : f32 to vector<9x256xf32>
    %165 = arith.mulf %163, %164 : vector<9x256xf32>
    %cst_43 = arith.constant dense<0xFF800000> : vector<256xf32>
    %166 = vector.multi_reduction <maximumf>, %165, %cst_43 [0] : vector<9x256xf32> to vector<256xf32>
    %167 = vector.shape_cast %166 : vector<256xf32> to vector<1x256xf32>
    %168 = vector.broadcast %167 : vector<1x256xf32> to vector<9x256xf32>
    %169 = arith.subf %165, %168 : vector<9x256xf32>
    %170 = math.exp %169 : vector<9x256xf32>
    %cst_44 = arith.constant dense<0.000000e+00> : vector<256xf32>
    %171 = vector.multi_reduction <add>, %170, %cst_44 [0] : vector<9x256xf32> to vector<256xf32>
    %172 = vector.shape_cast %171 : vector<256xf32> to vector<1x256xf32>
    %173 = tpu.reciprocal %172 {approx = true} : vector<1x256xf32> -> vector<1x256xf32>
    %174 = vector.broadcast %173 : vector<1x256xf32> to vector<9x256xf32>
    %175 = arith.mulf %170, %174 : vector<9x256xf32>
    %176 = tpu.iota {dimensions = array<i32: 0>} : vector<9x256xi32>
    %177 = arith.sitofp %176 : vector<9x256xi32> to vector<9x256xf32>
    %cst_45 = arith.constant 8.000000e+00 : f32
    %178 = vector.broadcast %cst_45 : f32 to vector<9x256xf32>
    %179 = arith.subf %178, %177 : vector<9x256xf32>
    %cst_46 = arith.constant dense<0xFF800000> : vector<256xf32>
    %180 = vector.multi_reduction <maximumf>, %165, %cst_46 [0] : vector<9x256xf32> to vector<256xf32>
    %181 = vector.shape_cast %180 : vector<256xf32> to vector<1x256xf32>
    %182 = vector.broadcast %181 : vector<1x256xf32> to vector<9x256xf32>
    %183 = arith.cmpf oeq, %165, %182 : vector<9x256xf32>
    %cst_47 = arith.constant -1.000000e+00 : f32
    %184 = vector.broadcast %cst_47 : f32 to vector<9x256xf32>
    %185 = arith.select %183, %179, %184 : vector<9x256xi1>, vector<9x256xf32>
    %cst_48 = arith.constant dense<0xFF800000> : vector<256xf32>
    %186 = vector.multi_reduction <maximumf>, %185, %cst_48 [0] : vector<9x256xf32> to vector<256xf32>
    %187 = vector.shape_cast %186 : vector<256xf32> to vector<1x256xf32>
    %188 = vector.broadcast %187 : vector<1x256xf32> to vector<9x256xf32>
    %189 = arith.cmpf oeq, %179, %188 : vector<9x256xf32>
    %cst_49 = arith.constant 0.000000e+00 : f32
    %190 = vector.broadcast %cst_49 : f32 to vector<9x256xf32>
    %191 = arith.select %189, %175, %190 : vector<9x256xi1>, vector<9x256xf32>
    %cst_50 = arith.constant dense<0.000000e+00> : vector<256xf32>
    %192 = vector.multi_reduction <add>, %191, %cst_50 [0] : vector<9x256xf32> to vector<256xf32>
    %193 = vector.shape_cast %192 : vector<256xf32> to vector<1x256xf32>
    %cst_51 = arith.constant 0.000000e+00 : f32
    %194 = vector.broadcast %cst_51 : f32 to vector<9x256xf32>
    %195 = arith.select %189, %30, %194 : vector<9x256xi1>, vector<9x256xf32>
    %cst_52 = arith.constant dense<0.000000e+00> : vector<256xf32>
    %196 = vector.multi_reduction <add>, %195, %cst_52 [0] : vector<9x256xf32> to vector<256xf32>
    %197 = vector.shape_cast %196 : vector<256xf32> to vector<1x256xf32>
    %cst_53 = arith.constant 0xFF800000 : f32
    %198 = vector.broadcast %cst_53 : f32 to vector<9x256xf32>
    %199 = arith.select %189, %198, %165 : vector<9x256xi1>, vector<9x256xf32>
    %cst_54 = arith.constant dense<0xFF800000> : vector<256xf32>
    %200 = vector.multi_reduction <maximumf>, %199, %cst_54 [0] : vector<9x256xf32> to vector<256xf32>
    %201 = vector.shape_cast %200 : vector<256xf32> to vector<1x256xf32>
    %202 = vector.broadcast %201 : vector<1x256xf32> to vector<9x256xf32>
    %203 = arith.cmpf oeq, %199, %202 : vector<9x256xf32>
    %cst_55 = arith.constant -1.000000e+00 : f32
    %204 = vector.broadcast %cst_55 : f32 to vector<9x256xf32>
    %205 = arith.select %203, %179, %204 : vector<9x256xi1>, vector<9x256xf32>
    %cst_56 = arith.constant dense<0xFF800000> : vector<256xf32>
    %206 = vector.multi_reduction <maximumf>, %205, %cst_56 [0] : vector<9x256xf32> to vector<256xf32>
    %207 = vector.shape_cast %206 : vector<256xf32> to vector<1x256xf32>
    %208 = vector.broadcast %207 : vector<1x256xf32> to vector<9x256xf32>
    %209 = arith.cmpf oeq, %179, %208 : vector<9x256xf32>
    %cst_57 = arith.constant 0.000000e+00 : f32
    %210 = vector.broadcast %cst_57 : f32 to vector<9x256xf32>
    %211 = arith.select %209, %175, %210 : vector<9x256xi1>, vector<9x256xf32>
    %cst_58 = arith.constant dense<0.000000e+00> : vector<256xf32>
    %212 = vector.multi_reduction <add>, %211, %cst_58 [0] : vector<9x256xf32> to vector<256xf32>
    %213 = vector.shape_cast %212 : vector<256xf32> to vector<1x256xf32>
    %cst_59 = arith.constant 0.000000e+00 : f32
    %214 = vector.broadcast %cst_59 : f32 to vector<9x256xf32>
    %215 = arith.select %209, %30, %214 : vector<9x256xi1>, vector<9x256xf32>
    %cst_60 = arith.constant dense<0.000000e+00> : vector<256xf32>
    %216 = vector.multi_reduction <add>, %215, %cst_60 [0] : vector<9x256xf32> to vector<256xf32>
    %217 = vector.shape_cast %216 : vector<256xf32> to vector<1x256xf32>
    %cst_61 = arith.constant 0xFF800000 : f32
    %218 = vector.broadcast %cst_61 : f32 to vector<9x256xf32>
    %219 = arith.select %209, %218, %199 : vector<9x256xi1>, vector<9x256xf32>
    %cst_62 = arith.constant dense<0xFF800000> : vector<256xf32>
    %220 = vector.multi_reduction <maximumf>, %219, %cst_62 [0] : vector<9x256xf32> to vector<256xf32>
    %221 = vector.shape_cast %220 : vector<256xf32> to vector<1x256xf32>
    %222 = vector.broadcast %221 : vector<1x256xf32> to vector<9x256xf32>
    %223 = arith.cmpf oeq, %219, %222 : vector<9x256xf32>
    %cst_63 = arith.constant -1.000000e+00 : f32
    %224 = vector.broadcast %cst_63 : f32 to vector<9x256xf32>
    %225 = arith.select %223, %179, %224 : vector<9x256xi1>, vector<9x256xf32>
    %cst_64 = arith.constant dense<0xFF800000> : vector<256xf32>
    %226 = vector.multi_reduction <maximumf>, %225, %cst_64 [0] : vector<9x256xf32> to vector<256xf32>
    %227 = vector.shape_cast %226 : vector<256xf32> to vector<1x256xf32>
    %228 = vector.broadcast %227 : vector<1x256xf32> to vector<9x256xf32>
    %229 = arith.cmpf oeq, %179, %228 : vector<9x256xf32>
    %cst_65 = arith.constant 0.000000e+00 : f32
    %230 = vector.broadcast %cst_65 : f32 to vector<9x256xf32>
    %231 = arith.select %229, %175, %230 : vector<9x256xi1>, vector<9x256xf32>
    %cst_66 = arith.constant dense<0.000000e+00> : vector<256xf32>
    %232 = vector.multi_reduction <add>, %231, %cst_66 [0] : vector<9x256xf32> to vector<256xf32>
    %233 = vector.shape_cast %232 : vector<256xf32> to vector<1x256xf32>
    %cst_67 = arith.constant 0.000000e+00 : f32
    %234 = vector.broadcast %cst_67 : f32 to vector<9x256xf32>
    %235 = arith.select %229, %30, %234 : vector<9x256xi1>, vector<9x256xf32>
    %cst_68 = arith.constant dense<0.000000e+00> : vector<256xf32>
    %236 = vector.multi_reduction <add>, %235, %cst_68 [0] : vector<9x256xf32> to vector<256xf32>
    %237 = vector.shape_cast %236 : vector<256xf32> to vector<1x256xf32>
    %238 = tpu.concatenate %193, %213, %233 in 0 : vector<1x256xf32>, vector<1x256xf32>, vector<1x256xf32> -> vector<3x256xf32>
    %239 = tpu.concatenate %197, %217, %237 in 0 : vector<1x256xf32>, vector<1x256xf32>, vector<1x256xf32> -> vector<3x256xf32>
    %cst_69 = arith.constant 1.600000e+01 : f32
    %240 = vector.broadcast %cst_69 : f32 to vector<3x256xf32>
    %241 = arith.divf %239, %240 : vector<3x256xf32>
    %242 = math.floor %241 : vector<3x256xf32>
    %cst_70 = arith.constant 1.600000e+01 : f32
    %243 = vector.broadcast %cst_70 : f32 to vector<3x256xf32>
    %244 = arith.mulf %242, %243 : vector<3x256xf32>
    %245 = arith.subf %239, %244 : vector<3x256xf32>
    %246 = vector.broadcast %11 : vector<1x256xf32> to vector<3x256xf32>
    %247 = arith.subf %242, %246 : vector<3x256xf32>
    %248 = vector.broadcast %14 : vector<1x256xf32> to vector<3x256xf32>
    %249 = arith.subf %245, %248 : vector<3x256xf32>
    %250 = tpu.concatenate %247, %249, %238 in 0 : vector<3x256xf32>, vector<3x256xf32>, vector<3x256xf32> -> vector<9x256xf32>
    %c0_71 = arith.constant 0 : index
    %c0_72 = arith.constant 0 : index
    %c0_73 = arith.constant 0 : index
    %251 = vector.load %arg6[%c0_71, %c0_72, %c0_73] : memref<1x9x256xf32, #tpu.memory_space<vmem>>, vector<1x9x256xf32>
    %252 = vector.shape_cast %251 : vector<1x9x256xf32> to vector<9x256xf32>
    %253 = vector.shape_cast %250 : vector<9x256xf32> to vector<1x9x256xf32>
    tpu.vector_store %arg6[%c0_71, %c0_72, %c0_73], %253 {strides = array<i32>} : memref<1x9x256xf32, #tpu.memory_space<vmem>>, vector<1x9x256xf32>,
    return
  }
  func.func @transform_0(%arg0: i32, %arg1: i32) -> (i32, i32, i32) {
    %c0_i32 = arith.constant 0 : i32
    %c0_i32_0 = arith.constant 0 : i32
    return %arg0, %c0_i32, %arg1 : i32, i32, i32
  }
  func.func @transform_1(%arg0: i32, %arg1: i32) -> (i32, i32, i32) {
    %c0_i32 = arith.constant 0 : i32
    %c0_i32_0 = arith.constant 0 : i32
    return %arg0, %c0_i32, %arg1 : i32, i32, i32
  }
  func.func @transform_2(%arg0: i32, %arg1: i32) -> (i32, i32, i32) {
    %c0_i32 = arith.constant 0 : i32
    %c0_i32_0 = arith.constant 0 : i32
    return %arg0, %c0_i32, %arg1 : i32, i32, i32
  }
  func.func @transform_3(%arg0: i32, %arg1: i32) -> (i32, i32) {
    %c0_i32 = arith.constant 0 : i32
    %c0_i32_0 = arith.constant 0 : i32
    return %c0_i32, %arg0 : i32, i32
  }
  func.func @transform_4(%arg0: i32, %arg1: i32) -> (i32, i32, i32) {
    %c0_i32 = arith.constant 0 : i32
    %c0_i32_0 = arith.constant 0 : i32
    return %arg0, %c0_i32, %arg1 : i32, i32, i32
  }
}

module attributes {stable_mosaic.version = 11 : i64} {
  func.func @_evaluate_kernel(%arg0: i32, %arg1: i32, %arg2: memref<1x9x256xf32, #tpu.memory_space<vmem>>, %arg3: memref<1x9x256xf32, #tpu.memory_space<vmem>>, %arg4: memref<1x4x256xbf16, #tpu.memory_space<vmem>>, %arg5: memref<4x256xbf16, #tpu.memory_space<vmem>>, %arg6: memref<1x9x256xf32, #tpu.memory_space<vmem>>) attributes {dimension_semantics = [#tpu.dimension_semantics<parallel>, #tpu.dimension_semantics<parallel>], iteration_bounds = array<i64: 2, 1>, scalar_prefetch = 0 : i64, scratch_operands = 0 : i64, tpu.core_type = #tpu.core_type<tc>, window_params = [{transform_indices = @transform_0, window_bounds = array<i64: 1, 9, 256>}, {transform_indices = @transform_1, window_bounds = array<i64: 1, 9, 256>}, {transform_indices = @transform_2, window_bounds = array<i64: 1, 4, 256>}, {transform_indices = @transform_3, window_bounds = array<i64: 4, 256>}, {transform_indices = @transform_4, window_bounds = array<i64: 1, 9, 256>}]} {
    %c0 = arith.constant 0 : index
    %c0_0 = arith.constant 0 : index
    %c0_1 = arith.constant 0 : index
    %0 = vector.load %arg2[%c0, %c0_0, %c0_1] : memref<1x9x256xf32, #tpu.memory_space<vmem>>, vector<1x9x256xf32>
    %1 = vector.shape_cast %0 : vector<1x9x256xf32> to vector<9x256xf32>
    %c0_2 = arith.constant 0 : index
    %c0_3 = arith.constant 0 : index
    %c0_4 = arith.constant 0 : index
    %2 = vector.load %arg3[%c0_2, %c0_3, %c0_4] : memref<1x9x256xf32, #tpu.memory_space<vmem>>, vector<1x9x256xf32>
    %3 = vector.shape_cast %2 : vector<1x9x256xf32> to vector<9x256xf32>
    %c256_i32 = arith.constant 256 : i32
    %4 = arith.muli %arg1, %c256_i32 : i32
    %5 = tpu.iota {dimensions = array<i32: 1>} : vector<1x256xi32>
    %6 = vector.broadcast %4 : i32 to vector<1x256xi32>
    %7 = arith.addi %6, %5 : vector<1x256xi32>
    %8 = arith.sitofp %7 : vector<1x256xi32> to vector<1x256xf32>
    %cst = arith.constant 1.600000e+01 : f32
    %9 = vector.broadcast %cst : f32 to vector<1x256xf32>
    %10 = arith.divf %8, %9 : vector<1x256xf32>
    %11 = math.floor %10 : vector<1x256xf32>
    %cst_5 = arith.constant 1.600000e+01 : f32
    %12 = vector.broadcast %cst_5 : f32 to vector<1x256xf32>
    %13 = arith.mulf %11, %12 : vector<1x256xf32>
    %14 = arith.subf %8, %13 : vector<1x256xf32>
    %15 = vector.broadcast %11 : vector<1x256xf32> to vector<9x256xf32>
    %16 = arith.addf %15, %1 : vector<9x256xf32>
    %cst_6 = arith.constant 0.000000e+00 : f32
    %cst_7 = arith.constant 1.500000e+01 : f32
    %17 = vector.broadcast %cst_6 : f32 to vector<9x256xf32>
    %18 = arith.maximumf %17, %16 : vector<9x256xf32>
    %19 = vector.broadcast %cst_7 : f32 to vector<9x256xf32>
    %20 = arith.minimumf %19, %18 : vector<9x256xf32>
    %21 = vector.broadcast %14 : vector<1x256xf32> to vector<9x256xf32>
    %22 = arith.addf %21, %3 : vector<9x256xf32>
    %cst_8 = arith.constant 0.000000e+00 : f32
    %cst_9 = arith.constant 1.500000e+01 : f32
    %23 = vector.broadcast %cst_8 : f32 to vector<9x256xf32>
    %24 = arith.maximumf %23, %22 : vector<9x256xf32>
    %25 = vector.broadcast %cst_9 : f32 to vector<9x256xf32>
    %26 = arith.minimumf %25, %24 : vector<9x256xf32>
    %cst_10 = arith.constant 1.600000e+01 : f32
    %27 = vector.broadcast %cst_10 : f32 to vector<9x256xf32>
    %28 = arith.mulf %20, %27 : vector<9x256xf32>
    %29 = arith.addf %28, %26 : vector<9x256xf32>
    %30 = math.floor %29 : vector<9x256xf32>
    %31 = arith.fptosi %30 : vector<9x256xf32> to vector<9x256xi32>
    %c0_11 = arith.constant 0 : index
    %c0_12 = arith.constant 0 : index
    %c0_13 = arith.constant 0 : index
    %32 = vector.load %arg4[%c0_11, %c0_12, %c0_13] : memref<1x4x256xbf16, #tpu.memory_space<vmem>>, vector<1x4x256xbf16>
    %33 = vector.shape_cast %32 : vector<1x4x256xbf16> to vector<4x256xbf16>
    %34 = arith.extf %33 : vector<4x256xbf16> to vector<4x256xf32>
    %c0_14 = arith.constant 0 : index
    %c0_15 = arith.constant 0 : index
    %35 = vector.load %arg5[%c0_14, %c0_15] : memref<4x256xbf16, #tpu.memory_space<vmem>>, vector<4x256xbf16>
    %36 = arith.extf %35 : vector<4x256xbf16> to vector<4x256xf32>
    %37 = vector.extract_strided_slice %31 {offsets = [0, 0], sizes = [1, 256], strides = [1, 1]} : vector<9x256xi32> to vector<1x256xi32>
    %38 = vector.shape_cast %37 : vector<1x256xi32> to vector<1x256xi32>
    %39 = vector.broadcast %38 : vector<1x256xi32> to vector<4x256xi32>
    %c0_i32 = arith.constant 0 : i32
    %40 = vector.broadcast %c0_i32 : i32 to vector<4x256xi32>
    %41 = arith.cmpi slt, %39, %40 : vector<4x256xi32>
    %c256_i32_16 = arith.constant 256 : i32
    %42 = vector.broadcast %c256_i32_16 : i32 to vector<4x256xi32>
    %43 = arith.addi %39, %42 : vector<4x256xi32>
    %44 = arith.select %41, %43, %39 : vector<4x256xi1>, vector<4x256xi32>
    %45 = vector.shape_cast %44 : vector<4x256xi32> to vector<4x256x1xi32>
    %46 = vector.shape_cast %45 : vector<4x256x1xi32> to vector<4x256xi32>
    %47 = tpu.dynamic_gather %36[%46] in [1] : vector<4x256xf32>, vector<4x256xi32> -> vector<4x256xf32>
    %48 = arith.mulf %34, %47 : vector<4x256xf32>
    %cst_17 = arith.constant dense<0.000000e+00> : vector<256xf32>
    %49 = vector.multi_reduction <add>, %48, %cst_17 [0] : vector<4x256xf32> to vector<256xf32>
    %50 = vector.shape_cast %49 : vector<256xf32> to vector<1x256xf32>
    %51 = vector.extract_strided_slice %31 {offsets = [1, 0], sizes = [1, 256], strides = [1, 1]} : vector<9x256xi32> to vector<1x256xi32>
    %52 = vector.shape_cast %51 : vector<1x256xi32> to vector<1x256xi32>
    %53 = vector.broadcast %52 : vector<1x256xi32> to vector<4x256xi32>
    %c0_i32_18 = arith.constant 0 : i32
    %54 = vector.broadcast %c0_i32_18 : i32 to vector<4x256xi32>
    %55 = arith.cmpi slt, %53, %54 : vector<4x256xi32>
    %c256_i32_19 = arith.constant 256 : i32
    %56 = vector.broadcast %c256_i32_19 : i32 to vector<4x256xi32>
    %57 = arith.addi %53, %56 : vector<4x256xi32>
    %58 = arith.select %55, %57, %53 : vector<4x256xi1>, vector<4x256xi32>
    %59 = vector.shape_cast %58 : vector<4x256xi32> to vector<4x256x1xi32>
    %60 = vector.shape_cast %59 : vector<4x256x1xi32> to vector<4x256xi32>
    %61 = tpu.dynamic_gather %36[%60] in [1] : vector<4x256xf32>, vector<4x256xi32> -> vector<4x256xf32>
    %62 = arith.mulf %34, %61 : vector<4x256xf32>
    %cst_20 = arith.constant dense<0.000000e+00> : vector<256xf32>
    %63 = vector.multi_reduction <add>, %62, %cst_20 [0] : vector<4x256xf32> to vector<256xf32>
    %64 = vector.shape_cast %63 : vector<256xf32> to vector<1x256xf32>
    %65 = vector.extract_strided_slice %31 {offsets = [2, 0], sizes = [1, 256], strides = [1, 1]} : vector<9x256xi32> to vector<1x256xi32>
    %66 = vector.shape_cast %65 : vector<1x256xi32> to vector<1x256xi32>
    %67 = vector.broadcast %66 : vector<1x256xi32> to vector<4x256xi32>
    %c0_i32_21 = arith.constant 0 : i32
    %68 = vector.broadcast %c0_i32_21 : i32 to vector<4x256xi32>
    %69 = arith.cmpi slt, %67, %68 : vector<4x256xi32>
    %c256_i32_22 = arith.constant 256 : i32
    %70 = vector.broadcast %c256_i32_22 : i32 to vector<4x256xi32>
    %71 = arith.addi %67, %70 : vector<4x256xi32>
    %72 = arith.select %69, %71, %67 : vector<4x256xi1>, vector<4x256xi32>
    %73 = vector.shape_cast %72 : vector<4x256xi32> to vector<4x256x1xi32>
    %74 = vector.shape_cast %73 : vector<4x256x1xi32> to vector<4x256xi32>
    %75 = tpu.dynamic_gather %36[%74] in [1] : vector<4x256xf32>, vector<4x256xi32> -> vector<4x256xf32>
    %76 = arith.mulf %34, %75 : vector<4x256xf32>
    %cst_23 = arith.constant dense<0.000000e+00> : vector<256xf32>
    %77 = vector.multi_reduction <add>, %76, %cst_23 [0] : vector<4x256xf32> to vector<256xf32>
    %78 = vector.shape_cast %77 : vector<256xf32> to vector<1x256xf32>
    %79 = vector.extract_strided_slice %31 {offsets = [3, 0], sizes = [1, 256], strides = [1, 1]} : vector<9x256xi32> to vector<1x256xi32>
    %80 = vector.shape_cast %79 : vector<1x256xi32> to vector<1x256xi32>
    %81 = vector.broadcast %80 : vector<1x256xi32> to vector<4x256xi32>
    %c0_i32_24 = arith.constant 0 : i32
    %82 = vector.broadcast %c0_i32_24 : i32 to vector<4x256xi32>
    %83 = arith.cmpi slt, %81, %82 : vector<4x256xi32>
    %c256_i32_25 = arith.constant 256 : i32
    %84 = vector.broadcast %c256_i32_25 : i32 to vector<4x256xi32>
    %85 = arith.addi %81, %84 : vector<4x256xi32>
    %86 = arith.select %83, %85, %81 : vector<4x256xi1>, vector<4x256xi32>
    %87 = vector.shape_cast %86 : vector<4x256xi32> to vector<4x256x1xi32>
    %88 = vector.shape_cast %87 : vector<4x256x1xi32> to vector<4x256xi32>
    %89 = tpu.dynamic_gather %36[%88] in [1] : vector<4x256xf32>, vector<4x256xi32> -> vector<4x256xf32>
    %90 = arith.mulf %34, %89 : vector<4x256xf32>
    %cst_26 = arith.constant dense<0.000000e+00> : vector<256xf32>
    %91 = vector.multi_reduction <add>, %90, %cst_26 [0] : vector<4x256xf32> to vector<256xf32>
    %92 = vector.shape_cast %91 : vector<256xf32> to vector<1x256xf32>
    %93 = vector.extract_strided_slice %31 {offsets = [4, 0], sizes = [1, 256], strides = [1, 1]} : vector<9x256xi32> to vector<1x256xi32>
    %94 = vector.shape_cast %93 : vector<1x256xi32> to vector<1x256xi32>
    %95 = vector.broadcast %94 : vector<1x256xi32> to vector<4x256xi32>
    %c0_i32_27 = arith.constant 0 : i32
    %96 = vector.broadcast %c0_i32_27 : i32 to vector<4x256xi32>
    %97 = arith.cmpi slt, %95, %96 : vector<4x256xi32>
    %c256_i32_28 = arith.constant 256 : i32
    %98 = vector.broadcast %c256_i32_28 : i32 to vector<4x256xi32>
    %99 = arith.addi %95, %98 : vector<4x256xi32>
    %100 = arith.select %97, %99, %95 : vector<4x256xi1>, vector<4x256xi32>
    %101 = vector.shape_cast %100 : vector<4x256xi32> to vector<4x256x1xi32>
    %102 = vector.shape_cast %101 : vector<4x256x1xi32> to vector<4x256xi32>
    %103 = tpu.dynamic_gather %36[%102] in [1] : vector<4x256xf32>, vector<4x256xi32> -> vector<4x256xf32>
    %104 = arith.mulf %34, %103 : vector<4x256xf32>
    %cst_29 = arith.constant dense<0.000000e+00> : vector<256xf32>
    %105 = vector.multi_reduction <add>, %104, %cst_29 [0] : vector<4x256xf32> to vector<256xf32>
    %106 = vector.shape_cast %105 : vector<256xf32> to vector<1x256xf32>
    %107 = vector.extract_strided_slice %31 {offsets = [5, 0], sizes = [1, 256], strides = [1, 1]} : vector<9x256xi32> to vector<1x256xi32>
    %108 = vector.shape_cast %107 : vector<1x256xi32> to vector<1x256xi32>
    %109 = vector.broadcast %108 : vector<1x256xi32> to vector<4x256xi32>
    %c0_i32_30 = arith.constant 0 : i32
    %110 = vector.broadcast %c0_i32_30 : i32 to vector<4x256xi32>
    %111 = arith.cmpi slt, %109, %110 : vector<4x256xi32>
    %c256_i32_31 = arith.constant 256 : i32
    %112 = vector.broadcast %c256_i32_31 : i32 to vector<4x256xi32>
    %113 = arith.addi %109, %112 : vector<4x256xi32>
    %114 = arith.select %111, %113, %109 : vector<4x256xi1>, vector<4x256xi32>
    %115 = vector.shape_cast %114 : vector<4x256xi32> to vector<4x256x1xi32>
    %116 = vector.shape_cast %115 : vector<4x256x1xi32> to vector<4x256xi32>
    %117 = tpu.dynamic_gather %36[%116] in [1] : vector<4x256xf32>, vector<4x256xi32> -> vector<4x256xf32>
    %118 = arith.mulf %34, %117 : vector<4x256xf32>
    %cst_32 = arith.constant dense<0.000000e+00> : vector<256xf32>
    %119 = vector.multi_reduction <add>, %118, %cst_32 [0] : vector<4x256xf32> to vector<256xf32>
    %120 = vector.shape_cast %119 : vector<256xf32> to vector<1x256xf32>
    %121 = vector.extract_strided_slice %31 {offsets = [6, 0], sizes = [1, 256], strides = [1, 1]} : vector<9x256xi32> to vector<1x256xi32>
    %122 = vector.shape_cast %121 : vector<1x256xi32> to vector<1x256xi32>
    %123 = vector.broadcast %122 : vector<1x256xi32> to vector<4x256xi32>
    %c0_i32_33 = arith.constant 0 : i32
    %124 = vector.broadcast %c0_i32_33 : i32 to vector<4x256xi32>
    %125 = arith.cmpi slt, %123, %124 : vector<4x256xi32>
    %c256_i32_34 = arith.constant 256 : i32
    %126 = vector.broadcast %c256_i32_34 : i32 to vector<4x256xi32>
    %127 = arith.addi %123, %126 : vector<4x256xi32>
    %128 = arith.select %125, %127, %123 : vector<4x256xi1>, vector<4x256xi32>
    %129 = vector.shape_cast %128 : vector<4x256xi32> to vector<4x256x1xi32>
    %130 = vector.shape_cast %129 : vector<4x256x1xi32> to vector<4x256xi32>
    %131 = tpu.dynamic_gather %36[%130] in [1] : vector<4x256xf32>, vector<4x256xi32> -> vector<4x256xf32>
    %132 = arith.mulf %34, %131 : vector<4x256xf32>
    %cst_35 = arith.constant dense<0.000000e+00> : vector<256xf32>
    %133 = vector.multi_reduction <add>, %132, %cst_35 [0] : vector<4x256xf32> to vector<256xf32>
    %134 = vector.shape_cast %133 : vector<256xf32> to vector<1x256xf32>
    %135 = vector.extract_strided_slice %31 {offsets = [7, 0], sizes = [1, 256], strides = [1, 1]} : vector<9x256xi32> to vector<1x256xi32>
    %136 = vector.shape_cast %135 : vector<1x256xi32> to vector<1x256xi32>
    %137 = vector.broadcast %136 : vector<1x256xi32> to vector<4x256xi32>
    %c0_i32_36 = arith.constant 0 : i32
    %138 = vector.broadcast %c0_i32_36 : i32 to vector<4x256xi32>
    %139 = arith.cmpi slt, %137, %138 : vector<4x256xi32>
    %c256_i32_37 = arith.constant 256 : i32
    %140 = vector.broadcast %c256_i32_37 : i32 to vector<4x256xi32>
    %141 = arith.addi %137, %140 : vector<4x256xi32>
    %142 = arith.select %139, %141, %137 : vector<4x256xi1>, vector<4x256xi32>
    %143 = vector.shape_cast %142 : vector<4x256xi32> to vector<4x256x1xi32>
    %144 = vector.shape_cast %143 : vector<4x256x1xi32> to vector<4x256xi32>
    %145 = tpu.dynamic_gather %36[%144] in [1] : vector<4x256xf32>, vector<4x256xi32> -> vector<4x256xf32>
    %146 = arith.mulf %34, %145 : vector<4x256xf32>
    %cst_38 = arith.constant dense<0.000000e+00> : vector<256xf32>
    %147 = vector.multi_reduction <add>, %146, %cst_38 [0] : vector<4x256xf32> to vector<256xf32>
    %148 = vector.shape_cast %147 : vector<256xf32> to vector<1x256xf32>
    %149 = vector.extract_strided_slice %31 {offsets = [8, 0], sizes = [1, 256], strides = [1, 1]} : vector<9x256xi32> to vector<1x256xi32>
    %150 = vector.shape_cast %149 : vector<1x256xi32> to vector<1x256xi32>
    %151 = vector.broadcast %150 : vector<1x256xi32> to vector<4x256xi32>
    %c0_i32_39 = arith.constant 0 : i32
    %152 = vector.broadcast %c0_i32_39 : i32 to vector<4x256xi32>
    %153 = arith.cmpi slt, %151, %152 : vector<4x256xi32>
    %c256_i32_40 = arith.constant 256 : i32
    %154 = vector.broadcast %c256_i32_40 : i32 to vector<4x256xi32>
    %155 = arith.addi %151, %154 : vector<4x256xi32>
    %156 = arith.select %153, %155, %151 : vector<4x256xi1>, vector<4x256xi32>
    %157 = vector.shape_cast %156 : vector<4x256xi32> to vector<4x256x1xi32>
    %158 = vector.shape_cast %157 : vector<4x256x1xi32> to vector<4x256xi32>
    %159 = tpu.dynamic_gather %36[%158] in [1] : vector<4x256xf32>, vector<4x256xi32> -> vector<4x256xf32>
    %160 = arith.mulf %34, %159 : vector<4x256xf32>
    %cst_41 = arith.constant dense<0.000000e+00> : vector<256xf32>
    %161 = vector.multi_reduction <add>, %160, %cst_41 [0] : vector<4x256xf32> to vector<256xf32>
    %162 = vector.shape_cast %161 : vector<256xf32> to vector<1x256xf32>
    %163 = tpu.concatenate %50, %64, %78, %92, %106, %120, %134, %148, %162 in 0 : vector<1x256xf32>, vector<1x256xf32>, vector<1x256xf32>, vector<1x256xf32>, vector<1x256xf32>, vector<1x256xf32>, vector<1x256xf32>, vector<1x256xf32>, vector<1x256xf32> -> vector<9x256xf32>
    %cst_42 = arith.constant 1.000000e+00 : f32
    %164 = vector.broadcast %cst_42 : f32 to vector<9x256xf32>
    %165 = arith.mulf %163, %164 : vector<9x256xf32>
    %cst_43 = arith.constant dense<0xFF800000> : vector<256xf32>
    %166 = vector.multi_reduction <maximumf>, %165, %cst_43 [0] : vector<9x256xf32> to vector<256xf32>
    %167 = vector.shape_cast %166 : vector<256xf32> to vector<1x256xf32>
    %168 = vector.broadcast %167 : vector<1x256xf32> to vector<9x256xf32>
    %169 = arith.subf %165, %168 : vector<9x256xf32>
    %170 = math.exp %169 : vector<9x256xf32>
    %cst_44 = arith.constant dense<0.000000e+00> : vector<256xf32>
    %171 = vector.multi_reduction <add>, %170, %cst_44 [0] : vector<9x256xf32> to vector<256xf32>
    %172 = vector.shape_cast %171 : vector<256xf32> to vector<1x256xf32>
    %173 = tpu.reciprocal %172 {approx = true} : vector<1x256xf32> -> vector<1x256xf32>
    %174 = vector.broadcast %173 : vector<1x256xf32> to vector<9x256xf32>
    %175 = arith.mulf %170, %174 : vector<9x256xf32>
    %176 = tpu.iota {dimensions = array<i32: 0>} : vector<9x256xi32>
    %177 = arith.sitofp %176 : vector<9x256xi32> to vector<9x256xf32>
    %cst_45 = arith.constant 8.000000e+00 : f32
    %178 = vector.broadcast %cst_45 : f32 to vector<9x256xf32>
    %179 = arith.subf %178, %177 : vector<9x256xf32>
    %cst_46 = arith.constant dense<0xFF800000> : vector<256xf32>
    %180 = vector.multi_reduction <maximumf>, %165, %cst_46 [0] : vector<9x256xf32> to vector<256xf32>
    %181 = vector.shape_cast %180 : vector<256xf32> to vector<1x256xf32>
    %182 = vector.broadcast %181 : vector<1x256xf32> to vector<9x256xf32>
    %183 = arith.cmpf oeq, %165, %182 : vector<9x256xf32>
    %cst_47 = arith.constant -1.000000e+00 : f32
    %184 = vector.broadcast %cst_47 : f32 to vector<9x256xf32>
    %185 = arith.select %183, %179, %184 : vector<9x256xi1>, vector<9x256xf32>
    %cst_48 = arith.constant dense<0xFF800000> : vector<256xf32>
    %186 = vector.multi_reduction <maximumf>, %185, %cst_48 [0] : vector<9x256xf32> to vector<256xf32>
    %187 = vector.shape_cast %186 : vector<256xf32> to vector<1x256xf32>
    %188 = vector.broadcast %187 : vector<1x256xf32> to vector<9x256xf32>
    %189 = arith.cmpf oeq, %179, %188 : vector<9x256xf32>
    %cst_49 = arith.constant 0.000000e+00 : f32
    %190 = vector.broadcast %cst_49 : f32 to vector<9x256xf32>
    %191 = arith.select %189, %175, %190 : vector<9x256xi1>, vector<9x256xf32>
    %cst_50 = arith.constant dense<0.000000e+00> : vector<256xf32>
    %192 = vector.multi_reduction <add>, %191, %cst_50 [0] : vector<9x256xf32> to vector<256xf32>
    %193 = vector.shape_cast %192 : vector<256xf32> to vector<1x256xf32>
    %cst_51 = arith.constant 0.000000e+00 : f32
    %194 = vector.broadcast %cst_51 : f32 to vector<9x256xf32>
    %195 = arith.select %189, %30, %194 : vector<9x256xi1>, vector<9x256xf32>
    %cst_52 = arith.constant dense<0.000000e+00> : vector<256xf32>
    %196 = vector.multi_reduction <add>, %195, %cst_52 [0] : vector<9x256xf32> to vector<256xf32>
    %197 = vector.shape_cast %196 : vector<256xf32> to vector<1x256xf32>
    %cst_53 = arith.constant 0xFF800000 : f32
    %198 = vector.broadcast %cst_53 : f32 to vector<9x256xf32>
    %199 = arith.select %189, %198, %165 : vector<9x256xi1>, vector<9x256xf32>
    %cst_54 = arith.constant dense<0xFF800000> : vector<256xf32>
    %200 = vector.multi_reduction <maximumf>, %199, %cst_54 [0] : vector<9x256xf32> to vector<256xf32>
    %201 = vector.shape_cast %200 : vector<256xf32> to vector<1x256xf32>
    %202 = vector.broadcast %201 : vector<1x256xf32> to vector<9x256xf32>
    %203 = arith.cmpf oeq, %199, %202 : vector<9x256xf32>
    %cst_55 = arith.constant -1.000000e+00 : f32
    %204 = vector.broadcast %cst_55 : f32 to vector<9x256xf32>
    %205 = arith.select %203, %179, %204 : vector<9x256xi1>, vector<9x256xf32>
    %cst_56 = arith.constant dense<0xFF800000> : vector<256xf32>
    %206 = vector.multi_reduction <maximumf>, %205, %cst_56 [0] : vector<9x256xf32> to vector<256xf32>
    %207 = vector.shape_cast %206 : vector<256xf32> to vector<1x256xf32>
    %208 = vector.broadcast %207 : vector<1x256xf32> to vector<9x256xf32>
    %209 = arith.cmpf oeq, %179, %208 : vector<9x256xf32>
    %cst_57 = arith.constant 0.000000e+00 : f32
    %210 = vector.broadcast %cst_57 : f32 to vector<9x256xf32>
    %211 = arith.select %209, %175, %210 : vector<9x256xi1>, vector<9x256xf32>
    %cst_58 = arith.constant dense<0.000000e+00> : vector<256xf32>
    %212 = vector.multi_reduction <add>, %211, %cst_58 [0] : vector<9x256xf32> to vector<256xf32>
    %213 = vector.shape_cast %212 : vector<256xf32> to vector<1x256xf32>
    %cst_59 = arith.constant 0.000000e+00 : f32
    %214 = vector.broadcast %cst_59 : f32 to vector<9x256xf32>
    %215 = arith.select %209, %30, %214 : vector<9x256xi1>, vector<9x256xf32>
    %cst_60 = arith.constant dense<0.000000e+00> : vector<256xf32>
    %216 = vector.multi_reduction <add>, %215, %cst_60 [0] : vector<9x256xf32> to vector<256xf32>
    %217 = vector.shape_cast %216 : vector<256xf32> to vector<1x256xf32>
    %cst_61 = arith.constant 0xFF800000 : f32
    %218 = vector.broadcast %cst_61 : f32 to vector<9x256xf32>
    %219 = arith.select %209, %218, %199 : vector<9x256xi1>, vector<9x256xf32>
    %cst_62 = arith.constant dense<0xFF800000> : vector<256xf32>
    %220 = vector.multi_reduction <maximumf>, %219, %cst_62 [0] : vector<9x256xf32> to vector<256xf32>
    %221 = vector.shape_cast %220 : vector<256xf32> to vector<1x256xf32>
    %222 = vector.broadcast %221 : vector<1x256xf32> to vector<9x256xf32>
    %223 = arith.cmpf oeq, %219, %222 : vector<9x256xf32>
    %cst_63 = arith.constant -1.000000e+00 : f32
    %224 = vector.broadcast %cst_63 : f32 to vector<9x256xf32>
    %225 = arith.select %223, %179, %224 : vector<9x256xi1>, vector<9x256xf32>
    %cst_64 = arith.constant dense<0xFF800000> : vector<256xf32>
    %226 = vector.multi_reduction <maximumf>, %225, %cst_64 [0] : vector<9x256xf32> to vector<256xf32>
    %227 = vector.shape_cast %226 : vector<256xf32> to vector<1x256xf32>
    %228 = vector.broadcast %227 : vector<1x256xf32> to vector<9x256xf32>
    %229 = arith.cmpf oeq, %179, %228 : vector<9x256xf32>
    %cst_65 = arith.constant 0.000000e+00 : f32
    %230 = vector.broadcast %cst_65 : f32 to vector<9x256xf32>
    %231 = arith.select %229, %175, %230 : vector<9x256xi1>, vector<9x256xf32>
    %cst_66 = arith.constant dense<0.000000e+00> : vector<256xf32>
    %232 = vector.multi_reduction <add>, %231, %cst_66 [0] : vector<9x256xf32> to vector<256xf32>
    %233 = vector.shape_cast %232 : vector<256xf32> to vector<1x256xf32>
    %cst_67 = arith.constant 0.000000e+00 : f32
    %234 = vector.broadcast %cst_67 : f32 to vector<9x256xf32>
    %235 = arith.select %229, %30, %234 : vector<9x256xi1>, vector<9x256xf32>
    %cst_68 = arith.constant dense<0.000000e+00> : vector<256xf32>
    %236 = vector.multi_reduction <add>, %235, %cst_68 [0] : vector<9x256xf32> to vector<256xf32>
    %237 = vector.shape_cast %236 : vector<256xf32> to vector<1x256xf32>
    %238 = tpu.concatenate %193, %213, %233 in 0 : vector<1x256xf32>, vector<1x256xf32>, vector<1x256xf32> -> vector<3x256xf32>
    %239 = tpu.concatenate %197, %217, %237 in 0 : vector<1x256xf32>, vector<1x256xf32>, vector<1x256xf32> -> vector<3x256xf32>
    %cst_69 = arith.constant 1.600000e+01 : f32
    %240 = vector.broadcast %cst_69 : f32 to vector<3x256xf32>
    %241 = arith.divf %239, %240 : vector<3x256xf32>
    %242 = math.floor %241 : vector<3x256xf32>
    %cst_70 = arith.constant 1.600000e+01 : f32
    %243 = vector.broadcast %cst_70 : f32 to vector<3x256xf32>
    %244 = arith.mulf %242, %243 : vector<3x256xf32>
    %245 = arith.subf %239, %244 : vector<3x256xf32>
    %246 = vector.broadcast %11 : vector<1x256xf32> to vector<3x256xf32>
    %247 = arith.subf %242, %246 : vector<3x256xf32>
    %248 = vector.broadcast %14 : vector<1x256xf32> to vector<3x256xf32>
    %249 = arith.subf %245, %248 : vector<3x256xf32>
    %250 = tpu.concatenate %247, %249, %238 in 0 : vector<3x256xf32>, vector<3x256xf32>, vector<3x256xf32> -> vector<9x256xf32>
    %c0_71 = arith.constant 0 : index
    %c0_72 = arith.constant 0 : index
    %c0_73 = arith.constant 0 : index
    %251 = vector.load %arg6[%c0_71, %c0_72, %c0_73] : memref<1x9x256xf32, #tpu.memory_space<vmem>>, vector<1x9x256xf32>
    %252 = vector.shape_cast %251 : vector<1x9x256xf32> to vector<9x256xf32>
    %253 = vector.shape_cast %250 : vector<9x256xf32> to vector<1x9x256xf32>
    tpu.vector_store %arg6[%c0_71, %c0_72, %c0_73], %253 {strides = array<i32>} : memref<1x9x256xf32, #tpu.memory_space<vmem>>, vector<1x9x256xf32>,
    return
  }
  func.func @transform_0(%arg0: i32, %arg1: i32) -> (i32, i32, i32) {
    %c0_i32 = arith.constant 0 : i32
    %c0_i32_0 = arith.constant 0 : i32
    return %arg0, %c0_i32, %arg1 : i32, i32, i32
  }
  func.func @transform_1(%arg0: i32, %arg1: i32) -> (i32, i32, i32) {
    %c0_i32 = arith.constant 0 : i32
    %c0_i32_0 = arith.constant 0 : i32
    return %arg0, %c0_i32, %arg1 : i32, i32, i32
  }
  func.func @transform_2(%arg0: i32, %arg1: i32) -> (i32, i32, i32) {
    %c0_i32 = arith.constant 0 : i32
    %c0_i32_0 = arith.constant 0 : i32
    return %arg0, %c0_i32, %arg1 : i32, i32, i32
  }
  func.func @transform_3(%arg0: i32, %arg1: i32) -> (i32, i32) {
    %c0_i32 = arith.constant 0 : i32
    %c0_i32_0 = arith.constant 0 : i32
    return %c0_i32, %arg0 : i32, i32
  }
  func.func @transform_4(%arg0: i32, %arg1: i32) -> (i32, i32, i32) {
    %c0_i32 = arith.constant 0 : i32
    %c0_i32_0 = arith.constant 0 : i32
    return %arg0, %c0_i32, %arg1 : i32, i32, i32
  }
}

module attributes {stable_mosaic.version = 11 : i64} {
  func.func @_evaluate_kernel(%arg0: i32, %arg1: i32, %arg2: memref<1x9x256xf32, #tpu.memory_space<vmem>>, %arg3: memref<1x9x256xf32, #tpu.memory_space<vmem>>, %arg4: memref<1x4x256xbf16, #tpu.memory_space<vmem>>, %arg5: memref<4x256xbf16, #tpu.memory_space<vmem>>, %arg6: memref<1x9x256xf32, #tpu.memory_space<vmem>>) attributes {dimension_semantics = [#tpu.dimension_semantics<parallel>, #tpu.dimension_semantics<parallel>], iteration_bounds = array<i64: 2, 1>, scalar_prefetch = 0 : i64, scratch_operands = 0 : i64, tpu.core_type = #tpu.core_type<tc>, window_params = [{transform_indices = @transform_0, window_bounds = array<i64: 1, 9, 256>}, {transform_indices = @transform_1, window_bounds = array<i64: 1, 9, 256>}, {transform_indices = @transform_2, window_bounds = array<i64: 1, 4, 256>}, {pipeline_mode = #tpu.pipeline_mode<synchronous>, transform_indices = @transform_3, window_bounds = array<i64: 4, 256>}, {transform_indices = @transform_4, window_bounds = array<i64: 1, 9, 256>}]} {
    %c0 = arith.constant 0 : index
    %c0_0 = arith.constant 0 : index
    %c0_1 = arith.constant 0 : index
    %0 = vector.load %arg2[%c0, %c0_0, %c0_1] : memref<1x9x256xf32, #tpu.memory_space<vmem>>, vector<1x9x256xf32>
    %1 = vector.shape_cast %0 : vector<1x9x256xf32> to vector<9x256xf32>
    %c0_2 = arith.constant 0 : index
    %c0_3 = arith.constant 0 : index
    %c0_4 = arith.constant 0 : index
    %2 = vector.load %arg3[%c0_2, %c0_3, %c0_4] : memref<1x9x256xf32, #tpu.memory_space<vmem>>, vector<1x9x256xf32>
    %3 = vector.shape_cast %2 : vector<1x9x256xf32> to vector<9x256xf32>
    %c256_i32 = arith.constant 256 : i32
    %4 = arith.muli %arg1, %c256_i32 : i32
    %5 = tpu.iota {dimensions = array<i32: 1>} : vector<1x256xi32>
    %6 = vector.broadcast %4 : i32 to vector<1x256xi32>
    %7 = arith.addi %6, %5 : vector<1x256xi32>
    %8 = arith.sitofp %7 : vector<1x256xi32> to vector<1x256xf32>
    %cst = arith.constant 1.600000e+01 : f32
    %9 = vector.broadcast %cst : f32 to vector<1x256xf32>
    %10 = arith.divf %8, %9 : vector<1x256xf32>
    %11 = math.floor %10 : vector<1x256xf32>
    %cst_5 = arith.constant 1.600000e+01 : f32
    %12 = vector.broadcast %cst_5 : f32 to vector<1x256xf32>
    %13 = arith.mulf %11, %12 : vector<1x256xf32>
    %14 = arith.subf %8, %13 : vector<1x256xf32>
    %15 = vector.broadcast %11 : vector<1x256xf32> to vector<9x256xf32>
    %16 = arith.addf %15, %1 : vector<9x256xf32>
    %cst_6 = arith.constant 0.000000e+00 : f32
    %cst_7 = arith.constant 1.500000e+01 : f32
    %17 = vector.broadcast %cst_6 : f32 to vector<9x256xf32>
    %18 = arith.maximumf %17, %16 : vector<9x256xf32>
    %19 = vector.broadcast %cst_7 : f32 to vector<9x256xf32>
    %20 = arith.minimumf %19, %18 : vector<9x256xf32>
    %21 = vector.broadcast %14 : vector<1x256xf32> to vector<9x256xf32>
    %22 = arith.addf %21, %3 : vector<9x256xf32>
    %cst_8 = arith.constant 0.000000e+00 : f32
    %cst_9 = arith.constant 1.500000e+01 : f32
    %23 = vector.broadcast %cst_8 : f32 to vector<9x256xf32>
    %24 = arith.maximumf %23, %22 : vector<9x256xf32>
    %25 = vector.broadcast %cst_9 : f32 to vector<9x256xf32>
    %26 = arith.minimumf %25, %24 : vector<9x256xf32>
    %cst_10 = arith.constant 1.600000e+01 : f32
    %27 = vector.broadcast %cst_10 : f32 to vector<9x256xf32>
    %28 = arith.mulf %20, %27 : vector<9x256xf32>
    %29 = arith.addf %28, %26 : vector<9x256xf32>
    %30 = math.floor %29 : vector<9x256xf32>
    %31 = arith.fptosi %30 : vector<9x256xf32> to vector<9x256xi32>
    %c0_11 = arith.constant 0 : index
    %c0_12 = arith.constant 0 : index
    %32 = vector.load %arg5[%c0_11, %c0_12] : memref<4x256xbf16, #tpu.memory_space<vmem>>, vector<4x256xbf16>
    %c0_13 = arith.constant 0 : index
    %c0_14 = arith.constant 0 : index
    %c0_15 = arith.constant 0 : index
    %33 = vector.load %arg4[%c0_13, %c0_14, %c0_15] : memref<1x4x256xbf16, #tpu.memory_space<vmem>>, vector<1x4x256xbf16>
    %34 = vector.shape_cast %33 : vector<1x4x256xbf16> to vector<4x256xbf16>
    %cst_16 = arith.constant dense<0.000000e+00> : vector<256x256xf32>
    %35 = tpu.matmul %32, %34, %cst_16 {dimension_numbers = #tpu.dot_dimension_numbers<[0], [0], [1], [1], [0, 1, 1, 1], [], []>} : vector<4x256xbf16>, vector<4x256xbf16>, vector<256x256xf32> -> vector<256x256xf32>
    %c0_i32 = arith.constant 0 : i32
    %36 = vector.broadcast %c0_i32 : i32 to vector<9x256xi32>
    %37 = arith.cmpi slt, %31, %36 : vector<9x256xi32>
    %c256_i32_17 = arith.constant 256 : i32
    %38 = vector.broadcast %c256_i32_17 : i32 to vector<9x256xi32>
    %39 = arith.addi %31, %38 : vector<9x256xi32>
    %40 = arith.select %37, %39, %31 : vector<9x256xi1>, vector<9x256xi32>
    %41 = vector.shape_cast %40 : vector<9x256xi32> to vector<9x256x1xi32>
    %42 = vector.shape_cast %41 : vector<9x256x1xi32> to vector<9x256xi32>
    %43 = tpu.dynamic_gather %35[%42] in [0] : vector<256x256xf32>, vector<9x256xi32> -> vector<9x256xf32>
    %cst_18 = arith.constant 1.000000e+00 : f32
    %44 = vector.broadcast %cst_18 : f32 to vector<9x256xf32>
    %45 = arith.mulf %43, %44 : vector<9x256xf32>
    %cst_19 = arith.constant dense<0xFF800000> : vector<256xf32>
    %46 = vector.multi_reduction <maximumf>, %45, %cst_19 [0] : vector<9x256xf32> to vector<256xf32>
    %47 = vector.shape_cast %46 : vector<256xf32> to vector<1x256xf32>
    %48 = vector.broadcast %47 : vector<1x256xf32> to vector<9x256xf32>
    %49 = arith.subf %45, %48 : vector<9x256xf32>
    %50 = math.exp %49 : vector<9x256xf32>
    %cst_20 = arith.constant dense<0.000000e+00> : vector<256xf32>
    %51 = vector.multi_reduction <add>, %50, %cst_20 [0] : vector<9x256xf32> to vector<256xf32>
    %52 = vector.shape_cast %51 : vector<256xf32> to vector<1x256xf32>
    %53 = tpu.reciprocal %52 {approx = true} : vector<1x256xf32> -> vector<1x256xf32>
    %54 = vector.broadcast %53 : vector<1x256xf32> to vector<9x256xf32>
    %55 = arith.mulf %50, %54 : vector<9x256xf32>
    %56 = tpu.iota {dimensions = array<i32: 0>} : vector<9x256xi32>
    %57 = arith.sitofp %56 : vector<9x256xi32> to vector<9x256xf32>
    %cst_21 = arith.constant 8.000000e+00 : f32
    %58 = vector.broadcast %cst_21 : f32 to vector<9x256xf32>
    %59 = arith.subf %58, %57 : vector<9x256xf32>
    %cst_22 = arith.constant dense<0xFF800000> : vector<256xf32>
    %60 = vector.multi_reduction <maximumf>, %45, %cst_22 [0] : vector<9x256xf32> to vector<256xf32>
    %61 = vector.shape_cast %60 : vector<256xf32> to vector<1x256xf32>
    %62 = vector.broadcast %61 : vector<1x256xf32> to vector<9x256xf32>
    %63 = arith.cmpf oeq, %45, %62 : vector<9x256xf32>
    %cst_23 = arith.constant -1.000000e+00 : f32
    %64 = vector.broadcast %cst_23 : f32 to vector<9x256xf32>
    %65 = arith.select %63, %59, %64 : vector<9x256xi1>, vector<9x256xf32>
    %cst_24 = arith.constant dense<0xFF800000> : vector<256xf32>
    %66 = vector.multi_reduction <maximumf>, %65, %cst_24 [0] : vector<9x256xf32> to vector<256xf32>
    %67 = vector.shape_cast %66 : vector<256xf32> to vector<1x256xf32>
    %68 = vector.broadcast %67 : vector<1x256xf32> to vector<9x256xf32>
    %69 = arith.cmpf oeq, %59, %68 : vector<9x256xf32>
    %cst_25 = arith.constant 0.000000e+00 : f32
    %70 = vector.broadcast %cst_25 : f32 to vector<9x256xf32>
    %71 = arith.select %69, %55, %70 : vector<9x256xi1>, vector<9x256xf32>
    %cst_26 = arith.constant dense<0.000000e+00> : vector<256xf32>
    %72 = vector.multi_reduction <add>, %71, %cst_26 [0] : vector<9x256xf32> to vector<256xf32>
    %73 = vector.shape_cast %72 : vector<256xf32> to vector<1x256xf32>
    %cst_27 = arith.constant 0.000000e+00 : f32
    %74 = vector.broadcast %cst_27 : f32 to vector<9x256xf32>
    %75 = arith.select %69, %30, %74 : vector<9x256xi1>, vector<9x256xf32>
    %cst_28 = arith.constant dense<0.000000e+00> : vector<256xf32>
    %76 = vector.multi_reduction <add>, %75, %cst_28 [0] : vector<9x256xf32> to vector<256xf32>
    %77 = vector.shape_cast %76 : vector<256xf32> to vector<1x256xf32>
    %cst_29 = arith.constant 0xFF800000 : f32
    %78 = vector.broadcast %cst_29 : f32 to vector<9x256xf32>
    %79 = arith.select %69, %78, %45 : vector<9x256xi1>, vector<9x256xf32>
    %cst_30 = arith.constant dense<0xFF800000> : vector<256xf32>
    %80 = vector.multi_reduction <maximumf>, %79, %cst_30 [0] : vector<9x256xf32> to vector<256xf32>
    %81 = vector.shape_cast %80 : vector<256xf32> to vector<1x256xf32>
    %82 = vector.broadcast %81 : vector<1x256xf32> to vector<9x256xf32>
    %83 = arith.cmpf oeq, %79, %82 : vector<9x256xf32>
    %cst_31 = arith.constant -1.000000e+00 : f32
    %84 = vector.broadcast %cst_31 : f32 to vector<9x256xf32>
    %85 = arith.select %83, %59, %84 : vector<9x256xi1>, vector<9x256xf32>
    %cst_32 = arith.constant dense<0xFF800000> : vector<256xf32>
    %86 = vector.multi_reduction <maximumf>, %85, %cst_32 [0] : vector<9x256xf32> to vector<256xf32>
    %87 = vector.shape_cast %86 : vector<256xf32> to vector<1x256xf32>
    %88 = vector.broadcast %87 : vector<1x256xf32> to vector<9x256xf32>
    %89 = arith.cmpf oeq, %59, %88 : vector<9x256xf32>
    %cst_33 = arith.constant 0.000000e+00 : f32
    %90 = vector.broadcast %cst_33 : f32 to vector<9x256xf32>
    %91 = arith.select %89, %55, %90 : vector<9x256xi1>, vector<9x256xf32>
    %cst_34 = arith.constant dense<0.000000e+00> : vector<256xf32>
    %92 = vector.multi_reduction <add>, %91, %cst_34 [0] : vector<9x256xf32> to vector<256xf32>
    %93 = vector.shape_cast %92 : vector<256xf32> to vector<1x256xf32>
    %cst_35 = arith.constant 0.000000e+00 : f32
    %94 = vector.broadcast %cst_35 : f32 to vector<9x256xf32>
    %95 = arith.select %89, %30, %94 : vector<9x256xi1>, vector<9x256xf32>
    %cst_36 = arith.constant dense<0.000000e+00> : vector<256xf32>
    %96 = vector.multi_reduction <add>, %95, %cst_36 [0] : vector<9x256xf32> to vector<256xf32>
    %97 = vector.shape_cast %96 : vector<256xf32> to vector<1x256xf32>
    %cst_37 = arith.constant 0xFF800000 : f32
    %98 = vector.broadcast %cst_37 : f32 to vector<9x256xf32>
    %99 = arith.select %89, %98, %79 : vector<9x256xi1>, vector<9x256xf32>
    %cst_38 = arith.constant dense<0xFF800000> : vector<256xf32>
    %100 = vector.multi_reduction <maximumf>, %99, %cst_38 [0] : vector<9x256xf32> to vector<256xf32>
    %101 = vector.shape_cast %100 : vector<256xf32> to vector<1x256xf32>
    %102 = vector.broadcast %101 : vector<1x256xf32> to vector<9x256xf32>
    %103 = arith.cmpf oeq, %99, %102 : vector<9x256xf32>
    %cst_39 = arith.constant -1.000000e+00 : f32
    %104 = vector.broadcast %cst_39 : f32 to vector<9x256xf32>
    %105 = arith.select %103, %59, %104 : vector<9x256xi1>, vector<9x256xf32>
    %cst_40 = arith.constant dense<0xFF800000> : vector<256xf32>
    %106 = vector.multi_reduction <maximumf>, %105, %cst_40 [0] : vector<9x256xf32> to vector<256xf32>
    %107 = vector.shape_cast %106 : vector<256xf32> to vector<1x256xf32>
    %108 = vector.broadcast %107 : vector<1x256xf32> to vector<9x256xf32>
    %109 = arith.cmpf oeq, %59, %108 : vector<9x256xf32>
    %cst_41 = arith.constant 0.000000e+00 : f32
    %110 = vector.broadcast %cst_41 : f32 to vector<9x256xf32>
    %111 = arith.select %109, %55, %110 : vector<9x256xi1>, vector<9x256xf32>
    %cst_42 = arith.constant dense<0.000000e+00> : vector<256xf32>
    %112 = vector.multi_reduction <add>, %111, %cst_42 [0] : vector<9x256xf32> to vector<256xf32>
    %113 = vector.shape_cast %112 : vector<256xf32> to vector<1x256xf32>
    %cst_43 = arith.constant 0.000000e+00 : f32
    %114 = vector.broadcast %cst_43 : f32 to vector<9x256xf32>
    %115 = arith.select %109, %30, %114 : vector<9x256xi1>, vector<9x256xf32>
    %cst_44 = arith.constant dense<0.000000e+00> : vector<256xf32>
    %116 = vector.multi_reduction <add>, %115, %cst_44 [0] : vector<9x256xf32> to vector<256xf32>
    %117 = vector.shape_cast %116 : vector<256xf32> to vector<1x256xf32>
    %118 = tpu.concatenate %73, %93, %113 in 0 : vector<1x256xf32>, vector<1x256xf32>, vector<1x256xf32> -> vector<3x256xf32>
    %119 = tpu.concatenate %77, %97, %117 in 0 : vector<1x256xf32>, vector<1x256xf32>, vector<1x256xf32> -> vector<3x256xf32>
    %cst_45 = arith.constant 1.600000e+01 : f32
    %120 = vector.broadcast %cst_45 : f32 to vector<3x256xf32>
    %121 = arith.divf %119, %120 : vector<3x256xf32>
    %122 = math.floor %121 : vector<3x256xf32>
    %cst_46 = arith.constant 1.600000e+01 : f32
    %123 = vector.broadcast %cst_46 : f32 to vector<3x256xf32>
    %124 = arith.mulf %122, %123 : vector<3x256xf32>
    %125 = arith.subf %119, %124 : vector<3x256xf32>
    %126 = vector.broadcast %11 : vector<1x256xf32> to vector<3x256xf32>
    %127 = arith.subf %122, %126 : vector<3x256xf32>
    %128 = vector.broadcast %14 : vector<1x256xf32> to vector<3x256xf32>
    %129 = arith.subf %125, %128 : vector<3x256xf32>
    %130 = tpu.concatenate %127, %129, %118 in 0 : vector<3x256xf32>, vector<3x256xf32>, vector<3x256xf32> -> vector<9x256xf32>
    %c0_47 = arith.constant 0 : index
    %c0_48 = arith.constant 0 : index
    %c0_49 = arith.constant 0 : index
    %131 = vector.load %arg6[%c0_47, %c0_48, %c0_49] : memref<1x9x256xf32, #tpu.memory_space<vmem>>, vector<1x9x256xf32>
    %132 = vector.shape_cast %131 : vector<1x9x256xf32> to vector<9x256xf32>
    %133 = vector.shape_cast %130 : vector<9x256xf32> to vector<1x9x256xf32>
    tpu.vector_store %arg6[%c0_47, %c0_48, %c0_49], %133 {strides = array<i32>} : memref<1x9x256xf32, #tpu.memory_space<vmem>>, vector<1x9x256xf32>,
    return
  }
  func.func @transform_0(%arg0: i32, %arg1: i32) -> (i32, i32, i32) {
    %c0_i32 = arith.constant 0 : i32
    %c0_i32_0 = arith.constant 0 : i32
    return %arg0, %c0_i32, %arg1 : i32, i32, i32
  }
  func.func @transform_1(%arg0: i32, %arg1: i32) -> (i32, i32, i32) {
    %c0_i32 = arith.constant 0 : i32
    %c0_i32_0 = arith.constant 0 : i32
    return %arg0, %c0_i32, %arg1 : i32, i32, i32
  }
  func.func @transform_2(%arg0: i32, %arg1: i32) -> (i32, i32, i32) {
    %c0_i32 = arith.constant 0 : i32
    %c0_i32_0 = arith.constant 0 : i32
    return %arg0, %c0_i32, %arg1 : i32, i32, i32
  }
  func.func @transform_3(%arg0: i32, %arg1: i32) -> (i32, i32) {
    %c0_i32 = arith.constant 0 : i32
    %c0_i32_0 = arith.constant 0 : i32
    return %c0_i32, %arg0 : i32, i32
  }
  func.func @transform_4(%arg0: i32, %arg1: i32) -> (i32, i32, i32) {
    %c0_i32 = arith.constant 0 : i32
    %c0_i32_0 = arith.constant 0 : i32
    return %arg0, %c0_i32, %arg1 : i32, i32, i32
  }
}

module attributes {stable_mosaic.version = 11 : i64} {
  func.func @_evaluate_kernel(%arg0: i32, %arg1: i32, %arg2: memref<1x9x256xf32, #tpu.memory_space<vmem>>, %arg3: memref<1x9x256xf32, #tpu.memory_space<vmem>>, %arg4: memref<1x4x256xbf16, #tpu.memory_space<vmem>>, %arg5: memref<4x256xbf16, #tpu.memory_space<vmem>>, %arg6: memref<1x9x256xf32, #tpu.memory_space<vmem>>) attributes {dimension_semantics = [#tpu.dimension_semantics<parallel>, #tpu.dimension_semantics<parallel>], iteration_bounds = array<i64: 2, 1>, scalar_prefetch = 0 : i64, scratch_operands = 0 : i64, tpu.core_type = #tpu.core_type<tc>, window_params = [{transform_indices = @transform_0, window_bounds = array<i64: 1, 9, 256>}, {transform_indices = @transform_1, window_bounds = array<i64: 1, 9, 256>}, {transform_indices = @transform_2, window_bounds = array<i64: 1, 4, 256>}, {transform_indices = @transform_3, window_bounds = array<i64: 4, 256>}, {transform_indices = @transform_4, window_bounds = array<i64: 1, 9, 256>}]} {
    %c0 = arith.constant 0 : index
    %c0_0 = arith.constant 0 : index
    %c0_1 = arith.constant 0 : index
    %0 = vector.load %arg2[%c0, %c0_0, %c0_1] : memref<1x9x256xf32, #tpu.memory_space<vmem>>, vector<1x9x256xf32>
    %1 = vector.shape_cast %0 : vector<1x9x256xf32> to vector<9x256xf32>
    %c0_2 = arith.constant 0 : index
    %c0_3 = arith.constant 0 : index
    %c0_4 = arith.constant 0 : index
    %2 = vector.load %arg3[%c0_2, %c0_3, %c0_4] : memref<1x9x256xf32, #tpu.memory_space<vmem>>, vector<1x9x256xf32>
    %3 = vector.shape_cast %2 : vector<1x9x256xf32> to vector<9x256xf32>
    %c256_i32 = arith.constant 256 : i32
    %4 = arith.muli %arg1, %c256_i32 : i32
    %5 = tpu.iota {dimensions = array<i32: 1>} : vector<1x256xi32>
    %6 = vector.broadcast %4 : i32 to vector<1x256xi32>
    %7 = arith.addi %6, %5 : vector<1x256xi32>
    %8 = arith.sitofp %7 : vector<1x256xi32> to vector<1x256xf32>
    %cst = arith.constant 1.600000e+01 : f32
    %9 = vector.broadcast %cst : f32 to vector<1x256xf32>
    %10 = arith.divf %8, %9 : vector<1x256xf32>
    %11 = math.floor %10 : vector<1x256xf32>
    %cst_5 = arith.constant 1.600000e+01 : f32
    %12 = vector.broadcast %cst_5 : f32 to vector<1x256xf32>
    %13 = arith.mulf %11, %12 : vector<1x256xf32>
    %14 = arith.subf %8, %13 : vector<1x256xf32>
    %15 = vector.broadcast %11 : vector<1x256xf32> to vector<9x256xf32>
    %16 = arith.addf %15, %1 : vector<9x256xf32>
    %cst_6 = arith.constant 0.000000e+00 : f32
    %cst_7 = arith.constant 1.500000e+01 : f32
    %17 = vector.broadcast %cst_6 : f32 to vector<9x256xf32>
    %18 = arith.maximumf %17, %16 : vector<9x256xf32>
    %19 = vector.broadcast %cst_7 : f32 to vector<9x256xf32>
    %20 = arith.minimumf %19, %18 : vector<9x256xf32>
    %21 = vector.broadcast %14 : vector<1x256xf32> to vector<9x256xf32>
    %22 = arith.addf %21, %3 : vector<9x256xf32>
    %cst_8 = arith.constant 0.000000e+00 : f32
    %cst_9 = arith.constant 1.500000e+01 : f32
    %23 = vector.broadcast %cst_8 : f32 to vector<9x256xf32>
    %24 = arith.maximumf %23, %22 : vector<9x256xf32>
    %25 = vector.broadcast %cst_9 : f32 to vector<9x256xf32>
    %26 = arith.minimumf %25, %24 : vector<9x256xf32>
    %cst_10 = arith.constant 1.600000e+01 : f32
    %27 = vector.broadcast %cst_10 : f32 to vector<9x256xf32>
    %28 = arith.mulf %20, %27 : vector<9x256xf32>
    %29 = arith.addf %28, %26 : vector<9x256xf32>
    %30 = math.floor %29 : vector<9x256xf32>
    %31 = arith.fptosi %30 : vector<9x256xf32> to vector<9x256xi32>
    %c0_11 = arith.constant 0 : index
    %c0_12 = arith.constant 0 : index
    %32 = vector.load %arg5[%c0_11, %c0_12] : memref<4x256xbf16, #tpu.memory_space<vmem>>, vector<4x256xbf16>
    %c0_13 = arith.constant 0 : index
    %c0_14 = arith.constant 0 : index
    %c0_15 = arith.constant 0 : index
    %33 = vector.load %arg4[%c0_13, %c0_14, %c0_15] : memref<1x4x256xbf16, #tpu.memory_space<vmem>>, vector<1x4x256xbf16>
    %34 = vector.shape_cast %33 : vector<1x4x256xbf16> to vector<4x256xbf16>
    %cst_16 = arith.constant dense<0.000000e+00> : vector<256x256xf32>
    %35 = tpu.matmul %32, %34, %cst_16 {dimension_numbers = #tpu.dot_dimension_numbers<[0], [0], [1], [1], [0, 1, 1, 1], [], []>} : vector<4x256xbf16>, vector<4x256xbf16>, vector<256x256xf32> -> vector<256x256xf32>
    %c0_i32 = arith.constant 0 : i32
    %36 = vector.broadcast %c0_i32 : i32 to vector<9x256xi32>
    %37 = arith.cmpi slt, %31, %36 : vector<9x256xi32>
    %c256_i32_17 = arith.constant 256 : i32
    %38 = vector.broadcast %c256_i32_17 : i32 to vector<9x256xi32>
    %39 = arith.addi %31, %38 : vector<9x256xi32>
    %40 = arith.select %37, %39, %31 : vector<9x256xi1>, vector<9x256xi32>
    %41 = vector.shape_cast %40 : vector<9x256xi32> to vector<9x256x1xi32>
    %42 = vector.shape_cast %41 : vector<9x256x1xi32> to vector<9x256xi32>
    %43 = tpu.dynamic_gather %35[%42] in [0] : vector<256x256xf32>, vector<9x256xi32> -> vector<9x256xf32>
    %cst_18 = arith.constant 1.000000e+00 : f32
    %44 = vector.broadcast %cst_18 : f32 to vector<9x256xf32>
    %45 = arith.mulf %43, %44 : vector<9x256xf32>
    %cst_19 = arith.constant dense<0xFF800000> : vector<256xf32>
    %46 = vector.multi_reduction <maximumf>, %45, %cst_19 [0] : vector<9x256xf32> to vector<256xf32>
    %47 = vector.shape_cast %46 : vector<256xf32> to vector<1x256xf32>
    %48 = vector.broadcast %47 : vector<1x256xf32> to vector<9x256xf32>
    %49 = arith.subf %45, %48 : vector<9x256xf32>
    %50 = math.exp %49 : vector<9x256xf32>
    %cst_20 = arith.constant dense<0.000000e+00> : vector<256xf32>
    %51 = vector.multi_reduction <add>, %50, %cst_20 [0] : vector<9x256xf32> to vector<256xf32>
    %52 = vector.shape_cast %51 : vector<256xf32> to vector<1x256xf32>
    %53 = tpu.reciprocal %52 {approx = true} : vector<1x256xf32> -> vector<1x256xf32>
    %54 = vector.broadcast %53 : vector<1x256xf32> to vector<9x256xf32>
    %55 = arith.mulf %50, %54 : vector<9x256xf32>
    %56 = tpu.iota {dimensions = array<i32: 0>} : vector<9x256xi32>
    %57 = arith.sitofp %56 : vector<9x256xi32> to vector<9x256xf32>
    %cst_21 = arith.constant 8.000000e+00 : f32
    %58 = vector.broadcast %cst_21 : f32 to vector<9x256xf32>
    %59 = arith.subf %58, %57 : vector<9x256xf32>
    %cst_22 = arith.constant dense<0xFF800000> : vector<256xf32>
    %60 = vector.multi_reduction <maximumf>, %45, %cst_22 [0] : vector<9x256xf32> to vector<256xf32>
    %61 = vector.shape_cast %60 : vector<256xf32> to vector<1x256xf32>
    %62 = vector.broadcast %61 : vector<1x256xf32> to vector<9x256xf32>
    %63 = arith.cmpf oeq, %45, %62 : vector<9x256xf32>
    %cst_23 = arith.constant -1.000000e+00 : f32
    %64 = vector.broadcast %cst_23 : f32 to vector<9x256xf32>
    %65 = arith.select %63, %59, %64 : vector<9x256xi1>, vector<9x256xf32>
    %cst_24 = arith.constant dense<0xFF800000> : vector<256xf32>
    %66 = vector.multi_reduction <maximumf>, %65, %cst_24 [0] : vector<9x256xf32> to vector<256xf32>
    %67 = vector.shape_cast %66 : vector<256xf32> to vector<1x256xf32>
    %68 = vector.broadcast %67 : vector<1x256xf32> to vector<9x256xf32>
    %69 = arith.cmpf oeq, %59, %68 : vector<9x256xf32>
    %cst_25 = arith.constant 0.000000e+00 : f32
    %70 = vector.broadcast %cst_25 : f32 to vector<9x256xf32>
    %71 = arith.select %69, %55, %70 : vector<9x256xi1>, vector<9x256xf32>
    %cst_26 = arith.constant dense<0.000000e+00> : vector<256xf32>
    %72 = vector.multi_reduction <add>, %71, %cst_26 [0] : vector<9x256xf32> to vector<256xf32>
    %73 = vector.shape_cast %72 : vector<256xf32> to vector<1x256xf32>
    %cst_27 = arith.constant 0.000000e+00 : f32
    %74 = vector.broadcast %cst_27 : f32 to vector<9x256xf32>
    %75 = arith.select %69, %30, %74 : vector<9x256xi1>, vector<9x256xf32>
    %cst_28 = arith.constant dense<0.000000e+00> : vector<256xf32>
    %76 = vector.multi_reduction <add>, %75, %cst_28 [0] : vector<9x256xf32> to vector<256xf32>
    %77 = vector.shape_cast %76 : vector<256xf32> to vector<1x256xf32>
    %cst_29 = arith.constant 0xFF800000 : f32
    %78 = vector.broadcast %cst_29 : f32 to vector<9x256xf32>
    %79 = arith.select %69, %78, %45 : vector<9x256xi1>, vector<9x256xf32>
    %cst_30 = arith.constant dense<0xFF800000> : vector<256xf32>
    %80 = vector.multi_reduction <maximumf>, %79, %cst_30 [0] : vector<9x256xf32> to vector<256xf32>
    %81 = vector.shape_cast %80 : vector<256xf32> to vector<1x256xf32>
    %82 = vector.broadcast %81 : vector<1x256xf32> to vector<9x256xf32>
    %83 = arith.cmpf oeq, %79, %82 : vector<9x256xf32>
    %cst_31 = arith.constant -1.000000e+00 : f32
    %84 = vector.broadcast %cst_31 : f32 to vector<9x256xf32>
    %85 = arith.select %83, %59, %84 : vector<9x256xi1>, vector<9x256xf32>
    %cst_32 = arith.constant dense<0xFF800000> : vector<256xf32>
    %86 = vector.multi_reduction <maximumf>, %85, %cst_32 [0] : vector<9x256xf32> to vector<256xf32>
    %87 = vector.shape_cast %86 : vector<256xf32> to vector<1x256xf32>
    %88 = vector.broadcast %87 : vector<1x256xf32> to vector<9x256xf32>
    %89 = arith.cmpf oeq, %59, %88 : vector<9x256xf32>
    %cst_33 = arith.constant 0.000000e+00 : f32
    %90 = vector.broadcast %cst_33 : f32 to vector<9x256xf32>
    %91 = arith.select %89, %55, %90 : vector<9x256xi1>, vector<9x256xf32>
    %cst_34 = arith.constant dense<0.000000e+00> : vector<256xf32>
    %92 = vector.multi_reduction <add>, %91, %cst_34 [0] : vector<9x256xf32> to vector<256xf32>
    %93 = vector.shape_cast %92 : vector<256xf32> to vector<1x256xf32>
    %cst_35 = arith.constant 0.000000e+00 : f32
    %94 = vector.broadcast %cst_35 : f32 to vector<9x256xf32>
    %95 = arith.select %89, %30, %94 : vector<9x256xi1>, vector<9x256xf32>
    %cst_36 = arith.constant dense<0.000000e+00> : vector<256xf32>
    %96 = vector.multi_reduction <add>, %95, %cst_36 [0] : vector<9x256xf32> to vector<256xf32>
    %97 = vector.shape_cast %96 : vector<256xf32> to vector<1x256xf32>
    %cst_37 = arith.constant 0xFF800000 : f32
    %98 = vector.broadcast %cst_37 : f32 to vector<9x256xf32>
    %99 = arith.select %89, %98, %79 : vector<9x256xi1>, vector<9x256xf32>
    %cst_38 = arith.constant dense<0xFF800000> : vector<256xf32>
    %100 = vector.multi_reduction <maximumf>, %99, %cst_38 [0] : vector<9x256xf32> to vector<256xf32>
    %101 = vector.shape_cast %100 : vector<256xf32> to vector<1x256xf32>
    %102 = vector.broadcast %101 : vector<1x256xf32> to vector<9x256xf32>
    %103 = arith.cmpf oeq, %99, %102 : vector<9x256xf32>
    %cst_39 = arith.constant -1.000000e+00 : f32
    %104 = vector.broadcast %cst_39 : f32 to vector<9x256xf32>
    %105 = arith.select %103, %59, %104 : vector<9x256xi1>, vector<9x256xf32>
    %cst_40 = arith.constant dense<0xFF800000> : vector<256xf32>
    %106 = vector.multi_reduction <maximumf>, %105, %cst_40 [0] : vector<9x256xf32> to vector<256xf32>
    %107 = vector.shape_cast %106 : vector<256xf32> to vector<1x256xf32>
    %108 = vector.broadcast %107 : vector<1x256xf32> to vector<9x256xf32>
    %109 = arith.cmpf oeq, %59, %108 : vector<9x256xf32>
    %cst_41 = arith.constant 0.000000e+00 : f32
    %110 = vector.broadcast %cst_41 : f32 to vector<9x256xf32>
    %111 = arith.select %109, %55, %110 : vector<9x256xi1>, vector<9x256xf32>
    %cst_42 = arith.constant dense<0.000000e+00> : vector<256xf32>
    %112 = vector.multi_reduction <add>, %111, %cst_42 [0] : vector<9x256xf32> to vector<256xf32>
    %113 = vector.shape_cast %112 : vector<256xf32> to vector<1x256xf32>
    %cst_43 = arith.constant 0.000000e+00 : f32
    %114 = vector.broadcast %cst_43 : f32 to vector<9x256xf32>
    %115 = arith.select %109, %30, %114 : vector<9x256xi1>, vector<9x256xf32>
    %cst_44 = arith.constant dense<0.000000e+00> : vector<256xf32>
    %116 = vector.multi_reduction <add>, %115, %cst_44 [0] : vector<9x256xf32> to vector<256xf32>
    %117 = vector.shape_cast %116 : vector<256xf32> to vector<1x256xf32>
    %118 = tpu.concatenate %73, %93, %113 in 0 : vector<1x256xf32>, vector<1x256xf32>, vector<1x256xf32> -> vector<3x256xf32>
    %119 = tpu.concatenate %77, %97, %117 in 0 : vector<1x256xf32>, vector<1x256xf32>, vector<1x256xf32> -> vector<3x256xf32>
    %cst_45 = arith.constant 1.600000e+01 : f32
    %120 = vector.broadcast %cst_45 : f32 to vector<3x256xf32>
    %121 = arith.divf %119, %120 : vector<3x256xf32>
    %122 = math.floor %121 : vector<3x256xf32>
    %cst_46 = arith.constant 1.600000e+01 : f32
    %123 = vector.broadcast %cst_46 : f32 to vector<3x256xf32>
    %124 = arith.mulf %122, %123 : vector<3x256xf32>
    %125 = arith.subf %119, %124 : vector<3x256xf32>
    %126 = vector.broadcast %11 : vector<1x256xf32> to vector<3x256xf32>
    %127 = arith.subf %122, %126 : vector<3x256xf32>
    %128 = vector.broadcast %14 : vector<1x256xf32> to vector<3x256xf32>
    %129 = arith.subf %125, %128 : vector<3x256xf32>
    %130 = tpu.concatenate %127, %129, %118 in 0 : vector<3x256xf32>, vector<3x256xf32>, vector<3x256xf32> -> vector<9x256xf32>
    %c0_47 = arith.constant 0 : index
    %c0_48 = arith.constant 0 : index
    %c0_49 = arith.constant 0 : index
    %131 = vector.load %arg6[%c0_47, %c0_48, %c0_49] : memref<1x9x256xf32, #tpu.memory_space<vmem>>, vector<1x9x256xf32>
    %132 = vector.shape_cast %131 : vector<1x9x256xf32> to vector<9x256xf32>
    %133 = vector.shape_cast %130 : vector<9x256xf32> to vector<1x9x256xf32>
    tpu.vector_store %arg6[%c0_47, %c0_48, %c0_49], %133 {strides = array<i32>} : memref<1x9x256xf32, #tpu.memory_space<vmem>>, vector<1x9x256xf32>,
    return
  }
  func.func @transform_0(%arg0: i32, %arg1: i32) -> (i32, i32, i32) {
    %c0_i32 = arith.constant 0 : i32
    %c0_i32_0 = arith.constant 0 : i32
    return %arg0, %c0_i32, %arg1 : i32, i32, i32
  }
  func.func @transform_1(%arg0: i32, %arg1: i32) -> (i32, i32, i32) {
    %c0_i32 = arith.constant 0 : i32
    %c0_i32_0 = arith.constant 0 : i32
    return %arg0, %c0_i32, %arg1 : i32, i32, i32
  }
  func.func @transform_2(%arg0: i32, %arg1: i32) -> (i32, i32, i32) {
    %c0_i32 = arith.constant 0 : i32
    %c0_i32_0 = arith.constant 0 : i32
    return %arg0, %c0_i32, %arg1 : i32, i32, i32
  }
  func.func @transform_3(%arg0: i32, %arg1: i32) -> (i32, i32) {
    %c0_i32 = arith.constant 0 : i32
    %c0_i32_0 = arith.constant 0 : i32
    return %c0_i32, %arg0 : i32, i32
  }
  func.func @transform_4(%arg0: i32, %arg1: i32) -> (i32, i32, i32) {
    %c0_i32 = arith.constant 0 : i32
    %c0_i32_0 = arith.constant 0 : i32
    return %arg0, %c0_i32, %arg1 : i32, i32, i32
  }
}

module attributes {stable_mosaic.version = 11 : i64} {
  func.func @_evaluate_kernel(%arg0: i32, %arg1: i32, %arg2: memref<1x9x256xf32, #tpu.memory_space<vmem>>, %arg3: memref<1x9x256xf32, #tpu.memory_space<vmem>>, %arg4: memref<1x4x256xbf16, #tpu.memory_space<vmem>>, %arg5: memref<4x256xbf16, #tpu.memory_space<vmem>>, %arg6: memref<1x9x256xf32, #tpu.memory_space<vmem>>, %arg7: memref<256x256xf32, #tpu.memory_space<vmem>>) attributes {dimension_semantics = [#tpu.dimension_semantics<parallel>, #tpu.dimension_semantics<parallel>], iteration_bounds = array<i64: 2, 1>, scalar_prefetch = 0 : i64, scratch_operands = 1 : i64, tpu.core_type = #tpu.core_type<tc>, window_params = [{transform_indices = @transform_0, window_bounds = array<i64: 1, 9, 256>}, {transform_indices = @transform_1, window_bounds = array<i64: 1, 9, 256>}, {transform_indices = @transform_2, window_bounds = array<i64: 1, 4, 256>}, {pipeline_mode = #tpu.pipeline_mode<synchronous>, transform_indices = @transform_3, window_bounds = array<i64: 4, 256>}, {transform_indices = @transform_4, window_bounds = array<i64: 1, 9, 256>}]} {
    %c0 = arith.constant 0 : index
    %c0_0 = arith.constant 0 : index
    %c0_1 = arith.constant 0 : index
    %0 = vector.load %arg2[%c0, %c0_0, %c0_1] : memref<1x9x256xf32, #tpu.memory_space<vmem>>, vector<1x9x256xf32>
    %1 = vector.shape_cast %0 : vector<1x9x256xf32> to vector<9x256xf32>
    %c0_2 = arith.constant 0 : index
    %c0_3 = arith.constant 0 : index
    %c0_4 = arith.constant 0 : index
    %2 = vector.load %arg3[%c0_2, %c0_3, %c0_4] : memref<1x9x256xf32, #tpu.memory_space<vmem>>, vector<1x9x256xf32>
    %3 = vector.shape_cast %2 : vector<1x9x256xf32> to vector<9x256xf32>
    %c256_i32 = arith.constant 256 : i32
    %4 = arith.muli %arg1, %c256_i32 : i32
    %5 = tpu.iota {dimensions = array<i32: 1>} : vector<1x256xi32>
    %6 = vector.broadcast %4 : i32 to vector<1x256xi32>
    %7 = arith.addi %6, %5 : vector<1x256xi32>
    %8 = arith.sitofp %7 : vector<1x256xi32> to vector<1x256xf32>
    %cst = arith.constant 1.600000e+01 : f32
    %9 = vector.broadcast %cst : f32 to vector<1x256xf32>
    %10 = arith.divf %8, %9 : vector<1x256xf32>
    %11 = math.floor %10 : vector<1x256xf32>
    %cst_5 = arith.constant 1.600000e+01 : f32
    %12 = vector.broadcast %cst_5 : f32 to vector<1x256xf32>
    %13 = arith.mulf %11, %12 : vector<1x256xf32>
    %14 = arith.subf %8, %13 : vector<1x256xf32>
    %15 = vector.broadcast %11 : vector<1x256xf32> to vector<9x256xf32>
    %16 = arith.addf %15, %1 : vector<9x256xf32>
    %cst_6 = arith.constant 0.000000e+00 : f32
    %cst_7 = arith.constant 1.500000e+01 : f32
    %17 = vector.broadcast %cst_6 : f32 to vector<9x256xf32>
    %18 = arith.maximumf %17, %16 : vector<9x256xf32>
    %19 = vector.broadcast %cst_7 : f32 to vector<9x256xf32>
    %20 = arith.minimumf %19, %18 : vector<9x256xf32>
    %21 = vector.broadcast %14 : vector<1x256xf32> to vector<9x256xf32>
    %22 = arith.addf %21, %3 : vector<9x256xf32>
    %cst_8 = arith.constant 0.000000e+00 : f32
    %cst_9 = arith.constant 1.500000e+01 : f32
    %23 = vector.broadcast %cst_8 : f32 to vector<9x256xf32>
    %24 = arith.maximumf %23, %22 : vector<9x256xf32>
    %25 = vector.broadcast %cst_9 : f32 to vector<9x256xf32>
    %26 = arith.minimumf %25, %24 : vector<9x256xf32>
    %cst_10 = arith.constant 1.600000e+01 : f32
    %27 = vector.broadcast %cst_10 : f32 to vector<9x256xf32>
    %28 = arith.mulf %20, %27 : vector<9x256xf32>
    %29 = arith.addf %28, %26 : vector<9x256xf32>
    %30 = math.floor %29 : vector<9x256xf32>
    %31 = arith.fptosi %30 : vector<9x256xf32> to vector<9x256xi32>
    %c0_11 = arith.constant 0 : index
    %c0_12 = arith.constant 0 : index
    %32 = vector.load %arg5[%c0_11, %c0_12] : memref<4x256xbf16, #tpu.memory_space<vmem>>, vector<4x256xbf16>
    %33 = arith.extf %32 : vector<4x256xbf16> to vector<4x256xf32>
    %c0_13 = arith.constant 0 : index
    %c0_14 = arith.constant 0 : index
    %c0_15 = arith.constant 0 : index
    %34 = vector.load %arg4[%c0_13, %c0_14, %c0_15] : memref<1x4x256xbf16, #tpu.memory_space<vmem>>, vector<1x4x256xbf16>
    %35 = vector.shape_cast %34 : vector<1x4x256xbf16> to vector<4x256xbf16>
    %36 = arith.extf %35 : vector<4x256xbf16> to vector<4x256xf32>
    %cst_16 = arith.constant dense<0.000000e+00> : vector<256x256xf32>
    %37 = tpu.matmul %33, %36, %cst_16 {dimension_numbers = #tpu.dot_dimension_numbers<[0], [0], [1], [1], [0, 1, 1, 1], [], []>} : vector<4x256xf32>, vector<4x256xf32>, vector<256x256xf32> -> vector<256x256xf32>
    %c0_17 = arith.constant 0 : index
    %c0_18 = arith.constant 0 : index
    %38 = vector.load %arg7[%c0_17, %c0_18] : memref<256x256xf32, #tpu.memory_space<vmem>>, vector<256x256xf32>
    tpu.vector_store %arg7[%c0_17, %c0_18], %37 {strides = array<i32>} : memref<256x256xf32, #tpu.memory_space<vmem>>, vector<256x256xf32>,
    %cst_19 = arith.constant 0.000000e+00 : f32
    %39 = vector.broadcast %cst_19 : f32 to vector<9x256xf32>
    %c0_i32 = arith.constant 0 : i32
    %c256_i32_20 = arith.constant 256 : i32
    %40 = arith.muli %c0_i32, %c256_i32_20 : i32
    %41 = tpu.assume_multiple %40, 256 : i32
    %42 = tpu.iota {dimensions = array<i32: 0>} : vector<256x1xi32>
    %43 = vector.broadcast %41 : i32 to vector<256x1xi32>
    %44 = arith.addi %43, %42 : vector<256x1xi32>
    %45 = arith.index_cast %41 : i32 to index
    %c0_21 = arith.constant 0 : index
    %46 = vector.load %arg7[%45, %c0_21] : memref<256x256xf32, #tpu.memory_space<vmem>>, vector<256x256xf32>
    %47 = vector.extract_strided_slice %31 {offsets = [0, 0], sizes = [1, 256], strides = [1, 1]} : vector<9x256xi32> to vector<1x256xi32>
    %48 = vector.broadcast %44 : vector<256x1xi32> to vector<256x256xi32>
    %49 = vector.broadcast %47 : vector<1x256xi32> to vector<256x256xi32>
    %50 = arith.cmpi eq, %48, %49 : vector<256x256xi32>
    %cst_22 = arith.constant 0.000000e+00 : f32
    %51 = vector.broadcast %cst_22 : f32 to vector<256x256xf32>
    %52 = arith.select %50, %46, %51 : vector<256x256xi1>, vector<256x256xf32>
    %cst_23 = arith.constant dense<0.000000e+00> : vector<256xf32>
    %53 = vector.multi_reduction <add>, %52, %cst_23 [0] : vector<256x256xf32> to vector<256xf32>
    %54 = vector.shape_cast %53 : vector<256xf32> to vector<1x256xf32>
    %55 = vector.extract_strided_slice %31 {offsets = [1, 0], sizes = [1, 256], strides = [1, 1]} : vector<9x256xi32> to vector<1x256xi32>
    %56 = vector.broadcast %44 : vector<256x1xi32> to vector<256x256xi32>
    %57 = vector.broadcast %55 : vector<1x256xi32> to vector<256x256xi32>
    %58 = arith.cmpi eq, %56, %57 : vector<256x256xi32>
    %cst_24 = arith.constant 0.000000e+00 : f32
    %59 = vector.broadcast %cst_24 : f32 to vector<256x256xf32>
    %60 = arith.select %58, %46, %59 : vector<256x256xi1>, vector<256x256xf32>
    %cst_25 = arith.constant dense<0.000000e+00> : vector<256xf32>
    %61 = vector.multi_reduction <add>, %60, %cst_25 [0] : vector<256x256xf32> to vector<256xf32>
    %62 = vector.shape_cast %61 : vector<256xf32> to vector<1x256xf32>
    %63 = vector.extract_strided_slice %31 {offsets = [2, 0], sizes = [1, 256], strides = [1, 1]} : vector<9x256xi32> to vector<1x256xi32>
    %64 = vector.broadcast %44 : vector<256x1xi32> to vector<256x256xi32>
    %65 = vector.broadcast %63 : vector<1x256xi32> to vector<256x256xi32>
    %66 = arith.cmpi eq, %64, %65 : vector<256x256xi32>
    %cst_26 = arith.constant 0.000000e+00 : f32
    %67 = vector.broadcast %cst_26 : f32 to vector<256x256xf32>
    %68 = arith.select %66, %46, %67 : vector<256x256xi1>, vector<256x256xf32>
    %cst_27 = arith.constant dense<0.000000e+00> : vector<256xf32>
    %69 = vector.multi_reduction <add>, %68, %cst_27 [0] : vector<256x256xf32> to vector<256xf32>
    %70 = vector.shape_cast %69 : vector<256xf32> to vector<1x256xf32>
    %71 = vector.extract_strided_slice %31 {offsets = [3, 0], sizes = [1, 256], strides = [1, 1]} : vector<9x256xi32> to vector<1x256xi32>
    %72 = vector.broadcast %44 : vector<256x1xi32> to vector<256x256xi32>
    %73 = vector.broadcast %71 : vector<1x256xi32> to vector<256x256xi32>
    %74 = arith.cmpi eq, %72, %73 : vector<256x256xi32>
    %cst_28 = arith.constant 0.000000e+00 : f32
    %75 = vector.broadcast %cst_28 : f32 to vector<256x256xf32>
    %76 = arith.select %74, %46, %75 : vector<256x256xi1>, vector<256x256xf32>
    %cst_29 = arith.constant dense<0.000000e+00> : vector<256xf32>
    %77 = vector.multi_reduction <add>, %76, %cst_29 [0] : vector<256x256xf32> to vector<256xf32>
    %78 = vector.shape_cast %77 : vector<256xf32> to vector<1x256xf32>
    %79 = vector.extract_strided_slice %31 {offsets = [4, 0], sizes = [1, 256], strides = [1, 1]} : vector<9x256xi32> to vector<1x256xi32>
    %80 = vector.broadcast %44 : vector<256x1xi32> to vector<256x256xi32>
    %81 = vector.broadcast %79 : vector<1x256xi32> to vector<256x256xi32>
    %82 = arith.cmpi eq, %80, %81 : vector<256x256xi32>
    %cst_30 = arith.constant 0.000000e+00 : f32
    %83 = vector.broadcast %cst_30 : f32 to vector<256x256xf32>
    %84 = arith.select %82, %46, %83 : vector<256x256xi1>, vector<256x256xf32>
    %cst_31 = arith.constant dense<0.000000e+00> : vector<256xf32>
    %85 = vector.multi_reduction <add>, %84, %cst_31 [0] : vector<256x256xf32> to vector<256xf32>
    %86 = vector.shape_cast %85 : vector<256xf32> to vector<1x256xf32>
    %87 = vector.extract_strided_slice %31 {offsets = [5, 0], sizes = [1, 256], strides = [1, 1]} : vector<9x256xi32> to vector<1x256xi32>
    %88 = vector.broadcast %44 : vector<256x1xi32> to vector<256x256xi32>
    %89 = vector.broadcast %87 : vector<1x256xi32> to vector<256x256xi32>
    %90 = arith.cmpi eq, %88, %89 : vector<256x256xi32>
    %cst_32 = arith.constant 0.000000e+00 : f32
    %91 = vector.broadcast %cst_32 : f32 to vector<256x256xf32>
    %92 = arith.select %90, %46, %91 : vector<256x256xi1>, vector<256x256xf32>
    %cst_33 = arith.constant dense<0.000000e+00> : vector<256xf32>
    %93 = vector.multi_reduction <add>, %92, %cst_33 [0] : vector<256x256xf32> to vector<256xf32>
    %94 = vector.shape_cast %93 : vector<256xf32> to vector<1x256xf32>
    %95 = vector.extract_strided_slice %31 {offsets = [6, 0], sizes = [1, 256], strides = [1, 1]} : vector<9x256xi32> to vector<1x256xi32>
    %96 = vector.broadcast %44 : vector<256x1xi32> to vector<256x256xi32>
    %97 = vector.broadcast %95 : vector<1x256xi32> to vector<256x256xi32>
    %98 = arith.cmpi eq, %96, %97 : vector<256x256xi32>
    %cst_34 = arith.constant 0.000000e+00 : f32
    %99 = vector.broadcast %cst_34 : f32 to vector<256x256xf32>
    %100 = arith.select %98, %46, %99 : vector<256x256xi1>, vector<256x256xf32>
    %cst_35 = arith.constant dense<0.000000e+00> : vector<256xf32>
    %101 = vector.multi_reduction <add>, %100, %cst_35 [0] : vector<256x256xf32> to vector<256xf32>
    %102 = vector.shape_cast %101 : vector<256xf32> to vector<1x256xf32>
    %103 = vector.extract_strided_slice %31 {offsets = [7, 0], sizes = [1, 256], strides = [1, 1]} : vector<9x256xi32> to vector<1x256xi32>
    %104 = vector.broadcast %44 : vector<256x1xi32> to vector<256x256xi32>
    %105 = vector.broadcast %103 : vector<1x256xi32> to vector<256x256xi32>
    %106 = arith.cmpi eq, %104, %105 : vector<256x256xi32>
    %cst_36 = arith.constant 0.000000e+00 : f32
    %107 = vector.broadcast %cst_36 : f32 to vector<256x256xf32>
    %108 = arith.select %106, %46, %107 : vector<256x256xi1>, vector<256x256xf32>
    %cst_37 = arith.constant dense<0.000000e+00> : vector<256xf32>
    %109 = vector.multi_reduction <add>, %108, %cst_37 [0] : vector<256x256xf32> to vector<256xf32>
    %110 = vector.shape_cast %109 : vector<256xf32> to vector<1x256xf32>
    %111 = vector.extract_strided_slice %31 {offsets = [8, 0], sizes = [1, 256], strides = [1, 1]} : vector<9x256xi32> to vector<1x256xi32>
    %112 = vector.broadcast %44 : vector<256x1xi32> to vector<256x256xi32>
    %113 = vector.broadcast %111 : vector<1x256xi32> to vector<256x256xi32>
    %114 = arith.cmpi eq, %112, %113 : vector<256x256xi32>
    %cst_38 = arith.constant 0.000000e+00 : f32
    %115 = vector.broadcast %cst_38 : f32 to vector<256x256xf32>
    %116 = arith.select %114, %46, %115 : vector<256x256xi1>, vector<256x256xf32>
    %cst_39 = arith.constant dense<0.000000e+00> : vector<256xf32>
    %117 = vector.multi_reduction <add>, %116, %cst_39 [0] : vector<256x256xf32> to vector<256xf32>
    %118 = vector.shape_cast %117 : vector<256xf32> to vector<1x256xf32>
    %119 = tpu.concatenate %54, %62, %70, %78, %86, %94, %102, %110, %118 in 0 : vector<1x256xf32>, vector<1x256xf32>, vector<1x256xf32>, vector<1x256xf32>, vector<1x256xf32>, vector<1x256xf32>, vector<1x256xf32>, vector<1x256xf32>, vector<1x256xf32> -> vector<9x256xf32>
    %120 = arith.addf %39, %119 : vector<9x256xf32>
    %c1_i32 = arith.constant 1 : i32
    %cst_40 = arith.constant 1.000000e+00 : f32
    %121 = vector.broadcast %cst_40 : f32 to vector<9x256xf32>
    %122 = arith.mulf %120, %121 : vector<9x256xf32>
    %cst_41 = arith.constant dense<0xFF800000> : vector<256xf32>
    %123 = vector.multi_reduction <maximumf>, %122, %cst_41 [0] : vector<9x256xf32> to vector<256xf32>
    %124 = vector.shape_cast %123 : vector<256xf32> to vector<1x256xf32>
    %125 = vector.broadcast %124 : vector<1x256xf32> to vector<9x256xf32>
    %126 = arith.subf %122, %125 : vector<9x256xf32>
    %127 = math.exp %126 : vector<9x256xf32>
    %cst_42 = arith.constant dense<0.000000e+00> : vector<256xf32>
    %128 = vector.multi_reduction <add>, %127, %cst_42 [0] : vector<9x256xf32> to vector<256xf32>
    %129 = vector.shape_cast %128 : vector<256xf32> to vector<1x256xf32>
    %130 = tpu.reciprocal %129 {approx = true} : vector<1x256xf32> -> vector<1x256xf32>
    %131 = vector.broadcast %130 : vector<1x256xf32> to vector<9x256xf32>
    %132 = arith.mulf %127, %131 : vector<9x256xf32>
    %133 = tpu.iota {dimensions = array<i32: 0>} : vector<9x256xi32>
    %134 = arith.sitofp %133 : vector<9x256xi32> to vector<9x256xf32>
    %cst_43 = arith.constant 8.000000e+00 : f32
    %135 = vector.broadcast %cst_43 : f32 to vector<9x256xf32>
    %136 = arith.subf %135, %134 : vector<9x256xf32>
    %cst_44 = arith.constant dense<0xFF800000> : vector<256xf32>
    %137 = vector.multi_reduction <maximumf>, %122, %cst_44 [0] : vector<9x256xf32> to vector<256xf32>
    %138 = vector.shape_cast %137 : vector<256xf32> to vector<1x256xf32>
    %139 = vector.broadcast %138 : vector<1x256xf32> to vector<9x256xf32>
    %140 = arith.cmpf oeq, %122, %139 : vector<9x256xf32>
    %cst_45 = arith.constant -1.000000e+00 : f32
    %141 = vector.broadcast %cst_45 : f32 to vector<9x256xf32>
    %142 = arith.select %140, %136, %141 : vector<9x256xi1>, vector<9x256xf32>
    %cst_46 = arith.constant dense<0xFF800000> : vector<256xf32>
    %143 = vector.multi_reduction <maximumf>, %142, %cst_46 [0] : vector<9x256xf32> to vector<256xf32>
    %144 = vector.shape_cast %143 : vector<256xf32> to vector<1x256xf32>
    %145 = vector.broadcast %144 : vector<1x256xf32> to vector<9x256xf32>
    %146 = arith.cmpf oeq, %136, %145 : vector<9x256xf32>
    %cst_47 = arith.constant 0.000000e+00 : f32
    %147 = vector.broadcast %cst_47 : f32 to vector<9x256xf32>
    %148 = arith.select %146, %132, %147 : vector<9x256xi1>, vector<9x256xf32>
    %cst_48 = arith.constant dense<0.000000e+00> : vector<256xf32>
    %149 = vector.multi_reduction <add>, %148, %cst_48 [0] : vector<9x256xf32> to vector<256xf32>
    %150 = vector.shape_cast %149 : vector<256xf32> to vector<1x256xf32>
    %cst_49 = arith.constant 0.000000e+00 : f32
    %151 = vector.broadcast %cst_49 : f32 to vector<9x256xf32>
    %152 = arith.select %146, %30, %151 : vector<9x256xi1>, vector<9x256xf32>
    %cst_50 = arith.constant dense<0.000000e+00> : vector<256xf32>
    %153 = vector.multi_reduction <add>, %152, %cst_50 [0] : vector<9x256xf32> to vector<256xf32>
    %154 = vector.shape_cast %153 : vector<256xf32> to vector<1x256xf32>
    %cst_51 = arith.constant 0xFF800000 : f32
    %155 = vector.broadcast %cst_51 : f32 to vector<9x256xf32>
    %156 = arith.select %146, %155, %122 : vector<9x256xi1>, vector<9x256xf32>
    %cst_52 = arith.constant dense<0xFF800000> : vector<256xf32>
    %157 = vector.multi_reduction <maximumf>, %156, %cst_52 [0] : vector<9x256xf32> to vector<256xf32>
    %158 = vector.shape_cast %157 : vector<256xf32> to vector<1x256xf32>
    %159 = vector.broadcast %158 : vector<1x256xf32> to vector<9x256xf32>
    %160 = arith.cmpf oeq, %156, %159 : vector<9x256xf32>
    %cst_53 = arith.constant -1.000000e+00 : f32
    %161 = vector.broadcast %cst_53 : f32 to vector<9x256xf32>
    %162 = arith.select %160, %136, %161 : vector<9x256xi1>, vector<9x256xf32>
    %cst_54 = arith.constant dense<0xFF800000> : vector<256xf32>
    %163 = vector.multi_reduction <maximumf>, %162, %cst_54 [0] : vector<9x256xf32> to vector<256xf32>
    %164 = vector.shape_cast %163 : vector<256xf32> to vector<1x256xf32>
    %165 = vector.broadcast %164 : vector<1x256xf32> to vector<9x256xf32>
    %166 = arith.cmpf oeq, %136, %165 : vector<9x256xf32>
    %cst_55 = arith.constant 0.000000e+00 : f32
    %167 = vector.broadcast %cst_55 : f32 to vector<9x256xf32>
    %168 = arith.select %166, %132, %167 : vector<9x256xi1>, vector<9x256xf32>
    %cst_56 = arith.constant dense<0.000000e+00> : vector<256xf32>
    %169 = vector.multi_reduction <add>, %168, %cst_56 [0] : vector<9x256xf32> to vector<256xf32>
    %170 = vector.shape_cast %169 : vector<256xf32> to vector<1x256xf32>
    %cst_57 = arith.constant 0.000000e+00 : f32
    %171 = vector.broadcast %cst_57 : f32 to vector<9x256xf32>
    %172 = arith.select %166, %30, %171 : vector<9x256xi1>, vector<9x256xf32>
    %cst_58 = arith.constant dense<0.000000e+00> : vector<256xf32>
    %173 = vector.multi_reduction <add>, %172, %cst_58 [0] : vector<9x256xf32> to vector<256xf32>
    %174 = vector.shape_cast %173 : vector<256xf32> to vector<1x256xf32>
    %cst_59 = arith.constant 0xFF800000 : f32
    %175 = vector.broadcast %cst_59 : f32 to vector<9x256xf32>
    %176 = arith.select %166, %175, %156 : vector<9x256xi1>, vector<9x256xf32>
    %cst_60 = arith.constant dense<0xFF800000> : vector<256xf32>
    %177 = vector.multi_reduction <maximumf>, %176, %cst_60 [0] : vector<9x256xf32> to vector<256xf32>
    %178 = vector.shape_cast %177 : vector<256xf32> to vector<1x256xf32>
    %179 = vector.broadcast %178 : vector<1x256xf32> to vector<9x256xf32>
    %180 = arith.cmpf oeq, %176, %179 : vector<9x256xf32>
    %cst_61 = arith.constant -1.000000e+00 : f32
    %181 = vector.broadcast %cst_61 : f32 to vector<9x256xf32>
    %182 = arith.select %180, %136, %181 : vector<9x256xi1>, vector<9x256xf32>
    %cst_62 = arith.constant dense<0xFF800000> : vector<256xf32>
    %183 = vector.multi_reduction <maximumf>, %182, %cst_62 [0] : vector<9x256xf32> to vector<256xf32>
    %184 = vector.shape_cast %183 : vector<256xf32> to vector<1x256xf32>
    %185 = vector.broadcast %184 : vector<1x256xf32> to vector<9x256xf32>
    %186 = arith.cmpf oeq, %136, %185 : vector<9x256xf32>
    %cst_63 = arith.constant 0.000000e+00 : f32
    %187 = vector.broadcast %cst_63 : f32 to vector<9x256xf32>
    %188 = arith.select %186, %132, %187 : vector<9x256xi1>, vector<9x256xf32>
    %cst_64 = arith.constant dense<0.000000e+00> : vector<256xf32>
    %189 = vector.multi_reduction <add>, %188, %cst_64 [0] : vector<9x256xf32> to vector<256xf32>
    %190 = vector.shape_cast %189 : vector<256xf32> to vector<1x256xf32>
    %cst_65 = arith.constant 0.000000e+00 : f32
    %191 = vector.broadcast %cst_65 : f32 to vector<9x256xf32>
    %192 = arith.select %186, %30, %191 : vector<9x256xi1>, vector<9x256xf32>
    %cst_66 = arith.constant dense<0.000000e+00> : vector<256xf32>
    %193 = vector.multi_reduction <add>, %192, %cst_66 [0] : vector<9x256xf32> to vector<256xf32>
    %194 = vector.shape_cast %193 : vector<256xf32> to vector<1x256xf32>
    %195 = tpu.concatenate %150, %170, %190 in 0 : vector<1x256xf32>, vector<1x256xf32>, vector<1x256xf32> -> vector<3x256xf32>
    %196 = tpu.concatenate %154, %174, %194 in 0 : vector<1x256xf32>, vector<1x256xf32>, vector<1x256xf32> -> vector<3x256xf32>
    %cst_67 = arith.constant 1.600000e+01 : f32
    %197 = vector.broadcast %cst_67 : f32 to vector<3x256xf32>
    %198 = arith.divf %196, %197 : vector<3x256xf32>
    %199 = math.floor %198 : vector<3x256xf32>
    %cst_68 = arith.constant 1.600000e+01 : f32
    %200 = vector.broadcast %cst_68 : f32 to vector<3x256xf32>
    %201 = arith.mulf %199, %200 : vector<3x256xf32>
    %202 = arith.subf %196, %201 : vector<3x256xf32>
    %203 = vector.broadcast %11 : vector<1x256xf32> to vector<3x256xf32>
    %204 = arith.subf %199, %203 : vector<3x256xf32>
    %205 = vector.broadcast %14 : vector<1x256xf32> to vector<3x256xf32>
    %206 = arith.subf %202, %205 : vector<3x256xf32>
    %207 = tpu.concatenate %204, %206, %195 in 0 : vector<3x256xf32>, vector<3x256xf32>, vector<3x256xf32> -> vector<9x256xf32>
    %c0_69 = arith.constant 0 : index
    %c0_70 = arith.constant 0 : index
    %c0_71 = arith.constant 0 : index
    %208 = vector.load %arg6[%c0_69, %c0_70, %c0_71] : memref<1x9x256xf32, #tpu.memory_space<vmem>>, vector<1x9x256xf32>
    %209 = vector.shape_cast %208 : vector<1x9x256xf32> to vector<9x256xf32>
    %210 = vector.shape_cast %207 : vector<9x256xf32> to vector<1x9x256xf32>
    tpu.vector_store %arg6[%c0_69, %c0_70, %c0_71], %210 {strides = array<i32>} : memref<1x9x256xf32, #tpu.memory_space<vmem>>, vector<1x9x256xf32>,
    return
  }
  func.func @transform_0(%arg0: i32, %arg1: i32) -> (i32, i32, i32) {
    %c0_i32 = arith.constant 0 : i32
    %c0_i32_0 = arith.constant 0 : i32
    return %arg0, %c0_i32, %arg1 : i32, i32, i32
  }
  func.func @transform_1(%arg0: i32, %arg1: i32) -> (i32, i32, i32) {
    %c0_i32 = arith.constant 0 : i32
    %c0_i32_0 = arith.constant 0 : i32
    return %arg0, %c0_i32, %arg1 : i32, i32, i32
  }
  func.func @transform_2(%arg0: i32, %arg1: i32) -> (i32, i32, i32) {
    %c0_i32 = arith.constant 0 : i32
    %c0_i32_0 = arith.constant 0 : i32
    return %arg0, %c0_i32, %arg1 : i32, i32, i32
  }
  func.func @transform_3(%arg0: i32, %arg1: i32) -> (i32, i32) {
    %c0_i32 = arith.constant 0 : i32
    %c0_i32_0 = arith.constant 0 : i32
    return %c0_i32, %arg0 : i32, i32
  }
  func.func @transform_4(%arg0: i32, %arg1: i32) -> (i32, i32, i32) {
    %c0_i32 = arith.constant 0 : i32
    %c0_i32_0 = arith.constant 0 : i32
    return %arg0, %c0_i32, %arg1 : i32, i32, i32
  }
}

module attributes {stable_mosaic.version = 11 : i64} {
  func.func @_evaluate_kernel(%arg0: i32, %arg1: i32, %arg2: memref<1x9x256xf32, #tpu.memory_space<vmem>>, %arg3: memref<1x9x256xf32, #tpu.memory_space<vmem>>, %arg4: memref<1x4x256xbf16, #tpu.memory_space<vmem>>, %arg5: memref<4x256xbf16, #tpu.memory_space<vmem>>, %arg6: memref<1x9x256xf32, #tpu.memory_space<vmem>>, %arg7: memref<256x256xf32, #tpu.memory_space<vmem>>) attributes {dimension_semantics = [#tpu.dimension_semantics<parallel>, #tpu.dimension_semantics<parallel>], iteration_bounds = array<i64: 2, 1>, scalar_prefetch = 0 : i64, scratch_operands = 1 : i64, tpu.core_type = #tpu.core_type<tc>, window_params = [{transform_indices = @transform_0, window_bounds = array<i64: 1, 9, 256>}, {transform_indices = @transform_1, window_bounds = array<i64: 1, 9, 256>}, {transform_indices = @transform_2, window_bounds = array<i64: 1, 4, 256>}, {transform_indices = @transform_3, window_bounds = array<i64: 4, 256>}, {transform_indices = @transform_4, window_bounds = array<i64: 1, 9, 256>}]} {
    %c0 = arith.constant 0 : index
    %c0_0 = arith.constant 0 : index
    %c0_1 = arith.constant 0 : index
    %0 = vector.load %arg2[%c0, %c0_0, %c0_1] : memref<1x9x256xf32, #tpu.memory_space<vmem>>, vector<1x9x256xf32>
    %1 = vector.shape_cast %0 : vector<1x9x256xf32> to vector<9x256xf32>
    %c0_2 = arith.constant 0 : index
    %c0_3 = arith.constant 0 : index
    %c0_4 = arith.constant 0 : index
    %2 = vector.load %arg3[%c0_2, %c0_3, %c0_4] : memref<1x9x256xf32, #tpu.memory_space<vmem>>, vector<1x9x256xf32>
    %3 = vector.shape_cast %2 : vector<1x9x256xf32> to vector<9x256xf32>
    %c256_i32 = arith.constant 256 : i32
    %4 = arith.muli %arg1, %c256_i32 : i32
    %5 = tpu.iota {dimensions = array<i32: 1>} : vector<1x256xi32>
    %6 = vector.broadcast %4 : i32 to vector<1x256xi32>
    %7 = arith.addi %6, %5 : vector<1x256xi32>
    %8 = arith.sitofp %7 : vector<1x256xi32> to vector<1x256xf32>
    %cst = arith.constant 1.600000e+01 : f32
    %9 = vector.broadcast %cst : f32 to vector<1x256xf32>
    %10 = arith.divf %8, %9 : vector<1x256xf32>
    %11 = math.floor %10 : vector<1x256xf32>
    %cst_5 = arith.constant 1.600000e+01 : f32
    %12 = vector.broadcast %cst_5 : f32 to vector<1x256xf32>
    %13 = arith.mulf %11, %12 : vector<1x256xf32>
    %14 = arith.subf %8, %13 : vector<1x256xf32>
    %15 = vector.broadcast %11 : vector<1x256xf32> to vector<9x256xf32>
    %16 = arith.addf %15, %1 : vector<9x256xf32>
    %cst_6 = arith.constant 0.000000e+00 : f32
    %cst_7 = arith.constant 1.500000e+01 : f32
    %17 = vector.broadcast %cst_6 : f32 to vector<9x256xf32>
    %18 = arith.maximumf %17, %16 : vector<9x256xf32>
    %19 = vector.broadcast %cst_7 : f32 to vector<9x256xf32>
    %20 = arith.minimumf %19, %18 : vector<9x256xf32>
    %21 = vector.broadcast %14 : vector<1x256xf32> to vector<9x256xf32>
    %22 = arith.addf %21, %3 : vector<9x256xf32>
    %cst_8 = arith.constant 0.000000e+00 : f32
    %cst_9 = arith.constant 1.500000e+01 : f32
    %23 = vector.broadcast %cst_8 : f32 to vector<9x256xf32>
    %24 = arith.maximumf %23, %22 : vector<9x256xf32>
    %25 = vector.broadcast %cst_9 : f32 to vector<9x256xf32>
    %26 = arith.minimumf %25, %24 : vector<9x256xf32>
    %cst_10 = arith.constant 1.600000e+01 : f32
    %27 = vector.broadcast %cst_10 : f32 to vector<9x256xf32>
    %28 = arith.mulf %20, %27 : vector<9x256xf32>
    %29 = arith.addf %28, %26 : vector<9x256xf32>
    %30 = math.floor %29 : vector<9x256xf32>
    %31 = arith.fptosi %30 : vector<9x256xf32> to vector<9x256xi32>
    %c0_11 = arith.constant 0 : index
    %c0_12 = arith.constant 0 : index
    %32 = vector.load %arg5[%c0_11, %c0_12] : memref<4x256xbf16, #tpu.memory_space<vmem>>, vector<4x256xbf16>
    %33 = arith.extf %32 : vector<4x256xbf16> to vector<4x256xf32>
    %c0_13 = arith.constant 0 : index
    %c0_14 = arith.constant 0 : index
    %c0_15 = arith.constant 0 : index
    %34 = vector.load %arg4[%c0_13, %c0_14, %c0_15] : memref<1x4x256xbf16, #tpu.memory_space<vmem>>, vector<1x4x256xbf16>
    %35 = vector.shape_cast %34 : vector<1x4x256xbf16> to vector<4x256xbf16>
    %36 = arith.extf %35 : vector<4x256xbf16> to vector<4x256xf32>
    %cst_16 = arith.constant dense<0.000000e+00> : vector<256x256xf32>
    %37 = tpu.matmul %33, %36, %cst_16 {dimension_numbers = #tpu.dot_dimension_numbers<[0], [0], [1], [1], [0, 1, 1, 1], [], []>} : vector<4x256xf32>, vector<4x256xf32>, vector<256x256xf32> -> vector<256x256xf32>
    %c0_17 = arith.constant 0 : index
    %c0_18 = arith.constant 0 : index
    %38 = vector.load %arg7[%c0_17, %c0_18] : memref<256x256xf32, #tpu.memory_space<vmem>>, vector<256x256xf32>
    tpu.vector_store %arg7[%c0_17, %c0_18], %37 {strides = array<i32>} : memref<256x256xf32, #tpu.memory_space<vmem>>, vector<256x256xf32>,
    %cst_19 = arith.constant 0.000000e+00 : f32
    %39 = vector.broadcast %cst_19 : f32 to vector<9x256xf32>
    %c0_i32 = arith.constant 0 : i32
    %c256_i32_20 = arith.constant 256 : i32
    %40 = arith.muli %c0_i32, %c256_i32_20 : i32
    %41 = tpu.assume_multiple %40, 256 : i32
    %42 = tpu.iota {dimensions = array<i32: 0>} : vector<256x1xi32>
    %43 = vector.broadcast %41 : i32 to vector<256x1xi32>
    %44 = arith.addi %43, %42 : vector<256x1xi32>
    %45 = arith.index_cast %41 : i32 to index
    %c0_21 = arith.constant 0 : index
    %46 = vector.load %arg7[%45, %c0_21] : memref<256x256xf32, #tpu.memory_space<vmem>>, vector<256x256xf32>
    %47 = vector.extract_strided_slice %31 {offsets = [0, 0], sizes = [1, 256], strides = [1, 1]} : vector<9x256xi32> to vector<1x256xi32>
    %48 = vector.broadcast %44 : vector<256x1xi32> to vector<256x256xi32>
    %49 = vector.broadcast %47 : vector<1x256xi32> to vector<256x256xi32>
    %50 = arith.cmpi eq, %48, %49 : vector<256x256xi32>
    %cst_22 = arith.constant 0.000000e+00 : f32
    %51 = vector.broadcast %cst_22 : f32 to vector<256x256xf32>
    %52 = arith.select %50, %46, %51 : vector<256x256xi1>, vector<256x256xf32>
    %cst_23 = arith.constant dense<0.000000e+00> : vector<256xf32>
    %53 = vector.multi_reduction <add>, %52, %cst_23 [0] : vector<256x256xf32> to vector<256xf32>
    %54 = vector.shape_cast %53 : vector<256xf32> to vector<1x256xf32>
    %55 = vector.extract_strided_slice %31 {offsets = [1, 0], sizes = [1, 256], strides = [1, 1]} : vector<9x256xi32> to vector<1x256xi32>
    %56 = vector.broadcast %44 : vector<256x1xi32> to vector<256x256xi32>
    %57 = vector.broadcast %55 : vector<1x256xi32> to vector<256x256xi32>
    %58 = arith.cmpi eq, %56, %57 : vector<256x256xi32>
    %cst_24 = arith.constant 0.000000e+00 : f32
    %59 = vector.broadcast %cst_24 : f32 to vector<256x256xf32>
    %60 = arith.select %58, %46, %59 : vector<256x256xi1>, vector<256x256xf32>
    %cst_25 = arith.constant dense<0.000000e+00> : vector<256xf32>
    %61 = vector.multi_reduction <add>, %60, %cst_25 [0] : vector<256x256xf32> to vector<256xf32>
    %62 = vector.shape_cast %61 : vector<256xf32> to vector<1x256xf32>
    %63 = vector.extract_strided_slice %31 {offsets = [2, 0], sizes = [1, 256], strides = [1, 1]} : vector<9x256xi32> to vector<1x256xi32>
    %64 = vector.broadcast %44 : vector<256x1xi32> to vector<256x256xi32>
    %65 = vector.broadcast %63 : vector<1x256xi32> to vector<256x256xi32>
    %66 = arith.cmpi eq, %64, %65 : vector<256x256xi32>
    %cst_26 = arith.constant 0.000000e+00 : f32
    %67 = vector.broadcast %cst_26 : f32 to vector<256x256xf32>
    %68 = arith.select %66, %46, %67 : vector<256x256xi1>, vector<256x256xf32>
    %cst_27 = arith.constant dense<0.000000e+00> : vector<256xf32>
    %69 = vector.multi_reduction <add>, %68, %cst_27 [0] : vector<256x256xf32> to vector<256xf32>
    %70 = vector.shape_cast %69 : vector<256xf32> to vector<1x256xf32>
    %71 = vector.extract_strided_slice %31 {offsets = [3, 0], sizes = [1, 256], strides = [1, 1]} : vector<9x256xi32> to vector<1x256xi32>
    %72 = vector.broadcast %44 : vector<256x1xi32> to vector<256x256xi32>
    %73 = vector.broadcast %71 : vector<1x256xi32> to vector<256x256xi32>
    %74 = arith.cmpi eq, %72, %73 : vector<256x256xi32>
    %cst_28 = arith.constant 0.000000e+00 : f32
    %75 = vector.broadcast %cst_28 : f32 to vector<256x256xf32>
    %76 = arith.select %74, %46, %75 : vector<256x256xi1>, vector<256x256xf32>
    %cst_29 = arith.constant dense<0.000000e+00> : vector<256xf32>
    %77 = vector.multi_reduction <add>, %76, %cst_29 [0] : vector<256x256xf32> to vector<256xf32>
    %78 = vector.shape_cast %77 : vector<256xf32> to vector<1x256xf32>
    %79 = vector.extract_strided_slice %31 {offsets = [4, 0], sizes = [1, 256], strides = [1, 1]} : vector<9x256xi32> to vector<1x256xi32>
    %80 = vector.broadcast %44 : vector<256x1xi32> to vector<256x256xi32>
    %81 = vector.broadcast %79 : vector<1x256xi32> to vector<256x256xi32>
    %82 = arith.cmpi eq, %80, %81 : vector<256x256xi32>
    %cst_30 = arith.constant 0.000000e+00 : f32
    %83 = vector.broadcast %cst_30 : f32 to vector<256x256xf32>
    %84 = arith.select %82, %46, %83 : vector<256x256xi1>, vector<256x256xf32>
    %cst_31 = arith.constant dense<0.000000e+00> : vector<256xf32>
    %85 = vector.multi_reduction <add>, %84, %cst_31 [0] : vector<256x256xf32> to vector<256xf32>
    %86 = vector.shape_cast %85 : vector<256xf32> to vector<1x256xf32>
    %87 = vector.extract_strided_slice %31 {offsets = [5, 0], sizes = [1, 256], strides = [1, 1]} : vector<9x256xi32> to vector<1x256xi32>
    %88 = vector.broadcast %44 : vector<256x1xi32> to vector<256x256xi32>
    %89 = vector.broadcast %87 : vector<1x256xi32> to vector<256x256xi32>
    %90 = arith.cmpi eq, %88, %89 : vector<256x256xi32>
    %cst_32 = arith.constant 0.000000e+00 : f32
    %91 = vector.broadcast %cst_32 : f32 to vector<256x256xf32>
    %92 = arith.select %90, %46, %91 : vector<256x256xi1>, vector<256x256xf32>
    %cst_33 = arith.constant dense<0.000000e+00> : vector<256xf32>
    %93 = vector.multi_reduction <add>, %92, %cst_33 [0] : vector<256x256xf32> to vector<256xf32>
    %94 = vector.shape_cast %93 : vector<256xf32> to vector<1x256xf32>
    %95 = vector.extract_strided_slice %31 {offsets = [6, 0], sizes = [1, 256], strides = [1, 1]} : vector<9x256xi32> to vector<1x256xi32>
    %96 = vector.broadcast %44 : vector<256x1xi32> to vector<256x256xi32>
    %97 = vector.broadcast %95 : vector<1x256xi32> to vector<256x256xi32>
    %98 = arith.cmpi eq, %96, %97 : vector<256x256xi32>
    %cst_34 = arith.constant 0.000000e+00 : f32
    %99 = vector.broadcast %cst_34 : f32 to vector<256x256xf32>
    %100 = arith.select %98, %46, %99 : vector<256x256xi1>, vector<256x256xf32>
    %cst_35 = arith.constant dense<0.000000e+00> : vector<256xf32>
    %101 = vector.multi_reduction <add>, %100, %cst_35 [0] : vector<256x256xf32> to vector<256xf32>
    %102 = vector.shape_cast %101 : vector<256xf32> to vector<1x256xf32>
    %103 = vector.extract_strided_slice %31 {offsets = [7, 0], sizes = [1, 256], strides = [1, 1]} : vector<9x256xi32> to vector<1x256xi32>
    %104 = vector.broadcast %44 : vector<256x1xi32> to vector<256x256xi32>
    %105 = vector.broadcast %103 : vector<1x256xi32> to vector<256x256xi32>
    %106 = arith.cmpi eq, %104, %105 : vector<256x256xi32>
    %cst_36 = arith.constant 0.000000e+00 : f32
    %107 = vector.broadcast %cst_36 : f32 to vector<256x256xf32>
    %108 = arith.select %106, %46, %107 : vector<256x256xi1>, vector<256x256xf32>
    %cst_37 = arith.constant dense<0.000000e+00> : vector<256xf32>
    %109 = vector.multi_reduction <add>, %108, %cst_37 [0] : vector<256x256xf32> to vector<256xf32>
    %110 = vector.shape_cast %109 : vector<256xf32> to vector<1x256xf32>
    %111 = vector.extract_strided_slice %31 {offsets = [8, 0], sizes = [1, 256], strides = [1, 1]} : vector<9x256xi32> to vector<1x256xi32>
    %112 = vector.broadcast %44 : vector<256x1xi32> to vector<256x256xi32>
    %113 = vector.broadcast %111 : vector<1x256xi32> to vector<256x256xi32>
    %114 = arith.cmpi eq, %112, %113 : vector<256x256xi32>
    %cst_38 = arith.constant 0.000000e+00 : f32
    %115 = vector.broadcast %cst_38 : f32 to vector<256x256xf32>
    %116 = arith.select %114, %46, %115 : vector<256x256xi1>, vector<256x256xf32>
    %cst_39 = arith.constant dense<0.000000e+00> : vector<256xf32>
    %117 = vector.multi_reduction <add>, %116, %cst_39 [0] : vector<256x256xf32> to vector<256xf32>
    %118 = vector.shape_cast %117 : vector<256xf32> to vector<1x256xf32>
    %119 = tpu.concatenate %54, %62, %70, %78, %86, %94, %102, %110, %118 in 0 : vector<1x256xf32>, vector<1x256xf32>, vector<1x256xf32>, vector<1x256xf32>, vector<1x256xf32>, vector<1x256xf32>, vector<1x256xf32>, vector<1x256xf32>, vector<1x256xf32> -> vector<9x256xf32>
    %120 = arith.addf %39, %119 : vector<9x256xf32>
    %c1_i32 = arith.constant 1 : i32
    %cst_40 = arith.constant 1.000000e+00 : f32
    %121 = vector.broadcast %cst_40 : f32 to vector<9x256xf32>
    %122 = arith.mulf %120, %121 : vector<9x256xf32>
    %cst_41 = arith.constant dense<0xFF800000> : vector<256xf32>
    %123 = vector.multi_reduction <maximumf>, %122, %cst_41 [0] : vector<9x256xf32> to vector<256xf32>
    %124 = vector.shape_cast %123 : vector<256xf32> to vector<1x256xf32>
    %125 = vector.broadcast %124 : vector<1x256xf32> to vector<9x256xf32>
    %126 = arith.subf %122, %125 : vector<9x256xf32>
    %127 = math.exp %126 : vector<9x256xf32>
    %cst_42 = arith.constant dense<0.000000e+00> : vector<256xf32>
    %128 = vector.multi_reduction <add>, %127, %cst_42 [0] : vector<9x256xf32> to vector<256xf32>
    %129 = vector.shape_cast %128 : vector<256xf32> to vector<1x256xf32>
    %130 = tpu.reciprocal %129 {approx = true} : vector<1x256xf32> -> vector<1x256xf32>
    %131 = vector.broadcast %130 : vector<1x256xf32> to vector<9x256xf32>
    %132 = arith.mulf %127, %131 : vector<9x256xf32>
    %133 = tpu.iota {dimensions = array<i32: 0>} : vector<9x256xi32>
    %134 = arith.sitofp %133 : vector<9x256xi32> to vector<9x256xf32>
    %cst_43 = arith.constant 8.000000e+00 : f32
    %135 = vector.broadcast %cst_43 : f32 to vector<9x256xf32>
    %136 = arith.subf %135, %134 : vector<9x256xf32>
    %cst_44 = arith.constant dense<0xFF800000> : vector<256xf32>
    %137 = vector.multi_reduction <maximumf>, %122, %cst_44 [0] : vector<9x256xf32> to vector<256xf32>
    %138 = vector.shape_cast %137 : vector<256xf32> to vector<1x256xf32>
    %139 = vector.broadcast %138 : vector<1x256xf32> to vector<9x256xf32>
    %140 = arith.cmpf oeq, %122, %139 : vector<9x256xf32>
    %cst_45 = arith.constant -1.000000e+00 : f32
    %141 = vector.broadcast %cst_45 : f32 to vector<9x256xf32>
    %142 = arith.select %140, %136, %141 : vector<9x256xi1>, vector<9x256xf32>
    %cst_46 = arith.constant dense<0xFF800000> : vector<256xf32>
    %143 = vector.multi_reduction <maximumf>, %142, %cst_46 [0] : vector<9x256xf32> to vector<256xf32>
    %144 = vector.shape_cast %143 : vector<256xf32> to vector<1x256xf32>
    %145 = vector.broadcast %144 : vector<1x256xf32> to vector<9x256xf32>
    %146 = arith.cmpf oeq, %136, %145 : vector<9x256xf32>
    %cst_47 = arith.constant 0.000000e+00 : f32
    %147 = vector.broadcast %cst_47 : f32 to vector<9x256xf32>
    %148 = arith.select %146, %132, %147 : vector<9x256xi1>, vector<9x256xf32>
    %cst_48 = arith.constant dense<0.000000e+00> : vector<256xf32>
    %149 = vector.multi_reduction <add>, %148, %cst_48 [0] : vector<9x256xf32> to vector<256xf32>
    %150 = vector.shape_cast %149 : vector<256xf32> to vector<1x256xf32>
    %cst_49 = arith.constant 0.000000e+00 : f32
    %151 = vector.broadcast %cst_49 : f32 to vector<9x256xf32>
    %152 = arith.select %146, %30, %151 : vector<9x256xi1>, vector<9x256xf32>
    %cst_50 = arith.constant dense<0.000000e+00> : vector<256xf32>
    %153 = vector.multi_reduction <add>, %152, %cst_50 [0] : vector<9x256xf32> to vector<256xf32>
    %154 = vector.shape_cast %153 : vector<256xf32> to vector<1x256xf32>
    %cst_51 = arith.constant 0xFF800000 : f32
    %155 = vector.broadcast %cst_51 : f32 to vector<9x256xf32>
    %156 = arith.select %146, %155, %122 : vector<9x256xi1>, vector<9x256xf32>
    %cst_52 = arith.constant dense<0xFF800000> : vector<256xf32>
    %157 = vector.multi_reduction <maximumf>, %156, %cst_52 [0] : vector<9x256xf32> to vector<256xf32>
    %158 = vector.shape_cast %157 : vector<256xf32> to vector<1x256xf32>
    %159 = vector.broadcast %158 : vector<1x256xf32> to vector<9x256xf32>
    %160 = arith.cmpf oeq, %156, %159 : vector<9x256xf32>
    %cst_53 = arith.constant -1.000000e+00 : f32
    %161 = vector.broadcast %cst_53 : f32 to vector<9x256xf32>
    %162 = arith.select %160, %136, %161 : vector<9x256xi1>, vector<9x256xf32>
    %cst_54 = arith.constant dense<0xFF800000> : vector<256xf32>
    %163 = vector.multi_reduction <maximumf>, %162, %cst_54 [0] : vector<9x256xf32> to vector<256xf32>
    %164 = vector.shape_cast %163 : vector<256xf32> to vector<1x256xf32>
    %165 = vector.broadcast %164 : vector<1x256xf32> to vector<9x256xf32>
    %166 = arith.cmpf oeq, %136, %165 : vector<9x256xf32>
    %cst_55 = arith.constant 0.000000e+00 : f32
    %167 = vector.broadcast %cst_55 : f32 to vector<9x256xf32>
    %168 = arith.select %166, %132, %167 : vector<9x256xi1>, vector<9x256xf32>
    %cst_56 = arith.constant dense<0.000000e+00> : vector<256xf32>
    %169 = vector.multi_reduction <add>, %168, %cst_56 [0] : vector<9x256xf32> to vector<256xf32>
    %170 = vector.shape_cast %169 : vector<256xf32> to vector<1x256xf32>
    %cst_57 = arith.constant 0.000000e+00 : f32
    %171 = vector.broadcast %cst_57 : f32 to vector<9x256xf32>
    %172 = arith.select %166, %30, %171 : vector<9x256xi1>, vector<9x256xf32>
    %cst_58 = arith.constant dense<0.000000e+00> : vector<256xf32>
    %173 = vector.multi_reduction <add>, %172, %cst_58 [0] : vector<9x256xf32> to vector<256xf32>
    %174 = vector.shape_cast %173 : vector<256xf32> to vector<1x256xf32>
    %cst_59 = arith.constant 0xFF800000 : f32
    %175 = vector.broadcast %cst_59 : f32 to vector<9x256xf32>
    %176 = arith.select %166, %175, %156 : vector<9x256xi1>, vector<9x256xf32>
    %cst_60 = arith.constant dense<0xFF800000> : vector<256xf32>
    %177 = vector.multi_reduction <maximumf>, %176, %cst_60 [0] : vector<9x256xf32> to vector<256xf32>
    %178 = vector.shape_cast %177 : vector<256xf32> to vector<1x256xf32>
    %179 = vector.broadcast %178 : vector<1x256xf32> to vector<9x256xf32>
    %180 = arith.cmpf oeq, %176, %179 : vector<9x256xf32>
    %cst_61 = arith.constant -1.000000e+00 : f32
    %181 = vector.broadcast %cst_61 : f32 to vector<9x256xf32>
    %182 = arith.select %180, %136, %181 : vector<9x256xi1>, vector<9x256xf32>
    %cst_62 = arith.constant dense<0xFF800000> : vector<256xf32>
    %183 = vector.multi_reduction <maximumf>, %182, %cst_62 [0] : vector<9x256xf32> to vector<256xf32>
    %184 = vector.shape_cast %183 : vector<256xf32> to vector<1x256xf32>
    %185 = vector.broadcast %184 : vector<1x256xf32> to vector<9x256xf32>
    %186 = arith.cmpf oeq, %136, %185 : vector<9x256xf32>
    %cst_63 = arith.constant 0.000000e+00 : f32
    %187 = vector.broadcast %cst_63 : f32 to vector<9x256xf32>
    %188 = arith.select %186, %132, %187 : vector<9x256xi1>, vector<9x256xf32>
    %cst_64 = arith.constant dense<0.000000e+00> : vector<256xf32>
    %189 = vector.multi_reduction <add>, %188, %cst_64 [0] : vector<9x256xf32> to vector<256xf32>
    %190 = vector.shape_cast %189 : vector<256xf32> to vector<1x256xf32>
    %cst_65 = arith.constant 0.000000e+00 : f32
    %191 = vector.broadcast %cst_65 : f32 to vector<9x256xf32>
    %192 = arith.select %186, %30, %191 : vector<9x256xi1>, vector<9x256xf32>
    %cst_66 = arith.constant dense<0.000000e+00> : vector<256xf32>
    %193 = vector.multi_reduction <add>, %192, %cst_66 [0] : vector<9x256xf32> to vector<256xf32>
    %194 = vector.shape_cast %193 : vector<256xf32> to vector<1x256xf32>
    %195 = tpu.concatenate %150, %170, %190 in 0 : vector<1x256xf32>, vector<1x256xf32>, vector<1x256xf32> -> vector<3x256xf32>
    %196 = tpu.concatenate %154, %174, %194 in 0 : vector<1x256xf32>, vector<1x256xf32>, vector<1x256xf32> -> vector<3x256xf32>
    %cst_67 = arith.constant 1.600000e+01 : f32
    %197 = vector.broadcast %cst_67 : f32 to vector<3x256xf32>
    %198 = arith.divf %196, %197 : vector<3x256xf32>
    %199 = math.floor %198 : vector<3x256xf32>
    %cst_68 = arith.constant 1.600000e+01 : f32
    %200 = vector.broadcast %cst_68 : f32 to vector<3x256xf32>
    %201 = arith.mulf %199, %200 : vector<3x256xf32>
    %202 = arith.subf %196, %201 : vector<3x256xf32>
    %203 = vector.broadcast %11 : vector<1x256xf32> to vector<3x256xf32>
    %204 = arith.subf %199, %203 : vector<3x256xf32>
    %205 = vector.broadcast %14 : vector<1x256xf32> to vector<3x256xf32>
    %206 = arith.subf %202, %205 : vector<3x256xf32>
    %207 = tpu.concatenate %204, %206, %195 in 0 : vector<3x256xf32>, vector<3x256xf32>, vector<3x256xf32> -> vector<9x256xf32>
    %c0_69 = arith.constant 0 : index
    %c0_70 = arith.constant 0 : index
    %c0_71 = arith.constant 0 : index
    %208 = vector.load %arg6[%c0_69, %c0_70, %c0_71] : memref<1x9x256xf32, #tpu.memory_space<vmem>>, vector<1x9x256xf32>
    %209 = vector.shape_cast %208 : vector<1x9x256xf32> to vector<9x256xf32>
    %210 = vector.shape_cast %207 : vector<9x256xf32> to vector<1x9x256xf32>
    tpu.vector_store %arg6[%c0_69, %c0_70, %c0_71], %210 {strides = array<i32>} : memref<1x9x256xf32, #tpu.memory_space<vmem>>, vector<1x9x256xf32>,
    return
  }
  func.func @transform_0(%arg0: i32, %arg1: i32) -> (i32, i32, i32) {
    %c0_i32 = arith.constant 0 : i32
    %c0_i32_0 = arith.constant 0 : i32
    return %arg0, %c0_i32, %arg1 : i32, i32, i32
  }
  func.func @transform_1(%arg0: i32, %arg1: i32) -> (i32, i32, i32) {
    %c0_i32 = arith.constant 0 : i32
    %c0_i32_0 = arith.constant 0 : i32
    return %arg0, %c0_i32, %arg1 : i32, i32, i32
  }
  func.func @transform_2(%arg0: i32, %arg1: i32) -> (i32, i32, i32) {
    %c0_i32 = arith.constant 0 : i32
    %c0_i32_0 = arith.constant 0 : i32
    return %arg0, %c0_i32, %arg1 : i32, i32, i32
  }
  func.func @transform_3(%arg0: i32, %arg1: i32) -> (i32, i32) {
    %c0_i32 = arith.constant 0 : i32
    %c0_i32_0 = arith.constant 0 : i32
    return %c0_i32, %arg0 : i32, i32
  }
  func.func @transform_4(%arg0: i32, %arg1: i32) -> (i32, i32, i32) {
    %c0_i32 = arith.constant 0 : i32
    %c0_i32_0 = arith.constant 0 : i32
    return %arg0, %c0_i32, %arg1 : i32, i32, i32
  }
}

</mosaic_0001>

<bundles_post_ra>
// kernel: tpu_custom_call.1
= control target key start
LH: loop header
LB: loop body
LE: loop exit
PB: predicated region body
PF: predicated region fallthrough
CT: control target
= control target key end

     0   :  { %s3568_s15 = smov 0   ;;  %s3570_s16 = smov 0   ;;  %s6856_s0 = inlined_call_operand.vmem [shape: f32[2,9,256], index: 0, kind: input, shape index: {}]   ;;  %s6857_s1 = inlined_call_operand.vmem [shape: f32[2,9,256], index: 1, kind: input, shape index: {}]   ;;  %s6858_s2 = inlined_call_operand.vmem [shape: bf16[2,4,256], index: 2, kind: input, shape index: {}]   ;;  %s6859_s3 = inlined_call_operand.vmem [shape: bf16[4,512], index: 3, kind: input, shape index: {}]   ;;  %s6860_s4 = inlined_call_operand.vmem [shape: f32[2,9,256], index: 4, kind: output, shape index: {}]  }
   0x1   :  { %s3572_s17 = smov 0  }
   0x2 LB: > { %s26_s18 = sadd.s32 1, %s3536_s16  ;;  %p3420_p0 = scmp.ge.s32.totalorder %s3540_s17, 1  ;;  %s3540_s17 = sphi %s3572_s17, %s14_s17   ;;  %s3536_s16 = sphi %s3570_s16, %s7103_s16   ;;  %s3532_s15 = sphi %s3568_s15, %s7102_s15  }
   0x3   : > { %p28_p1 = scmp.ge.s32.totalorder %s26_s18, 2  ;;  %p228_p2 = scmp.lt.s32.totalorder %s3540_s17, 3 }
   0x5   : > { %s7105_s18 = smov (%p28_p1, %s26_s18), 0  ;;  %p229_p3 = pnand %p3420_p0, %p228_p2 }
   0x7   : > { %232 = sbr.rel (%p229_p3) target bundleno = 969 (0x3c9), region = 36 }
   0xe   : > { %s3427_s19 = sshll.u32 %s3532_s15, 1  ;;  %p286_p4 = scmp.lt.s32.totalorder %s3532_s15, 1  ;;  %v3542_v0 = vmov 0.0   ;;  %vm6861_vm0 = vcmask 1043456   ;;  %vm470_vm1 = vcmask 31744   ;;  %v340_v39 = vlaneseq }
   0xf   : > { %p316_p5 = scmp.lt.s32.totalorder %s3427_s19, 3  ;;  %636 = vmatprep.mubr.f32.mxu0 %v3542_v0  ;;  %732 = vmatprep.mubr.f32.mxu1 %v3542_v0 }
  0x10   : > { %s7107_s15 = smov (!%p286_p4, %s3532_s15), 1  ;;  %v341_v40 = vand.u32 127, %v340_v39 }
  0x11   : > { %s7109_s19 = smov (!%p316_p5, %s3427_s19), 3  ;;  %s3469_s20 = sshll.u32 %s7107_s15, 2 }
  0x12   : > { %s3428_s21 = sshll.u32 %s7109_s19, 1  ;;  %s313_s27 = scalar_lea.vmem %s6858_s2, %s3469_s20  ;;  %v342_v41 = vadd.s32 128, %v341_v40  ;;  %v346_v42 = vcvt.s32.f32 %v341_v40 }
  0x13   : > { %s319_s24 = scalar_lea.vmem %s6859_s3, %s3428_s21  ;;  %v399_v3 = vld [vmem:[%s313_s27] sm:$0xf]  ;;  %s3664_s28 = sshll.u32 %s7107_s15, 5 }
  0x14   : > { %v397_v1 = vld [vmem:[%s319_s24] sm:$0xf]  ;;  %v400_v4 = vunpack.c.l.bf16 %v399_v3  ;;  %v347_v43 = vcvt.s32.f32 %v342_v41  ;;  %v349_v44 = vmul.f32 0.0625, %v346_v42  ;;  %s293_s5 = scalar_lea.vmem %s6856_s0, %s3664_s28  ;;  %s303_s8 = scalar_lea.vmem %s6857_s1, %s3664_s28 }
  0x15   : > { %v398_v2 = vunpack.c.l.bf16 %v397_v1  ;;  %v331_v49 = vld [vmem:[%s293_s5] sm:$0xff]  ;;  %v332_v51 = vld [vmem:[%s293_s5 + $0x8] sm:$0xff]  ;;  %v333_v52 = vld [vmem:[%s293_s5 + $0x10] sm:$0x1]  ;;  %s6825_s11 = scalar_lea.vmem %s6860_s4, %s3664_s28 }
  0x16   : > { %v469_v5 = vcombine.high %v400_v4, %v400_v4  ;;  %v350_v45 = vmul.f32 0.0625, %v347_v43  ;;  %v3666_v46 = vfloor.f32 %v349_v44  ;;  %v334_v55 = vld [vmem:[%s293_s5 + $0x18] sm:$0x1]  ;;  %v335_v56 = vld [vmem:[%s303_s8] sm:$0xff]  ;;  %v336_v59 = vld [vmem:[%s303_s8 + $0x8] sm:$0xff] }
  0x17   : > { %404 = vxpose.xlu0.b32.start.end [1/1] (short) %v398_v2, 128  ;;  %v402_v6 = vcombine.high %v398_v2, %v398_v2  ;;  %v337_v61 = vld [vmem:[%s303_s8 + $0x10] sm:$0x1]  ;;  %v338_v1 = vld [vmem:[%s303_s8 + $0x18] sm:$0x1] }
  0x18   : > { %3431 = vmatprep.subr.msk.mxu0 %vm6861_vm0, %v469_v5  ;;  %3471 = vmatprep.subr.msk.mxu1 %vm6861_vm0, %v469_v5  ;;  %6904 = vst [vmem:[#allocation3_spill] sm:$0xff] %v3666_v46  ;;  %v3668_v47 = vfloor.f32 %v350_v45  ;;  %v353_v48 = vmul.f32 16.0, %v3666_v46  ;;  %v357_v54 = vadd.f32 %v3666_v46, %v331_v49  ;;  %v359_v60 = vadd.f32 %v3666_v46, %v333_v52 }
  0x19   : > { %3432 = vmatpush1.msk.msra.mxu0 %vm6861_vm0, %v400_v4  ;;  %3472 = vmatpush1.msk.msra.mxu1 %vm6861_vm0, %v400_v4 }
  0x1a   : > { %6905 = vst [vmem:[#allocation4_spill] sm:$0xff] %v3668_v47  ;;  %v354_v50 = vmul.f32 16.0, %v3668_v47  ;;  %v3680_v53 = vsub.f32 %v346_v42, %v353_v48  ;;  %v358_v58 = vadd.f32 %v3668_v47, %v332_v51  ;;  %v360_v62 = vadd.f32 %v3668_v47, %v334_v55 }
  0x1b   : > { %v361_v63 = vmax.f32 %v357_v54, 0.0  ;;  %v363_v4 = vmax.f32 %v359_v60, 0.0 }
  0x1c   : > { %6906 = vst [vmem:[#allocation5_spill] sm:$0xff] %v3680_v53  ;;  %v3683_v57 = vsub.f32 %v347_v43, %v354_v50  ;;  %v362_v2 = vmax.f32 %v358_v58, 0.0  ;;  %v371_v5 = vadd.f32 %v3680_v53, %v337_v61 }
  0x1e   : > { %6907 = vst [vmem:[#allocation6_spill] sm:$0xff] %v3683_v57  ;;  %v370_v3 = vadd.f32 %v3683_v57, %v336_v59 }
  0x54   : > { %436 = vxpose.xlu0.b32.start.end [1/1] (short) %v402_v6, 128  ;;  %v364_v6 = vmax.f32 %v360_v62, 0.0 }
  0x97   : > { %v420_v7 = vpop.trf.xlu0 }
  0x98   : > { %3433 = vmatmul.mubr.msk.f32.vlgmr.msra.gmra.mrb[0].mxu0 %vm470_vm1, %v420_v7  ;;  %v365_v7 = vmin.f32 %v361_v63, 15.0 }
  0x99   : > { %642 = vmatprep.mubr.f32.mxu0 %v3542_v0 }
  0x9b   : > { %v421_v8 = vpop.trf.xlu0 }
  0x9c   : > { %3434 = vmatmul.mubr.msk.f32.gmra.mrb[2].mxu0 %vm470_vm1, %v421_v8  ;;  %v372_v8 = vadd.f32 %v3683_v57, %v338_v1 }
  0x9d   : > { %648 = vmatprep.mubr.f32.mxu0 %v3542_v0 }
  0x9f   : > { %v422_v9 = vpop.trf.xlu0 }
  0xa0   : > { %3435 = vmatmul.mubr.msk.f32.gmra.mrb[4].mxu0 %vm470_vm1, %v422_v9 }
  0xa1   : > { %654 = vmatprep.mubr.f32.mxu0 %v3542_v0 }
  0xa3   : > { %v423_v10 = vpop.trf.xlu0 }
  0xa4   : > { %3436 = vmatmul.mubr.msk.f32.gmra.mrb[6].mxu0 %vm470_vm1, %v423_v10  ;;  %v366_v10 = vmin.f32 %v362_v2, 15.0 }
  0xa5   : > { %660 = vmatprep.mubr.f32.mxu0 %v3542_v0 }
  0xa7   : > { %v424_v11 = vpop.trf.xlu0 }
  0xa8   : > { %3437 = vmatmul.mubr.msk.f32.gmra.mrb[8].mxu0 %vm470_vm1, %v424_v11  ;;  %v374_v11 = vmax.f32 %v370_v3, 0.0 }
  0xa9   : > { %666 = vmatprep.mubr.f32.mxu0 %v3542_v0 }
  0xab   : > { %v425_v12 = vpop.trf.xlu0 }
  0xac   : > { %3438 = vmatmul.mubr.msk.f32.gmra.mrb[10].mxu0 %vm470_vm1, %v425_v12  ;;  %v367_v12 = vmin.f32 %v363_v4, 15.0 }
  0xad   : > { %672 = vmatprep.mubr.f32.mxu0 %v3542_v0 }
  0xaf   : > { %v426_v13 = vpop.trf.xlu0 }
  0xb0   : > { %3439 = vmatmul.mubr.msk.f32.gmra.mrb[12].mxu0 %vm470_vm1, %v426_v13  ;;  %v375_v13 = vmax.f32 %v371_v5, 0.0 }
  0xb1   : > { %678 = vmatprep.mubr.f32.mxu0 %v3542_v0 }
  0xb3   : > { %v427_v14 = vpop.trf.xlu0 }
  0xb4   : > { %3440 = vmatmul.mubr.msk.f32.gmra.mrb[14].mxu0 %vm470_vm1, %v427_v14  ;;  %v368_v14 = vmin.f32 %v364_v6, 15.0 }
  0xb5   : > { %684 = vmatprep.mubr.f32.mxu0 %v3542_v0 }
  0xb7   : > { %v428_v15 = vpop.trf.xlu0 }
  0xb8   : > { %3441 = vmatmul.mubr.msk.f32.gmra.mrb[16].mxu0 %vm470_vm1, %v428_v15  ;;  %v376_v15 = vmax.f32 %v372_v8, 0.0 }
  0xb9   : > { %690 = vmatprep.mubr.f32.mxu0 %v3542_v0 }
  0xbb   : > { %v429_v16 = vpop.trf.xlu0 }
  0xbc   : > { %3442 = vmatmul.mubr.msk.f32.gmra.mrb[18].mxu0 %vm470_vm1, %v429_v16 }
  0xbd   : > { %696 = vmatprep.mubr.f32.mxu0 %v3542_v0 }
  0xbf   : > { %v430_v17 = vpop.trf.xlu0 }
  0xc0   : > { %3443 = vmatmul.mubr.msk.f32.gmra.mrb[20].mxu0 %vm470_vm1, %v430_v17  ;;  %v381_v17 = vmul.f32 16.0, %v365_v7 }
  0xc1   : > { %702 = vmatprep.mubr.f32.mxu0 %v3542_v0 }
  0xc3   : > { %v431_v18 = vpop.trf.xlu0 }
  0xc4   : > { %3444 = vmatmul.mubr.msk.f32.gmra.mrb[22].mxu0 %vm470_vm1, %v431_v18  ;;  %v378_v18 = vmin.f32 %v374_v11, 15.0 }
  0xc5   : > { %708 = vmatprep.mubr.f32.mxu0 %v3542_v0 }
  0xc7   : > { %v432_v19 = vpop.trf.xlu0 }
  0xc8   : > { %3445 = vmatmul.mubr.msk.f32.gmra.mrb[24].mxu0 %vm470_vm1, %v432_v19  ;;  %v382_v19 = vmul.f32 16.0, %v366_v10 }
  0xc9   : > { %714 = vmatprep.mubr.f32.mxu0 %v3542_v0 }
  0xcb   : > { %v433_v20 = vpop.trf.xlu0 }
  0xcc   : > { %3446 = vmatmul.mubr.msk.f32.gmra.mrb[26].mxu0 %vm470_vm1, %v433_v20  ;;  %v379_v20 = vmin.f32 %v375_v13, 15.0 }
  0xcd   : > { %720 = vmatprep.mubr.f32.mxu0 %v3542_v0 }
  0xcf   : > { %v434_v21 = vpop.trf.xlu0 }
  0xd0   : > { %3447 = vmatmul.mubr.msk.f32.gmra.mrb[28].mxu0 %vm470_vm1, %v434_v21  ;;  %v383_v21 = vmul.f32 16.0, %v367_v12 }
  0xd1   : > { %726 = vmatprep.mubr.f32.mxu0 %v3542_v0 }
  0xd3   : > { %v435_v22 = vpop.trf.xlu0 }
  0xd4   : > { %3448 = vmatmul.mubr.msk.f32.gmra.mrb[30].mxu0 %vm470_vm1, %v435_v22  ;;  %v380_v22 = vmin.f32 %v376_v15, 15.0 }
  0xd7   : > { %v452_v23 = vpop.trf.xlu0 }
  0xd8   : > { %3449 = vmatmul.mubr.msk.f32.vlgmr.msra.gmra.mrb[0].mxu1 %vm470_vm1, %v452_v23  ;;  %v384_v23 = vmul.f32 16.0, %v368_v14 }
  0xd9   : > { %738 = vmatprep.mubr.f32.mxu1 %v3542_v0 }
  0xdb   : > { %v453_v24 = vpop.trf.xlu0 }
  0xdc   : > { %3450 = vmatmul.mubr.msk.f32.gmra.mrb[2].mxu1 %vm470_vm1, %v453_v24 }
  0xdd   : > { %744 = vmatprep.mubr.f32.mxu1 %v3542_v0 }
  0xdf   : > { %v454_v25 = vpop.trf.xlu0 }
  0xe0   : > { %3451 = vmatmul.mubr.msk.f32.gmra.mrb[4].mxu1 %vm470_vm1, %v454_v25  ;;  %v386_v25 = vadd.f32 %v382_v19, %v378_v18 }
  0xe1   : > { %750 = vmatprep.mubr.f32.mxu1 %v3542_v0 }
  0xe3   : > { %v455_v26 = vpop.trf.xlu0 }
  0xe4   : > { %3452 = vmatmul.mubr.msk.f32.gmra.mrb[6].mxu1 %vm470_vm1, %v455_v26  ;;  %v387_v26 = vadd.f32 %v383_v21, %v379_v20 }
  0xe5   : > { %756 = vmatprep.mubr.f32.mxu1 %v3542_v0 }
  0xe7   : > { %v456_v27 = vpop.trf.xlu0 }
  0xe8   : > { %3453 = vmatmul.mubr.msk.f32.gmra.mrb[8].mxu1 %vm470_vm1, %v456_v27  ;;  %v388_v27 = vadd.f32 %v384_v23, %v380_v22 }
  0xe9   : > { %762 = vmatprep.mubr.f32.mxu1 %v3542_v0 }
  0xeb   : > { %v457_v28 = vpop.trf.xlu0 }
  0xec   : > { %3454 = vmatmul.mubr.msk.f32.gmra.mrb[10].mxu1 %vm470_vm1, %v457_v28 }
  0xed   : > { %768 = vmatprep.mubr.f32.mxu1 %v3542_v0 }
  0xef   : > { %v458_v29 = vpop.trf.xlu0 }
  0xf0   : > { %3455 = vmatmul.mubr.msk.f32.gmra.mrb[12].mxu1 %vm470_vm1, %v458_v29  ;;  %v3694_v29 = vfloor.f32 %v386_v25 }
  0xf1   : > { %774 = vmatprep.mubr.f32.mxu1 %v3542_v0 }
  0xf2   : > { %6909 = vst [vmem:[#allocation8_spill] sm:$0xff] %v3694_v29 }
  0xf3   : > { %v459_v30 = vpop.trf.xlu0 }
  0xf4   : > { %3456 = vmatmul.mubr.msk.f32.gmra.mrb[14].mxu1 %vm470_vm1, %v459_v30  ;;  %v3696_v30 = vfloor.f32 %v387_v26 }
  0xf5   : > { %780 = vmatprep.mubr.f32.mxu1 %v3542_v0 }
  0xf6   : > { %6910 = vst [vmem:[#allocation9_spill] sm:$0xff] %v3696_v30 }
  0xf7   : > { %v460_v31 = vpop.trf.xlu0 }
  0xf8   : > { %3457 = vmatmul.mubr.msk.f32.gmra.mrb[16].mxu1 %vm470_vm1, %v460_v31  ;;  %v3698_v31 = vshrl.u32 %v340_v39, 7 }
  0xf9   : > { %786 = vmatprep.mubr.f32.mxu1 %v3542_v0 }
  0xfa   : > { %6911 = vst [vmem:[#allocation10_spill] sm:$0xff] %v3698_v31  ;;  %v1238_v40 = vsub.s32 1, %v3698_v31  ;;  %v1448_v41 = vsub.s32 2, %v3698_v31  ;;  %v1658_v39 = vsub.s32 3, %v3698_v31  ;;  %v1868_v43 = vsub.s32 4, %v3698_v31 }
  0xfb   : > { %v461_v32 = vpop.trf.xlu0  ;;  %v2078_v44 = vsub.s32 5, %v3698_v31  ;;  %v2288_v45 = vsub.s32 6, %v3698_v31  ;;  %v2498_v48 = vsub.s32 7, %v3698_v31  ;;  %v3759_v7 = vadd.s32 8, %v3698_v31 }
  0xfc   : > { %3458 = vmatmul.mubr.msk.f32.gmra.mrb[18].mxu1 %vm470_vm1, %v461_v32  ;;  %v3700_v32 = vfloor.f32 %v388_v27  ;;  %v3806_v8 = vadd.s32 16, %v3698_v31  ;;  %v3816_v10 = vadd.s32 32, %v3698_v31  ;;  %v3819_v11 = vadd.s32 40, %v3698_v31 }
  0xfd   : > { %792 = vmatprep.mubr.f32.mxu1 %v3542_v0  ;;  %6914 = vst [vmem:[#allocation13_spill] sm:$0xff] %v3759_v7  ;;  %v3822_v12 = vadd.s32 48, %v3698_v31  ;;  %v3825_v13 = vadd.s32 56, %v3698_v31  ;;  %v3832_v14 = vadd.s32 64, %v3698_v31  ;;  %v3835_v15 = vadd.s32 72, %v3698_v31 }
  0xfe   : > { %6912 = vst [vmem:[#allocation11_spill] sm:$0xff] %v3700_v32  ;;  %v3848_v19 = vadd.s32 96, %v3698_v31  ;;  %v3851_v20 = vadd.s32 104, %v3698_v31  ;;  %v3854_v21 = vadd.s32 112, %v3698_v31  ;;  %v3857_v22 = vadd.s32 120, %v3698_v31 }
  0xff   : > { %v462_v33 = vpop.trf.xlu0 }
 0x100   : > { %3459 = vmatmul.mubr.msk.f32.gmra.mrb[20].mxu1 %vm470_vm1, %v462_v33  ;;  %6915 = vst [vmem:[#allocation14_spill] sm:$0xff] %v3851_v20  ;;  %6916 = vst [vmem:[#allocation15_spill] sm:$0xff] %v3854_v21 }
 0x101   : > { %798 = vmatprep.mubr.f32.mxu1 %v3542_v0  ;;  %6917 = vst [vmem:[#allocation16_spill] sm:$0xff] %v3857_v22 }
 0x103   : > { %v463_v34 = vpop.trf.xlu0 }
 0x104   : > { %3460 = vmatmul.mubr.msk.f32.gmra.mrb[22].mxu1 %vm470_vm1, %v463_v34  ;;  %v3475_v34 = vtrunc.f32 %v3694_v29 }
 0x105   : > { %804 = vmatprep.mubr.f32.mxu1 %v3542_v0 }
 0x106   : > { %v3476_v42 = vcvt.f32.s32 %v3475_v34 }
 0x107   : > { %v464_v35 = vpop.trf.xlu0 }
 0x108   : > { %3461 = vmatmul.mubr.msk.f32.gmra.mrb[24].mxu1 %vm470_vm1, %v464_v35  ;;  %v3477_v35 = vtrunc.f32 %v3696_v30  ;;  %v3724_v58 = vrot.slane %v3476_v42, %v1448_v41  ;;  %v3738_v1 = vrot.slane %v3476_v42, %v1868_v43  ;;  %v3740_v2 = vrot.slane %v3476_v42, %v2078_v44 }
 0x109   : > { %810 = vmatprep.mubr.f32.mxu1 %v3542_v0  ;;  %v3744_v4 = vrot.slane %v3476_v42, %v2288_v45  ;;  %v3746_v5 = vrot.slane %v3476_v42, %v2498_v48 }
 0x10a   : > { %v3478_v49 = vcvt.f32.s32 %v3477_v35  ;;  %vm2087_vm13 = vcmp.eq.s32.totalorder %v3759_v7, %v3740_v2 }
 0x10b   : > { %v465_v36 = vpop.trf.xlu0  ;;  %6913 = vst [vmem:[#allocation12_spill] sm:$0xff] %v3746_v5  ;;  %vm2297_vm0 = vcmp.eq.s32.totalorder %v3759_v7, %v3744_v4 }
 0x10c   : > { %3462 = vmatmul.mubr.msk.f32.gmra.mrb[26].mxu1 %vm470_vm1, %v465_v36  ;;  %v1028_v36 = vsub.s32 0, %v3698_v31 }
 0x10d   : > { %816 = vmatprep.mubr.f32.mxu1 %v3542_v0 }
 0x10e   : > { %v3720_v55 = vrot.slane %v3476_v42, %v1028_v36  ;;  %v3742_v3 = vrot.slane %v3478_v49, %v1028_v36 }
 0x10f   : > { %v466_v37 = vpop.trf.xlu0 }
 0x110   : > { %3463 = vmatmul.mubr.msk.f32.gmra.mrb[28].mxu1 %vm470_vm1, %v466_v37  ;;  %vm2714_vm10 = vcmp.eq.s32.totalorder %v3698_v31, %v3742_v3 }
 0x111   : > { %822 = vmatprep.mubr.f32.mxu1 %v3542_v0  ;;  %v369_v0 = vadd.f32 %v3680_v53, %v335_v56  ;;  %v3722_v56 = vrot.slane %v3476_v42, %v1238_v40 }
 0x113   : > { %v467_v38 = vpop.trf.xlu0  ;;  %v373_v9 = vmax.f32 %v369_v0, 0.0  ;;  %v3736_v0 = vrot.slane %v3476_v42, %v1658_v39 }
 0x114   : > { %3464 = vmatmul.mubr.msk.f32.gmra.mrb[30].mxu1 %vm470_vm1, %v467_v38  ;;  %v3479_v38 = vtrunc.f32 %v3700_v32  ;;  %vm1457_vm1 = vcmp.eq.s32.totalorder %v3759_v7, %v3724_v58 }
 0x115   : > { %v377_v16 = vmin.f32 %v373_v9, 15.0  ;;  %v3809_v9 = vadd.s32 24, %v3698_v31 }
 0x116   : > { %v3480_v50 = vcvt.f32.s32 %v3479_v38 }
 0x117   : > { %v385_v24 = vadd.f32 %v381_v17, %v377_v16  ;;  %v3838_v16 = vadd.s32 80, %v3698_v31  ;;  %v3841_v17 = vadd.s32 88, %v3698_v31 }
 0x118   : > { %v3748_v6 = vrot.slane %v3480_v50, %v1028_v36 }
 0x119   : > { %v3692_v28 = vfloor.f32 %v385_v24 }
 0x11b   : > { %6908 = vst [vmem:[#allocation7_spill] sm:$0xff] %v3692_v28  ;;  %v3473_v33 = vtrunc.f32 %v3692_v28 }
 0x11d   : > { %v3474_v37 = vcvt.f32.s32 %v3473_v33 }
 0x11f   : > { %v3714_v51 = vrot.slane %v3474_v37, %v1028_v36  ;;  %v3716_v52 = vrot.slane %v3474_v37, %v1238_v40  ;;  %v3718_v54 = vrot.slane %v3474_v37, %v1448_v41  ;;  %v3726_v59 = vrot.slane %v3474_v37, %v1658_v39 }
 0x120   : > { %v3728_v60 = vrot.slane %v3474_v37, %v1868_v43  ;;  %v3730_v61 = vrot.slane %v3474_v37, %v2078_v44  ;;  %v3732_v62 = vrot.slane %v3474_v37, %v2288_v45  ;;  %v3734_v63 = vrot.slane %v3474_v37, %v2498_v48 }
 0x121   : > { %vm1034_vm2 = vcmp.eq.s32.totalorder %v3698_v31, %v3714_v51  ;;  %vm1244_vm3 = vcmp.eq.s32.totalorder %v3698_v31, %v3716_v52  ;;  %vm1454_vm4 = vcmp.eq.s32.totalorder %v3698_v31, %v3718_v54  ;;  %vm1664_vm5 = vcmp.eq.s32.totalorder %v3698_v31, %v3726_v59 }
 0x122   : > { %vm1874_vm6 = vcmp.eq.s32.totalorder %v3698_v31, %v3728_v60  ;;  %vm2084_vm7 = vcmp.eq.s32.totalorder %v3698_v31, %v3730_v61  ;;  %vm2294_vm8 = vcmp.eq.s32.totalorder %v3698_v31, %v3732_v62  ;;  %vm2504_vm9 = vcmp.eq.s32.totalorder %v3698_v31, %v3734_v63 }
 0x123   : > { %vm1246_vm14 = vcmp.eq.s32.totalorder %v3759_v7, %v3716_v52  ;;  %vm1456_vm15 = vcmp.eq.s32.totalorder %v3759_v7, %v3718_v54  ;;  %vm2086_vm11 = vcmp.eq.s32.totalorder %v3759_v7, %v3730_v61  ;;  %vm2296_vm12 = vcmp.eq.s32.totalorder %v3759_v7, %v3732_v62 }
 0x16b   : > { %v638_v18 = vpop.f32.mrb[0].mxu0 }
 0x16c   : > { %v1098_v23 = vsel %vm1034_vm2, %v638_v18, 0.0  ;;  %v1308_v24 = vsel %vm1244_vm3, %v638_v18, 0.0  ;;  %v1518_v25 = vsel %vm1454_vm4, %v638_v18, 0.0  ;;  %v1728_v26 = vsel %vm1664_vm5, %v638_v18, 0.0  ;;  %v640_v27 = vpop.f32.mrb[1].mxu0 }
 0x16d   : > { %v1938_v33 = vsel %vm1874_vm6, %v638_v18, 0.0  ;;  %v2148_v34 = vsel %vm2084_vm7, %v638_v18, 0.0  ;;  %v2358_v35 = vsel %vm2294_vm8, %v638_v18, 0.0  ;;  %v2568_v36 = vsel %vm2504_vm9, %v638_v18, 0.0 }
 0x16e   : > { %vm2507_vm2 = vcmp.eq.s32.totalorder %v3759_v7, %v3746_v5  ;;  %vm2717_vm3 = vcmp.eq.s32.totalorder %v3759_v7, %v3748_v6  ;;  %v2778_v37 = vsel %vm2714_vm10, %v638_v18, 0.0  ;;  %vm6918_vm4 = vcmp.eq.s32.totalorder %v3698_v31, %v3720_v55 }
 0x16f   : > { %v1099_v38 = vsel %vm6918_vm4, %v640_v27, 0.0  ;;  %vm6919_vm5 = vcmp.eq.s32.totalorder %v3698_v31, %v3722_v56  ;;  %vm6920_vm6 = vcmp.eq.s32.totalorder %v3698_v31, %v3724_v58  ;;  %vm1038_vm7 = vcmp.eq.s32.totalorder %v3806_v8, %v3714_v51  ;;  %v644_v45 = vpop.f32.mrb[2].mxu0 }
 0x170   : > { %v1309_v40 = vsel %vm6919_vm5, %v640_v27, 0.0  ;;  %v1519_v41 = vsel %vm6920_vm6, %v640_v27, 0.0  ;;  %vm6921_vm9 = vcmp.eq.s32.totalorder %v3698_v31, %v3736_v0  ;;  %vm6922_vm10 = vcmp.eq.s32.totalorder %v3698_v31, %v3738_v1  ;;  %v646_v47 = vpop.f32.mrb[3].mxu0 }
 0x171   : > { %v1729_v42 = vsel %vm6921_vm9, %v640_v27, 0.0  ;;  %v1939_v39 = vsel %vm6922_vm10, %v640_v27, 0.0  ;;  %vm6923_vm4 = vcmp.eq.s32.totalorder %v3698_v31, %v3740_v2  ;;  %vm6924_vm5 = vcmp.eq.s32.totalorder %v3698_v31, %v3744_v4 }
 0x172   : > { %v2149_v43 = vsel %vm6923_vm4, %v640_v27, 0.0  ;;  %v2359_v44 = vsel %vm6924_vm5, %v640_v27, 0.0  ;;  %vm1458_vm6 = vcmp.eq.s32.totalorder %v3806_v8, %v3718_v54  ;;  %vm6925_vm9 = vcmp.eq.s32.totalorder %v3698_v31, %v3746_v5 }
 0x173   : > { %v2569_v48 = vsel %vm6925_vm9, %v640_v27, 0.0  ;;  %vm6926_vm10 = vcmp.eq.s32.totalorder %v3698_v31, %v3748_v6  ;;  %vm6927_vm4 = vcmp.eq.s32.totalorder %v3759_v7, %v3714_v51  ;;  %v1310_v18 = vsel %vm1246_vm14, %v644_v45, 0.0 }
 0x174   : > { %v2779_v49 = vsel %vm6926_vm10, %v640_v27, 0.0  ;;  %v1100_v50 = vsel %vm6927_vm4, %v644_v45, 0.0  ;;  %vm1878_vm5 = vcmp.eq.s32.totalorder %v3806_v8, %v3728_v60  ;;  %vm2088_vm8 = vcmp.eq.s32.totalorder %v3806_v8, %v3730_v61 }
 0x175   : > { %v1162_v57 = vadd.f32 %v1100_v50, %v1098_v23  ;;  %v1372_v46 = vadd.f32 %v1310_v18, %v1308_v24  ;;  %v1520_v27 = vsel %vm1456_vm15, %v644_v45, 0.0  ;;  %vm6928_vm9 = vcmp.eq.s32.totalorder %v3759_v7, %v3726_v59 }
 0x176   : > { %v1730_v53 = vsel %vm6928_vm9, %v644_v45, 0.0  ;;  %vm2298_vm14 = vcmp.eq.s32.totalorder %v3806_v8, %v3732_v62  ;;  %v1582_v32 = vadd.f32 %v1520_v27, %v1518_v25  ;;  %vm6929_vm4 = vcmp.eq.s32.totalorder %v3759_v7, %v3728_v60 }
 0x177   : > { %v1792_v29 = vadd.f32 %v1730_v53, %v1728_v26  ;;  %v1940_v23 = vsel %vm6929_vm4, %v644_v45, 0.0  ;;  %v2150_v24 = vsel %vm2086_vm11, %v644_v45, 0.0  ;;  %vm2718_vm15 = vcmp.eq.s32.totalorder %v3806_v8, %v3742_v3  ;;  %v3965_v26 = vpop.f32.mrb[4].mxu0 }
 0x178   : > { %v2002_v50 = vadd.f32 %v1940_v23, %v1938_v33  ;;  %v2212_v18 = vadd.f32 %v2150_v24, %v2148_v34  ;;  %v2360_v53 = vsel %vm2296_vm12, %v644_v45, 0.0  ;;  %vm6930_vm10 = vcmp.eq.s32.totalorder %v3759_v7, %v3734_v63  ;;  %v3977_v23 = vpop.f32.mrb[5].mxu0 }
 0x179   : > { %v2570_v25 = vsel %vm6930_vm10, %v644_v45, 0.0  ;;  %v2422_v27 = vadd.f32 %v2360_v53, %v2358_v35  ;;  %vm6931_vm9 = vcmp.eq.s32.totalorder %v3759_v7, %v3742_v3  ;;  %vm6932_vm12 = vcmp.eq.s32.totalorder %v3759_v7, %v3720_v55 }
 0x17a   : > { %v2632_v30 = vadd.f32 %v2570_v25, %v2568_v36  ;;  %v2780_v33 = vsel %vm6931_vm9, %v644_v45, 0.0  ;;  %v1101_v34 = vsel %vm6932_vm12, %v646_v47, 0.0  ;;  %vm6933_vm4 = vcmp.eq.s32.totalorder %v3759_v7, %v3722_v56 }
 0x17b   : > { %v2842_v24 = vadd.f32 %v2780_v33, %v2778_v37  ;;  %v1199_v28 = vadd.f32 %v1101_v34, %v1099_v38  ;;  %v1311_v35 = vsel %vm6933_vm4, %v646_v47, 0.0  ;;  %v1521_v36 = vsel %vm1457_vm1, %v646_v47, 0.0  ;;  %v4009_v34 = vpop.f32.mrb[6].mxu0 }
 0x17c   : > { %vm2089_vm9 = vcmp.eq.s32.totalorder %v3806_v8, %v3740_v2  ;;  %vm2299_vm12 = vcmp.eq.s32.totalorder %v3806_v8, %v3744_v4  ;;  %v1409_v45 = vadd.f32 %v1311_v35, %v1309_v40  ;;  %v1619_v53 = vadd.f32 %v1521_v36, %v1519_v41 }
 0x17d   : > { %vm6934_vm11 = vcmp.eq.s32.totalorder %v3759_v7, %v3736_v0  ;;  %vm6935_vm10 = vcmp.eq.s32.totalorder %v3759_v7, %v3738_v1  ;;  %vm2509_vm4 = vcmp.eq.s32.totalorder %v3806_v8, %v3746_v5  ;;  %vm2719_vm1 = vcmp.eq.s32.totalorder %v3806_v8, %v3748_v6 }
 0x17e   : > { %v1731_v37 = vsel %vm6934_vm11, %v646_v47, 0.0  ;;  %v1941_v38 = vsel %vm6935_vm10, %v646_v47, 0.0  ;;  %v2151_v40 = vsel %vm2087_vm13, %v646_v47, 0.0  ;;  %v2361_v41 = vsel %vm2297_vm0, %v646_v47, 0.0 }
 0x17f   : > { %v1829_v25 = vadd.f32 %v1731_v37, %v1729_v42  ;;  %v2039_v33 = vadd.f32 %v1941_v38, %v1939_v39  ;;  %vm1040_vm11 = vcmp.eq.s32.totalorder %v3809_v9, %v3714_v51  ;;  %vm1250_vm10 = vcmp.eq.s32.totalorder %v3809_v9, %v3716_v52  ;;  %v4025_v37 = vpop.f32.mrb[7].mxu0 }
 0x180   : > { %v2249_v35 = vadd.f32 %v2151_v40, %v2149_v43  ;;  %v2459_v36 = vadd.f32 %v2361_v41, %v2359_v44  ;;  %v2571_v42 = vsel %vm2507_vm2, %v646_v47, 0.0  ;;  %v2781_v39 = vsel %vm2717_vm3, %v646_v47, 0.0 }
 0x181   : > { %vm1460_vm0 = vcmp.eq.s32.totalorder %v3809_v9, %v3718_v54  ;;  %v2669_v38 = vadd.f32 %v2571_v42, %v2569_v48  ;;  %v2879_v31 = vadd.f32 %v2781_v39, %v2779_v49  ;;  %v1102_v43 = vsel %vm1038_vm7, %v3965_v26, 0.0  ;;  %v4063_v39 = vpop.f32.mrb[8].mxu0 }
 0x182   : > { %vm6936_vm2 = vcmp.eq.s32.totalorder %v3806_v8, %v3716_v52  ;;  %vm2090_vm13 = vcmp.eq.s32.totalorder %v3809_v9, %v3730_v61  ;;  %v1163_v44 = vadd.f32 %v1162_v57, %v1102_v43  ;;  %v1522_v48 = vsel %vm1458_vm6, %v3965_v26, 0.0 }
 0x183   : > { %v1312_v47 = vsel %vm6936_vm2, %v3965_v26, 0.0  ;;  %vm6937_vm7 = vcmp.eq.s32.totalorder %v3806_v8, %v3726_v59  ;;  %vm2300_vm2 = vcmp.eq.s32.totalorder %v3809_v9, %v3732_v62  ;;  %vm2510_vm3 = vcmp.eq.s32.totalorder %v3809_v9, %v3734_v63 }
 0x184   : > { %v1373_v40 = vadd.f32 %v1372_v46, %v1312_v47  ;;  %v1732_v49 = vsel %vm6937_vm7, %v3965_v26, 0.0  ;;  %v1583_v41 = vadd.f32 %v1582_v32, %v1522_v48  ;;  %v1942_v46 = vsel %vm1878_vm5, %v3965_v26, 0.0  ;;  %v4077_v48 = vpop.f32.mrb[9].mxu0 }
 0x185   : > { %v1793_v42 = vadd.f32 %v1792_v29, %v1732_v49  ;;  %v2152_v57 = vsel %vm2088_vm8, %v3965_v26, 0.0  ;;  %vm2720_vm6 = vcmp.eq.s32.totalorder %v3809_v9, %v3742_v3  ;;  %v2003_v32 = vadd.f32 %v2002_v50, %v1942_v46 }
 0x186   : > { %v2213_v29 = vadd.f32 %v2212_v18, %v2152_v57  ;;  %v2362_v43 = vsel %vm2298_vm14, %v3965_v26, 0.0  ;;  %vm6938_vm5 = vcmp.eq.s32.totalorder %v3806_v8, %v3734_v63  ;;  %v2782_v49 = vsel %vm2718_vm15, %v3965_v26, 0.0 }
 0x187   : > { %v2572_v47 = vsel %vm6938_vm5, %v3965_v26, 0.0  ;;  %v2423_v50 = vadd.f32 %v2422_v27, %v2362_v43  ;;  %vm6939_vm14 = vcmp.eq.s32.totalorder %v3806_v8, %v3720_v55  ;;  %v2843_v57 = vadd.f32 %v2842_v24, %v2782_v49 }
 0x188   : > { %v2633_v18 = vadd.f32 %v2632_v30, %v2572_v47  ;;  %v1103_v46 = vsel %vm6939_vm14, %v3977_v23, 0.0  ;;  %vm6940_vm8 = vcmp.eq.s32.totalorder %v3806_v8, %v3722_v56  ;;  %vm6941_vm15 = vcmp.eq.s32.totalorder %v3806_v8, %v3724_v58  ;;  %v4115_v47 = vpop.f32.mrb[10].mxu0 }
 0x189   : > { %v1200_v7 = vadd.f32 %v1199_v28, %v1103_v46  ;;  %v1313_v30 = vsel %vm6940_vm8, %v3977_v23, 0.0  ;;  %v1523_v26 = vsel %vm6941_vm15, %v3977_v23, 0.0  ;;  %vm2301_vm5 = vcmp.eq.s32.totalorder %v3809_v9, %v3744_v4 }
 0x18a   : > { %v1410_v27 = vadd.f32 %v1409_v45, %v1313_v30  ;;  %v1620_v43 = vadd.f32 %v1619_v53, %v1523_v26  ;;  %vm6942_vm7 = vcmp.eq.s32.totalorder %v3806_v8, %v3736_v0  ;;  %vm6943_vm8 = vcmp.eq.s32.totalorder %v3806_v8, %v3738_v1  ;;  %v4129_v30 = vpop.f32.mrb[11].mxu0 }
 0x18b   : > { %v1733_v28 = vsel %vm6942_vm7, %v3977_v23, 0.0  ;;  %v1943_v24 = vsel %vm6943_vm8, %v3977_v23, 0.0  ;;  %vm2511_vm15 = vcmp.eq.s32.totalorder %v3809_v9, %v3746_v5  ;;  %vm2721_vm14 = vcmp.eq.s32.totalorder %v3809_v9, %v3748_v6 }
 0x18c   : > { %v1830_v45 = vadd.f32 %v1829_v25, %v1733_v28  ;;  %v2040_v53 = vadd.f32 %v2039_v33, %v1943_v24  ;;  %v2153_v49 = vsel %vm2089_vm9, %v3977_v23, 0.0  ;;  %v2363_v46 = vsel %vm2299_vm12, %v3977_v23, 0.0 }
 0x18d   : > { %vm1042_vm7 = vcmp.eq.s32.totalorder %v3816_v10, %v3714_v51  ;;  %vm1252_vm8 = vcmp.eq.s32.totalorder %v3816_v10, %v3716_v52  ;;  %v2250_v25 = vadd.f32 %v2249_v35, %v2153_v49  ;;  %v2460_v33 = vadd.f32 %v2459_v36, %v2363_v46  ;;  %v4167_v49 = vpop.f32.mrb[12].mxu0 }
 0x18e   : > { %v2573_v26 = vsel %vm2509_vm4, %v3977_v23, 0.0  ;;  %v2783_v28 = vsel %vm2719_vm1, %v3977_v23, 0.0  ;;  %vm1462_vm9 = vcmp.eq.s32.totalorder %v3816_v10, %v3718_v54  ;;  %vm1672_vm12 = vcmp.eq.s32.totalorder %v3816_v10, %v3726_v59 }
 0x18f   : > { %v2670_v24 = vadd.f32 %v2669_v38, %v2573_v26  ;;  %v2880_v22 = vadd.f32 %v2879_v31, %v2783_v28  ;;  %v1104_v35 = vsel %vm1040_vm11, %v4009_v34, 0.0  ;;  %v1314_v36 = vsel %vm1250_vm10, %v4009_v34, 0.0  ;;  %v4181_v28 = vpop.f32.mrb[13].mxu0 }
 0x190   : > { %v1164_v8 = vadd.f32 %v1163_v44, %v1104_v35  ;;  %v1374_v23 = vadd.f32 %v1373_v40, %v1314_v36  ;;  %v1524_v31 = vsel %vm1460_vm0, %v4009_v34, 0.0  ;;  %vm6944_vm11 = vcmp.eq.s32.totalorder %v3809_v9, %v3726_v59 }
 0x191   : > { %v1734_v38 = vsel %vm6944_vm11, %v4009_v34, 0.0  ;;  %vm2302_vm10 = vcmp.eq.s32.totalorder %v3816_v10, %v3732_v62  ;;  %vm2512_vm4 = vcmp.eq.s32.totalorder %v3816_v10, %v3734_v63  ;;  %v1584_v44 = vadd.f32 %v1583_v41, %v1524_v31 }
 0x192   : > { %v1794_v40 = vadd.f32 %v1793_v42, %v1734_v38  ;;  %vm6945_vm1 = vcmp.eq.s32.totalorder %v3809_v9, %v3728_v60  ;;  %v2154_v26 = vsel %vm2090_vm13, %v4009_v34, 0.0  ;;  %vm2722_vm0 = vcmp.eq.s32.totalorder %v3816_v10, %v3742_v3 }
 0x193   : > { %v1944_v46 = vsel %vm6945_vm1, %v4009_v34, 0.0  ;;  %vm1043_vm11 = vcmp.eq.s32.totalorder %v3816_v10, %v3720_v55  ;;  %v2214_v42 = vadd.f32 %v2213_v29, %v2154_v26  ;;  %v2364_v35 = vsel %vm2300_vm2, %v4009_v34, 0.0 }
 0x194   : > { %v2004_v41 = vadd.f32 %v2003_v32, %v1944_v46  ;;  %v2574_v36 = vsel %vm2510_vm3, %v4009_v34, 0.0  ;;  %v2424_v31 = vadd.f32 %v2423_v50, %v2364_v35  ;;  %v2784_v32 = vsel %vm2720_vm6, %v4009_v34, 0.0 }
 0x195   : > { %v2634_v38 = vadd.f32 %v2633_v18, %v2574_v36  ;;  %vm6946_vm2 = vcmp.eq.s32.totalorder %v3809_v9, %v3720_v55  ;;  %v2844_v46 = vadd.f32 %v2843_v57, %v2784_v32  ;;  %vm6947_vm1 = vcmp.eq.s32.totalorder %v3809_v9, %v3722_v56  ;;  %v4219_v18 = vpop.f32.mrb[14].mxu0 }
 0x196   : > { %v1105_v29 = vsel %vm6946_vm2, %v4025_v37, 0.0  ;;  %v1315_v50 = vsel %vm6947_vm1, %v4025_v37, 0.0  ;;  %vm6948_vm6 = vcmp.eq.s32.totalorder %v3809_v9, %v3724_v58  ;;  %vm6949_vm13 = vcmp.eq.s32.totalorder %v3809_v9, %v3736_v0  ;;  %v4233_v32 = vpop.f32.mrb[15].mxu0 }
 0x197   : > { %v1201_v26 = vadd.f32 %v1200_v7, %v1105_v29  ;;  %v1525_v34 = vsel %vm6948_vm6, %v4025_v37, 0.0  ;;  %v1411_v57 = vadd.f32 %v1410_v27, %v1315_v50  ;;  %v1735_v35 = vsel %vm6949_vm13, %v4025_v37, 0.0 }
 0x198   : > { %v1621_v7 = vadd.f32 %v1620_v43, %v1525_v34  ;;  %vm6950_vm1 = vcmp.eq.s32.totalorder %v3809_v9, %v3738_v1  ;;  %vm2513_vm6 = vcmp.eq.s32.totalorder %v3816_v10, %v3746_v5  ;;  %vm2723_vm3 = vcmp.eq.s32.totalorder %v3816_v10, %v3748_v6 }
 0x199   : > { %v1945_v36 = vsel %vm6950_vm1, %v4025_v37, 0.0  ;;  %v1831_v27 = vadd.f32 %v1830_v45, %v1735_v35  ;;  %vm6951_vm2 = vcmp.eq.s32.totalorder %v3809_v9, %v3740_v2  ;;  %v2365_v50 = vsel %vm2301_vm5, %v4025_v37, 0.0  ;;  %v4271_v9 = vpop.f32.mrb[16].mxu0 }
 0x19a   : > { %v2041_v43 = vadd.f32 %v2040_v53, %v1945_v36  ;;  %v2155_v29 = vsel %vm6951_vm2, %v4025_v37, 0.0  ;;  %vm1044_vm13 = vcmp.eq.s32.totalorder %v3819_v11, %v3714_v51  ;;  %vm1254_vm1 = vcmp.eq.s32.totalorder %v3819_v11, %v3716_v52 }
 0x19b   : > { %v2251_v34 = vadd.f32 %v2250_v25, %v2155_v29  ;;  %v2461_v21 = vadd.f32 %v2460_v33, %v2365_v50  ;;  %v2575_v45 = vsel %vm2511_vm15, %v4025_v37, 0.0  ;;  %v2785_v53 = vsel %vm2721_vm14, %v4025_v37, 0.0  ;;  %v4285_v50 = vpop.f32.mrb[17].mxu0 }
 0x19c   : > { %vm1464_vm5 = vcmp.eq.s32.totalorder %v3819_v11, %v3718_v54  ;;  %vm1674_vm2 = vcmp.eq.s32.totalorder %v3819_v11, %v3726_v59  ;;  %v2671_v35 = vadd.f32 %v2670_v24, %v2575_v45  ;;  %v2881_v36 = vadd.f32 %v2880_v22, %v2785_v53 }
 0x19d   : > { %v1106_v25 = vsel %vm1042_vm7, %v4063_v39, 0.0  ;;  %v1316_v33 = vsel %vm1252_vm8, %v4063_v39, 0.0  ;;  %vm1884_vm14 = vcmp.eq.s32.totalorder %v3819_v11, %v3728_v60  ;;  %v1526_v24 = vsel %vm1462_vm9, %v4063_v39, 0.0 }
 0x19e   : > { %v1165_v37 = vadd.f32 %v1164_v8, %v1106_v25  ;;  %v1375_v22 = vadd.f32 %v1374_v23, %v1316_v33  ;;  %v1736_v29 = vsel %vm1672_vm12, %v4063_v39, 0.0  ;;  %vm2304_vm7 = vcmp.eq.s32.totalorder %v3819_v11, %v3732_v62 }
 0x19f   : > { %v1585_v8 = vadd.f32 %v1584_v44, %v1526_v24  ;;  %v1795_v23 = vadd.f32 %v1794_v40, %v1736_v29  ;;  %vm6952_vm15 = vcmp.eq.s32.totalorder %v3816_v10, %v3728_v60  ;;  %vm6953_vm9 = vcmp.eq.s32.totalorder %v3816_v10, %v3730_v61 }
 0x1a0   : > { %v1946_v45 = vsel %vm6952_vm15, %v4063_v39, 0.0  ;;  %v2156_v53 = vsel %vm6953_vm9, %v4063_v39, 0.0  ;;  %vm2724_vm12 = vcmp.eq.s32.totalorder %v3819_v11, %v3742_v3  ;;  %vm1045_vm8 = vcmp.eq.s32.totalorder %v3819_v11, %v3720_v55 }
 0x1a1   : > { %v2005_v25 = vadd.f32 %v2004_v41, %v1946_v45  ;;  %v2215_v33 = vadd.f32 %v2214_v42, %v2156_v53  ;;  %v2366_v44 = vsel %vm2302_vm10, %v4063_v39, 0.0  ;;  %v2576_v40 = vsel %vm2512_vm4, %v4063_v39, 0.0  ;;  %v4323_v45 = vpop.f32.mrb[18].mxu0 }
 0x1a2   : > { %vm1255_vm15 = vcmp.eq.s32.totalorder %v3819_v11, %v3722_v56  ;;  %v2425_v24 = vadd.f32 %v2424_v31, %v2366_v44  ;;  %v2635_v29 = vadd.f32 %v2634_v38, %v2576_v40  ;;  %v2786_v41 = vsel %vm2722_vm0, %v4063_v39, 0.0  ;;  %v4337_v44 = vpop.f32.mrb[19].mxu0 }
 0x1a3   : > { %v1107_v42 = vsel %vm1043_vm11, %v4077_v48, 0.0  ;;  %v2845_v31 = vadd.f32 %v2844_v46, %v2786_v41  ;;  %vm6954_vm9 = vcmp.eq.s32.totalorder %v3816_v10, %v3722_v56  ;;  %vm6955_vm0 = vcmp.eq.s32.totalorder %v3816_v10, %v3724_v58 }
 0x1a4   : > { %v1202_v38 = vadd.f32 %v1201_v26, %v1107_v42  ;;  %v1317_v39 = vsel %vm6954_vm9, %v4077_v48, 0.0  ;;  %v1527_v53 = vsel %vm6955_vm0, %v4077_v48, 0.0  ;;  %vm6956_vm4 = vcmp.eq.s32.totalorder %v3816_v10, %v3736_v0 }
 0x1a5   : > { %v1412_v46 = vadd.f32 %v1411_v57, %v1317_v39  ;;  %v1622_v26 = vadd.f32 %v1621_v7, %v1527_v53  ;;  %v1737_v40 = vsel %vm6956_vm4, %v4077_v48, 0.0  ;;  %vm6957_vm9 = vcmp.eq.s32.totalorder %v3816_v10, %v3738_v1 }
 0x1a6   : > { %v1947_v41 = vsel %vm6957_vm9, %v4077_v48, 0.0  ;;  %vm2725_vm10 = vcmp.eq.s32.totalorder %v3819_v11, %v3748_v6  ;;  %v1832_v42 = vadd.f32 %v1831_v27, %v1737_v40  ;;  %vm6958_vm11 = vcmp.eq.s32.totalorder %v3816_v10, %v3740_v2  ;;  %v4375_v40 = vpop.f32.mrb[20].mxu0 }
 0x1a7   : > { %v2042_v20 = vadd.f32 %v2041_v43, %v1947_v41  ;;  %v2157_v57 = vsel %vm6958_vm11, %v4077_v48, 0.0  ;;  %vm6959_vm4 = vcmp.eq.s32.totalorder %v3816_v10, %v3744_v4  ;;  %vm1046_vm9 = vcmp.eq.s32.totalorder %v3822_v12, %v3714_v51 }
 0x1a8   : > { %v2367_v7 = vsel %vm6959_vm4, %v4077_v48, 0.0  ;;  %vm1256_vm0 = vcmp.eq.s32.totalorder %v3822_v12, %v3716_v52  ;;  %v2252_v39 = vadd.f32 %v2251_v34, %v2157_v57  ;;  %v2577_v27 = vsel %vm2513_vm6, %v4077_v48, 0.0 }
 0x1a9   : > { %v2462_v53 = vadd.f32 %v2461_v21, %v2367_v7  ;;  %v2787_v43 = vsel %vm2723_vm3, %v4077_v48, 0.0  ;;  %vm1466_vm11 = vcmp.eq.s32.totalorder %v3822_v12, %v3718_v54  ;;  %vm1676_vm4 = vcmp.eq.s32.totalorder %v3822_v12, %v3726_v59  ;;  %v4389_v48 = vpop.f32.mrb[21].mxu0 }
 0x1aa   : > { %v2672_v34 = vadd.f32 %v2671_v35, %v2577_v27  ;;  %v2882_v21 = vadd.f32 %v2881_v36, %v2787_v43  ;;  %v1108_v41 = vsel %vm1044_vm13, %v4115_v47, 0.0  ;;  %v1318_v10 = vsel %vm1254_vm1, %v4115_v47, 0.0 }
 0x1ab   : > { %vm1886_vm3 = vcmp.eq.s32.totalorder %v3822_v12, %v3728_v60  ;;  %vm2096_vm6 = vcmp.eq.s32.totalorder %v3822_v12, %v3730_v61  ;;  %v1166_v35 = vadd.f32 %v1165_v37, %v1108_v41  ;;  %v1376_v36 = vadd.f32 %v1375_v22, %v1318_v10 }
 0x1ac   : > { %v1528_v57 = vsel %vm1464_vm5, %v4115_v47, 0.0  ;;  %v1738_v7 = vsel %vm1674_vm2, %v4115_v47, 0.0  ;;  %vm2516_vm1 = vcmp.eq.s32.totalorder %v3822_v12, %v3734_v63  ;;  %v1948_v37 = vsel %vm1884_vm14, %v4115_v47, 0.0 }
 0x1ad   : > { %v1586_v27 = vadd.f32 %v1585_v8, %v1528_v57  ;;  %v1796_v43 = vadd.f32 %v1795_v23, %v1738_v7  ;;  %vm6960_vm5 = vcmp.eq.s32.totalorder %v3819_v11, %v3730_v61  ;;  %vm1047_vm13 = vcmp.eq.s32.totalorder %v3822_v12, %v3720_v55  ;;  %v4427_v57 = vpop.f32.mrb[22].mxu0 }
 0x1ae   : > { %v2158_v22 = vsel %vm6960_vm5, %v4115_v47, 0.0  ;;  %v2006_v41 = vadd.f32 %v2005_v25, %v1948_v37  ;;  %v2368_v8 = vsel %vm2304_vm7, %v4115_v47, 0.0  ;;  %vm6961_vm14 = vcmp.eq.s32.totalorder %v3819_v11, %v3734_v63 }
 0x1af   : > { %v2216_v10 = vadd.f32 %v2215_v33, %v2158_v22  ;;  %v2578_v23 = vsel %vm6961_vm14, %v4115_v47, 0.0  ;;  %vm1257_vm5 = vcmp.eq.s32.totalorder %v3822_v12, %v3722_v56  ;;  %vm1467_vm2 = vcmp.eq.s32.totalorder %v3822_v12, %v3724_v58  ;;  %v4441_v22 = vpop.f32.mrb[23].mxu0 }
 0x1b0   : > { %v2426_v25 = vadd.f32 %v2425_v24, %v2368_v8  ;;  %v2636_v33 = vadd.f32 %v2635_v29, %v2578_v23  ;;  %v2788_v7 = vsel %vm2724_vm12, %v4115_v47, 0.0  ;;  %v1109_v37 = vsel %vm1045_vm8, %v4129_v30, 0.0  ;;  %6962 = vst [vmem:[#allocation17_spill] sm:$0xff] %v4441_v22 }
 0x1b1   : > { %v2846_v24 = vadd.f32 %v2845_v31, %v2788_v7  ;;  %v1203_v29 = vadd.f32 %v1202_v38, %v1109_v37  ;;  %v1319_v47 = vsel %vm1255_vm15, %v4129_v30, 0.0  ;;  %vm6963_vm12 = vcmp.eq.s32.totalorder %v3819_v11, %v3724_v58 }
 0x1b2   : > { %v1529_v8 = vsel %vm6963_vm12, %v4129_v30, 0.0  ;;  %v1413_v23 = vadd.f32 %v1412_v46, %v1319_v47  ;;  %vm6964_vm7 = vcmp.eq.s32.totalorder %v3819_v11, %v3736_v0  ;;  %vm6965_vm15 = vcmp.eq.s32.totalorder %v3819_v11, %v3738_v1  ;;  %v4479_v47 = vpop.f32.mrb[24].mxu0 }
 0x1b3   : > { %v1623_v22 = vadd.f32 %v1622_v26, %v1529_v8  ;;  %v1739_v31 = vsel %vm6964_vm7, %v4129_v30, 0.0  ;;  %v1949_v38 = vsel %vm6965_vm15, %v4129_v30, 0.0  ;;  %vm6966_vm14 = vcmp.eq.s32.totalorder %v3819_v11, %v3740_v2 }
 0x1b4   : > { %v1833_v7 = vadd.f32 %v1832_v42, %v1739_v31  ;;  %v2043_v37 = vadd.f32 %v2042_v20, %v1949_v38  ;;  %v2159_v46 = vsel %vm6966_vm14, %v4129_v30, 0.0  ;;  %vm6967_vm7 = vcmp.eq.s32.totalorder %v3819_v11, %v3744_v4  ;;  %v4493_v38 = vpop.f32.mrb[25].mxu0 }
 0x1b5   : > { %v2369_v26 = vsel %vm6967_vm7, %v4129_v30, 0.0  ;;  %vm1048_vm15 = vcmp.eq.s32.totalorder %v3825_v13, %v3714_v51  ;;  %vm1258_vm12 = vcmp.eq.s32.totalorder %v3825_v13, %v3716_v52  ;;  %v2253_v42 = vadd.f32 %v2252_v39, %v2159_v46 }
 0x1b6   : > { %v2463_v20 = vadd.f32 %v2462_v53, %v2369_v26  ;;  %vm6968_vm8 = vcmp.eq.s32.totalorder %v3819_v11, %v3746_v5  ;;  %v2789_v31 = vsel %vm2725_vm10, %v4129_v30, 0.0  ;;  %vm1468_vm14 = vcmp.eq.s32.totalorder %v3825_v13, %v3718_v54 }
 0x1b7   : > { %v2579_v8 = vsel %vm6968_vm8, %v4129_v30, 0.0  ;;  %vm1678_vm7 = vcmp.eq.s32.totalorder %v3825_v13, %v3726_v59  ;;  %v2883_v53 = vadd.f32 %v2882_v21, %v2789_v31  ;;  %v1110_v46 = vsel %vm1046_vm9, %v4167_v49, 0.0 }
 0x1b8   : > { %v2673_v39 = vadd.f32 %v2672_v34, %v2579_v8  ;;  %v1320_v11 = vsel %vm1256_vm0, %v4167_v49, 0.0  ;;  %vm1888_vm10 = vcmp.eq.s32.totalorder %v3825_v13, %v3728_v60  ;;  %vm2098_vm8 = vcmp.eq.s32.totalorder %v3825_v13, %v3730_v61 }
 0x1b9   : > { %v1167_v30 = vadd.f32 %v1166_v35, %v1110_v46  ;;  %v1377_v26 = vadd.f32 %v1376_v36, %v1320_v11  ;;  %v1530_v34 = vsel %vm1466_vm11, %v4167_v49, 0.0  ;;  %v1740_v21 = vsel %vm1676_vm4, %v4167_v49, 0.0  ;;  %v4531_v46 = vpop.f32.mrb[26].mxu0 }
 0x1ba   : > { %vm2308_vm0 = vcmp.eq.s32.totalorder %v3825_v13, %v3732_v62  ;;  %v1587_v8 = vadd.f32 %v1586_v27, %v1530_v34  ;;  %v1797_v31 = vadd.f32 %v1796_v43, %v1740_v21  ;;  %v1950_v35 = vsel %vm1886_vm3, %v4167_v49, 0.0  ;;  %6969 = vst [vmem:[#allocation18_spill] sm:$0xff] %v4531_v46  ;;  %v4545_v21 = vpop.f32.mrb[27].mxu0 }
 0x1bb   : > { %v2160_v36 = vsel %vm2096_vm6, %v4167_v49, 0.0  ;;  %vm2728_vm11 = vcmp.eq.s32.totalorder %v3825_v13, %v3742_v3  ;;  %v2007_v27 = vadd.f32 %v2006_v41, %v1950_v35  ;;  %vm6970_vm9 = vcmp.eq.s32.totalorder %v3822_v12, %v3732_v62  ;;  %6971 = vst [vmem:[#allocation19_spill] sm:$0xff] %v4545_v21 }
 0x1bc   : > { %v2217_v43 = vadd.f32 %v2216_v10, %v2160_v36  ;;  %v2370_v11 = vsel %vm6970_vm9, %v4167_v49, 0.0  ;;  %v2580_v34 = vsel %vm2516_vm1, %v4167_v49, 0.0  ;;  %vm1259_vm3 = vcmp.eq.s32.totalorder %v3825_v13, %v3722_v56 }
 0x1bd   : > { %vm1469_vm6 = vcmp.eq.s32.totalorder %v3825_v13, %v3724_v58  ;;  %v2427_v41 = vadd.f32 %v2426_v25, %v2370_v11  ;;  %v2637_v10 = vadd.f32 %v2636_v33, %v2580_v34  ;;  %vm6972_vm4 = vcmp.eq.s32.totalorder %v3822_v12, %v3742_v3  ;;  %v4583_v34 = vpop.f32.mrb[28].mxu0 }
 0x1be   : > { %v2790_v35 = vsel %vm6972_vm4, %v4167_v49, 0.0  ;;  %v1111_v36 = vsel %vm1047_vm13, %v4181_v28, 0.0  ;;  %vm1679_vm1 = vcmp.eq.s32.totalorder %v3825_v13, %v3736_v0  ;;  %v1321_v25 = vsel %vm1257_vm5, %v4181_v28, 0.0 }
 0x1bf   : > { %v2847_v46 = vadd.f32 %v2846_v24, %v2790_v35  ;;  %v1204_v21 = vadd.f32 %v1203_v29, %v1111_v36  ;;  %v1531_v49 = vsel %vm1467_vm2, %v4181_v28, 0.0  ;;  %v1414_v33 = vadd.f32 %v1413_v23, %v1321_v25  ;;  %v4597_v25 = vpop.f32.mrb[29].mxu0 }
 0x1c0   : > { %v1624_v11 = vadd.f32 %v1623_v22, %v1531_v49  ;;  %vm6973_vm9 = vcmp.eq.s32.totalorder %v3822_v12, %v3736_v0  ;;  %vm6974_vm5 = vcmp.eq.s32.totalorder %v3822_v12, %v3738_v1  ;;  %vm6975_vm4 = vcmp.eq.s32.totalorder %v3822_v12, %v3740_v2  ;;  %6977 = vst [vmem:[#allocation20_spill] sm:$0xff] %v4597_v25 }
 0x1c1   : > { %v1741_v24 = vsel %vm6973_vm9, %v4181_v28, 0.0  ;;  %v1951_v29 = vsel %vm6974_vm5, %v4181_v28, 0.0  ;;  %v2161_v35 = vsel %vm6975_vm4, %v4181_v28, 0.0  ;;  %vm6976_vm9 = vcmp.eq.s32.totalorder %v3822_v12, %v3744_v4 }
 0x1c2   : > { %v1834_v23 = vadd.f32 %v1833_v7, %v1741_v24  ;;  %v2044_v22 = vadd.f32 %v2043_v37, %v1951_v29  ;;  %v2371_v36 = vsel %vm6976_vm9, %v4181_v28, 0.0  ;;  %vm1050_vm5 = vcmp.eq.s32.totalorder %v3832_v14, %v3714_v51 }
 0x1c3   : > { %v2254_v7 = vadd.f32 %v2253_v42, %v2161_v35  ;;  %v2464_v37 = vadd.f32 %v2463_v20, %v2371_v36  ;;  %vm6978_vm2 = vcmp.eq.s32.totalorder %v3822_v12, %v3746_v5  ;;  %vm6979_vm4 = vcmp.eq.s32.totalorder %v3822_v12, %v3748_v6  ;;  %v4635_v35 = vpop.f32.mrb[30].mxu0 }
 0x1c4   : > { %v2581_v49 = vsel %vm6978_vm2, %v4181_v28, 0.0  ;;  %v2791_v24 = vsel %vm6979_vm4, %v4181_v28, 0.0  ;;  %vm1470_vm9 = vcmp.eq.s32.totalorder %v3832_v14, %v3718_v54  ;;  %vm1680_vm13 = vcmp.eq.s32.totalorder %v3832_v14, %v3726_v59 }
 0x1c5   : > { %v2674_v29 = vadd.f32 %v2673_v39, %v2581_v49  ;;  %v2884_v25 = vadd.f32 %v2883_v53, %v2791_v24  ;;  %v1112_v42 = vsel %vm1048_vm15, %v4219_v18, 0.0  ;;  %v1322_v20 = vsel %vm1258_vm12, %v4219_v18, 0.0  ;;  %v4649_v24 = vpop.f32.mrb[31].mxu0 }
 0x1c6   : > { %vm1890_vm2 = vcmp.eq.s32.totalorder %v3832_v14, %v3728_v60  ;;  %vm2100_vm4 = vcmp.eq.s32.totalorder %v3832_v14, %v3730_v61  ;;  %v1168_v12 = vadd.f32 %v1167_v30, %v1112_v42  ;;  %v1378_v28 = vadd.f32 %v1377_v26, %v1322_v20 }
 0x1c7   : > { %v1532_v39 = vsel %vm1468_vm14, %v4219_v18, 0.0  ;;  %v1742_v53 = vsel %vm1678_vm7, %v4219_v18, 0.0  ;;  %vm2310_vm12 = vcmp.eq.s32.totalorder %v3832_v14, %v3732_v62  ;;  %vm2520_vm15 = vcmp.eq.s32.totalorder %v3832_v14, %v3734_v63 }
 0x1c8   : > { %v1588_v30 = vadd.f32 %v1587_v8, %v1532_v39  ;;  %v1798_v26 = vadd.f32 %v1797_v31, %v1742_v53  ;;  %v1952_v36 = vsel %vm1888_vm10, %v4219_v18, 0.0  ;;  %v2162_v49 = vsel %vm2098_vm8, %v4219_v18, 0.0 }
 0x1c9   : > { %vm2730_vm14 = vcmp.eq.s32.totalorder %v3832_v14, %v3742_v3  ;;  %v2008_v8 = vadd.f32 %v2007_v27, %v1952_v36  ;;  %v2218_v31 = vadd.f32 %v2217_v43, %v2162_v49  ;;  %v2372_v42 = vsel %vm2308_vm0, %v4219_v18, 0.0 }
 0x1ca   : > { %vm6980_vm10 = vcmp.eq.s32.totalorder %v3825_v13, %v3734_v63  ;;  %vm1471_vm7 = vcmp.eq.s32.totalorder %v3832_v14, %v3724_v58  ;;  %v2428_v39 = vadd.f32 %v2427_v41, %v2372_v42  ;;  %v2792_v27 = vsel %vm2728_vm11, %v4219_v18, 0.0 }
 0x1cb   : > { %v2582_v20 = vsel %vm6980_vm10, %v4219_v18, 0.0  ;;  %vm6981_vm0 = vcmp.eq.s32.totalorder %v3825_v13, %v3720_v55  ;;  %vm1681_vm10 = vcmp.eq.s32.totalorder %v3832_v14, %v3736_v0  ;;  %vm1891_vm8 = vcmp.eq.s32.totalorder %v3832_v14, %v3738_v1 }
 0x1cc   : > { %v2638_v53 = vadd.f32 %v2637_v10, %v2582_v20  ;;  %v1113_v43 = vsel %vm6981_vm0, %v4233_v32, 0.0  ;;  %v2848_v36 = vadd.f32 %v2847_v46, %v2792_v27  ;;  %v1323_v41 = vsel %vm1259_vm3, %v4233_v32, 0.0  ;;  %v4687_v10 = vpop.f32.mrb[0].mxu1 }
 0x1cd   : > { %v1205_v49 = vadd.f32 %v1204_v21, %v1113_v43  ;;  %v1533_v18 = vsel %vm1469_vm6, %v4233_v32, 0.0  ;;  %v1415_v46 = vadd.f32 %v1414_v33, %v1323_v41  ;;  %v1743_v42 = vsel %vm1679_vm1, %v4233_v32, 0.0  ;;  %v4701_v27 = vpop.f32.mrb[1].mxu1 }
 0x1ce   : > { %v1625_v21 = vadd.f32 %v1624_v11, %v1533_v18  ;;  %vm6982_vm3 = vcmp.eq.s32.totalorder %v3825_v13, %v3738_v1  ;;  %6983 = vst [vmem:[#allocation21_spill] sm:$0xff] %v4701_v27  ;;  %v1835_v33 = vadd.f32 %v1834_v23, %v1743_v42  ;;  %vm6984_vm11 = vcmp.eq.s32.totalorder %v3825_v13, %v3740_v2 }
 0x1cf   : > { %v1953_v20 = vsel %vm6982_vm3, %v4233_v32, 0.0  ;;  %v2163_v43 = vsel %vm6984_vm11, %v4233_v32, 0.0  ;;  %vm6985_vm1 = vcmp.eq.s32.totalorder %v3825_v13, %v3744_v4  ;;  %vm1262_vm0 = vcmp.eq.s32.totalorder %v3835_v15, %v3716_v52 }
 0x1d0   : > { %v2045_v11 = vadd.f32 %v2044_v22, %v1953_v20  ;;  %v2373_v41 = vsel %vm6985_vm1, %v4233_v32, 0.0  ;;  %v2255_v18 = vadd.f32 %v2254_v7, %v2163_v43  ;;  %vm6986_vm6 = vcmp.eq.s32.totalorder %v3825_v13, %v3746_v5 }
 0x1d1   : > { %v2465_v27 = vadd.f32 %v2464_v37, %v2373_v41  ;;  %v2583_v23 = vsel %vm6986_vm6, %v4233_v32, 0.0  ;;  %vm6987_vm11 = vcmp.eq.s32.totalorder %v3825_v13, %v3748_v6  ;;  %vm1682_vm3 = vcmp.eq.s32.totalorder %v3835_v15, %v3726_v59  ;;  %v4739_v13 = vpop.f32.mrb[2].mxu1 }
 0x1d2   : > { %v2793_v22 = vsel %vm6987_vm11, %v4233_v32, 0.0  ;;  %v2675_v42 = vadd.f32 %v2674_v29, %v2583_v23  ;;  %v1114_v7 = vsel %vm1050_vm5, %v4271_v9, 0.0  ;;  %vm6988_vm6 = vcmp.eq.s32.totalorder %v3832_v14, %v3716_v52  ;;  %v4753_v41 = vpop.f32.mrb[3].mxu1 }
 0x1d3   : > { %v2885_v20 = vadd.f32 %v2884_v25, %v2793_v22  ;;  %v1324_v37 = vsel %vm6988_vm6, %v4271_v9, 0.0  ;;  %vm1892_vm11 = vcmp.eq.s32.totalorder %v3835_v15, %v3728_v60  ;;  %vm2102_vm1 = vcmp.eq.s32.totalorder %v3835_v15, %v3730_v61 }
 0x1d4   : > { %v1169_v32 = vadd.f32 %v1168_v12, %v1114_v7  ;;  %v1379_v25 = vadd.f32 %v1378_v28, %v1324_v37  ;;  %v1534_v29 = vsel %vm1470_vm9, %v4271_v9, 0.0  ;;  %v1744_v43 = vsel %vm1680_vm13, %v4271_v9, 0.0 }
 0x1d5   : > { %vm2312_vm5 = vcmp.eq.s32.totalorder %v3835_v15, %v3732_v62  ;;  %vm2522_vm6 = vcmp.eq.s32.totalorder %v3835_v15, %v3734_v63  ;;  %v1589_v12 = vadd.f32 %v1588_v30, %v1534_v29  ;;  %v1799_v28 = vadd.f32 %v1798_v26, %v1744_v43 }
 0x1d6   : > { %v1954_v23 = vsel %vm1890_vm2, %v4271_v9, 0.0  ;;  %v2164_v22 = vsel %vm2100_vm4, %v4271_v9, 0.0  ;;  %vm2732_vm13 = vcmp.eq.s32.totalorder %v3835_v15, %v3742_v3  ;;  %vm1053_vm9 = vcmp.eq.s32.totalorder %v3835_v15, %v3720_v55 }
 0x1d7   : > { %v2009_v7 = vadd.f32 %v2008_v8, %v1954_v23  ;;  %v2219_v37 = vadd.f32 %v2218_v31, %v2164_v22  ;;  %v2374_v30 = vsel %vm2310_vm12, %v4271_v9, 0.0  ;;  %v2584_v26 = vsel %vm2520_vm15, %v4271_v9, 0.0  ;;  %v4791_v23 = vpop.f32.mrb[4].mxu1 }
 0x1d8   : > { %v2429_v29 = vadd.f32 %v2428_v39, %v2374_v30  ;;  %v2639_v43 = vadd.f32 %v2638_v53, %v2584_v26  ;;  %v2794_v8 = vsel %vm2730_vm14, %v4271_v9, 0.0  ;;  %vm6989_vm12 = vcmp.eq.s32.totalorder %v3832_v14, %v3720_v55  ;;  %6990 = vst [vmem:[#allocation22_spill] sm:$0xff] %v4791_v23  ;;  %v4805_v30 = vpop.f32.mrb[5].mxu1 }
 0x1d9   : > { %v1115_v31 = vsel %vm6989_vm12, %v4285_v50, 0.0  ;;  %vm1683_vm15 = vcmp.eq.s32.totalorder %v3835_v15, %v3736_v0  ;;  %vm1893_vm2 = vcmp.eq.s32.totalorder %v3835_v15, %v3738_v1  ;;  %v2849_v39 = vadd.f32 %v2848_v36, %v2794_v8  ;;  %6992 = vst [vmem:[#allocation23_spill] sm:$0xff] %v4805_v30 }
 0x1da   : > { %v1206_v53 = vadd.f32 %v1205_v49, %v1115_v31  ;;  %vm6991_vm4 = vcmp.eq.s32.totalorder %v3832_v14, %v3722_v56  ;;  %v1535_v22 = vsel %vm1471_vm7, %v4285_v50, 0.0  ;;  %vm2103_vm14 = vcmp.eq.s32.totalorder %v3835_v15, %v3740_v2 }
 0x1db   : > { %v1325_v9 = vsel %vm6991_vm4, %v4285_v50, 0.0  ;;  %v1626_v49 = vadd.f32 %v1625_v21, %v1535_v22  ;;  %v1745_v26 = vsel %vm1681_vm10, %v4285_v50, 0.0  ;;  %v1955_v8 = vsel %vm1891_vm8, %v4285_v50, 0.0 }
 0x1dc   : > { %v1416_v36 = vadd.f32 %v1415_v46, %v1325_v9  ;;  %v1836_v31 = vadd.f32 %v1835_v33, %v1745_v26  ;;  %v2046_v30 = vadd.f32 %v2045_v11, %v1955_v8  ;;  %vm6993_vm12 = vcmp.eq.s32.totalorder %v3832_v14, %v3740_v2  ;;  %v4843_v26 = vpop.f32.mrb[6].mxu1 }
 0x1dd   : > { %v2165_v46 = vsel %vm6993_vm12, %v4285_v50, 0.0  ;;  %vm6994_vm10 = vcmp.eq.s32.totalorder %v3832_v14, %v3744_v4  ;;  %vm6995_vm4 = vcmp.eq.s32.totalorder %v3832_v14, %v3746_v5  ;;  %vm6996_vm12 = vcmp.eq.s32.totalorder %v3832_v14, %v3748_v6  ;;  %6997 = vst [vmem:[#allocation24_spill] sm:$0xff] %v4843_v26 }
 0x1de   : > { %v2375_v21 = vsel %vm6994_vm10, %v4285_v50, 0.0  ;;  %v2256_v9 = vadd.f32 %v2255_v18, %v2165_v46  ;;  %v2585_v33 = vsel %vm6995_vm4, %v4285_v50, 0.0  ;;  %v2795_v11 = vsel %vm6996_vm12, %v4285_v50, 0.0  ;;  %v4857_v50 = vpop.f32.mrb[7].mxu1 }
 0x1df   : > { %v2466_v22 = vadd.f32 %v2465_v27, %v2375_v21  ;;  %vm1474_vm10 = vcmp.eq.s32.totalorder %v3838_v16, %v3718_v54  ;;  %v2676_v18 = vadd.f32 %v2675_v42, %v2585_v33  ;;  %v2886_v27 = vadd.f32 %v2885_v20, %v2795_v11  ;;  %6999 = vst [vmem:[#allocation25_spill] sm:$0xff] %v4857_v50 }
 0x1e0   : > { %vm6998_vm7 = vcmp.eq.s32.totalorder %v3835_v15, %v3714_v51  ;;  %v1326_v14 = vsel %vm1262_vm0, %v4323_v45, 0.0  ;;  %vm1894_vm4 = vcmp.eq.s32.totalorder %v3838_v16, %v3728_v60  ;;  %vm2104_vm12 = vcmp.eq.s32.totalorder %v3838_v16, %v3730_v61 }
 0x1e1   : > { %v1116_v8 = vsel %vm6998_vm7, %v4323_v45, 0.0  ;;  %v1380_v20 = vadd.f32 %v1379_v25, %v1326_v14  ;;  %vm7000_vm8 = vcmp.eq.s32.totalorder %v3835_v15, %v3718_v54  ;;  %v1746_v21 = vsel %vm1682_vm3, %v4323_v45, 0.0 }
 0x1e2   : > { %v1170_v42 = vadd.f32 %v1169_v32, %v1116_v8  ;;  %v1536_v46 = vsel %vm7000_vm8, %v4323_v45, 0.0  ;;  %vm2314_vm0 = vcmp.eq.s32.totalorder %v3838_v16, %v3732_v62  ;;  %vm2524_vm7 = vcmp.eq.s32.totalorder %v3838_v16, %v3734_v63 }
 0x1e3   : > { %v1590_v33 = vadd.f32 %v1589_v12, %v1536_v46  ;;  %v1800_v11 = vadd.f32 %v1799_v28, %v1746_v21  ;;  %v1956_v32 = vsel %vm1892_vm11, %v4323_v45, 0.0  ;;  %v2166_v25 = vsel %vm2102_vm1, %v4323_v45, 0.0  ;;  %v4895_v46 = vpop.f32.mrb[8].mxu1 }
 0x1e4   : > { %vm2734_vm3 = vcmp.eq.s32.totalorder %v3838_v16, %v3742_v3  ;;  %vm1055_vm8 = vcmp.eq.s32.totalorder %v3838_v16, %v3720_v55  ;;  %v2010_v8 = vadd.f32 %v2009_v7, %v1956_v32  ;;  %v2220_v14 = vadd.f32 %v2219_v37, %v2166_v25  ;;  %7001 = vst [vmem:[#allocation26_spill] sm:$0xff] %v4895_v46  ;;  %v4909_v25 = vpop.f32.mrb[9].mxu1 }
 0x1e5   : > { %v2376_v12 = vsel %vm2312_vm5, %v4323_v45, 0.0  ;;  %v2586_v28 = vsel %vm2522_vm6, %v4323_v45, 0.0  ;;  %vm1265_vm1 = vcmp.eq.s32.totalorder %v3838_v16, %v3722_v56  ;;  %v2796_v21 = vsel %vm2732_vm13, %v4323_v45, 0.0  ;;  %7002 = vst [vmem:[#allocation27_spill] sm:$0xff] %v4909_v25 }
 0x1e6   : > { %v2430_v7 = vadd.f32 %v2429_v29, %v2376_v12  ;;  %v2640_v37 = vadd.f32 %v2639_v43, %v2586_v28  ;;  %v1117_v32 = vsel %vm1053_vm9, %v4337_v44, 0.0  ;;  %vm1685_vm5 = vcmp.eq.s32.totalorder %v3838_v16, %v3736_v0 }
 0x1e7   : > { %v2850_v29 = vadd.f32 %v2849_v39, %v2796_v21  ;;  %v1207_v43 = vadd.f32 %v1206_v53, %v1117_v32  ;;  %vm7003_vm11 = vcmp.eq.s32.totalorder %v3835_v15, %v3722_v56  ;;  %vm7004_vm13 = vcmp.eq.s32.totalorder %v3835_v15, %v3724_v58 }
 0x1e8   : > { %v1327_v45 = vsel %vm7003_vm11, %v4337_v44, 0.0  ;;  %v1537_v12 = vsel %vm7004_vm13, %v4337_v44, 0.0  ;;  %vm2105_vm9 = vcmp.eq.s32.totalorder %v3838_v16, %v3740_v2  ;;  %vm2315_vm6 = vcmp.eq.s32.totalorder %v3838_v16, %v3744_v4 }
 0x1e9   : > { %v1417_v28 = vadd.f32 %v1416_v36, %v1327_v45  ;;  %v1627_v25 = vadd.f32 %v1626_v49, %v1537_v12  ;;  %v1747_v39 = vsel %vm1683_vm15, %v4337_v44, 0.0  ;;  %v1957_v53 = vsel %vm1893_vm2, %v4337_v44, 0.0 }
 0x1ea   : > { %v1837_v21 = vadd.f32 %v1836_v31, %v1747_v39  ;;  %v2047_v32 = vadd.f32 %v2046_v30, %v1957_v53  ;;  %v2167_v36 = vsel %vm2103_vm14, %v4337_v44, 0.0  ;;  %vm7005_vm15 = vcmp.eq.s32.totalorder %v3835_v15, %v3744_v4 }
 0x1eb   : > { %v2377_v49 = vsel %vm7005_vm15, %v4337_v44, 0.0  ;;  %v2257_v45 = vadd.f32 %v2256_v9, %v2167_v36  ;;  %vm7006_vm13 = vcmp.eq.s32.totalorder %v3835_v15, %v3746_v5  ;;  %vm7007_vm14 = vcmp.eq.s32.totalorder %v3835_v15, %v3748_v6  ;;  %v4971_v15 = vpop.f32.mrb[10].mxu1 }
 0x1ec   : > { %v2467_v12 = vadd.f32 %v2466_v22, %v2377_v49  ;;  %v2587_v30 = vsel %vm7006_vm13, %v4337_v44, 0.0  ;;  %v2797_v31 = vsel %vm7007_vm14, %v4337_v44, 0.0  ;;  %vm1686_vm2 = vcmp.eq.s32.totalorder %v3841_v17, %v3726_v59  ;;  %7010 = vst [vmem:[#allocation28_spill] sm:$0xff] %v4971_v15 }
 0x1ed   : > { %v2677_v39 = vadd.f32 %v2676_v18, %v2587_v30  ;;  %v2887_v53 = vadd.f32 %v2886_v27, %v2797_v31  ;;  %vm7008_vm11 = vcmp.eq.s32.totalorder %v3838_v16, %v3714_v51  ;;  %vm7009_vm13 = vcmp.eq.s32.totalorder %v3838_v16, %v3716_v52 }
 0x1ee   : > { %v1118_v9 = vsel %vm7008_vm11, %v4375_v40, 0.0  ;;  %v1328_v22 = vsel %vm7009_vm13, %v4375_v40, 0.0  ;;  %vm1896_vm14 = vcmp.eq.s32.totalorder %v3841_v17, %v3728_v60  ;;  %v1538_v27 = vsel %vm1474_vm10, %v4375_v40, 0.0 }
 0x1ef   : > { %v1171_v44 = vadd.f32 %v1170_v42, %v1118_v9  ;;  %v1381_v18 = vadd.f32 %v1380_v20, %v1328_v22  ;;  %vm7011_vm11 = vcmp.eq.s32.totalorder %v3838_v16, %v3726_v59  ;;  %vm2316_vm13 = vcmp.eq.s32.totalorder %v3841_v17, %v3732_v62 }
 0x1f0   : > { %v1748_v36 = vsel %vm7011_vm11, %v4375_v40, 0.0  ;;  %vm2526_vm15 = vcmp.eq.s32.totalorder %v3841_v17, %v3734_v63  ;;  %v1591_v49 = vadd.f32 %v1590_v33, %v1538_v27  ;;  %v1958_v42 = vsel %vm1894_vm4, %v4375_v40, 0.0 }
 0x1f1   : > { %v1801_v30 = vadd.f32 %v1800_v11, %v1748_v36  ;;  %v2168_v20 = vsel %vm2104_vm12, %v4375_v40, 0.0  ;;  %vm2736_vm10 = vcmp.eq.s32.totalorder %v3841_v17, %v3742_v3  ;;  %vm1057_vm11 = vcmp.eq.s32.totalorder %v3841_v17, %v3720_v55 }
 0x1f2   : > { %v2011_v31 = vadd.f32 %v2010_v8, %v1958_v42  ;;  %v2221_v9 = vadd.f32 %v2220_v14, %v2168_v20  ;;  %v2378_v33 = vsel %vm2314_vm0, %v4375_v40, 0.0  ;;  %v2588_v11 = vsel %vm2524_vm7, %v4375_v40, 0.0 }
 0x1f3   : > { %vm1267_vm4 = vcmp.eq.s32.totalorder %v3841_v17, %v3722_v56  ;;  %vm1477_vm12 = vcmp.eq.s32.totalorder %v3841_v17, %v3724_v58  ;;  %v2431_v22 = vadd.f32 %v2430_v7, %v2378_v33  ;;  %v2641_v27 = vadd.f32 %v2640_v37, %v2588_v11 }
 0x1f4   : > { %v2798_v8 = vsel %vm2734_vm3, %v4375_v40, 0.0  ;;  %v1119_v14 = vsel %vm1055_vm8, %v4389_v48, 0.0  ;;  %vm1897_vm7 = vcmp.eq.s32.totalorder %v3841_v17, %v3738_v1  ;;  %v1329_v7 = vsel %vm1265_vm1, %v4389_v48, 0.0 }
 0x1f5   : > { %v2851_v36 = vadd.f32 %v2850_v29, %v2798_v8  ;;  %v1208_v42 = vadd.f32 %v1207_v43, %v1119_v14  ;;  %vm7012_vm3 = vcmp.eq.s32.totalorder %v3838_v16, %v3724_v58  ;;  %vm2317_vm0 = vcmp.eq.s32.totalorder %v3841_v17, %v3744_v4  ;;  %v5057_v8 = vpop.f32.mrb[11].mxu1 }
 0x1f6   : > { %v1539_v40 = vsel %vm7012_vm3, %v4389_v48, 0.0  ;;  %v1418_v37 = vadd.f32 %v1417_v28, %v1329_v7  ;;  %v1749_v29 = vsel %vm1685_vm5, %v4389_v48, 0.0  ;;  %vm7013_vm1 = vcmp.eq.s32.totalorder %v3838_v16, %v3738_v1  ;;  %7014 = vst [vmem:[#allocation29_spill] sm:$0xff] %v5057_v8 }
 0x1f7   : > { %v1628_v20 = vadd.f32 %v1627_v25, %v1539_v40  ;;  %v1959_v43 = vsel %vm7013_vm1, %v4389_v48, 0.0  ;;  %vm2527_vm3 = vcmp.eq.s32.totalorder %v3841_v17, %v3746_v5  ;;  %v1838_v33 = vadd.f32 %v1837_v21, %v1749_v29 }
 0x1f8   : > { %v2048_v11 = vadd.f32 %v2047_v32, %v1959_v43  ;;  %v2169_v25 = vsel %vm2105_vm9, %v4389_v48, 0.0  ;;  %v2379_v28 = vsel %vm2315_vm6, %v4389_v48, 0.0  ;;  %vm7015_vm8 = vcmp.eq.s32.totalorder %v3838_v16, %v3746_v5 }
 0x1f9   : > { %v2258_v21 = vadd.f32 %v2257_v45, %v2169_v25  ;;  %v2468_v32 = vadd.f32 %v2467_v12, %v2379_v28  ;;  %v2589_v14 = vsel %vm7015_vm8, %v4389_v48, 0.0  ;;  %vm7016_vm9 = vcmp.eq.s32.totalorder %v3838_v16, %v3748_v6 }
 0x1fa   : > { %v2799_v7 = vsel %vm7016_vm9, %v4389_v48, 0.0  ;;  %v2678_v40 = vadd.f32 %v2677_v39, %v2589_v14  ;;  %vm7017_vm5 = vcmp.eq.s32.totalorder %v3841_v17, %v3714_v51  ;;  %vm7018_vm8 = vcmp.eq.s32.totalorder %v3841_v17, %v3716_v52 }
 0x1fb   : > { %v2888_v29 = vadd.f32 %v2887_v53, %v2799_v7  ;;  %v1120_v45 = vsel %vm7017_vm5, %v4427_v57, 0.0  ;;  %v1330_v12 = vsel %vm7018_vm8, %v4427_v57, 0.0  ;;  %vm1898_vm9 = vcmp.eq.s32.totalorder %v3848_v19, %v3728_v60 }
 0x1fc   : > { %vm2108_vm6 = vcmp.eq.s32.totalorder %v3848_v19, %v3730_v61  ;;  %v1172_v16 = vadd.f32 %v1171_v44, %v1120_v45  ;;  %v1382_v48 = vadd.f32 %v1381_v18, %v1330_v12  ;;  %vm7019_vm1 = vcmp.eq.s32.totalorder %v3841_v17, %v3718_v54 }
 0x1fd   : > { %v1540_v39 = vsel %vm7019_vm1, %v4427_v57, 0.0  ;;  %v1750_v53 = vsel %vm1686_vm2, %v4427_v57, 0.0  ;;  %vm2528_vm8 = vcmp.eq.s32.totalorder %v3848_v19, %v3734_v63  ;;  %v1960_v44 = vsel %vm1896_vm14, %v4427_v57, 0.0 }
 0x1fe   : > { %v1592_v43 = vadd.f32 %v1591_v49, %v1540_v39  ;;  %v1802_v25 = vadd.f32 %v1801_v30, %v1750_v53  ;;  %vm7020_vm1 = vcmp.eq.s32.totalorder %v3841_v17, %v3730_v61  ;;  %vm2738_vm2 = vcmp.eq.s32.totalorder %v3848_v19, %v3742_v3 }
 0x1ff   : > { %v2170_v18 = vsel %vm7020_vm1, %v4427_v57, 0.0  ;;  %vm1059_vm5 = vcmp.eq.s32.totalorder %v3848_v19, %v3720_v55  ;;  %v2012_v28 = vadd.f32 %v2011_v31, %v1960_v44  ;;  %v2380_v49 = vsel %vm2316_vm13, %v4427_v57, 0.0 }
 0x200   : > { %v2222_v14 = vadd.f32 %v2221_v9, %v2170_v18  ;;  %v2590_v30 = vsel %vm2526_vm15, %v4427_v57, 0.0  ;;  %vm1269_vm14 = vcmp.eq.s32.totalorder %v3848_v19, %v3722_v56  ;;  %vm1479_vm1 = vcmp.eq.s32.totalorder %v3848_v19, %v3724_v58  ;;  %v7021_v9 = vld [vmem:[#allocation17_spill] sm:$0xff] }
 0x201   : > { %v2432_v7 = vadd.f32 %v2431_v22, %v2380_v49  ;;  %v2642_v45 = vadd.f32 %v2641_v27, %v2590_v30  ;;  %v2800_v31 = vsel %vm2736_vm10, %v4427_v57, 0.0  ;;  %v1121_v12 = vsel %vm1057_vm11, %v7021_v9, 0.0  ;;  %v5143_v27 = vpop.f32.mrb[12].mxu1 }
 0x202   : > { %vm1689_vm15 = vcmp.eq.s32.totalorder %v3848_v19, %v3736_v0  ;;  %v2852_v39 = vadd.f32 %v2851_v36, %v2800_v31  ;;  %v1209_v53 = vadd.f32 %v1208_v42, %v1121_v12  ;;  %v1331_v22 = vsel %vm1267_vm4, %v7021_v9, 0.0  ;;  %7022 = vst [vmem:[#allocation17_spill] sm:$0xff] %v5143_v27  ;;  %v7025_v31 = vld [vmem:[#allocation14_spill] sm:$0xff] }
 0x203   : > { %v1541_v57 = vsel %vm1477_vm12, %v7021_v9, 0.0  ;;  %vm2109_vm10 = vcmp.eq.s32.totalorder %v3848_v19, %v3740_v2  ;;  %v1419_v36 = vadd.f32 %v1418_v37, %v1331_v22  ;;  %vm7023_vm13 = vcmp.eq.s32.totalorder %v3841_v17, %v3736_v0 }
 0x204   : > { %v1629_v42 = vadd.f32 %v1628_v20, %v1541_v57  ;;  %v1751_v44 = vsel %vm7023_vm13, %v7021_v9, 0.0  ;;  %v1961_v18 = vsel %vm1897_vm7, %v7021_v9, 0.0  ;;  %vm2529_vm4 = vcmp.eq.s32.totalorder %v3848_v19, %v3746_v5 }
 0x205   : > { %vm2739_vm12 = vcmp.eq.s32.totalorder %v3848_v19, %v3748_v6  ;;  %v1839_v49 = vadd.f32 %v1838_v33, %v1751_v44  ;;  %v2049_v30 = vadd.f32 %v2048_v11, %v1961_v18  ;;  %vm7024_vm11 = vcmp.eq.s32.totalorder %v3841_v17, %v3740_v2 }
 0x206   : > { %v2171_v37 = vsel %vm7024_vm11, %v7021_v9, 0.0  ;;  %v2381_v20 = vsel %vm2317_vm0, %v7021_v9, 0.0  ;;  %v2591_v33 = vsel %vm2527_vm3, %v7021_v9, 0.0  ;;  %vm7026_vm11 = vcmp.eq.s32.totalorder %v3841_v17, %v3748_v6 }
 0x207   : > { %v2259_v12 = vadd.f32 %v2258_v21, %v2171_v37  ;;  %v2469_v22 = vadd.f32 %v2468_v32, %v2381_v20  ;;  %v2801_v11 = vsel %vm7026_vm11, %v7021_v9, 0.0  ;;  %v2679_v57 = vadd.f32 %v2678_v40, %v2591_v33  ;;  %v5217_v20 = vpop.f32.mrb[13].mxu1 }
 0x208   : > { %v2889_v44 = vadd.f32 %v2888_v29, %v2801_v11  ;;  %vm7027_vm13 = vcmp.eq.s32.totalorder %v3848_v19, %v3714_v51  ;;  %vm7028_vm3 = vcmp.eq.s32.totalorder %v3848_v19, %v3716_v52  ;;  %vm2110_vm0 = vcmp.eq.s32.totalorder %v7025_v31, %v3730_v61  ;;  %7031 = vst [vmem:[#allocation14_spill] sm:$0xff] %v5217_v20 }
 0x209   : > { %v1122_v21 = vsel %vm7027_vm13, %v4479_v47, 0.0  ;;  %v1332_v32 = vsel %vm7028_vm3, %v4479_v47, 0.0  ;;  %vm7029_vm7 = vcmp.eq.s32.totalorder %v3848_v19, %v3718_v54  ;;  %vm7030_vm13 = vcmp.eq.s32.totalorder %v3848_v19, %v3726_v59 }
 0x20a   : > { %v1173_v17 = vadd.f32 %v1172_v16, %v1122_v21  ;;  %v1383_v9 = vadd.f32 %v1382_v48, %v1332_v32  ;;  %v1542_v40 = vsel %vm7029_vm7, %v4479_v47, 0.0  ;;  %v1752_v29 = vsel %vm7030_vm13, %v4479_v47, 0.0 }
 0x20b   : > { %vm2320_vm3 = vcmp.eq.s32.totalorder %v7025_v31, %v3732_v62  ;;  %v1593_v18 = vadd.f32 %v1592_v43, %v1542_v40  ;;  %v1803_v37 = vadd.f32 %v1802_v25, %v1752_v29  ;;  %v1962_v16 = vsel %vm1898_vm9, %v4479_v47, 0.0  ;;  %v7033_v29 = vld [vmem:[#allocation15_spill] sm:$0xff] }
 0x20c   : > { %v2172_v48 = vsel %vm2108_vm6, %v4479_v47, 0.0  ;;  %vm2740_vm7 = vcmp.eq.s32.totalorder %v7025_v31, %v3742_v3  ;;  %v2013_v43 = vadd.f32 %v2012_v28, %v1962_v16  ;;  %vm7032_vm11 = vcmp.eq.s32.totalorder %v3848_v19, %v3732_v62 }
 0x20d   : > { %v2223_v25 = vadd.f32 %v2222_v14, %v2172_v48  ;;  %v2382_v33 = vsel %vm7032_vm11, %v4479_v47, 0.0  ;;  %v2592_v11 = vsel %vm2528_vm8, %v4479_v47, 0.0  ;;  %vm1271_vm6 = vcmp.eq.s32.totalorder %v7025_v31, %v3722_v56 }
 0x20e   : > { %v2433_v28 = vadd.f32 %v2432_v7, %v2382_v33  ;;  %v2643_v14 = vadd.f32 %v2642_v45, %v2592_v11  ;;  %v2802_v21 = vsel %vm2738_vm2, %v4479_v47, 0.0  ;;  %v1123_v32 = vsel %vm1059_vm5, %v4493_v38, 0.0 }
 0x20f   : > { %vm1901_vm8 = vcmp.eq.s32.totalorder %v7025_v31, %v3738_v1  ;;  %vm2111_vm11 = vcmp.eq.s32.totalorder %v7025_v31, %v3740_v2  ;;  %v2853_v7 = vadd.f32 %v2852_v39, %v2802_v21  ;;  %v5249_v45 = vadd.f32 %v1209_v53, %v1123_v32 }
 0x210   : > { %v1333_v47 = vsel %vm1269_vm14, %v4493_v38, 0.0  ;;  %v1543_v40 = vsel %vm1479_vm1, %v4493_v38, 0.0  ;;  %vm2741_vm5 = vcmp.eq.s32.totalorder %v7025_v31, %v3748_v6  ;;  %vm1062_vm2 = vcmp.eq.s32.totalorder %v7033_v29, %v3714_v51 }
 0x211   : > { %vm1272_vm9 = vcmp.eq.s32.totalorder %v7033_v29, %v3716_v52  ;;  %v5267_v39 = vadd.f32 %v1419_v36, %v1333_v47  ;;  %v5269_v53 = vadd.f32 %v1629_v42, %v1543_v40  ;;  %v1753_v16 = vsel %vm1689_vm15, %v4493_v38, 0.0 }
 0x212   : > { %vm7034_vm14 = vcmp.eq.s32.totalorder %v3848_v19, %v3738_v1  ;;  %v5281_v33 = vadd.f32 %v1839_v49, %v1753_v16  ;;  %v2173_v36 = vsel %vm2109_vm10, %v4493_v38, 0.0  ;;  %vm7035_vm15 = vcmp.eq.s32.totalorder %v3848_v19, %v3744_v4  ;;  %v7039_v19 = vld [vmem:[#allocation16_spill] sm:$0xff] }
 0x213   : > { %v1963_v48 = vsel %vm7034_vm14, %v4493_v38, 0.0  ;;  %v2383_v42 = vsel %vm7035_vm15, %v4493_v38, 0.0  ;;  %vm1902_vm14 = vcmp.eq.s32.totalorder %v7033_v29, %v3728_v60  ;;  %vm2112_vm1 = vcmp.eq.s32.totalorder %v7033_v29, %v3730_v61 }
 0x214   : > { %v5283_v11 = vadd.f32 %v2049_v30, %v1963_v48  ;;  %v5299_v49 = vadd.f32 %v2259_v12, %v2173_v36  ;;  %v5301_v30 = vadd.f32 %v2469_v22, %v2383_v42  ;;  %v2593_v21 = vsel %vm2529_vm4, %v4493_v38, 0.0  ;;  %v7036_v12 = vld [vmem:[#allocation18_spill] sm:$0xff] }
 0x215   : > { %v2803_v32 = vsel %vm2739_vm12, %v4493_v38, 0.0  ;;  %v5313_v47 = vadd.f32 %v2679_v57, %v2593_v21  ;;  %vm7037_vm15 = vcmp.eq.s32.totalorder %v7025_v31, %v3714_v51  ;;  %vm7038_vm4 = vcmp.eq.s32.totalorder %v7025_v31, %v3716_v52  ;;  %v5331_v38 = vpop.f32.mrb[14].mxu1 }
 0x216   : > { %v5315_v40 = vadd.f32 %v2889_v44, %v2803_v32  ;;  %v1124_v22 = vsel %vm7037_vm15, %v7036_v12, 0.0  ;;  %v1334_v16 = vsel %vm7038_vm4, %v7036_v12, 0.0  ;;  %vm2742_vm12 = vcmp.eq.s32.totalorder %v7033_v29, %v3742_v3  ;;  %7040 = vst [vmem:[#allocation15_spill] sm:$0xff] %v5331_v38  ;;  %v5435_v8 = vpop.f32.mrb[15].mxu1 }
 0x217   : > { %v1174_v57 = vadd.f32 %v1173_v17, %v1124_v22  ;;  %v1384_v44 = vadd.f32 %v1383_v9, %v1334_v16  ;;  %vm7041_vm15 = vcmp.eq.s32.totalorder %v7025_v31, %v3718_v54  ;;  %vm7042_vm4 = vcmp.eq.s32.totalorder %v7025_v31, %v3726_v59 }
 0x218   : > { %v1544_v48 = vsel %vm7041_vm15, %v7036_v12, 0.0  ;;  %v1754_v36 = vsel %vm7042_vm4, %v7036_v12, 0.0  ;;  %vm7043_vm13 = vcmp.eq.s32.totalorder %v7025_v31, %v3728_v60  ;;  %v2174_v9 = vsel %vm2110_vm0, %v7036_v12, 0.0 }
 0x219   : > { %v1594_v42 = vadd.f32 %v1593_v18, %v1544_v48  ;;  %v1804_v21 = vadd.f32 %v1803_v37, %v1754_v36  ;;  %v1964_v17 = vsel %vm7043_vm13, %v7036_v12, 0.0  ;;  %vm1694_vm15 = vcmp.eq.s32.totalorder %v7039_v19, %v3726_v59 }
 0x21a   : > { %vm1904_vm4 = vcmp.eq.s32.totalorder %v7039_v19, %v3728_v60  ;;  %v2014_v18 = vadd.f32 %v2013_v43, %v1964_v17  ;;  %v2224_v37 = vadd.f32 %v2223_v25, %v2174_v9  ;;  %v2384_v32 = vsel %vm2320_vm3, %v7036_v12, 0.0  ;;  %v7045_v25 = vld [vmem:[#allocation19_spill] sm:$0xff] }
 0x21b   : > { %vm7044_vm0 = vcmp.eq.s32.totalorder %v7025_v31, %v3734_v63  ;;  %vm2324_vm13 = vcmp.eq.s32.totalorder %v7039_v19, %v3732_v62  ;;  %v2434_v16 = vadd.f32 %v2433_v28, %v2384_v32  ;;  %v2804_v43 = vsel %vm2740_vm7, %v7036_v12, 0.0 }
 0x21c   : > { %v2594_v22 = vsel %vm7044_vm0, %v7036_v12, 0.0  ;;  %vm7046_vm10 = vcmp.eq.s32.totalorder %v7025_v31, %v3720_v55  ;;  %vm2534_vm3 = vcmp.eq.s32.totalorder %v7039_v19, %v3734_v63  ;;  %v2854_v17 = vadd.f32 %v2853_v7, %v2804_v43 }
 0x21d   : > { %v2644_v48 = vadd.f32 %v2643_v14, %v2594_v22  ;;  %v1125_v36 = vsel %vm7046_vm10, %v7045_v25, 0.0  ;;  %v1335_v28 = vsel %vm1271_vm6, %v7045_v25, 0.0  ;;  %vm7047_vm0 = vcmp.eq.s32.totalorder %v7025_v31, %v3724_v58 }
 0x21e   : > { %v1545_v14 = vsel %vm7047_vm0, %v7045_v25, 0.0  ;;  %vm7048_vm7 = vcmp.eq.s32.totalorder %v7025_v31, %v3736_v0  ;;  %vm1063_vm10 = vcmp.eq.s32.totalorder %v7033_v29, %v3720_v55  ;;  %v5397_v7 = vsel %vm1901_vm8, %v7045_v25, 0.0 }
 0x21f   : > { %v5389_v12 = vsel %vm7048_vm7, %v7045_v25, 0.0  ;;  %v5403_v9 = vsel %vm2111_vm11, %v7045_v25, 0.0  ;;  %vm7049_vm6 = vcmp.eq.s32.totalorder %v7025_v31, %v3744_v4  ;;  %vm7050_vm0 = vcmp.eq.s32.totalorder %v7025_v31, %v3746_v5 }
 0x220   : > { %v5409_v32 = vsel %vm7049_vm6, %v7045_v25, 0.0  ;;  %v5415_v22 = vsel %vm7050_vm0, %v7045_v25, 0.0  ;;  %v5421_v43 = vsel %vm2741_vm5, %v7045_v25, 0.0  ;;  %v1126_v38 = vsel %vm1062_vm2, %v4583_v34, 0.0 }
 0x221   : > { %v1336_v20 = vsel %vm1272_vm9, %v4583_v34, 0.0  ;;  %vm7051_vm8 = vcmp.eq.s32.totalorder %v7033_v29, %v3718_v54  ;;  %v1175_v31 = vadd.f32 %v1174_v57, %v1126_v38  ;;  %vm7052_vm11 = vcmp.eq.s32.totalorder %v7033_v29, %v3726_v59 }
 0x222   : > { %v1546_v27 = vsel %vm7051_vm8, %v4583_v34, 0.0  ;;  %v1385_v25 = vadd.f32 %v1384_v44, %v1336_v20  ;;  %v1756_v46 = vsel %vm7052_vm11, %v4583_v34, 0.0  ;;  %v1966_v26 = vsel %vm1902_vm14, %v4583_v34, 0.0 }
 0x223   : > { %v1595_v15 = vadd.f32 %v1594_v42, %v1546_v27  ;;  %v1805_v50 = vadd.f32 %v1804_v21, %v1756_v46  ;;  %v2176_v23 = vsel %vm2112_vm1, %v4583_v34, 0.0  ;;  %vm7053_vm9 = vcmp.eq.s32.totalorder %v7033_v29, %v3732_v62 }
 0x224   : > { %v2386_v27 = vsel %vm7053_vm9, %v4583_v34, 0.0  ;;  %v2015_v20 = vadd.f32 %v2014_v18, %v1966_v26  ;;  %v2225_v38 = vadd.f32 %v2224_v37, %v2176_v23  ;;  %vm7054_vm5 = vcmp.eq.s32.totalorder %v7033_v29, %v3734_v63 }
 0x225   : > { %v2435_v57 = vadd.f32 %v2434_v16, %v2386_v27  ;;  %v2596_v46 = vsel %vm7054_vm5, %v4583_v34, 0.0  ;;  %v2806_v42 = vsel %vm2742_vm12, %v4583_v34, 0.0  ;;  %vm7055_vm2 = vcmp.eq.s32.totalorder %v7039_v19, %v3714_v51 }
 0x226   : > { %v2645_v44 = vadd.f32 %v2644_v48, %v2596_v46  ;;  %v1128_v21 = vsel %vm7055_vm2, %v4635_v35, 0.0  ;;  %vm7056_vm1 = vcmp.eq.s32.totalorder %v7039_v19, %v3716_v52  ;;  %v2855_v26 = vadd.f32 %v2854_v17, %v2806_v42  ;;  %v5501_v42 = vpop.f32.mrb[16].mxu1 }
 0x227   : > { %v1338_v23 = vsel %vm7056_vm1, %v4635_v35, 0.0  ;;  %v5469_v18 = vadd.f32 %v1175_v31, %v1128_v21  ;;  %vm7057_vm14 = vcmp.eq.s32.totalorder %v7039_v19, %v3718_v54  ;;  %v1758_v48 = vsel %vm1694_vm15, %v4635_v35, 0.0 }
 0x228   : > { %v5471_v37 = vadd.f32 %v1385_v25, %v1338_v23  ;;  %v1548_v34 = vsel %vm7057_vm14, %v4635_v35, 0.0  ;;  %v1968_v17 = vsel %vm1904_vm4, %v4635_v35, 0.0  ;;  %vm7058_vm12 = vcmp.eq.s32.totalorder %v7039_v19, %v3730_v61 }
 0x229   : > { %v5477_v16 = vadd.f32 %v1595_v15, %v1548_v34  ;;  %v2178_v31 = vsel %vm7058_vm12, %v4635_v35, 0.0  ;;  %v5491_v25 = vadd.f32 %v1805_v50, %v1758_v48  ;;  %v5493_v27 = vadd.f32 %v2015_v20, %v1968_v17 }
 0x22a   : > { %v5495_v15 = vadd.f32 %v2225_v38, %v2178_v31  ;;  %v2388_v46 = vsel %vm2324_vm13, %v4635_v35, 0.0  ;;  %v2598_v23 = vsel %vm2534_vm3, %v4635_v35, 0.0  ;;  %vm2744_vm15 = vcmp.eq.s32.totalorder %v7039_v19, %v3742_v3  ;;  %v7059_v38 = vld [vmem:[#allocation20_spill] sm:$0xff] }
 0x22b   : > { %v5503_v21 = vadd.f32 %v2435_v57, %v2388_v46  ;;  %vm1065_vm4 = vcmp.eq.s32.totalorder %v7039_v19, %v3720_v55  ;;  %v5513_v50 = vadd.f32 %v2645_v44, %v2598_v23  ;;  %v2808_v20 = vsel %vm2744_vm15, %v4635_v35, 0.0 }
 0x22c   : > { %v1127_v57 = vsel %vm1063_vm10, %v7059_v38, 0.0  ;;  %v1129_v34 = vsel %vm1065_vm4, %v4649_v24, 0.0  ;;  %v5521_v48 = vadd.f32 %v2855_v26, %v2808_v20  ;;  %v1211_v17 = vadd.f32 %v5249_v45, %v1125_v36 }
 0x22d   : > { %vm1273_vm13 = vcmp.eq.s32.totalorder %v7033_v29, %v3722_v56  ;;  %vm1275_vm3 = vcmp.eq.s32.totalorder %v7039_v19, %v3722_v56  ;;  %v1421_v31 = vadd.f32 %v5267_v39, %v1335_v28  ;;  %vm1483_vm7 = vcmp.eq.s32.totalorder %v7033_v29, %v3724_v58 }
 0x22e   : > { %v1337_v44 = vsel %vm1273_vm13, %v7059_v38, 0.0  ;;  %v1339_v35 = vsel %vm1275_vm3, %v4649_v24, 0.0  ;;  %v1212_v46 = vadd.f32 %v1211_v17, %v1127_v57  ;;  %vm1485_vm10 = vcmp.eq.s32.totalorder %v7039_v19, %v3724_v58 }
 0x22f   : > { %v1547_v45 = vsel %vm1483_vm7, %v7059_v38, 0.0  ;;  %v1631_v36 = vadd.f32 %v5269_v53, %v1545_v14  ;;  %v1422_v26 = vadd.f32 %v1421_v31, %v1337_v44  ;;  %v1549_v23 = vsel %vm1485_vm10, %v4649_v24, 0.0  ;;  %v5554_v14 = vpop.f32.mrb[17].mxu1 }
 0x230   : > { %vm1693_vm6 = vcmp.eq.s32.totalorder %v7033_v29, %v3736_v0  ;;  %vm1695_vm0 = vcmp.eq.s32.totalorder %v7039_v19, %v3736_v0  ;;  %v5542_v39 = vadd.f32 %v1212_v46, %v1129_v34  ;;  %v1841_v53 = vadd.f32 %v5281_v33, %v5389_v12 }
 0x231   : > { %v1632_v28 = vadd.f32 %v1631_v36, %v1547_v45  ;;  %v1757_v20 = vsel %vm1693_vm6, %v7059_v38, 0.0  ;;  %v1759_v57 = vsel %vm1695_vm0, %v4649_v24, 0.0  ;;  %v5546_v17 = vadd.f32 %v1422_v26, %v1339_v35 }
 0x232   : > { %vm1903_vm8 = vcmp.eq.s32.totalorder %v7033_v29, %v3738_v1  ;;  %vm1905_vm11 = vcmp.eq.s32.totalorder %v7039_v19, %v3738_v1  ;;  %v2051_v35 = vadd.f32 %v5283_v11, %v5397_v7  ;;  %v1842_v46 = vadd.f32 %v1841_v53, %v1757_v20 }
 0x233   : > { %v5556_v34 = vadd.f32 %v1632_v28, %v1549_v23  ;;  %v1967_v44 = vsel %vm1903_vm8, %v7059_v38, 0.0  ;;  %v1969_v31 = vsel %vm1905_vm11, %v4649_v24, 0.0  ;;  %vm2113_vm9 = vcmp.eq.s32.totalorder %v7033_v29, %v3740_v2 }
 0x234   : > { %vm2115_vm5 = vcmp.eq.s32.totalorder %v7039_v19, %v3740_v2  ;;  %v2261_v33 = vadd.f32 %v5299_v49, %v5403_v9  ;;  %v2052_v12 = vadd.f32 %v2051_v35, %v1967_v44  ;;  %v2177_v45 = vsel %vm2113_vm9, %v7059_v38, 0.0 }
 0x235   : > { %v2179_v36 = vsel %vm2115_vm5, %v4649_v24, 0.0  ;;  %vm2323_vm2 = vcmp.eq.s32.totalorder %v7033_v29, %v3744_v4  ;;  %v5572_v26 = vadd.f32 %v1842_v46, %v1759_v57  ;;  %vm2325_vm1 = vcmp.eq.s32.totalorder %v7039_v19, %v3744_v4 }
 0x236   : > { %v2262_v11 = vadd.f32 %v2261_v33, %v2177_v45  ;;  %v2387_v7 = vsel %vm2323_vm2, %v7059_v38, 0.0  ;;  %v5577_v23 = vadd.f32 %v2052_v12, %v1969_v31  ;;  %v2389_v49 = vsel %vm2325_vm1, %v4649_v24, 0.0 }
 0x237   : > { %v2471_v9 = vadd.f32 %v5301_v30, %v5409_v32  ;;  %vm2533_vm14 = vcmp.eq.s32.totalorder %v7033_v29, %v3746_v5  ;;  %vm2535_vm12 = vcmp.eq.s32.totalorder %v7039_v19, %v3746_v5  ;;  %v2681_v57 = vadd.f32 %v5313_v47, %v5415_v22  ;;  %v5596_v30 = vpop.f32.mrb[18].mxu1  ;;  %v7060_v22 = vld [vmem:[#allocation10_spill] sm:$0xff] }
 0x238   : > { %v5584_v28 = vadd.f32 %v2262_v11, %v2179_v36  ;;  %v2597_v20 = vsel %vm2533_vm14, %v7059_v38, 0.0  ;;  %v2599_v44 = vsel %vm2535_vm12, %v4649_v24, 0.0  ;;  %vm2743_vm15 = vcmp.eq.s32.totalorder %v7033_v29, %v3748_v6 }
 0x239   : > { %v2472_v53 = vadd.f32 %v2471_v9, %v2387_v7  ;;  %vm2745_vm4 = vcmp.eq.s32.totalorder %v7039_v19, %v3748_v6  ;;  %v2682_v32 = vadd.f32 %v2681_v57, %v2597_v20  ;;  %v2807_v31 = vsel %vm2743_vm15, %v7059_v38, 0.0  ;;  %v5628_v7 = vpop.f32.mrb[19].mxu1 }
 0x23a   : > { %v2809_v35 = vsel %vm2745_vm4, %v4649_v24, 0.0  ;;  %v2891_v46 = vadd.f32 %v5315_v40, %v5421_v43  ;;  %v5603_v33 = vadd.s32 128, %v7060_v22  ;;  %v5606_v12 = vadd.s32 136, %v7060_v22 }
 0x23b   : > { %v2473_v47 = vadd.f32 %v2472_v53, %v2389_v49  ;;  %v5609_v29 = vadd.s32 144, %v7060_v22  ;;  %v2683_v19 = vadd.f32 %v2682_v32, %v2599_v44  ;;  %v5612_v36 = vadd.s32 152, %v7060_v22 }
 0x23c   : > { %v2892_v45 = vadd.f32 %v2891_v46, %v2807_v31  ;;  %v5615_v24 = vadd.s32 160, %v7060_v22  ;;  %vm1066_vm13 = vcmp.eq.s32.totalorder %v5603_v33, %v3714_v51  ;;  %vm1276_vm3 = vcmp.eq.s32.totalorder %v5603_v33, %v3716_v52 }
 0x23d   : > { %vm1486_vm7 = vcmp.eq.s32.totalorder %v5603_v33, %v3718_v54  ;;  %vm1696_vm10 = vcmp.eq.s32.totalorder %v5603_v33, %v3726_v59  ;;  %v1130_v43 = vsel %vm1066_vm13, %v4687_v10, 0.0  ;;  %v1340_v38 = vsel %vm1276_vm3, %v4687_v10, 0.0 }
 0x23e   : > { %v2893_v40 = vadd.f32 %v2892_v45, %v2809_v35  ;;  %v1550_v11 = vsel %vm1486_vm7, %v4687_v10, 0.0  ;;  %v1177_v49 = vadd.f32 %v5469_v18, %v1130_v43  ;;  %v1387_v9 = vadd.f32 %v5471_v37, %v1340_v38 }
 0x23f   : > { %v1597_v20 = vadd.f32 %v5477_v16, %v1550_v11  ;;  %v1760_v57 = vsel %vm1696_vm10, %v4687_v10, 0.0  ;;  %vm1906_vm6 = vcmp.eq.s32.totalorder %v5603_v33, %v3728_v60  ;;  %vm2116_vm0 = vcmp.eq.s32.totalorder %v5603_v33, %v3730_v61  ;;  %v5666_v11 = vpop.f32.mrb[20].mxu1 }
 0x240   : > { %v1807_v53 = vadd.f32 %v5491_v25, %v1760_v57  ;;  %vm2326_vm8 = vcmp.eq.s32.totalorder %v5603_v33, %v3732_v62  ;;  %v1970_v44 = vsel %vm1906_vm6, %v4687_v10, 0.0  ;;  %v2180_v18 = vsel %vm2116_vm0, %v4687_v10, 0.0 }
 0x241   : > { %v2390_v37 = vsel %vm2326_vm8, %v4687_v10, 0.0  ;;  %vm2536_vm11 = vcmp.eq.s32.totalorder %v5603_v33, %v3734_v63  ;;  %v2017_v16 = vadd.f32 %v5493_v27, %v1970_v44  ;;  %v2227_v25 = vadd.f32 %v5495_v15, %v2180_v18  ;;  %v7061_v27 = vld [vmem:[#allocation21_spill] sm:$0xff] }
 0x242   : > { %v2437_v32 = vadd.f32 %v5503_v21, %v2390_v37  ;;  %v2600_v31 = vsel %vm2536_vm11, %v4687_v10, 0.0  ;;  %vm2746_vm9 = vcmp.eq.s32.totalorder %v5603_v33, %v3742_v3  ;;  %vm1067_vm5 = vcmp.eq.s32.totalorder %v5603_v33, %v3720_v55 }
 0x243   : > { %v2647_v35 = vadd.f32 %v5513_v50, %v2600_v31  ;;  %vm1277_vm2 = vcmp.eq.s32.totalorder %v5603_v33, %v3722_v56  ;;  %v2810_v46 = vsel %vm2746_vm9, %v4687_v10, 0.0  ;;  %v1131_v45 = vsel %vm1067_vm5, %v7061_v27, 0.0 }
 0x244   : > { %v1341_v15 = vsel %vm1277_vm2, %v7061_v27, 0.0  ;;  %vm1487_vm1 = vcmp.eq.s32.totalorder %v5603_v33, %v3724_v58  ;;  %v2857_v21 = vadd.f32 %v5521_v48, %v2810_v46  ;;  %v1214_v50 = vadd.f32 %v5542_v39, %v1131_v45 }
 0x245   : > { %v1424_v43 = vadd.f32 %v5546_v17, %v1341_v15  ;;  %v1551_v38 = vsel %vm1487_vm1, %v7061_v27, 0.0  ;;  %vm1697_vm14 = vcmp.eq.s32.totalorder %v5603_v33, %v3736_v0  ;;  %vm1907_vm12 = vcmp.eq.s32.totalorder %v5603_v33, %v3738_v1 }
 0x246   : > { %v1634_v57 = vadd.f32 %v5556_v34, %v1551_v38  ;;  %vm2117_vm15 = vcmp.eq.s32.totalorder %v5603_v33, %v3740_v2  ;;  %v1761_v10 = vsel %vm1697_vm14, %v7061_v27, 0.0  ;;  %v1971_v48 = vsel %vm1907_vm12, %v7061_v27, 0.0 }
 0x247   : > { %v2181_v39 = vsel %vm2117_vm15, %v7061_v27, 0.0  ;;  %vm2327_vm4 = vcmp.eq.s32.totalorder %v5603_v33, %v3744_v4  ;;  %v1844_v17 = vadd.f32 %v5572_v26, %v1761_v10  ;;  %v2054_v34 = vadd.f32 %v5577_v23, %v1971_v48 }
 0x248   : > { %v2264_v44 = vadd.f32 %v5584_v28, %v2181_v39  ;;  %v2391_v18 = vsel %vm2327_vm4, %v7061_v27, 0.0  ;;  %vm2537_vm13 = vcmp.eq.s32.totalorder %v5603_v33, %v3746_v5  ;;  %vm2747_vm3 = vcmp.eq.s32.totalorder %v5603_v33, %v3748_v6 }
 0x249   : > { %v2474_v37 = vadd.f32 %v2473_v47, %v2391_v18  ;;  %vm1068_vm7 = vcmp.eq.s32.totalorder %v5606_v12, %v3714_v51  ;;  %v2601_v31 = vsel %vm2537_vm13, %v7061_v27, 0.0  ;;  %v2811_v26 = vsel %vm2747_vm3, %v7061_v27, 0.0 }
 0x24a   : > { %v1132_v23 = vsel %vm1068_vm7, %v4739_v13, 0.0  ;;  %vm1278_vm10 = vcmp.eq.s32.totalorder %v5606_v12, %v3716_v52  ;;  %v2684_v28 = vadd.f32 %v2683_v19, %v2601_v31  ;;  %v2894_v47 = vadd.f32 %v2893_v40, %v2811_v26  ;;  %v5707_v40 = vpop.f32.mrb[21].mxu1 }
 0x24b   : > { %v1178_v46 = vadd.f32 %v1177_v49, %v1132_v23  ;;  %v1342_v45 = vsel %vm1278_vm10, %v4739_v13, 0.0  ;;  %vm1488_vm6 = vcmp.eq.s32.totalorder %v5606_v12, %v3718_v54  ;;  %vm1698_vm0 = vcmp.eq.s32.totalorder %v5606_v12, %v3726_v59 }
 0x24c   : > { %v1388_v15 = vadd.f32 %v1387_v9, %v1342_v45  ;;  %vm1908_vm8 = vcmp.eq.s32.totalorder %v5606_v12, %v3728_v60  ;;  %v1552_v33 = vsel %vm1488_vm6, %v4739_v13, 0.0  ;;  %v1762_v27 = vsel %vm1698_vm0, %v4739_v13, 0.0 }
 0x24d   : > { %v1972_v19 = vsel %vm1908_vm8, %v4739_v13, 0.0  ;;  %vm2118_vm11 = vcmp.eq.s32.totalorder %v5606_v12, %v3730_v61  ;;  %v1598_v49 = vadd.f32 %v1597_v20, %v1552_v33  ;;  %v1808_v9 = vadd.f32 %v1807_v53, %v1762_v27  ;;  %v5734_v33 = vpop.f32.mrb[22].mxu1 }
 0x24e   : > { %v2018_v38 = vadd.f32 %v2017_v16, %v1972_v19  ;;  %v2182_v10 = vsel %vm2118_vm11, %v4739_v13, 0.0  ;;  %vm2328_vm9 = vcmp.eq.s32.totalorder %v5606_v12, %v3732_v62  ;;  %vm2538_vm5 = vcmp.eq.s32.totalorder %v5606_v12, %v3734_v63 }
 0x24f   : > { %v2228_v48 = vadd.f32 %v2227_v25, %v2182_v10  ;;  %vm2748_vm2 = vcmp.eq.s32.totalorder %v5606_v12, %v3742_v3  ;;  %v2392_v39 = vsel %vm2328_vm9, %v4739_v13, 0.0  ;;  %v2602_v18 = vsel %vm2538_vm5, %v4739_v13, 0.0 }
 0x250   : > { %v2812_v20 = vsel %vm2748_vm2, %v4739_v13, 0.0  ;;  %vm1069_vm1 = vcmp.eq.s32.totalorder %v5606_v12, %v3720_v55  ;;  %v2438_v53 = vadd.f32 %v2437_v32, %v2392_v39  ;;  %v2648_v16 = vadd.f32 %v2647_v35, %v2602_v18 }
 0x251   : > { %v2858_v25 = vadd.f32 %v2857_v21, %v2812_v20  ;;  %v1133_v31 = vsel %vm1069_vm1, %v4753_v41, 0.0  ;;  %vm1279_vm14 = vcmp.eq.s32.totalorder %v5606_v12, %v3722_v56  ;;  %vm1489_vm12 = vcmp.eq.s32.totalorder %v5606_v12, %v3724_v58  ;;  %v7062_v20 = vld [vmem:[#allocation22_spill] sm:$0xff] }
 0x252   : > { %v1215_v26 = vadd.f32 %v1214_v50, %v1133_v31  ;;  %vm1699_vm15 = vcmp.eq.s32.totalorder %v5606_v12, %v3736_v0  ;;  %v1343_v13 = vsel %vm1279_vm14, %v4753_v41, 0.0  ;;  %v1553_v23 = vsel %vm1489_vm12, %v4753_v41, 0.0 }
 0x253   : > { %v1763_v32 = vsel %vm1699_vm15, %v4753_v41, 0.0  ;;  %vm1909_vm4 = vcmp.eq.s32.totalorder %v5606_v12, %v3738_v1  ;;  %v1425_v35 = vadd.f32 %v1424_v43, %v1343_v13  ;;  %v1635_v21 = vadd.f32 %v1634_v57, %v1553_v23 }
 0x254   : > { %v1845_v50 = vadd.f32 %v1844_v17, %v1763_v32  ;;  %v1973_v45 = vsel %vm1909_vm4, %v4753_v41, 0.0  ;;  %vm2119_vm13 = vcmp.eq.s32.totalorder %v5606_v12, %v3740_v2  ;;  %vm2329_vm3 = vcmp.eq.s32.totalorder %v5606_v12, %v3744_v4 }
 0x255   : > { %v2055_v27 = vadd.f32 %v2054_v34, %v1973_v45  ;;  %vm2539_vm7 = vcmp.eq.s32.totalorder %v5606_v12, %v3746_v5  ;;  %v2183_v19 = vsel %vm2119_vm13, %v4753_v41, 0.0  ;;  %v2393_v43 = vsel %vm2329_vm3, %v4753_v41, 0.0 }
 0x256   : > { %v2603_v57 = vsel %vm2539_vm7, %v4753_v41, 0.0  ;;  %vm2749_vm10 = vcmp.eq.s32.totalorder %v5606_v12, %v3748_v6  ;;  %v2265_v17 = vadd.f32 %v2264_v44, %v2183_v19  ;;  %v2475_v34 = vadd.f32 %v2474_v37, %v2393_v43 }
 0x257   : > { %v2685_v10 = vadd.f32 %v2684_v28, %v2603_v57  ;;  %v2813_v39 = vsel %vm2749_vm10, %v4753_v41, 0.0  ;;  %vm1070_vm6 = vcmp.eq.s32.totalorder %v5609_v29, %v3714_v51  ;;  %vm1280_vm0 = vcmp.eq.s32.totalorder %v5609_v29, %v3716_v52  ;;  %v5759_v41 = vpop.f32.mrb[23].mxu1 }
 0x258   : > { %v2895_v18 = vadd.f32 %v2894_v47, %v2813_v39  ;;  %vm1490_vm8 = vcmp.eq.s32.totalorder %v5609_v29, %v3718_v54  ;;  %v1134_v31 = vsel %vm1070_vm6, %v7062_v20, 0.0  ;;  %v1344_v13 = vsel %vm1280_vm0, %v7062_v20, 0.0  ;;  %v7063_v39 = vld [vmem:[#allocation23_spill] sm:$0xff] }
 0x259   : > { %v1554_v12 = vsel %vm1490_vm8, %v7062_v20, 0.0  ;;  %vm1700_vm11 = vcmp.eq.s32.totalorder %v5609_v29, %v3726_v59  ;;  %v1179_v44 = vadd.f32 %v1178_v46, %v1134_v31  ;;  %v1389_v37 = vadd.f32 %v1388_v15, %v1344_v13 }
 0x25a   : > { %v1599_v28 = vadd.f32 %v1598_v49, %v1554_v12  ;;  %v1764_v47 = vsel %vm1700_vm11, %v7062_v20, 0.0  ;;  %vm1910_vm9 = vcmp.eq.s32.totalorder %v5609_v29, %v3728_v60  ;;  %vm2120_vm5 = vcmp.eq.s32.totalorder %v5609_v29, %v3730_v61  ;;  %v5786_v12 = vpop.f32.mrb[24].mxu1 }
 0x25b   : > { %v1809_v23 = vadd.f32 %v1808_v9, %v1764_v47  ;;  %vm2330_vm2 = vcmp.eq.s32.totalorder %v5609_v29, %v3732_v62  ;;  %v1974_v32 = vsel %vm1910_vm9, %v7062_v20, 0.0  ;;  %v2184_v45 = vsel %vm2120_vm5, %v7062_v20, 0.0 }
 0x25c   : > { %v2394_v46 = vsel %vm2330_vm2, %v7062_v20, 0.0  ;;  %vm2540_vm1 = vcmp.eq.s32.totalorder %v5609_v29, %v3734_v63  ;;  %v2019_v15 = vadd.f32 %v2018_v38, %v1974_v32  ;;  %v2229_v49 = vadd.f32 %v2228_v48, %v2184_v45 }
 0x25d   : > { %v2439_v9 = vadd.f32 %v2438_v53, %v2394_v46  ;;  %v2604_v19 = vsel %vm2540_vm1, %v7062_v20, 0.0  ;;  %vm2750_vm14 = vcmp.eq.s32.totalorder %v5609_v29, %v3742_v3  ;;  %vm1071_vm12 = vcmp.eq.s32.totalorder %v5609_v29, %v3720_v55 }
 0x25e   : > { %v2649_v43 = vadd.f32 %v2648_v16, %v2604_v19  ;;  %vm1281_vm15 = vcmp.eq.s32.totalorder %v5609_v29, %v3722_v56  ;;  %v2814_v57 = vsel %vm2750_vm14, %v7062_v20, 0.0  ;;  %v1135_v31 = vsel %vm1071_vm12, %v7063_v39, 0.0 }
 0x25f   : > { %v1345_v38 = vsel %vm1281_vm15, %v7063_v39, 0.0  ;;  %vm1491_vm4 = vcmp.eq.s32.totalorder %v5609_v29, %v3724_v58  ;;  %v2859_v48 = vadd.f32 %v2858_v25, %v2814_v57  ;;  %v1216_v53 = vadd.f32 %v1215_v26, %v1135_v31  ;;  %v7064_v31 = vld [vmem:[#allocation24_spill] sm:$0xff] }
 0x260   : > { %v1426_v16 = vadd.f32 %v1425_v35, %v1345_v38  ;;  %v1555_v13 = vsel %vm1491_vm4, %v7063_v39, 0.0  ;;  %vm1701_vm13 = vcmp.eq.s32.totalorder %v5609_v29, %v3736_v0  ;;  %vm1911_vm3 = vcmp.eq.s32.totalorder %v5609_v29, %v3738_v1 }
 0x261   : > { %v1636_v47 = vadd.f32 %v1635_v21, %v1555_v13  ;;  %vm2121_vm7 = vcmp.eq.s32.totalorder %v5609_v29, %v3740_v2  ;;  %v1765_v20 = vsel %vm1701_vm13, %v7063_v39, 0.0  ;;  %v1975_v25 = vsel %vm1911_vm3, %v7063_v39, 0.0 }
 0x262   : > { %v2185_v26 = vsel %vm2121_vm7, %v7063_v39, 0.0  ;;  %vm2331_vm10 = vcmp.eq.s32.totalorder %v5609_v29, %v3744_v4  ;;  %v1846_v35 = vadd.f32 %v1845_v50, %v1765_v20  ;;  %v2056_v21 = vadd.f32 %v2055_v27, %v1975_v25 }
 0x263   : > { %v2266_v32 = vadd.f32 %v2265_v17, %v2185_v26  ;;  %v2395_v45 = vsel %vm2331_vm10, %v7063_v39, 0.0  ;;  %vm2541_vm6 = vcmp.eq.s32.totalorder %v5609_v29, %v3746_v5  ;;  %vm2751_vm0 = vcmp.eq.s32.totalorder %v5609_v29, %v3748_v6  ;;  %v5830_v26 = vpop.f32.mrb[25].mxu1 }
 0x264   : > { %v2476_v46 = vadd.f32 %v2475_v34, %v2395_v45  ;;  %vm1072_vm8 = vcmp.eq.s32.totalorder %v5612_v36, %v3714_v51  ;;  %v2605_v19 = vsel %vm2541_vm6, %v7063_v39, 0.0  ;;  %v2815_v57 = vsel %vm2751_vm0, %v7063_v39, 0.0 }
 0x265   : > { %v1136_v50 = vsel %vm1072_vm8, %v7064_v31, 0.0  ;;  %vm1282_vm11 = vcmp.eq.s32.totalorder %v5612_v36, %v3716_v52  ;;  %v2686_v27 = vadd.f32 %v2685_v10, %v2605_v19  ;;  %v2896_v17 = vadd.f32 %v2895_v18, %v2815_v57  ;;  %v7065_v57 = vld [vmem:[#allocation25_spill] sm:$0xff] }
 0x266   : > { %v1180_v34 = vadd.f32 %v1179_v44, %v1136_v50  ;;  %v1346_v38 = vsel %vm1282_vm11, %v7064_v31, 0.0  ;;  %vm1492_vm9 = vcmp.eq.s32.totalorder %v5612_v36, %v3718_v54  ;;  %vm1702_vm5 = vcmp.eq.s32.totalorder %v5612_v36, %v3726_v59 }
 0x267   : > { %v1390_v13 = vadd.f32 %v1389_v37, %v1346_v38  ;;  %vm1912_vm2 = vcmp.eq.s32.totalorder %v5612_v36, %v3728_v60  ;;  %v1556_v29 = vsel %vm1492_vm9, %v7064_v31, 0.0  ;;  %v1766_v39 = vsel %vm1702_vm5, %v7064_v31, 0.0 }
 0x268   : > { %v1976_v10 = vsel %vm1912_vm2, %v7064_v31, 0.0  ;;  %vm2122_vm1 = vcmp.eq.s32.totalorder %v5612_v36, %v3730_v61  ;;  %v1600_v18 = vadd.f32 %v1599_v28, %v1556_v29  ;;  %v1810_v44 = vadd.f32 %v1809_v23, %v1766_v39 }
 0x269   : > { %v2020_v37 = vadd.f32 %v2019_v15, %v1976_v10  ;;  %v2186_v20 = vsel %vm2122_vm1, %v7064_v31, 0.0  ;;  %vm2332_vm14 = vcmp.eq.s32.totalorder %v5612_v36, %v3732_v62  ;;  %vm2542_vm12 = vcmp.eq.s32.totalorder %v5612_v36, %v3734_v63 }
 0x26a   : > { %v2230_v25 = vadd.f32 %v2229_v49, %v2186_v20  ;;  %vm2752_vm15 = vcmp.eq.s32.totalorder %v5612_v36, %v3742_v3  ;;  %v2396_v45 = vsel %vm2332_vm14, %v7064_v31, 0.0  ;;  %v2606_v28 = vsel %vm2542_vm12, %v7064_v31, 0.0 }
 0x26b   : > { %v2816_v23 = vsel %vm2752_vm15, %v7064_v31, 0.0  ;;  %vm1073_vm4 = vcmp.eq.s32.totalorder %v5612_v36, %v3720_v55  ;;  %v2440_v15 = vadd.f32 %v2439_v9, %v2396_v45  ;;  %v2650_v49 = vadd.f32 %v2649_v43, %v2606_v28 }
 0x26c   : > { %v2860_v19 = vadd.f32 %v2859_v48, %v2816_v23  ;;  %v1137_v50 = vsel %vm1073_vm4, %v7065_v57, 0.0  ;;  %vm1283_vm13 = vcmp.eq.s32.totalorder %v5612_v36, %v3722_v56  ;;  %vm1493_vm3 = vcmp.eq.s32.totalorder %v5612_v36, %v3724_v58 }
 0x26d   : > { %v1217_v38 = vadd.f32 %v1216_v53, %v1137_v50  ;;  %vm1703_vm7 = vcmp.eq.s32.totalorder %v5612_v36, %v3736_v0  ;;  %v1347_v31 = vsel %vm1283_vm13, %v7065_v57, 0.0  ;;  %v1557_v29 = vsel %vm1493_vm3, %v7065_v57, 0.0 }
 0x26e   : > { %v1767_v9 = vsel %vm1703_vm7, %v7065_v57, 0.0  ;;  %vm1913_vm10 = vcmp.eq.s32.totalorder %v5612_v36, %v3738_v1  ;;  %v1427_v43 = vadd.f32 %v1426_v16, %v1347_v31  ;;  %v1637_v48 = vadd.f32 %v1636_v47, %v1557_v29  ;;  %v5861_v47 = vpop.f32.mrb[26].mxu1  ;;  %v7067_v31 = vld [vmem:[#allocation26_spill] sm:$0xff] }
 0x26f   : > { %v1847_v53 = vadd.f32 %v1846_v35, %v1767_v9  ;;  %v1977_v39 = vsel %vm1913_vm10, %v7065_v57, 0.0  ;;  %vm2123_vm6 = vcmp.eq.s32.totalorder %v5612_v36, %v3740_v2  ;;  %vm2333_vm0 = vcmp.eq.s32.totalorder %v5612_v36, %v3744_v4  ;;  %7066 = vst [vmem:[#allocation18_spill] sm:$0xff] %v5861_v47 }
 0x270   : > { %v2057_v10 = vadd.f32 %v2056_v21, %v1977_v39  ;;  %vm2543_vm8 = vcmp.eq.s32.totalorder %v5612_v36, %v3746_v5  ;;  %v2187_v20 = vsel %vm2123_vm6, %v7065_v57, 0.0  ;;  %v2397_v45 = vsel %vm2333_vm0, %v7065_v57, 0.0  ;;  %v5882_v39 = vpop.f32.mrb[27].mxu1 }
 0x271   : > { %v2607_v16 = vsel %vm2543_vm8, %v7065_v57, 0.0  ;;  %vm2753_vm11 = vcmp.eq.s32.totalorder %v5612_v36, %v3748_v6  ;;  %v2267_v35 = vadd.f32 %v2266_v32, %v2187_v20  ;;  %v2477_v21 = vadd.f32 %v2476_v46, %v2397_v45  ;;  %7068 = vst [vmem:[#allocation16_spill] sm:$0xff] %v5882_v39 }
 0x272   : > { %v2687_v28 = vadd.f32 %v2686_v27, %v2607_v16  ;;  %v2817_v23 = vsel %vm2753_vm11, %v7065_v57, 0.0  ;;  %vm1074_vm9 = vcmp.eq.s32.totalorder %v5615_v24, %v3714_v51  ;;  %vm1284_vm5 = vcmp.eq.s32.totalorder %v5615_v24, %v3716_v52 }
 0x273   : > { %v2897_v50 = vadd.f32 %v2896_v17, %v2817_v23  ;;  %vm1494_vm2 = vcmp.eq.s32.totalorder %v5615_v24, %v3718_v54  ;;  %v1138_v29 = vsel %vm1074_vm9, %v7067_v31, 0.0  ;;  %v1348_v36 = vsel %vm1284_vm5, %v7067_v31, 0.0 }
 0x274   : > { %v1558_v32 = vsel %vm1494_vm2, %v7067_v31, 0.0  ;;  %vm1704_vm1 = vcmp.eq.s32.totalorder %v5615_v24, %v3726_v59  ;;  %v1181_v46 = vadd.f32 %v1180_v34, %v1138_v29  ;;  %v1391_v27 = vadd.f32 %v1390_v13, %v1348_v36  ;;  %v7069_v36 = vld [vmem:[#allocation27_spill] sm:$0xff] }
 0x275   : > { %v1601_v17 = vadd.f32 %v1600_v18, %v1558_v32  ;;  %v1768_v57 = vsel %vm1704_vm1, %v7067_v31, 0.0  ;;  %vm1914_vm14 = vcmp.eq.s32.totalorder %v5615_v24, %v3728_v60  ;;  %vm2124_vm12 = vcmp.eq.s32.totalorder %v5615_v24, %v3730_v61 }
 0x276   : > { %v1811_v9 = vadd.f32 %v1810_v44, %v1768_v57  ;;  %vm2334_vm15 = vcmp.eq.s32.totalorder %v5615_v24, %v3732_v62  ;;  %v1978_v20 = vsel %vm1914_vm14, %v7067_v31, 0.0  ;;  %v2188_v34 = vsel %vm2124_vm12, %v7067_v31, 0.0 }
 0x277   : > { %v2398_v13 = vsel %vm2334_vm15, %v7067_v31, 0.0  ;;  %vm2544_vm4 = vcmp.eq.s32.totalorder %v5615_v24, %v3734_v63  ;;  %v2021_v18 = vadd.f32 %v2020_v37, %v1978_v20  ;;  %v2231_v44 = vadd.f32 %v2230_v25, %v2188_v34  ;;  %v5902_v20 = vpop.f32.mrb[28].mxu1 }
 0x278   : > { %v2441_v45 = vadd.f32 %v2440_v15, %v2398_v13  ;;  %v2608_v16 = vsel %vm2544_vm4, %v7067_v31, 0.0  ;;  %vm2754_vm13 = vcmp.eq.s32.totalorder %v5615_v24, %v3742_v3  ;;  %vm1075_vm3 = vcmp.eq.s32.totalorder %v5615_v24, %v3720_v55  ;;  %7070 = vst [vmem:[#allocation19_spill] sm:$0xff] %v5902_v20 }
 0x279   : > { %v2651_v23 = vadd.f32 %v2650_v49, %v2608_v16  ;;  %vm1285_vm7 = vcmp.eq.s32.totalorder %v5615_v24, %v3722_v56  ;;  %v2818_v29 = vsel %vm2754_vm13, %v7067_v31, 0.0  ;;  %v1139_v32 = vsel %vm1075_vm3, %v7069_v36, 0.0 }
 0x27a   : > { %v1349_v37 = vsel %vm1285_vm7, %v7069_v36, 0.0  ;;  %vm1495_vm10 = vcmp.eq.s32.totalorder %v5615_v24, %v3724_v58  ;;  %v2861_v25 = vadd.f32 %v2860_v19, %v2818_v29  ;;  %v1218_v15 = vadd.f32 %v1217_v38, %v1139_v32 }
 0x27b   : > { %v1428_v49 = vadd.f32 %v1427_v43, %v1349_v37  ;;  %v1559_v57 = vsel %vm1495_vm10, %v7069_v36, 0.0  ;;  %vm1705_vm6 = vcmp.eq.s32.totalorder %v5615_v24, %v3736_v0  ;;  %vm1915_vm0 = vcmp.eq.s32.totalorder %v5615_v24, %v3738_v1 }
 0x27c   : > { %v1638_v34 = vadd.f32 %v1637_v48, %v1559_v57  ;;  %vm2125_vm8 = vcmp.eq.s32.totalorder %v5615_v24, %v3740_v2  ;;  %v1769_v31 = vsel %vm1705_vm6, %v7069_v36, 0.0  ;;  %v1979_v19 = vsel %vm1915_vm0, %v7069_v36, 0.0 }
 0x27d   : > { %v2189_v38 = vsel %vm2125_vm8, %v7069_v36, 0.0  ;;  %vm2335_vm11 = vcmp.eq.s32.totalorder %v5615_v24, %v3744_v4  ;;  %v1848_v43 = vadd.f32 %v1847_v53, %v1769_v31  ;;  %v2058_v48 = vadd.f32 %v2057_v10, %v1979_v19 }
 0x27e   : > { %v2268_v13 = vadd.f32 %v2267_v35, %v2189_v38  ;;  %v2399_v16 = vsel %vm2335_vm11, %v7069_v36, 0.0  ;;  %vm2545_vm9 = vcmp.eq.s32.totalorder %v5615_v24, %v3746_v5  ;;  %vm2755_vm5 = vcmp.eq.s32.totalorder %v5615_v24, %v3748_v6 }
 0x27f   : > { %v2478_v29 = vadd.f32 %v2477_v21, %v2399_v16  ;;  %v915_v32 = vadd.s32 168, %v7060_v22  ;;  %v2609_v37 = vsel %vm2545_vm9, %v7069_v36, 0.0  ;;  %v2819_v57 = vsel %vm2755_vm5, %v7069_v36, 0.0  ;;  %v7071_v21 = vld [vmem:[#allocation28_spill] sm:$0xff]  ;;  %v5935_v36 = vpop.f32.mrb[29].mxu1 }
 0x280   : > { %v5924_v20 = vadd.s32 176, %v7060_v22  ;;  %v5927_v53 = vadd.s32 184, %v7060_v22  ;;  %v2688_v10 = vadd.f32 %v2687_v28, %v2609_v37  ;;  %v2898_v35 = vadd.f32 %v2897_v50, %v2819_v57  ;;  %7072 = vst [vmem:[#allocation20_spill] sm:$0xff] %v5935_v36  ;;  %v5939_v50 = vpop.f32.mrb[30].mxu1 }
 0x281   : > { %vm1076_vm2 = vcmp.eq.s32.totalorder %v915_v32, %v3714_v51  ;;  %vm1286_vm1 = vcmp.eq.s32.totalorder %v915_v32, %v3716_v52  ;;  %vm1496_vm14 = vcmp.eq.s32.totalorder %v915_v32, %v3718_v54  ;;  %vm1706_vm12 = vcmp.eq.s32.totalorder %v915_v32, %v3726_v59 }
 0x282   : > { %v1140_v24 = vsel %vm1076_vm2, %v7071_v21, 0.0  ;;  %v1350_v31 = vsel %vm1286_vm1, %v7071_v21, 0.0  ;;  %v1560_v16 = vsel %vm1496_vm14, %v7071_v21, 0.0  ;;  %v1770_v28 = vsel %vm1706_vm12, %v7071_v21, 0.0 }
 0x283   : > { %v1182_v19 = vadd.f32 %v1181_v46, %v1140_v24  ;;  %v1392_v38 = vadd.f32 %v1391_v27, %v1350_v31  ;;  %v1602_v37 = vadd.f32 %v1601_v17, %v1560_v16  ;;  %v1812_v57 = vadd.f32 %v1811_v9, %v1770_v28  ;;  %v7073_v28 = vld [vmem:[#allocation29_spill] sm:$0xff] }
 0x284   : > { %vm1916_vm15 = vcmp.eq.s32.totalorder %v915_v32, %v3728_v60  ;;  %vm2126_vm4 = vcmp.eq.s32.totalorder %v915_v32, %v3730_v61  ;;  %vm2336_vm13 = vcmp.eq.s32.totalorder %v915_v32, %v3732_v62  ;;  %vm2546_vm3 = vcmp.eq.s32.totalorder %v915_v32, %v3734_v63 }
 0x285   : > { %v1980_v39 = vsel %vm1916_vm15, %v7071_v21, 0.0  ;;  %v2190_v47 = vsel %vm2126_vm4, %v7071_v21, 0.0  ;;  %v2400_v24 = vsel %vm2336_vm13, %v7071_v21, 0.0  ;;  %v2610_v31 = vsel %vm2546_vm3, %v7071_v21, 0.0 }
 0x286   : > { %v2022_v46 = vadd.f32 %v2021_v18, %v1980_v39  ;;  %v2232_v27 = vadd.f32 %v2231_v44, %v2190_v47  ;;  %v2442_v17 = vadd.f32 %v2441_v45, %v2400_v24  ;;  %v2652_v9 = vadd.f32 %v2651_v23, %v2610_v31 }
 0x287   : > { %vm2756_vm7 = vcmp.eq.s32.totalorder %v915_v32, %v3742_v3  ;;  %vm1077_vm10 = vcmp.eq.s32.totalorder %v915_v32, %v3720_v55  ;;  %vm1287_vm6 = vcmp.eq.s32.totalorder %v915_v32, %v3722_v56  ;;  %vm1497_vm0 = vcmp.eq.s32.totalorder %v915_v32, %v3724_v58 }
 0x288   : > { %v2820_v16 = vsel %vm2756_vm7, %v7071_v21, 0.0  ;;  %v1141_v36 = vsel %vm1077_vm10, %v7073_v28, 0.0  ;;  %v1351_v18 = vsel %vm1287_vm6, %v7073_v28, 0.0  ;;  %v1561_v44 = vsel %vm1497_vm0, %v7073_v28, 0.0 }
 0x289   : > { %v2862_v39 = vadd.f32 %v2861_v25, %v2820_v16  ;;  %v1219_v47 = vadd.f32 %v1218_v15, %v1141_v36  ;;  %v1429_v45 = vadd.f32 %v1428_v49, %v1351_v18  ;;  %v1639_v23 = vadd.f32 %v1638_v34, %v1561_v44  ;;  %v7074_v44 = vld [vmem:[#allocation17_spill] sm:$0xff] }
 0x28a   : > { %vm1707_vm8 = vcmp.eq.s32.totalorder %v915_v32, %v3736_v0  ;;  %vm1917_vm11 = vcmp.eq.s32.totalorder %v915_v32, %v3738_v1  ;;  %vm2127_vm9 = vcmp.eq.s32.totalorder %v915_v32, %v3740_v2  ;;  %vm2337_vm5 = vcmp.eq.s32.totalorder %v915_v32, %v3744_v4 }
 0x28b   : > { %v1771_v21 = vsel %vm1707_vm8, %v7073_v28, 0.0  ;;  %v1981_v24 = vsel %vm1917_vm11, %v7073_v28, 0.0  ;;  %v2191_v36 = vsel %vm2127_vm9, %v7073_v28, 0.0  ;;  %v2401_v31 = vsel %vm2337_vm5, %v7073_v28, 0.0 }
 0x28c   : > { %v1849_v25 = vadd.f32 %v1848_v43, %v1771_v21  ;;  %v2059_v15 = vadd.f32 %v2058_v48, %v1981_v24  ;;  %v2269_v49 = vadd.f32 %v2268_v13, %v2191_v36  ;;  %v2479_v34 = vadd.f32 %v2478_v29, %v2401_v31 }
 0x28d   : > { %vm2547_vm2 = vcmp.eq.s32.totalorder %v915_v32, %v3746_v5  ;;  %vm2757_vm1 = vcmp.eq.s32.totalorder %v915_v32, %v3748_v6  ;;  %vm1078_vm14 = vcmp.eq.s32.totalorder %v5924_v20, %v3714_v51  ;;  %vm1288_vm12 = vcmp.eq.s32.totalorder %v5924_v20, %v3716_v52 }
 0x28e   : > { %v2611_v16 = vsel %vm2547_vm2, %v7073_v28, 0.0  ;;  %v2821_v18 = vsel %vm2757_vm1, %v7073_v28, 0.0  ;;  %v1142_v21 = vsel %vm1078_vm14, %v7074_v44, 0.0  ;;  %v1352_v13 = vsel %vm1288_vm12, %v7074_v44, 0.0 }
 0x28f   : > { %v2689_v43 = vadd.f32 %v2688_v10, %v2611_v16  ;;  %v2899_v48 = vadd.f32 %v2898_v35, %v2821_v18  ;;  %v1183_v29 = vadd.f32 %v1182_v19, %v1142_v21  ;;  %v1393_v24 = vadd.f32 %v1392_v38, %v1352_v13  ;;  %v5999_v13 = vpop.f32.mrb[31].mxu1 }
 0x290   : > { %vm1498_vm15 = vcmp.eq.s32.totalorder %v5924_v20, %v3718_v54  ;;  %vm1708_vm4 = vcmp.eq.s32.totalorder %v5924_v20, %v3726_v59  ;;  %vm1918_vm13 = vcmp.eq.s32.totalorder %v5924_v20, %v3728_v60  ;;  %vm2128_vm3 = vcmp.eq.s32.totalorder %v5924_v20, %v3730_v61  ;;  %7076 = vst [vmem:[#allocation21_spill] sm:$0xff] %v5999_v13 }
 0x291   : > { %v1562_v32 = vsel %vm1498_vm15, %v7074_v44, 0.0  ;;  %v1772_v28 = vsel %vm1708_vm4, %v7074_v44, 0.0  ;;  %v1982_v19 = vsel %vm1918_vm13, %v7074_v44, 0.0  ;;  %v2192_v38 = vsel %vm2128_vm3, %v7074_v44, 0.0 }
 0x292   : > { %v1603_v10 = vadd.f32 %v1602_v37, %v1562_v32  ;;  %v1813_v35 = vadd.f32 %v1812_v57, %v1772_v28  ;;  %v2023_v36 = vadd.f32 %v2022_v46, %v1982_v19  ;;  %v2233_v31 = vadd.f32 %v2232_v27, %v2192_v38  ;;  %v7075_v27 = vld [vmem:[#allocation14_spill] sm:$0xff] }
 0x293   : > { %vm2338_vm7 = vcmp.eq.s32.totalorder %v5924_v20, %v3732_v62  ;;  %vm2548_vm10 = vcmp.eq.s32.totalorder %v5924_v20, %v3734_v63  ;;  %vm2758_vm6 = vcmp.eq.s32.totalorder %v5924_v20, %v3742_v3  ;;  %vm1079_vm0 = vcmp.eq.s32.totalorder %v5924_v20, %v3720_v55 }
 0x294   : > { %v2402_v16 = vsel %vm2338_vm7, %v7074_v44, 0.0  ;;  %v2612_v18 = vsel %vm2548_vm10, %v7074_v44, 0.0  ;;  %v2822_v46 = vsel %vm2758_vm6, %v7074_v44, 0.0  ;;  %v1143_v21 = vsel %vm1079_vm0, %v7075_v27, 0.0 }
 0x295   : > { %v2443_v37 = vadd.f32 %v2442_v17, %v2402_v16  ;;  %v2653_v57 = vadd.f32 %v2652_v9, %v2612_v18  ;;  %v2863_v32 = vadd.f32 %v2862_v39, %v2822_v46  ;;  %v1220_v28 = vadd.f32 %v1219_v47, %v1143_v21 }
 0x296   : > { %vm1289_vm8 = vcmp.eq.s32.totalorder %v5924_v20, %v3722_v56  ;;  %vm1499_vm11 = vcmp.eq.s32.totalorder %v5924_v20, %v3724_v58  ;;  %vm1709_vm9 = vcmp.eq.s32.totalorder %v5924_v20, %v3736_v0  ;;  %vm1919_vm5 = vcmp.eq.s32.totalorder %v5924_v20, %v3738_v1 }
 0x297   : > { %v1353_v19 = vsel %vm1289_vm8, %v7075_v27, 0.0  ;;  %v1563_v38 = vsel %vm1499_vm11, %v7075_v27, 0.0  ;;  %v1773_v39 = vsel %vm1709_vm9, %v7075_v27, 0.0  ;;  %v1983_v47 = vsel %vm1919_vm5, %v7075_v27, 0.0 }
 0x298   : > { %v1430_v17 = vadd.f32 %v1429_v45, %v1353_v19  ;;  %v1640_v9 = vadd.f32 %v1639_v23, %v1563_v38  ;;  %v1850_v44 = vadd.f32 %v1849_v25, %v1773_v39  ;;  %v2060_v16 = vadd.f32 %v2059_v15, %v1983_v47  ;;  %v7077_v38 = vld [vmem:[#allocation15_spill] sm:$0xff] }
 0x299   : > { %vm2129_vm2 = vcmp.eq.s32.totalorder %v5924_v20, %v3740_v2  ;;  %vm2339_vm1 = vcmp.eq.s32.totalorder %v5924_v20, %v3744_v4  ;;  %vm2549_vm14 = vcmp.eq.s32.totalorder %v5924_v20, %v3746_v5  ;;  %vm2759_vm12 = vcmp.eq.s32.totalorder %v5924_v20, %v3748_v6 }
 0x29a   : > { %v2193_v18 = vsel %vm2129_vm2, %v7075_v27, 0.0  ;;  %v2403_v46 = vsel %vm2339_vm1, %v7075_v27, 0.0  ;;  %v2613_v25 = vsel %vm2549_vm14, %v7075_v27, 0.0  ;;  %v2823_v15 = vsel %vm2759_vm12, %v7075_v27, 0.0 }
 0x29b   : > { %v2270_v45 = vadd.f32 %v2269_v49, %v2193_v18  ;;  %v2480_v23 = vadd.f32 %v2479_v34, %v2403_v46  ;;  %v2690_v21 = vadd.f32 %v2689_v43, %v2613_v25  ;;  %v2900_v19 = vadd.f32 %v2899_v48, %v2823_v15 }
 0x29c   : > { %vm1080_vm15 = vcmp.eq.s32.totalorder %v5927_v53, %v3714_v51  ;;  %vm1290_vm4 = vcmp.eq.s32.totalorder %v5927_v53, %v3716_v52  ;;  %vm1500_vm13 = vcmp.eq.s32.totalorder %v5927_v53, %v3718_v54  ;;  %vm1710_vm3 = vcmp.eq.s32.totalorder %v5927_v53, %v3726_v59 }
 0x29d   : > { %v1144_v39 = vsel %vm1080_vm15, %v7077_v38, 0.0  ;;  %v1354_v47 = vsel %vm1290_vm4, %v7077_v38, 0.0  ;;  %v1564_v34 = vsel %vm1500_vm13, %v7077_v38, 0.0  ;;  %v1774_v43 = vsel %vm1710_vm3, %v7077_v38, 0.0 }
 0x29e   : > { %v1184_v20 = vadd.f32 %v1183_v29, %v1144_v39  ;;  %v1394_v49 = vadd.f32 %v1393_v24, %v1354_v47  ;;  %v1604_v48 = vadd.f32 %v1603_v10, %v1564_v34  ;;  %v1814_v27 = vadd.f32 %v1813_v35, %v1774_v43 }
 0x29f   : > { %vm1920_vm7 = vcmp.eq.s32.totalorder %v5927_v53, %v3728_v60  ;;  %vm2130_vm10 = vcmp.eq.s32.totalorder %v5927_v53, %v3730_v61  ;;  %vm2340_vm6 = vcmp.eq.s32.totalorder %v5927_v53, %v3732_v62  ;;  %vm2550_vm0 = vcmp.eq.s32.totalorder %v5927_v53, %v3734_v63 }
 0x2a0   : > { %v1984_v18 = vsel %vm1920_vm7, %v7077_v38, 0.0  ;;  %v2194_v46 = vsel %vm2130_vm10, %v7077_v38, 0.0  ;;  %v2404_v10 = vsel %vm2340_vm6, %v7077_v38, 0.0  ;;  %v2614_v35 = vsel %vm2550_vm0, %v7077_v38, 0.0 }
 0x2a1   : > { %v2024_v29 = vadd.f32 %v2023_v36, %v1984_v18  ;;  %v2234_v24 = vadd.f32 %v2233_v31, %v2194_v46  ;;  %v2444_v25 = vadd.f32 %v2443_v37, %v2404_v10  ;;  %v2654_v15 = vadd.f32 %v2653_v57, %v2614_v35 }
 0x2a2   : > { %vm2760_vm8 = vcmp.eq.s32.totalorder %v5927_v53, %v3742_v3  ;;  %vm1081_vm11 = vcmp.eq.s32.totalorder %v5927_v53, %v3720_v55  ;;  %vm1291_vm9 = vcmp.eq.s32.totalorder %v5927_v53, %v3722_v56  ;;  %vm1501_vm5 = vcmp.eq.s32.totalorder %v5927_v53, %v3724_v58 }
 0x2a3   : > { %v2824_v39 = vsel %vm2760_vm8, %v7077_v38, 0.0  ;;  %v1145_v47 = vsel %vm1081_vm11, %v5435_v8, 0.0  ;;  %v1355_v37 = vsel %vm1291_vm9, %v5435_v8, 0.0  ;;  %v1565_v57 = vsel %vm1501_vm5, %v5435_v8, 0.0 }
 0x2a4   : > { %v2864_v36 = vadd.f32 %v2863_v32, %v2824_v39  ;;  %v1221_v31 = vadd.f32 %v1220_v28, %v1145_v47  ;;  %v1431_v34 = vadd.f32 %v1430_v17, %v1355_v37  ;;  %v1641_v43 = vadd.f32 %v1640_v9, %v1565_v57 }
 0x2a5   : > { %vm1711_vm2 = vcmp.eq.s32.totalorder %v5927_v53, %v3736_v0  ;;  %vm1921_vm1 = vcmp.eq.s32.totalorder %v5927_v53, %v3738_v1  ;;  %vm2131_vm14 = vcmp.eq.s32.totalorder %v5927_v53, %v3740_v2  ;;  %vm2341_vm12 = vcmp.eq.s32.totalorder %v5927_v53, %v3744_v4 }
 0x2a6   : > { %v1775_v38 = vsel %vm1711_vm2, %v5435_v8, 0.0  ;;  %v1985_v18 = vsel %vm1921_vm1, %v5435_v8, 0.0  ;;  %v2195_v17 = vsel %vm2131_vm14, %v5435_v8, 0.0  ;;  %v2405_v9 = vsel %vm2341_vm12, %v5435_v8, 0.0 }
 0x2a7   : > { %v1851_v32 = vadd.f32 %v1850_v44, %v1775_v38  ;;  %v2061_v28 = vadd.f32 %v2060_v16, %v1985_v18  ;;  %v2271_v46 = vadd.f32 %v2270_v45, %v2195_v17  ;;  %v2481_v10 = vadd.f32 %v2480_v23, %v2405_v9 }
 0x2a8   : > { %vm2551_vm15 = vcmp.eq.s32.totalorder %v5927_v53, %v3746_v5  ;;  %vm2761_vm4 = vcmp.eq.s32.totalorder %v5927_v53, %v3748_v6  ;;  %v918_v47 = vadd.s32 192, %v7060_v22  ;;  %v6081_v44 = vadd.s32 200, %v7060_v22 }
 0x2a9   : > { %v2615_v35 = vsel %vm2551_vm15, %v5435_v8, 0.0  ;;  %v2825_v39 = vsel %vm2761_vm4, %v5435_v8, 0.0  ;;  %v6084_v45 = vadd.s32 208, %v7060_v22  ;;  %v6087_v23 = vadd.s32 216, %v7060_v22 }
 0x2aa   : > { %v2691_v16 = vadd.f32 %v2690_v21, %v2615_v35  ;;  %v2901_v37 = vadd.f32 %v2900_v19, %v2825_v39  ;;  %vm1082_vm13 = vcmp.eq.s32.totalorder %v918_v47, %v3714_v51  ;;  %vm1292_vm3 = vcmp.eq.s32.totalorder %v918_v47, %v3716_v52 }
 0x2ab   : > { %vm1502_vm7 = vcmp.eq.s32.totalorder %v918_v47, %v3718_v54  ;;  %vm1712_vm10 = vcmp.eq.s32.totalorder %v918_v47, %v3726_v59  ;;  %v1146_v8 = vsel %vm1082_vm13, %v5501_v42, 0.0  ;;  %v1356_v53 = vsel %vm1292_vm3, %v5501_v42, 0.0 }
 0x2ac   : > { %v1566_v21 = vsel %vm1502_vm7, %v5501_v42, 0.0  ;;  %v1776_v19 = vsel %vm1712_vm10, %v5501_v42, 0.0  ;;  %v1185_v57 = vadd.f32 %v1184_v20, %v1146_v8  ;;  %v1395_v38 = vadd.f32 %v1394_v49, %v1356_v53 }
 0x2ad   : > { %v1605_v18 = vadd.f32 %v1604_v48, %v1566_v21  ;;  %v1815_v17 = vadd.f32 %v1814_v27, %v1776_v19  ;;  %vm1922_vm6 = vcmp.eq.s32.totalorder %v918_v47, %v3728_v60  ;;  %vm2132_vm0 = vcmp.eq.s32.totalorder %v918_v47, %v3730_v61 }
 0x2ae   : > { %vm2342_vm8 = vcmp.eq.s32.totalorder %v918_v47, %v3732_v62  ;;  %vm2552_vm11 = vcmp.eq.s32.totalorder %v918_v47, %v3734_v63  ;;  %v1986_v9 = vsel %vm1922_vm6, %v5501_v42, 0.0  ;;  %v2196_v35 = vsel %vm2132_vm0, %v5501_v42, 0.0 }
 0x2af   : > { %v2406_v39 = vsel %vm2342_vm8, %v5501_v42, 0.0  ;;  %v2616_v13 = vsel %vm2552_vm11, %v5501_v42, 0.0  ;;  %v2025_v20 = vadd.f32 %v2024_v29, %v1986_v9  ;;  %v2235_v49 = vadd.f32 %v2234_v24, %v2196_v35 }
 0x2b0   : > { %v2445_v48 = vadd.f32 %v2444_v25, %v2406_v39  ;;  %v2655_v27 = vadd.f32 %v2654_v15, %v2616_v13  ;;  %vm2762_vm9 = vcmp.eq.s32.totalorder %v918_v47, %v3742_v3  ;;  %vm1083_vm5 = vcmp.eq.s32.totalorder %v918_v47, %v3720_v55 }
 0x2b1   : > { %vm1293_vm2 = vcmp.eq.s32.totalorder %v918_v47, %v3722_v56  ;;  %vm1503_vm1 = vcmp.eq.s32.totalorder %v918_v47, %v3724_v58  ;;  %v2826_v8 = vsel %vm2762_vm9, %v5501_v42, 0.0  ;;  %v1147_v53 = vsel %vm1083_vm5, %v5554_v14, 0.0 }
 0x2b2   : > { %v1357_v21 = vsel %vm1293_vm2, %v5554_v14, 0.0  ;;  %v1567_v19 = vsel %vm1503_vm1, %v5554_v14, 0.0  ;;  %v2865_v29 = vadd.f32 %v2864_v36, %v2826_v8  ;;  %v1222_v24 = vadd.f32 %v1221_v31, %v1147_v53 }
 0x2b3   : > { %v1432_v25 = vadd.f32 %v1431_v34, %v1357_v21  ;;  %v1642_v13 = vadd.f32 %v1641_v43, %v1567_v19  ;;  %vm1713_vm14 = vcmp.eq.s32.totalorder %v918_v47, %v3736_v0  ;;  %vm1923_vm12 = vcmp.eq.s32.totalorder %v918_v47, %v3738_v1 }
 0x2b4   : > { %vm2133_vm15 = vcmp.eq.s32.totalorder %v918_v47, %v3740_v2  ;;  %vm2343_vm4 = vcmp.eq.s32.totalorder %v918_v47, %v3744_v4  ;;  %v1777_v42 = vsel %vm1713_vm14, %v5554_v14, 0.0  ;;  %v1987_v15 = vsel %vm1923_vm12, %v5554_v14, 0.0 }
 0x2b5   : > { %v2197_v9 = vsel %vm2133_vm15, %v5554_v14, 0.0  ;;  %v2407_v35 = vsel %vm2343_vm4, %v5554_v14, 0.0  ;;  %v1852_v36 = vadd.f32 %v1851_v32, %v1777_v42  ;;  %v2062_v31 = vadd.f32 %v2061_v28, %v1987_v15 }
 0x2b6   : > { %v2272_v34 = vadd.f32 %v2271_v46, %v2197_v9  ;;  %v2482_v43 = vadd.f32 %v2481_v10, %v2407_v35  ;;  %vm2553_vm13 = vcmp.eq.s32.totalorder %v918_v47, %v3746_v5  ;;  %vm2763_vm3 = vcmp.eq.s32.totalorder %v918_v47, %v3748_v6 }
 0x2b7   : > { %vm1084_vm7 = vcmp.eq.s32.totalorder %v6081_v44, %v3714_v51  ;;  %vm1294_vm10 = vcmp.eq.s32.totalorder %v6081_v44, %v3716_v52  ;;  %v2617_v39 = vsel %vm2553_vm13, %v5554_v14, 0.0  ;;  %v2827_v8 = vsel %vm2763_vm3, %v5554_v14, 0.0 }
 0x2b8   : > { %v1148_v53 = vsel %vm1084_vm7, %v5596_v30, 0.0  ;;  %v1358_v32 = vsel %vm1294_vm10, %v5596_v30, 0.0  ;;  %v2692_v28 = vadd.f32 %v2691_v16, %v2617_v39  ;;  %v2902_v46 = vadd.f32 %v2901_v37, %v2827_v8 }
 0x2b9   : > { %v1186_v10 = vadd.f32 %v1185_v57, %v1148_v53  ;;  %v1396_v21 = vadd.f32 %v1395_v38, %v1358_v32  ;;  %vm1504_vm6 = vcmp.eq.s32.totalorder %v6081_v44, %v3718_v54  ;;  %vm1714_vm0 = vcmp.eq.s32.totalorder %v6081_v44, %v3726_v59 }
 0x2ba   : > { %vm1924_vm8 = vcmp.eq.s32.totalorder %v6081_v44, %v3728_v60  ;;  %vm2134_vm11 = vcmp.eq.s32.totalorder %v6081_v44, %v3730_v61  ;;  %v1568_v14 = vsel %vm1504_vm6, %v5596_v30, 0.0  ;;  %v1778_v47 = vsel %vm1714_vm0, %v5596_v30, 0.0 }
 0x2bb   : > { %v1988_v16 = vsel %vm1924_vm8, %v5596_v30, 0.0  ;;  %v2198_v37 = vsel %vm2134_vm11, %v5596_v30, 0.0  ;;  %v1606_v57 = vadd.f32 %v1605_v18, %v1568_v14  ;;  %v1816_v38 = vadd.f32 %v1815_v17, %v1778_v47 }
 0x2bc   : > { %v2026_v19 = vadd.f32 %v2025_v20, %v1988_v16  ;;  %v2236_v42 = vadd.f32 %v2235_v49, %v2198_v37  ;;  %vm2344_vm9 = vcmp.eq.s32.totalorder %v6081_v44, %v3732_v62  ;;  %vm2554_vm5 = vcmp.eq.s32.totalorder %v6081_v44, %v3734_v63 }
 0x2bd   : > { %vm2764_vm2 = vcmp.eq.s32.totalorder %v6081_v44, %v3742_v3  ;;  %vm1085_vm1 = vcmp.eq.s32.totalorder %v6081_v44, %v3720_v55  ;;  %v2408_v15 = vsel %vm2344_vm9, %v5596_v30, 0.0  ;;  %v2618_v9 = vsel %vm2554_vm5, %v5596_v30, 0.0 }
 0x2be   : > { %v2828_v18 = vsel %vm2764_vm2, %v5596_v30, 0.0  ;;  %v1149_v17 = vsel %vm1085_vm1, %v5628_v7, 0.0  ;;  %v2446_v20 = vadd.f32 %v2445_v48, %v2408_v15  ;;  %v2656_v49 = vadd.f32 %v2655_v27, %v2618_v9 }
 0x2bf   : > { %v2866_v35 = vadd.f32 %v2865_v29, %v2828_v18  ;;  %v1223_v39 = vadd.f32 %v1222_v24, %v1149_v17  ;;  %vm1295_vm14 = vcmp.eq.s32.totalorder %v6081_v44, %v3722_v56  ;;  %vm1505_vm12 = vcmp.eq.s32.totalorder %v6081_v44, %v3724_v58 }
 0x2c0   : > { %vm1715_vm15 = vcmp.eq.s32.totalorder %v6081_v44, %v3736_v0  ;;  %vm1925_vm4 = vcmp.eq.s32.totalorder %v6081_v44, %v3738_v1  ;;  %v1359_v30 = vsel %vm1295_vm14, %v5628_v7, 0.0  ;;  %v1569_v8 = vsel %vm1505_vm12, %v5628_v7, 0.0 }
 0x2c1   : > { %v1779_v48 = vsel %vm1715_vm15, %v5628_v7, 0.0  ;;  %v1989_v27 = vsel %vm1925_vm4, %v5628_v7, 0.0  ;;  %v1433_v29 = vadd.f32 %v1432_v25, %v1359_v30  ;;  %v1643_v24 = vadd.f32 %v1642_v13, %v1569_v8 }
 0x2c2   : > { %v1853_v53 = vadd.f32 %v1852_v36, %v1779_v48  ;;  %v2063_v32 = vadd.f32 %v2062_v31, %v1989_v27  ;;  %vm2135_vm13 = vcmp.eq.s32.totalorder %v6081_v44, %v3740_v2  ;;  %vm2345_vm3 = vcmp.eq.s32.totalorder %v6081_v44, %v3744_v4 }
 0x2c3   : > { %vm2555_vm7 = vcmp.eq.s32.totalorder %v6081_v44, %v3746_v5  ;;  %vm2765_vm10 = vcmp.eq.s32.totalorder %v6081_v44, %v3748_v6  ;;  %v2199_v14 = vsel %vm2135_vm13, %v5628_v7, 0.0  ;;  %v2409_v47 = vsel %vm2345_vm3, %v5628_v7, 0.0 }
 0x2c4   : > { %v2619_v25 = vsel %vm2555_vm7, %v5628_v7, 0.0  ;;  %v2829_v13 = vsel %vm2765_vm10, %v5628_v7, 0.0  ;;  %v2273_v36 = vadd.f32 %v2272_v34, %v2199_v14  ;;  %v2483_v31 = vadd.f32 %v2482_v43, %v2409_v47 }
 0x2c5   : > { %v2693_v16 = vadd.f32 %v2692_v28, %v2619_v25  ;;  %v2903_v37 = vadd.f32 %v2902_v46, %v2829_v13  ;;  %vm1086_vm6 = vcmp.eq.s32.totalorder %v6084_v45, %v3714_v51  ;;  %vm1296_vm0 = vcmp.eq.s32.totalorder %v6084_v45, %v3716_v52 }
 0x2c6   : > { %vm1506_vm8 = vcmp.eq.s32.totalorder %v6084_v45, %v3718_v54  ;;  %vm1716_vm11 = vcmp.eq.s32.totalorder %v6084_v45, %v3726_v59  ;;  %v1150_v44 = vsel %vm1086_vm6, %v5666_v11, 0.0  ;;  %v1360_v7 = vsel %vm1296_vm0, %v5666_v11, 0.0 }
 0x2c7   : > { %v1570_v34 = vsel %vm1506_vm8, %v5666_v11, 0.0  ;;  %v1780_v43 = vsel %vm1716_vm11, %v5666_v11, 0.0  ;;  %v1187_v28 = vadd.f32 %v1186_v10, %v1150_v44  ;;  %v1397_v46 = vadd.f32 %v1396_v21, %v1360_v7 }
 0x2c8   : > { %v1607_v15 = vadd.f32 %v1606_v57, %v1570_v34  ;;  %v1817_v9 = vadd.f32 %v1816_v38, %v1780_v43  ;;  %vm1926_vm9 = vcmp.eq.s32.totalorder %v6084_v45, %v3728_v60  ;;  %vm2136_vm5 = vcmp.eq.s32.totalorder %v6084_v45, %v3730_v61 }
 0x2c9   : > { %vm2346_vm2 = vcmp.eq.s32.totalorder %v6084_v45, %v3732_v62  ;;  %vm2556_vm1 = vcmp.eq.s32.totalorder %v6084_v45, %v3734_v63  ;;  %v1990_v18 = vsel %vm1926_vm9, %v5666_v11, 0.0  ;;  %v2200_v17 = vsel %vm2136_vm5, %v5666_v11, 0.0 }
 0x2ca   : > { %v2410_v10 = vsel %vm2346_vm2, %v5666_v11, 0.0  ;;  %v2620_v21 = vsel %vm2556_vm1, %v5666_v11, 0.0  ;;  %v2027_v57 = vadd.f32 %v2026_v19, %v1990_v18  ;;  %v2237_v38 = vadd.f32 %v2236_v42, %v2200_v17 }
 0x2cb   : > { %v2447_v30 = vadd.f32 %v2446_v20, %v2410_v10  ;;  %v2657_v8 = vadd.f32 %v2656_v49, %v2620_v21  ;;  %vm2766_vm14 = vcmp.eq.s32.totalorder %v6084_v45, %v3742_v3  ;;  %vm1087_vm12 = vcmp.eq.s32.totalorder %v6084_v45, %v3720_v55 }
 0x2cc   : > { %vm1297_vm15 = vcmp.eq.s32.totalorder %v6084_v45, %v3722_v56  ;;  %vm1507_vm4 = vcmp.eq.s32.totalorder %v6084_v45, %v3724_v58  ;;  %v2830_v48 = vsel %vm2766_vm14, %v5666_v11, 0.0  ;;  %v1151_v27 = vsel %vm1087_vm12, %v5707_v40, 0.0 }
 0x2cd   : > { %v1361_v19 = vsel %vm1297_vm15, %v5707_v40, 0.0  ;;  %v1571_v42 = vsel %vm1507_vm4, %v5707_v40, 0.0  ;;  %v2867_v20 = vadd.f32 %v2866_v35, %v2830_v48  ;;  %v1224_v49 = vadd.f32 %v1223_v39, %v1151_v27 }
 0x2ce   : > { %v1434_v14 = vadd.f32 %v1433_v29, %v1361_v19  ;;  %v1644_v47 = vadd.f32 %v1643_v24, %v1571_v42  ;;  %vm1717_vm13 = vcmp.eq.s32.totalorder %v6084_v45, %v3736_v0  ;;  %vm1927_vm3 = vcmp.eq.s32.totalorder %v6084_v45, %v3738_v1 }
 0x2cf   : > { %vm2137_vm7 = vcmp.eq.s32.totalorder %v6084_v45, %v3740_v2  ;;  %vm2347_vm10 = vcmp.eq.s32.totalorder %v6084_v45, %v3744_v4  ;;  %v1781_v11 = vsel %vm1717_vm13, %v5707_v40, 0.0  ;;  %v1991_v25 = vsel %vm1927_vm3, %v5707_v40, 0.0 }
 0x2d0   : > { %v2201_v35 = vsel %vm2137_vm7, %v5707_v40, 0.0  ;;  %v2411_v39 = vsel %vm2347_vm10, %v5707_v40, 0.0  ;;  %v1854_v29 = vadd.f32 %v1853_v53, %v1781_v11  ;;  %v2064_v24 = vadd.f32 %v2063_v32, %v1991_v25 }
 0x2d1   : > { %v2274_v13 = vadd.f32 %v2273_v36, %v2201_v35  ;;  %v2484_v44 = vadd.f32 %v2483_v31, %v2411_v39  ;;  %vm2557_vm6 = vcmp.eq.s32.totalorder %v6084_v45, %v3746_v5  ;;  %vm2767_vm0 = vcmp.eq.s32.totalorder %v6084_v45, %v3748_v6 }
 0x2d2   : > { %vm1088_vm8 = vcmp.eq.s32.totalorder %v6087_v23, %v3714_v51  ;;  %vm1298_vm11 = vcmp.eq.s32.totalorder %v6087_v23, %v3716_v52  ;;  %v2621_v7 = vsel %vm2557_vm6, %v5707_v40, 0.0  ;;  %v2831_v34 = vsel %vm2767_vm0, %v5707_v40, 0.0 }
 0x2d3   : > { %v1152_v53 = vsel %vm1088_vm8, %v5734_v33, 0.0  ;;  %v1362_v32 = vsel %vm1298_vm11, %v5734_v33, 0.0  ;;  %v2694_v36 = vadd.f32 %v2693_v16, %v2621_v7  ;;  %v2904_v31 = vadd.f32 %v2903_v37, %v2831_v34 }
 0x2d4   : > { %v1188_v43 = vadd.f32 %v1187_v28, %v1152_v53  ;;  %v1398_v18 = vadd.f32 %v1397_v46, %v1362_v32  ;;  %vm1508_vm9 = vcmp.eq.s32.totalorder %v6087_v23, %v3718_v54  ;;  %vm1718_vm5 = vcmp.eq.s32.totalorder %v6087_v23, %v3726_v59 }
 0x2d5   : > { %vm1928_vm2 = vcmp.eq.s32.totalorder %v6087_v23, %v3728_v60  ;;  %vm2138_vm1 = vcmp.eq.s32.totalorder %v6087_v23, %v3730_v61  ;;  %v1572_v40 = vsel %vm1508_vm9, %v5734_v33, 0.0  ;;  %v1782_v45 = vsel %vm1718_vm5, %v5734_v33, 0.0 }
 0x2d6   : > { %v1992_v16 = vsel %vm1928_vm2, %v5734_v33, 0.0  ;;  %v2202_v37 = vsel %vm2138_vm1, %v5734_v33, 0.0  ;;  %v1608_v28 = vadd.f32 %v1607_v15, %v1572_v40  ;;  %v1818_v46 = vadd.f32 %v1817_v9, %v1782_v45 }
 0x2d7   : > { %v2028_v17 = vadd.f32 %v2027_v57, %v1992_v16  ;;  %v2238_v10 = vadd.f32 %v2237_v38, %v2202_v37  ;;  %vm2348_vm14 = vcmp.eq.s32.totalorder %v6087_v23, %v3732_v62  ;;  %vm2558_vm12 = vcmp.eq.s32.totalorder %v6087_v23, %v3734_v63 }
 0x2d8   : > { %vm2768_vm15 = vcmp.eq.s32.totalorder %v6087_v23, %v3742_v3  ;;  %vm1089_vm4 = vcmp.eq.s32.totalorder %v6087_v23, %v3720_v55  ;;  %v2412_v21 = vsel %vm2348_vm14, %v5734_v33, 0.0  ;;  %v2622_v48 = vsel %vm2558_vm12, %v5734_v33, 0.0 }
 0x2d9   : > { %v2832_v15 = vsel %vm2768_vm15, %v5734_v33, 0.0  ;;  %v1153_v9 = vsel %vm1089_vm4, %v5759_v41, 0.0  ;;  %v2448_v57 = vadd.f32 %v2447_v30, %v2412_v21  ;;  %v2658_v38 = vadd.f32 %v2657_v8, %v2622_v48 }
 0x2da   : > { %v2868_v27 = vadd.f32 %v2867_v20, %v2832_v15  ;;  %v1225_v19 = vadd.f32 %v1224_v49, %v1153_v9  ;;  %vm1299_vm13 = vcmp.eq.s32.totalorder %v6087_v23, %v3722_v56  ;;  %vm1509_vm3 = vcmp.eq.s32.totalorder %v6087_v23, %v3724_v58 }
 0x2db   : > { %vm1719_vm7 = vcmp.eq.s32.totalorder %v6087_v23, %v3736_v0  ;;  %vm1929_vm10 = vcmp.eq.s32.totalorder %v6087_v23, %v3738_v1  ;;  %v1363_v33 = vsel %vm1299_vm13, %v5759_v41, 0.0  ;;  %v1573_v42 = vsel %vm1509_vm3, %v5759_v41, 0.0 }
 0x2dc   : > { %v1783_v30 = vsel %vm1719_vm7, %v5759_v41, 0.0  ;;  %v1993_v8 = vsel %vm1929_vm10, %v5759_v41, 0.0  ;;  %v1435_v20 = vadd.f32 %v1434_v14, %v1363_v33  ;;  %v1645_v49 = vadd.f32 %v1644_v47, %v1573_v42 }
 0x2dd   : > { %v1855_v11 = vadd.f32 %v1854_v29, %v1783_v30  ;;  %v2065_v25 = vadd.f32 %v2064_v24, %v1993_v8  ;;  %vm2139_vm6 = vcmp.eq.s32.totalorder %v6087_v23, %v3740_v2  ;;  %vm2349_vm0 = vcmp.eq.s32.totalorder %v6087_v23, %v3744_v4 }
 0x2de   : > { %vm2559_vm8 = vcmp.eq.s32.totalorder %v6087_v23, %v3746_v5  ;;  %vm2769_vm11 = vcmp.eq.s32.totalorder %v6087_v23, %v3748_v6  ;;  %v2203_v35 = vsel %vm2139_vm6, %v5759_v41, 0.0  ;;  %v2413_v39 = vsel %vm2349_vm0, %v5759_v41, 0.0 }
 0x2df   : > { %v2623_v14 = vsel %vm2559_vm8, %v5759_v41, 0.0  ;;  %v2833_v47 = vsel %vm2769_vm11, %v5759_v41, 0.0  ;;  %v2275_v29 = vadd.f32 %v2274_v13, %v2203_v35  ;;  %v2485_v24 = vadd.f32 %v2484_v44, %v2413_v39 }
 0x2e0   : > { %v2695_v7 = vadd.f32 %v2694_v36, %v2623_v14  ;;  %v2905_v34 = vadd.f32 %v2904_v31, %v2833_v47  ;;  %v922_v53 = vadd.s32 224, %v7060_v22  ;;  %v6289_v32 = vadd.s32 232, %v7060_v22 }
 0x2e2   : > { %vm1090_vm9 = vcmp.eq.s32.totalorder %v922_v53, %v3714_v51  ;;  %vm1300_vm5 = vcmp.eq.s32.totalorder %v922_v53, %v3716_v52  ;;  %vm1510_vm2 = vcmp.eq.s32.totalorder %v922_v53, %v3718_v54  ;;  %vm1720_vm1 = vcmp.eq.s32.totalorder %v922_v53, %v3726_v59 }
 0x2e3   : > { %v1154_v23 = vsel %vm1090_vm9, %v5786_v12, 0.0  ;;  %v1364_v41 = vsel %vm1300_vm5, %v5786_v12, 0.0  ;;  %v1574_v13 = vsel %vm1510_vm2, %v5786_v12, 0.0  ;;  %v1784_v44 = vsel %vm1720_vm1, %v5786_v12, 0.0 }
 0x2e4   : > { %v1189_v36 = vadd.f32 %v1188_v43, %v1154_v23  ;;  %v1399_v31 = vadd.f32 %v1398_v18, %v1364_v41  ;;  %v1609_v40 = vadd.f32 %v1608_v28, %v1574_v13  ;;  %v1819_v45 = vadd.f32 %v1818_v46, %v1784_v44 }
 0x2e5   : > { %vm1930_vm14 = vcmp.eq.s32.totalorder %v922_v53, %v3728_v60  ;;  %vm2140_vm12 = vcmp.eq.s32.totalorder %v922_v53, %v3730_v61  ;;  %vm2350_vm15 = vcmp.eq.s32.totalorder %v922_v53, %v3732_v62  ;;  %vm2560_vm4 = vcmp.eq.s32.totalorder %v922_v53, %v3734_v63 }
 0x2e6   : > { %v1994_v16 = vsel %vm1930_vm14, %v5786_v12, 0.0  ;;  %v2204_v37 = vsel %vm2140_vm12, %v5786_v12, 0.0  ;;  %v2414_v21 = vsel %vm2350_vm15, %v5786_v12, 0.0  ;;  %v2624_v48 = vsel %vm2560_vm4, %v5786_v12, 0.0 }
 0x2e7   : > { %v2029_v43 = vadd.f32 %v2028_v17, %v1994_v16  ;;  %v2239_v18 = vadd.f32 %v2238_v10, %v2204_v37  ;;  %v2449_v28 = vadd.f32 %v2448_v57, %v2414_v21  ;;  %v2659_v46 = vadd.f32 %v2658_v38, %v2624_v48 }
 0x2e8   : > { %vm2770_vm13 = vcmp.eq.s32.totalorder %v922_v53, %v3742_v3  ;;  %vm1091_vm3 = vcmp.eq.s32.totalorder %v922_v53, %v3720_v55  ;;  %vm1301_vm7 = vcmp.eq.s32.totalorder %v922_v53, %v3722_v56  ;;  %vm1511_vm10 = vcmp.eq.s32.totalorder %v922_v53, %v3724_v58 }
 0x2e9   : > { %v2834_v15 = vsel %vm2770_vm13, %v5786_v12, 0.0  ;;  %v1155_v9 = vsel %vm1091_vm3, %v5830_v26, 0.0  ;;  %v1365_v33 = vsel %vm1301_vm7, %v5830_v26, 0.0  ;;  %v1575_v42 = vsel %vm1511_vm10, %v5830_v26, 0.0 }
 0x2ea   : > { %v2869_v17 = vadd.f32 %v2868_v27, %v2834_v15  ;;  %v6315_v10 = vadd.f32 %v1225_v19, %v1155_v9  ;;  %v6317_v57 = vadd.f32 %v1435_v20, %v1365_v33  ;;  %v6319_v38 = vadd.f32 %v1645_v49, %v1575_v42  ;;  %v7081_v15 = vld [vmem:[#allocation16_spill] sm:$0xff] }
 0x2eb   : > { %vm1721_vm6 = vcmp.eq.s32.totalorder %v922_v53, %v3736_v0  ;;  %vm1931_vm0 = vcmp.eq.s32.totalorder %v922_v53, %v3738_v1  ;;  %vm2141_vm8 = vcmp.eq.s32.totalorder %v922_v53, %v3740_v2  ;;  %vm2351_vm11 = vcmp.eq.s32.totalorder %v922_v53, %v3744_v4 }
 0x2ec   : > { %v1785_v12 = vsel %vm1721_vm6, %v5830_v26, 0.0  ;;  %v1995_v30 = vsel %vm1931_vm0, %v5830_v26, 0.0  ;;  %v2205_v27 = vsel %vm2141_vm8, %v5830_v26, 0.0  ;;  %v2415_v19 = vsel %vm2351_vm11, %v5830_v26, 0.0 }
 0x2ed   : > { %v6329_v8 = vadd.f32 %v1855_v11, %v1785_v12  ;;  %v6331_v20 = vadd.f32 %v2065_v25, %v1995_v30  ;;  %v6333_v49 = vadd.f32 %v2275_v29, %v2205_v27  ;;  %v6335_v35 = vadd.f32 %v2485_v24, %v2415_v19  ;;  %v7078_v25 = vld [vmem:[#allocation18_spill] sm:$0xff]  ;;  %v7083_v27 = vld [vmem:[#allocation19_spill] sm:$0xff] }
 0x2ee   : > { %vm2561_vm9 = vcmp.eq.s32.totalorder %v922_v53, %v3746_v5  ;;  %vm2771_vm5 = vcmp.eq.s32.totalorder %v922_v53, %v3748_v6  ;;  %vm1092_vm2 = vcmp.eq.s32.totalorder %v6289_v32, %v3714_v51  ;;  %vm1302_vm1 = vcmp.eq.s32.totalorder %v6289_v32, %v3716_v52 }
 0x2ef   : > { %v2625_v39 = vsel %vm2561_vm9, %v5830_v26, 0.0  ;;  %v2835_v11 = vsel %vm2771_vm5, %v5830_v26, 0.0  ;;  %v1156_v14 = vsel %vm1092_vm2, %v7078_v25, 0.0  ;;  %v1366_v47 = vsel %vm1302_vm1, %v7078_v25, 0.0 }
 0x2f0   : > { %v6347_v29 = vadd.f32 %v2695_v7, %v2625_v39  ;;  %v6349_v24 = vadd.f32 %v2905_v34, %v2835_v11  ;;  %v1190_v23 = vadd.f32 %v1189_v36, %v1156_v14  ;;  %v1400_v53 = vadd.f32 %v1399_v31, %v1366_v47 }
 0x2f1   : > { %vm1512_vm14 = vcmp.eq.s32.totalorder %v6289_v32, %v3718_v54  ;;  %vm1722_vm12 = vcmp.eq.s32.totalorder %v6289_v32, %v3726_v59  ;;  %vm1932_vm15 = vcmp.eq.s32.totalorder %v6289_v32, %v3728_v60  ;;  %vm2142_vm4 = vcmp.eq.s32.totalorder %v6289_v32, %v3730_v61 }
 0x2f2   : > { %7079 = vst [vmem:[#allocation22_spill] sm:$0xff] %v6347_v29  ;;  %7080 = vst [vmem:[#allocation23_spill] sm:$0xff] %v6349_v24  ;;  %v1576_v26 = vsel %vm1512_vm14, %v7078_v25, 0.0  ;;  %v1786_v7 = vsel %vm1722_vm12, %v7078_v25, 0.0  ;;  %v1996_v34 = vsel %vm1932_vm15, %v7078_v25, 0.0  ;;  %v2206_v41 = vsel %vm2142_vm4, %v7078_v25, 0.0 }
 0x2f3   : > { %v1610_v13 = vadd.f32 %v1609_v40, %v1576_v26  ;;  %v1820_v44 = vadd.f32 %v1819_v45, %v1786_v7  ;;  %v2030_v36 = vadd.f32 %v2029_v43, %v1996_v34  ;;  %v2240_v31 = vadd.f32 %v2239_v18, %v2206_v41 }
 0x2f4   : > { %vm2352_vm13 = vcmp.eq.s32.totalorder %v6289_v32, %v3732_v62  ;;  %vm2562_vm3 = vcmp.eq.s32.totalorder %v6289_v32, %v3734_v63  ;;  %vm2772_vm7 = vcmp.eq.s32.totalorder %v6289_v32, %v3742_v3  ;;  %v6370_v16 = vadd.s32 240, %v7060_v22 }
 0x2f5   : > { %v2416_v37 = vsel %vm2352_vm13, %v7078_v25, 0.0  ;;  %v2626_v21 = vsel %vm2562_vm3, %v7078_v25, 0.0  ;;  %v2836_v40 = vsel %vm2772_vm7, %v7078_v25, 0.0  ;;  %vm1093_vm10 = vcmp.eq.s32.totalorder %v6289_v32, %v3720_v55 }
 0x2f6   : > { %v2450_v45 = vadd.f32 %v2449_v28, %v2416_v37  ;;  %v2660_v48 = vadd.f32 %v2659_v46, %v2626_v21  ;;  %v2870_v43 = vadd.f32 %v2869_v17, %v2836_v40  ;;  %vm1303_vm6 = vcmp.eq.s32.totalorder %v6289_v32, %v3722_v56 }
 0x2f7   : > { %vm1513_vm0 = vcmp.eq.s32.totalorder %v6289_v32, %v3724_v58  ;;  %vm1723_vm8 = vcmp.eq.s32.totalorder %v6289_v32, %v3736_v0  ;;  %vm1933_vm11 = vcmp.eq.s32.totalorder %v6289_v32, %v3738_v1  ;;  %v6386_v18 = vadd.s32 248, %v7060_v22 }
 0x2f8   : > { %v6389_v9 = vsel %vm1093_vm10, %v7081_v15, 0.0  ;;  %v6392_v28 = vsel %vm1303_vm6, %v7081_v15, 0.0  ;;  %v6395_v46 = vsel %vm1513_vm0, %v7081_v15, 0.0  ;;  %vm2143_vm9 = vcmp.eq.s32.totalorder %v6289_v32, %v3740_v2 }
 0x2f9   : > { %v6400_v33 = vsel %vm1723_vm8, %v7081_v15, 0.0  ;;  %v6403_v42 = vsel %vm1933_vm11, %v7081_v15, 0.0  ;;  %vm2353_vm5 = vcmp.eq.s32.totalorder %v6289_v32, %v3744_v4  ;;  %vm2563_vm2 = vcmp.eq.s32.totalorder %v6289_v32, %v3746_v5 }
 0x2fa   : > { %v6410_v17 = vsel %vm2143_vm9, %v7081_v15, 0.0  ;;  %v6413_v12 = vsel %vm2353_vm5, %v7081_v15, 0.0  ;;  %v6416_v30 = vsel %vm2563_vm2, %v7081_v15, 0.0  ;;  %vm1094_vm1 = vcmp.eq.s32.totalorder %v6370_v16, %v3714_v51 }
 0x2fb   : > { %7082 = vst [vmem:[#allocation24_spill] sm:$0xff] %v6416_v30  ;;  %v1158_v19 = vsel %vm1094_vm1, %v7083_v27, 0.0  ;;  %vm1304_vm14 = vcmp.eq.s32.totalorder %v6370_v16, %v3716_v52  ;;  %vm1514_vm12 = vcmp.eq.s32.totalorder %v6370_v16, %v3718_v54  ;;  %vm1724_vm15 = vcmp.eq.s32.totalorder %v6370_v16, %v3726_v59 }
 0x2fc   : > { %v1191_v39 = vadd.f32 %v1190_v23, %v1158_v19  ;;  %v1368_v11 = vsel %vm1304_vm14, %v7083_v27, 0.0  ;;  %v1578_v25 = vsel %vm1514_vm12, %v7083_v27, 0.0  ;;  %v1788_v14 = vsel %vm1724_vm15, %v7083_v27, 0.0 }
 0x2fd   : > { %v1401_v47 = vadd.f32 %v1400_v53, %v1368_v11  ;;  %v1611_v26 = vadd.f32 %v1610_v13, %v1578_v25  ;;  %v1821_v7 = vadd.f32 %v1820_v44, %v1788_v14  ;;  %vm1934_vm4 = vcmp.eq.s32.totalorder %v6370_v16, %v3728_v60 }
 0x2fe   : > { %v1998_v34 = vsel %vm1934_vm4, %v7083_v27, 0.0  ;;  %vm2144_vm13 = vcmp.eq.s32.totalorder %v6370_v16, %v3730_v61  ;;  %vm2354_vm3 = vcmp.eq.s32.totalorder %v6370_v16, %v3732_v62  ;;  %vm2564_vm7 = vcmp.eq.s32.totalorder %v6370_v16, %v3734_v63 }
 0x2ff   : > { %v2031_v23 = vadd.f32 %v2030_v36, %v1998_v34  ;;  %v2208_v41 = vsel %vm2144_vm13, %v7083_v27, 0.0  ;;  %v2418_v53 = vsel %vm2354_vm3, %v7083_v27, 0.0  ;;  %v2628_v13 = vsel %vm2564_vm7, %v7083_v27, 0.0 }
 0x300   : > { %v2241_v44 = vadd.f32 %v2240_v31, %v2208_v41  ;;  %v2451_v37 = vadd.f32 %v2450_v45, %v2418_v53  ;;  %v2661_v21 = vadd.f32 %v2660_v48, %v2628_v13  ;;  %vm2774_vm10 = vcmp.eq.s32.totalorder %v6370_v16, %v3742_v3 }
 0x301   : > { %v2838_v40 = vsel %vm2774_vm10, %v7083_v27, 0.0  ;;  %vm1096_vm6 = vcmp.eq.s32.totalorder %v6386_v18, %v3714_v51  ;;  %vm1306_vm0 = vcmp.eq.s32.totalorder %v6386_v18, %v3716_v52  ;;  %vm1516_vm8 = vcmp.eq.s32.totalorder %v6386_v18, %v3718_v54 }
 0x302   : > { %v6451_v36 = vadd.f32 %v2870_v43, %v2838_v40  ;;  %v1160_v31 = vsel %vm1096_vm6, %v5939_v50, 0.0  ;;  %v1370_v45 = vsel %vm1306_vm0, %v5939_v50, 0.0  ;;  %v1580_v48 = vsel %vm1516_vm8, %v5939_v50, 0.0 }
 0x303   : > { %v1192_v19 = vadd.f32 %v1191_v39, %v1160_v31  ;;  %v1402_v11 = vadd.f32 %v1401_v47, %v1370_v45  ;;  %v1612_v27 = vadd.f32 %v1611_v26, %v1580_v48  ;;  %vm1726_vm11 = vcmp.eq.s32.totalorder %v6386_v18, %v3726_v59 }
 0x304   : > { %v1790_v51 = vsel %vm1726_vm11, %v5939_v50, 0.0  ;;  %vm1936_vm9 = vcmp.eq.s32.totalorder %v6386_v18, %v3728_v60  ;;  %vm2146_vm5 = vcmp.eq.s32.totalorder %v6386_v18, %v3730_v61  ;;  %vm2356_vm2 = vcmp.eq.s32.totalorder %v6386_v18, %v3732_v62 }
 0x305   : > { %v1193_v52 = vrot.slane %v1192_v19, 4  ;;  %v1403_v54 = vrot.slane %v1402_v11, 4  ;;  %v1613_v43 = vrot.slane %v1612_v27, 4  ;;  %v1822_v39 = vadd.f32 %v1821_v7, %v1790_v51 }
 0x306   : > { %vm2773_vm1 = vcmp.eq.s32.totalorder %v6289_v32, %v3748_v6  ;;  %v2000_v59 = vsel %vm1936_vm9, %v5939_v50, 0.0  ;;  %v2210_v25 = vsel %vm2146_vm5, %v5939_v50, 0.0  ;;  %v2420_v14 = vsel %vm2356_vm2, %v5939_v50, 0.0 }
 0x307   : > { %vm2566_vm14 = vcmp.eq.s32.totalorder %v6386_v18, %v3734_v63  ;;  %vm2916_vm12 = vcmask 1040384   ;;  %v1194_v60 = vadd.f32 %v1193_v52, %v1192_v19  ;;  %v1404_v61 = vadd.f32 %v1403_v54, %v1402_v11 }
 0x308   : > { %v1614_v62 = vadd.f32 %v1613_v43, %v1612_v27  ;;  %v1823_v47 = vrot.slane %v1822_v39, 4  ;;  %v2032_v26 = vadd.f32 %v2031_v23, %v2000_v59  ;;  %v2242_v34 = vadd.f32 %v2241_v44, %v2210_v25 }
 0x309   : > { %v2452_v7 = vadd.f32 %v2451_v37, %v2420_v14  ;;  %v2630_v41 = vsel %vm2566_vm14, %v5939_v50, 0.0  ;;  %vm2919_vm15 = vcmask 1041408   ;;  %v1195_v53 = vrot.slane %v1194_v60, 2 }
 0x30a   : > { %v1405_v13 = vrot.slane %v1404_v61, 2  ;;  %v1615_v40 = vrot.slane %v1614_v62, 2  ;;  %v1824_v31 = vadd.f32 %v1823_v47, %v1822_v39  ;;  %v2033_v45 = vrot.slane %v2032_v26, 4 }
 0x30b   : > { %v2243_v48 = vrot.slane %v2242_v34, 4  ;;  %v2453_v51 = vrot.slane %v2452_v7, 4  ;;  %v2662_v22 = vadd.f32 %v2661_v21, %v2630_v41  ;;  %v1196_v63 = vadd.f32 %v1195_v53, %v1194_v60 }
 0x30c   : > { %v1406_v24 = vadd.f32 %v1405_v13, %v1404_v61  ;;  %v1616_v19 = vadd.f32 %v1615_v40, %v1614_v62  ;;  %v1825_v11 = vrot.slane %v1824_v31, 2  ;;  %v2034_v27 = vadd.f32 %v2033_v45, %v2032_v26  ;;  %v7084_v40 = vld [vmem:[#allocation20_spill] sm:$0xff] }
 0x30d   : > { %v2244_v52 = vadd.f32 %v2243_v48, %v2242_v34  ;;  %v2454_v23 = vadd.f32 %v2453_v51, %v2452_v7  ;;  %v2663_v44 = vrot.slane %v2662_v22, 4  ;;  %v1197_v37 = vrot.slane %v1196_v63, 1 }
 0x30e   : > { %v1407_v54 = vrot.slane %v1406_v24, 1  ;;  %v1617_v43 = vrot.slane %v1616_v19, 1  ;;  %v1826_v59 = vadd.f32 %v1825_v11, %v1824_v31  ;;  %v2035_v25 = vrot.slane %v2034_v27, 2 }
 0x30f   : > { %v2245_v14 = vrot.slane %v2244_v52, 2  ;;  %v2455_v29 = vrot.slane %v2454_v23, 2  ;;  %v2664_v39 = vadd.f32 %v2663_v44, %v2662_v22  ;;  %v1198_v47 = vadd.f32 %v1197_v37, %v1196_v63 }
 0x310   : > { %v1408_v30 = vadd.f32 %v1407_v54, %v1406_v24  ;;  %v1618_v5 = vadd.f32 %v1617_v43, %v1616_v19  ;;  %v1827_v21 = vrot.slane %v1826_v59, 1  ;;  %v2036_v60 = vadd.f32 %v2035_v25, %v2034_v27 }
 0x311   : > { %v2246_v61 = vadd.f32 %v2245_v14, %v2244_v52  ;;  %v2456_v62 = vadd.f32 %v2455_v29, %v2454_v23  ;;  %v2665_v41 = vrot.slane %v2664_v39, 2  ;;  %v6477_v26 = vsel %vm2773_vm1, %v7081_v15, 0.0 }
 0x312   : > { %vm2776_vm4 = vcmp.eq.s32.totalorder %v6386_v18, %v3742_v3  ;;  %v2917_v34 = vsel %vm2916_vm12, %v1198_v47, %v1408_v30  ;;  %vm1095_vm13 = vcmp.eq.s32.totalorder %v6370_v16, %v3720_v55  ;;  %v2037_v22 = vrot.slane %v2036_v60, 1 }
 0x313   : > { %v2247_v24 = vrot.slane %v2246_v61, 1  ;;  %v2457_v7 = vrot.slane %v2456_v62, 1  ;;  %v2666_v53 = vadd.f32 %v2665_v41, %v2664_v39  ;;  %v6484_v29 = vadd.f32 %v1827_v21, %v1826_v59 }
 0x314   : > { %v2840_v13 = vsel %vm2776_vm4, %v5939_v50, 0.0  ;;  %v6488_v32 = vsel %vm2919_vm15, %v2917_v34, %v1618_v5  ;;  %vm1097_vm3 = vcmp.eq.s32.totalorder %v6386_v18, %v3720_v55  ;;  %v6492_v3 = vadd.f32 %v2037_v22, %v2036_v60  ;;  %v7085_v5 = vld [vmem:[#allocation21_spill] sm:$0xff] }
 0x315   : > { %v6494_v15 = vadd.f32 %v2247_v24, %v2246_v61  ;;  %v6496_v30 = vadd.f32 %v2457_v7, %v2456_v62  ;;  %v1159_v31 = vsel %vm1095_vm13, %v7084_v40, 0.0  ;;  %v2667_v45 = vrot.slane %v2666_v53, 1 }
 0x316   : > { %v2872_v48 = vadd.f32 %v6451_v36, %v2840_v13  ;;  %v1227_v50 = vadd.f32 %v6315_v10, %v6389_v9  ;;  %vm1305_vm7 = vcmp.eq.s32.totalorder %v6370_v16, %v3722_v56  ;;  %v1161_v51 = vsel %vm1097_vm3, %v7085_v5, 0.0 }
 0x317   : > { %vm1307_vm10 = vcmp.eq.s32.totalorder %v6386_v18, %v3722_v56  ;;  %v1369_v55 = vsel %vm1305_vm7, %v7084_v40, 0.0  ;;  %v1437_v63 = vadd.f32 %v6317_v57, %v6392_v28  ;;  %vm1515_vm6 = vcmp.eq.s32.totalorder %v6370_v16, %v3724_v58 }
 0x318   : > { %v2873_v19 = vrot.slane %v2872_v48, 4  ;;  %v1228_v11 = vadd.f32 %v1227_v50, %v1159_v31  ;;  %v1371_v36 = vsel %vm1307_vm10, %v7085_v5, 0.0  ;;  %vm1517_vm0 = vcmp.eq.s32.totalorder %v6386_v18, %v3724_v58 }
 0x319   : > { %v1438_v10 = vadd.f32 %v1437_v63, %v1369_v55  ;;  %v1579_v9 = vsel %vm1515_vm6, %v7084_v40, 0.0  ;;  %v1647_v56 = vadd.f32 %v6319_v38, %v6395_v46  ;;  %v1581_v57 = vsel %vm1517_vm0, %v7085_v5, 0.0 }
 0x31a   : > { %v2874_v27 = vadd.f32 %v2873_v19, %v2872_v48  ;;  %v1229_v52 = vadd.f32 %v1228_v11, %v1161_v51  ;;  %vm1725_vm8 = vcmp.eq.s32.totalorder %v6370_v16, %v3736_v0  ;;  %vm1727_vm11 = vcmp.eq.s32.totalorder %v6386_v18, %v3736_v0 }
 0x31b   : > { %v1439_v28 = vadd.f32 %v1438_v10, %v1371_v36  ;;  %v1648_v23 = vadd.f32 %v1647_v56, %v1579_v9  ;;  %v1789_v44 = vsel %vm1725_vm8, %v7084_v40, 0.0  ;;  %v1791_v54 = vsel %vm1727_vm11, %v7085_v5, 0.0 }
 0x31c   : > { %v2875_v58 = vrot.slane %v2874_v27, 2  ;;  %v1230_v37 = vrot.slane %v1229_v52, 4  ;;  %v1857_v38 = vadd.f32 %v6329_v8, %v6400_v33  ;;  %vm1935_vm9 = vcmp.eq.s32.totalorder %v6370_v16, %v3738_v1 }
 0x31d   : > { %v1440_v46 = vrot.slane %v1439_v28, 4  ;;  %v1649_v43 = vadd.f32 %v1648_v23, %v1581_v57  ;;  %vm1937_vm5 = vcmp.eq.s32.totalorder %v6386_v18, %v3738_v1  ;;  %v1999_v14 = vsel %vm1935_vm9, %v7084_v40, 0.0  ;;  %v7086_v23 = vld [vmem:[#allocation12_spill] sm:$0xff] }
 0x31e   : > { %v2876_v59 = vadd.f32 %v2875_v58, %v2874_v27  ;;  %v1231_v25 = vadd.f32 %v1230_v37, %v1229_v52  ;;  %v1858_v0 = vadd.f32 %v1857_v38, %v1789_v44  ;;  %v2001_v21 = vsel %vm1937_vm5, %v7085_v5, 0.0 }
 0x31f   : > { %v1441_v39 = vadd.f32 %v1440_v46, %v1439_v28  ;;  %v1650_v47 = vrot.slane %v1649_v43, 4  ;;  %v2067_v8 = vadd.f32 %v6331_v20, %v6403_v42  ;;  %vm2145_vm2 = vcmp.eq.s32.totalorder %v6370_v16, %v3740_v2  ;;  %v7087_v46 = vld [vmem:[#allocation24_spill] sm:$0xff] }
 0x320   : > { %v2877_v33 = vrot.slane %v2876_v59, 1  ;;  %v1232_v60 = vrot.slane %v1231_v25, 2  ;;  %v1859_v61 = vadd.f32 %v1858_v0, %v1791_v54  ;;  %vm2147_vm1 = vcmp.eq.s32.totalorder %v6386_v18, %v3740_v2 }
 0x321   : > { %v1442_v62 = vrot.slane %v1441_v39, 2  ;;  %v1651_v1 = vadd.f32 %v1650_v47, %v1649_v43  ;;  %v2068_v41 = vadd.f32 %v2067_v8, %v1999_v14  ;;  %v6539_v34 = vadd.f32 %v2667_v45, %v2666_v53  ;;  %v7088_v43 = vld [vmem:[#allocation22_spill] sm:$0xff] }
 0x322   : > { %v6541_v22 = vadd.f32 %v2877_v33, %v2876_v59  ;;  %v1233_v24 = vadd.f32 %v1232_v60, %v1231_v25  ;;  %v1860_v7 = vrot.slane %v1859_v61, 4  ;;  %v2209_v31 = vsel %vm2145_vm2, %v7084_v40, 0.0  ;;  %v7089_v33 = vld [vmem:[#allocation23_spill] sm:$0xff] }
 0x323   : > { %v1443_v13 = vadd.f32 %v1442_v62, %v1441_v39  ;;  %v1652_v20 = vrot.slane %v1651_v1, 2  ;;  %v2069_v42 = vadd.f32 %v2068_v41, %v2001_v21  ;;  %v2211_v51 = vsel %vm2147_vm1, %v7085_v5, 0.0 }
 0x324   : > { %v1234_v48 = vrot.slane %v1233_v24, 1  ;;  %v1861_v50 = vadd.f32 %v1860_v7, %v1859_v61  ;;  %v2277_v55 = vadd.f32 %v6333_v49, %v6410_v17  ;;  %vm2922_vm14 = vcmask 1042432  }
 0x325   : > { %v1444_v2 = vrot.slane %v1443_v13, 1  ;;  %v1653_v53 = vadd.f32 %v1652_v20, %v1651_v1  ;;  %v2070_v45 = vrot.slane %v2069_v42, 4  ;;  %vm2355_vm4 = vcmp.eq.s32.totalorder %v6370_v16, %v3744_v4 }
 0x326   : > { %v1235_v63 = vadd.f32 %v1234_v48, %v1233_v24  ;;  %v1862_v19 = vrot.slane %v1861_v50, 2  ;;  %v2278_v11 = vadd.f32 %v2277_v55, %v2209_v31  ;;  %vm2357_vm13 = vcmp.eq.s32.totalorder %v6386_v18, %v3744_v4 }
 0x327   : > { %v1445_v36 = vadd.f32 %v1444_v2, %v1443_v13  ;;  %v1654_v10 = vrot.slane %v1653_v53, 1  ;;  %v2071_v9 = vadd.f32 %v2070_v45, %v2069_v42  ;;  %v2419_v56 = vsel %vm2355_vm4, %v7084_v40, 0.0 }
 0x328   : > { %vm2927_vm3 = vcmask 1044480   ;;  %v1863_v49 = vadd.f32 %v1862_v19, %v1861_v50  ;;  %v2279_v17 = vadd.f32 %v2278_v11, %v2211_v51  ;;  %v2421_v27 = vsel %vm2357_vm13, %v7085_v5, 0.0 }
 0x329   : > { %v2487_v52 = vadd.f32 %v6335_v35, %v6413_v12  ;;  %v1655_v57 = vadd.f32 %v1654_v10, %v1653_v53  ;;  %v2072_v28 = vrot.slane %v2071_v9, 2  ;;  %vm2565_vm7 = vcmp.eq.s32.totalorder %v6370_v16, %v7086_v23 }
 0x32a   : > { %vm2567_vm10 = vcmp.eq.s32.totalorder %v6386_v18, %v7086_v23  ;;  %v1864_v4 = vrot.slane %v1863_v49, 1  ;;  %v2280_v44 = vrot.slane %v2279_v17, 4  ;;  %v2629_v37 = vsel %vm2565_vm7, %v7084_v40, 0.0 }
 0x32b   : > { %v2488_v58 = vadd.f32 %v2487_v52, %v2419_v56  ;;  %v2073_v54 = vadd.f32 %v2072_v28, %v2071_v9  ;;  %v2631_v38 = vsel %vm2567_vm10, %v7085_v5, 0.0  ;;  %v2697_v59 = vadd.f32 %v7088_v43, %v7087_v46  ;;  %v7092_v52 = vld [vmem:[#allocation10_spill] sm:$0xff] }
 0x32c   : > { %vm2775_vm6 = vcmp.eq.s32.totalorder %v6370_v16, %v3748_v6  ;;  %v1865_v35 = vadd.f32 %v1864_v4, %v1863_v49  ;;  %v2281_v12 = vadd.f32 %v2280_v44, %v2279_v17  ;;  %vm2777_vm0 = vcmp.eq.s32.totalorder %v6386_v18, %v3748_v6  ;;  %v7093_v4 = vld [vmem:[#allocation13_spill] sm:$0xff] }
 0x32d   : > { %v2489_v25 = vadd.f32 %v2488_v58, %v2421_v27  ;;  %v2074_v0 = vrot.slane %v2073_v54, 1  ;;  %v2698_v14 = vadd.f32 %v2697_v59, %v2629_v37  ;;  %v2839_v39 = vsel %vm2775_vm6, %v7084_v40, 0.0 }
 0x32e   : > { %v2841_v47 = vsel %vm2777_vm0, %v7085_v5, 0.0  ;;  %v2282_v21 = vrot.slane %v2281_v12, 2  ;;  %v2907_v60 = vadd.f32 %v7089_v33, %v6477_v26  ;;  %v2918_v61 = vsel %vm2916_vm12, %v1235_v63, %v1445_v36 }
 0x32f   : > { %v2490_v8 = vrot.slane %v2489_v25, 4  ;;  %v2075_v16 = vadd.f32 %v2074_v0, %v2073_v54  ;;  %v2699_v62 = vadd.f32 %v2698_v14, %v2631_v38  ;;  %v2921_v1 = vsel %vm2919_vm15, %v2918_v61, %v1655_v57 }
 0x330   : > { %v2923_v6 = vsel %vm2922_vm14, %v6488_v32, %v6484_v29  ;;  %v2283_v18 = vadd.f32 %v2282_v21, %v2281_v12  ;;  %v2908_v40 = vadd.f32 %v2907_v60, %v2839_v39  ;;  %v2924_v5 = vsel %vm2922_vm14, %v2921_v1, %v1865_v35 }
 0x331   : > { %v2491_v41 = vadd.f32 %v2490_v8, %v2489_v25  ;;  %v2700_v24 = vrot.slane %v2699_v62, 4  ;;  %vm7090_vm8 = vcmask 1043456   ;;  %vm2930_vm9 = vcmask 1045504  }
 0x332   : > { %v2925_v7 = vsel %vm7090_vm8, %v2923_v6, %v6492_v3  ;;  %vm7091_vm11 = vmmov %vm7090_vm8  ;;  %v2284_v13 = vrot.slane %v2283_v18, 1  ;;  %v2909_v42 = vadd.f32 %v2908_v40, %v2841_v47  ;;  %v2940_v29 = vsel %vm2916_vm12, %v6541_v22, -inf }
 0x333   : > { %v2926_v26 = vsel %vm7091_vm11, %v2924_v5, %v2075_v16  ;;  %v2492_v20 = vrot.slane %v2491_v41, 2  ;;  %v2928_v31 = vsel %vm2927_vm3, %v2925_v7, %v6494_v15  ;;  %v2701_v32 = vadd.f32 %v2700_v24, %v2699_v62 }
 0x334   : > { %v2931_v48 = vsel %vm2930_vm9, %v2928_v31, %v6496_v30  ;;  %vm2933_vm5 = vcmask 1046528   ;;  %v2285_v50 = vadd.f32 %v2284_v13, %v2283_v18  ;;  %v2910_v3 = vrot.slane %v2909_v42, 4 }
 0x335   : > { %v2493_v51 = vadd.f32 %v2492_v20, %v2491_v41  ;;  %v6588_v55 = vsel %vm2933_vm5, %v2931_v48, %v6539_v34  ;;  %v2702_v2 = vrot.slane %v2701_v32, 2  ;;  %v2990_v57 = vcvt.s32.f32 %v7092_v52 }
 0x336   : > { %v2941_v53 = vmax.f32 %v6588_v55, %v2940_v29  ;;  %v2911_v15 = vadd.f32 %v2910_v3, %v2909_v42  ;;  %v2929_v63 = vsel %vm2927_vm3, %v2926_v26, %v2285_v50  ;;  %v2991_v44 = vcvt.s32.f32 %v7093_v4 }
 0x337   : > { %v2494_v45 = vrot.slane %v2493_v51, 1  ;;  %v2703_v19 = vadd.f32 %v2702_v2, %v2701_v32  ;;  %v6602_v38 = vsub.f32 8.0, %v2990_v57 }
 0x338   : > { %v2942_v11 = vrot.slane %v2941_v53, 4  ;;  %v2912_v10 = vrot.slane %v2911_v15, 2  ;;  %v6605_v59 = vsub.f32 8.0, %v2991_v44 }
 0x339   : > { %v2495_v36 = vadd.f32 %v2494_v45, %v2493_v51  ;;  %v2704_v30 = vrot.slane %v2703_v19, 1  ;;  %v7094_v45 = vld [vmem:[#allocation7_spill] sm:$0xff] }
 0x33a   : > { %v2943_v9 = vmax.f32 %v2941_v53, %v2942_v11  ;;  %v2913_v56 = vadd.f32 %v2912_v10, %v2911_v15 }
 0x33b   : > { %v2932_v49 = vsel %vm2930_vm9, %v2929_v63, %v2495_v36  ;;  %v2705_v17 = vadd.f32 %v2704_v30, %v2703_v19  ;;  %v7095_v63 = vld [vmem:[#allocation9_spill] sm:$0xff] }
 0x33c   : > { %v2944_v27 = vrot.slane %v2943_v9, 2  ;;  %v2914_v34 = vrot.slane %v2913_v56, 1 }
 0x33d   : > { %v6595_v28 = vsel %vm2933_vm5, %v2932_v49, %v2705_v17 }
 0x33e   : > { %v2945_v23 = vmax.f32 %v2943_v9, %v2944_v27  ;;  %v6598_v58 = vadd.f32 %v2914_v34, %v2913_v56 }
 0x340   : > { %v2946_v37 = vrot.slane %v2945_v23, 1  ;;  %v2948_v54 = vsel %vm2916_vm12, %v6598_v58, -inf }
 0x341   : > { %v2949_v43 = vmax.f32 %v6595_v28, %v2948_v54 }
 0x342   : > { %v2947_v46 = vmax.f32 %v2945_v23, %v2946_v37 }
 0x343   : > { %v2950_v35 = vrot.slane %v2949_v43, 4 }
 0x344   : > { %v2956_v12 = vsub.f32 %v6588_v55, %v2947_v46  ;;  %v2958_v25 = vsub.f32 %v6541_v22, %v2947_v46  ;;  %vm2994_vm2 = vcmp.eq.f32.partialorder %v6588_v55, %v2947_v46  ;;  %vm2996_vm1 = vcmp.eq.f32.partialorder %v6541_v22, %v2947_v46 }
 0x345   : > { %v2998_v0 = vsel %vm2994_vm2, %v6602_v38, -1.0  ;;  %v2951_v14 = vmax.f32 %v2949_v43, %v2950_v35  ;;  %v3000_v21 = vsel %vm2996_vm1, %v6605_v59, -1.0 }
 0x346   : > { %v2960_v39 = vmul.f32 1.442695, %v2956_v12  ;;  %v2964_v47 = vmul.f32 1.442695, %v2958_v25  ;;  %v3002_v8 = vsel %vm2916_vm12, %v3000_v21, -inf  ;;  %v7096_v12 = vld [vmem:[#allocation8_spill] sm:$0xff] }
 0x347   : > { %v2952_v33 = vrot.slane %v2951_v14, 2  ;;  %v3003_v60 = vmax.f32 %v2998_v0, %v3002_v8  ;;  %v7097_v0 = vld [vmem:[#allocation11_spill] sm:$0xff] }
 0x348   : > { %3506 = vpow2.f32 %v2960_v39 }
 0x349   : > { %3508 = vpow2.f32 %v2964_v47  ;;  %v2953_v61 = vmax.f32 %v2951_v14, %v2952_v33  ;;  %v3004_v16 = vrot.slane %v3003_v60, 4 }
 0x34b   : > { %v2954_v62 = vrot.slane %v2953_v61, 1  ;;  %v3005_v1 = vmax.f32 %v3003_v60, %v3004_v16 }
 0x34d   : > { %v2955_v6 = vmax.f32 %v2953_v61, %v2954_v62  ;;  %v3006_v18 = vrot.slane %v3005_v1, 2 }
 0x34f   : > { %v2957_v41 = vsub.f32 %v6595_v28, %v2955_v6  ;;  %v2959_v40 = vsub.f32 %v6598_v58, %v2955_v6  ;;  %vm2995_vm4 = vcmp.eq.f32.partialorder %v6595_v28, %v2955_v6  ;;  %vm2997_vm13 = vcmp.eq.f32.partialorder %v6598_v58, %v2955_v6 }
 0x350   : > { %v2999_v5 = vsel %vm2995_vm4, %v6602_v38, -1.0  ;;  %v3001_v24 = vsel %vm2997_vm13, %v6605_v59, -1.0  ;;  %v3007_v7 = vmax.f32 %v3005_v1, %v3006_v18 }
 0x351   : > { %v2962_v13 = vmul.f32 1.442695, %v2957_v41  ;;  %v2966_v20 = vmul.f32 1.442695, %v2959_v40  ;;  %v3010_v42 = vsel %vm2916_vm12, %v3001_v24, -inf }
 0x352   : > { %v6620_v26 = vpop.eup %3506  ;;  %v3008_v29 = vrot.slane %v3007_v7, 1  ;;  %v3011_v32 = vmax.f32 %v2999_v5, %v3010_v42 }
 0x353   : > { %v6623_v31 = vpop.eup %3508  ;;  %3510 = vpow2.f32 %v2962_v13 }
 0x354   : > { %v2968_v48 = vsel %vm2916_vm12, %v6623_v31, 0.0  ;;  %3512 = vpow2.f32 %v2966_v20  ;;  %v6628_v51 = vmax.f32 %v3007_v7, %v3008_v29  ;;  %v3012_v3 = vrot.slane %v3011_v32, 4 }
 0x355   : > { %v2969_v50 = vadd.f32 %v6620_v26, %v2968_v48 }
 0x356   : > { %v3013_v53 = vmax.f32 %v3011_v32, %v3012_v3  ;;  %vm3018_vm3 = vcmp.eq.f32.partialorder %v6602_v38, %v6628_v51  ;;  %vm3020_vm7 = vcmp.eq.f32.partialorder %v6605_v59, %v6628_v51 }
 0x357   : > { %v2970_v2 = vrot.slane %v2969_v50, 4  ;;  %v3042_v15 = vsel %vm3018_vm3, %v7094_v45, 0.0  ;;  %v3044_v19 = vsel %vm3020_vm7, %v7095_v63, 0.0  ;;  %v6646_v11 = vsel %vm3018_vm3, -inf, %v6588_v55 }
 0x358   : > { %v6652_v36 = vsel %vm3020_vm7, -inf, %v6541_v22  ;;  %v3014_v30 = vrot.slane %v3013_v53, 2  ;;  %v3046_v9 = vsel %vm2916_vm12, %v3044_v19, 0.0 }
 0x359   : > { %v2971_v10 = vadd.f32 %v2970_v2, %v2969_v50  ;;  %v3066_v56 = vsel %vm2916_vm12, %v6652_v36, -inf  ;;  %v3047_v49 = vadd.f32 %v3046_v9, %v3042_v15 }
 0x35a   : > { %v3067_v17 = vmax.f32 %v6646_v11, %v3066_v56  ;;  %v3015_v34 = vmax.f32 %v3013_v53, %v3014_v30 }
 0x35b   : > { %v2972_v27 = vrot.slane %v2971_v10, 2  ;;  %v3048_v3 = vrot.slane %v3047_v49, 4 }
 0x35c   : > { %v3068_v55 = vrot.slane %v3067_v17, 4  ;;  %v3016_v57 = vrot.slane %v3015_v34, 1 }
 0x35d   : > { %v2973_v52 = vadd.f32 %v2972_v27, %v2971_v10  ;;  %v6658_v23 = vpop.eup %3510  ;;  %v3049_v9 = vadd.f32 %v3048_v3, %v3047_v49 }
 0x35e   : > { %v3069_v4 = vmax.f32 %v3067_v17, %v3068_v55  ;;  %v6660_v22 = vpop.eup %3512  ;;  %v6662_v37 = vmax.f32 %v3015_v34, %v3016_v57 }
 0x35f   : > { %v2974_v44 = vrot.slane %v2973_v52, 1  ;;  %v2976_v54 = vsel %vm2916_vm12, %v6660_v22, 0.0 }
 0x360   : > { %v3070_v46 = vrot.slane %v3069_v4, 2  ;;  %v2977_v35 = vadd.f32 %v6658_v23, %v2976_v54  ;;  %vm3019_vm10 = vcmp.eq.f32.partialorder %v6602_v38, %v6662_v37  ;;  %vm3021_vm6 = vcmp.eq.f32.partialorder %v6605_v59, %v6662_v37 }
 0x361   : > { %v2975_v43 = vadd.f32 %v2974_v44, %v2973_v52  ;;  %v3043_v25 = vsel %vm3019_vm10, %v7096_v12, 0.0  ;;  %v3045_v14 = vsel %vm3021_vm6, %v7097_v0, 0.0  ;;  %v6683_v39 = vsel %vm3019_vm10, -inf, %v6595_v28 }
 0x362   : > { %v2978_v47 = vrot.slane %v2977_v35, 4  ;;  %v3054_v21 = vsel %vm2916_vm12, %v3045_v14, 0.0  ;;  %v6690_v8 = vsel %vm3021_vm6, -inf, %v6598_v58  ;;  %v3071_v60 = vmax.f32 %v3069_v4, %v3070_v46 }
 0x363   : > { %3514 = vrcp.f32 %v2975_v43  ;;  %v3055_v33 = vadd.f32 %v3054_v21, %v3043_v25  ;;  %v3074_v61 = vsel %vm2916_vm12, %v6690_v8, -inf  ;;  %v3050_v4 = vrot.slane %v3049_v9, 2 }
 0x364   : > { %v2979_v16 = vadd.f32 %v2978_v47, %v2977_v35  ;;  %v3075_v62 = vmax.f32 %v6683_v39, %v3074_v61  ;;  %v3072_v28 = vrot.slane %v3071_v60, 1 }
 0x365   : > { %v3056_v54 = vrot.slane %v3055_v33, 4  ;;  %v6726_v21 = vadd.f32 %v3050_v4, %v3049_v9 }
 0x366   : > { %v2980_v1 = vrot.slane %v2979_v16, 2  ;;  %v3076_v6 = vrot.slane %v3075_v62, 4  ;;  %v3073_v18 = vmax.f32 %v3071_v60, %v3072_v28 }
 0x367   : > { %v3057_v61 = vadd.f32 %v3056_v54, %v3055_v33 }
 0x368   : > { %v2981_v41 = vadd.f32 %v2980_v1, %v2979_v16  ;;  %v3077_v40 = vmax.f32 %v3075_v62, %v3076_v6  ;;  %vm3082_vm0 = vcmp.eq.f32.partialorder %v6646_v11, %v3073_v18  ;;  %vm3084_vm8 = vcmp.eq.f32.partialorder %v6652_v36, %v3073_v18 }
 0x369   : > { %v3086_v24 = vsel %vm3082_vm0, %v6602_v38, -1.0  ;;  %v3088_v7 = vsel %vm3084_vm8, %v6605_v59, -1.0 }
 0x36a   : > { %v2982_v58 = vrot.slane %v2981_v41, 1  ;;  %v3078_v5 = vrot.slane %v3077_v40, 2  ;;  %v3090_v13 = vsel %vm2916_vm12, %v3088_v7, -inf }
 0x36b   : > { %v3091_v32 = vmax.f32 %v3086_v24, %v3090_v13 }
 0x36c   : > { %v2983_v42 = vadd.f32 %v2982_v58, %v2981_v41  ;;  %v3079_v29 = vmax.f32 %v3077_v40, %v3078_v5 }
 0x36d   : > { %v3515_v20 = vpop.eup %3514  ;;  %v3092_v53 = vrot.slane %v3091_v32, 4 }
 0x36e   : > { %v6701_v48 = vmul.f32 %v3515_v20, %v6620_v26  ;;  %v6704_v50 = vmul.f32 %v3515_v20, %v6623_v31  ;;  %3516 = vrcp.f32 %v2983_v42  ;;  %v3080_v2 = vrot.slane %v3079_v29, 1 }
 0x36f   : > { %v3093_v30 = vmax.f32 %v3091_v32, %v3092_v53  ;;  %v3058_v53 = vrot.slane %v3057_v61, 2 }
 0x370   : > { %v3022_v15 = vsel %vm3018_vm3, %v6701_v48, 0.0  ;;  %v3024_v19 = vsel %vm3020_vm7, %v6704_v50, 0.0  ;;  %v3081_v10 = vmax.f32 %v3079_v29, %v3080_v2 }
 0x371   : > { %v3026_v26 = vsel %vm2916_vm12, %v3024_v19, 0.0  ;;  %v3094_v56 = vrot.slane %v3093_v30, 2  ;;  %v3059_v4 = vadd.f32 %v3058_v53, %v3057_v61 }
 0x372   : > { %v3027_v31 = vadd.f32 %v3026_v26, %v3022_v15  ;;  %vm3083_vm11 = vcmp.eq.f32.partialorder %v6683_v39, %v3081_v10  ;;  %vm3085_vm5 = vcmp.eq.f32.partialorder %v6690_v8, %v3081_v10 }
 0x373   : > { %v3087_v27 = vsel %vm3083_vm11, %v6602_v38, -1.0  ;;  %v3089_v34 = vsel %vm3085_vm5, %v6605_v59, -1.0  ;;  %v3095_v55 = vmax.f32 %v3093_v30, %v3094_v56 }
 0x374   : > { %v3028_v17 = vrot.slane %v3027_v31, 4  ;;  %v3098_v51 = vsel %vm2916_vm12, %v3089_v34, -inf }
 0x375   : > { %v3099_v57 = vmax.f32 %v3087_v27, %v3098_v51  ;;  %v3096_v44 = vrot.slane %v3095_v55, 1 }
 0x376   : > { %v3029_v52 = vadd.f32 %v3028_v17, %v3027_v31 }
 0x377   : > { %v3100_v46 = vrot.slane %v3099_v57, 4  ;;  %v3097_v35 = vmax.f32 %v3095_v55, %v3096_v44 }
 0x378   : > { %v3517_v49 = vpop.eup %3516  ;;  %v3030_v43 = vrot.slane %v3029_v52, 2 }
 0x379   : > { %v6721_v25 = vmul.f32 %v3517_v49, %v6658_v23  ;;  %v6724_v14 = vmul.f32 %v3517_v49, %v6660_v22  ;;  %v3101_v47 = vmax.f32 %v3099_v57, %v3100_v46  ;;  %vm3106_vm2 = vcmp.eq.f32.partialorder %v6602_v38, %v3097_v35 }
 0x37a   : > { %vm3108_vm1 = vcmp.eq.f32.partialorder %v6605_v59, %v3097_v35  ;;  %v3031_v16 = vadd.f32 %v3030_v43, %v3029_v52  ;;  %v3110_v28 = vsel %vm3106_vm2, %v6701_v48, 0.0  ;;  %v3130_v37 = vsel %vm3106_vm2, %v7094_v45, 0.0 }
 0x37b   : > { %v3023_v60 = vsel %vm3019_vm10, %v6721_v25, 0.0  ;;  %v3025_v23 = vsel %vm3021_vm6, %v6724_v14, 0.0  ;;  %v3102_v22 = vrot.slane %v3101_v47, 2  ;;  %v3112_v1 = vsel %vm3108_vm1, %v6704_v50, 0.0 }
 0x37c   : > { %v3034_v62 = vsel %vm2916_vm12, %v3025_v23, 0.0  ;;  %v3114_v41 = vsel %vm2916_vm12, %v3112_v1, 0.0  ;;  %v3132_v40 = vsel %vm3108_vm1, %v7095_v63, 0.0  ;;  %v6755_v58 = vsel %vm3106_vm2, -inf, %v6646_v11 }
 0x37d   : > { %v3035_v6 = vadd.f32 %v3034_v62, %v3023_v60  ;;  %v3103_v18 = vmax.f32 %v3101_v47, %v3102_v22  ;;  %v3115_v33 = vadd.f32 %v3114_v41, %v3110_v28  ;;  %v6760_v5 = vsel %vm3108_vm1, -inf, %v6652_v36 }
 0x37e   : > { %v3134_v13 = vsel %vm2916_vm12, %v3132_v40, 0.0  ;;  %v3154_v20 = vsel %vm2916_vm12, %v6760_v5, -inf  ;;  %v3052_v11 = vrot.slane %v6726_v21, 1  ;;  %v3032_v36 = vrot.slane %v3031_v16, 1 }
 0x37f   : > { %v3036_v24 = vrot.slane %v3035_v6, 4  ;;  %v3104_v7 = vrot.slane %v3103_v18, 1  ;;  %v3116_v42 = vrot.slane %v3115_v33, 4  ;;  %v3135_v29 = vadd.f32 %v3134_v13, %v3130_v37 }
 0x380   : > { %v3155_v32 = vmax.f32 %v6755_v58, %v3154_v20  ;;  %v3033_v60 = vadd.f32 %v3032_v36, %v3031_v16  ;;  %v3053_v37 = vadd.f32 %v3052_v11, %v6726_v21 }
 0x381   : > { %v3037_v3 = vadd.f32 %v3036_v24, %v3035_v6  ;;  %v3105_v2 = vmax.f32 %v3103_v18, %v3104_v7  ;;  %v3117_v15 = vadd.f32 %v3116_v42, %v3115_v33  ;;  %v3136_v19 = vrot.slane %v3135_v29, 4 }
 0x382   : > { %v3156_v26 = vrot.slane %v3155_v32, 4  ;;  %v3060_v24 = vrot.slane %v3059_v4, 1 }
 0x383   : > { %vm3107_vm4 = vcmp.eq.f32.partialorder %v6602_v38, %v3105_v2  ;;  %vm3109_vm13 = vcmp.eq.f32.partialorder %v6605_v59, %v3105_v2  ;;  %v3118_v31 = vrot.slane %v3117_v15, 2  ;;  %v3038_v56 = vrot.slane %v3037_v3, 2 }
 0x384   : > { %v3111_v10 = vsel %vm3107_vm4, %v6721_v25, 0.0  ;;  %v3113_v30 = vsel %vm3109_vm13, %v6724_v14, 0.0  ;;  %v3131_v9 = vsel %vm3107_vm4, %v7096_v12, 0.0  ;;  %v3133_v27 = vsel %vm3109_vm13, %v7097_v0, 0.0 }
 0x385   : > { %v3122_v17 = vsel %vm2916_vm12, %v3113_v30, 0.0  ;;  %v3137_v34 = vadd.f32 %v3136_v19, %v3135_v29  ;;  %v3119_v55 = vadd.f32 %v3118_v31, %v3117_v15  ;;  %v3142_v52 = vsel %vm2916_vm12, %v3133_v27, 0.0 }
 0x386   : > { %v3123_v51 = vadd.f32 %v3122_v17, %v3111_v10  ;;  %v3151_v57 = vsel %vm3107_vm4, -inf, %v6683_v39  ;;  %v3143_v54 = vadd.f32 %v3142_v52, %v3131_v9  ;;  %v3153_v46 = vsel %vm3109_vm13, -inf, %v6690_v8 }
 0x387   : > { %v3138_v44 = vrot.slane %v3137_v34, 2  ;;  %v3120_v49 = vrot.slane %v3119_v55, 1  ;;  %v3157_v35 = vmax.f32 %v3155_v32, %v3156_v26  ;;  %v3162_v47 = vsel %vm2916_vm12, %v3153_v46, -inf }
 0x388   : > { %v3124_v43 = vrot.slane %v3123_v51, 4  ;;  %v3144_v22 = vrot.slane %v3143_v54, 4  ;;  %v3163_v62 = vmax.f32 %v3151_v57, %v3162_v47  ;;  %v3039_v28 = vadd.f32 %v3038_v56, %v3037_v3 }
 0x389   : > { %v3139_v23 = vadd.f32 %v3138_v44, %v3137_v34  ;;  %v3121_v1 = vadd.f32 %v3120_v49, %v3119_v55  ;;  %v3158_v39 = vrot.slane %v3157_v35, 2  ;;  %v3061_v21 = vadd.f32 %v3060_v24, %v3059_v4 }
 0x38a   : > { %v3125_v6 = vadd.f32 %v3124_v43, %v3123_v51  ;;  %v3145_v18 = vadd.f32 %v3144_v22, %v3143_v54  ;;  %v3164_v41 = vrot.slane %v3163_v62, 4  ;;  %v3040_v20 = vrot.slane %v3039_v28, 1 }
 0x38b   : > { %v3140_v61 = vrot.slane %v3139_v23, 1  ;;  %v3159_v8 = vmax.f32 %v3157_v35, %v3158_v39  ;;  %v6786_v40 = vsel %vm2916_vm12, %v3033_v60, %v3121_v1 }
 0x38c   : > { %v3126_v33 = vrot.slane %v3125_v6, 2  ;;  %v3146_v16 = vrot.slane %v3145_v18, 2  ;;  %v3165_v13 = vmax.f32 %v3163_v62, %v3164_v41  ;;  %v3041_v36 = vadd.f32 %v3040_v20, %v3039_v28 }
 0x38d   : > { %v3141_v7 = vadd.f32 %v3140_v61, %v3139_v23  ;;  %v3160_v29 = vrot.slane %v3159_v8, 1 }
 0x38e   : > { %v3127_v42 = vadd.f32 %v3126_v33, %v3125_v6  ;;  %v3147_v32 = vadd.f32 %v3146_v16, %v3145_v18  ;;  %v3166_v3 = vrot.slane %v3165_v13, 2 }
 0x38f   : > { %v6789_v2 = vsel %vm2916_vm12, %v3053_v37, %v3141_v7  ;;  %v3161_v15 = vmax.f32 %v3159_v8, %v3160_v29 }
 0x390   : > { %v3128_v53 = vrot.slane %v3127_v42, 1  ;;  %v3148_v11 = vrot.slane %v3147_v32, 1  ;;  %v3167_v19 = vmax.f32 %v3165_v13, %v3166_v3 }
 0x391   : > { %vm3170_vm3 = vcmp.eq.f32.partialorder %v6755_v58, %v3161_v15  ;;  %vm3172_vm7 = vcmp.eq.f32.partialorder %v6760_v5, %v3161_v15 }
 0x392   : > { %v3129_v26 = vadd.f32 %v3128_v53, %v3127_v42  ;;  %v3149_v10 = vadd.f32 %v3148_v11, %v3147_v32  ;;  %v3168_v30 = vrot.slane %v3167_v19, 1  ;;  %v3174_v31 = vsel %vm3170_vm3, %v6602_v38, -1.0 }
 0x393   : > { %v3176_v9 = vsel %vm3172_vm7, %v6605_v59, -1.0 }
 0x394   : > { %v3178_v56 = vsel %vm2916_vm12, %v3176_v9, -inf  ;;  %v6797_v17 = vsel %vm2916_vm12, %v3041_v36, %v3129_v26  ;;  %v3169_v27 = vmax.f32 %v3167_v19, %v3168_v30  ;;  %v6800_v55 = vsel %vm2916_vm12, %v3061_v21, %v3149_v10 }
 0x395   : > { %v3179_v34 = vmax.f32 %v3174_v31, %v3178_v56 }
 0x396   : > { %vm3171_vm10 = vcmp.eq.f32.partialorder %v3151_v57, %v3169_v27  ;;  %vm3173_vm6 = vcmp.eq.f32.partialorder %v3153_v46, %v3169_v27 }
 0x397   : > { %v3180_v58 = vrot.slane %v3179_v34, 4  ;;  %v3175_v5 = vsel %vm3171_vm10, %v6602_v38, -1.0  ;;  %v3177_v51 = vsel %vm3173_vm6, %v6605_v59, -1.0 }
 0x398   : > { %v3186_v4 = vsel %vm2916_vm12, %v3177_v51, -inf }
 0x399   : > { %v3181_v52 = vmax.f32 %v3179_v34, %v3180_v58  ;;  %v3187_v44 = vmax.f32 %v3175_v5, %v3186_v4 }
 0x39b   : > { %v3182_v54 = vrot.slane %v3181_v52, 2  ;;  %v3188_v49 = vrot.slane %v3187_v44, 4 }
 0x39d   : > { %v3183_v43 = vmax.f32 %v3181_v52, %v3182_v54  ;;  %v3189_v35 = vmax.f32 %v3187_v44, %v3188_v49  ;;  %v7098_v49 = vld [vmem:[#allocation5_spill] sm:$0xff] }
 0x39f   : > { %v3184_v47 = vrot.slane %v3183_v43, 1  ;;  %v3190_v60 = vrot.slane %v3189_v35, 2 }
 0x3a1   : > { %v3185_v23 = vmax.f32 %v3183_v43, %v3184_v47  ;;  %v3191_v22 = vmax.f32 %v3189_v35, %v3190_v60  ;;  %v7099_v47 = vld [vmem:[#allocation3_spill] sm:$0xff] }
 0x3a3   : > { %vm3194_vm0 = vcmp.eq.f32.partialorder %v6602_v38, %v3185_v23  ;;  %vm3196_vm8 = vcmp.eq.f32.partialorder %v6605_v59, %v3185_v23  ;;  %v3192_v57 = vrot.slane %v3191_v22, 1 }
 0x3a4   : > { %v3198_v46 = vsel %vm3194_vm0, %v6701_v48, 0.0  ;;  %v3200_v62 = vsel %vm3196_vm8, %v6704_v50, 0.0  ;;  %v3218_v28 = vsel %vm3194_vm0, %v7094_v45, 0.0  ;;  %v3220_v6 = vsel %vm3196_vm8, %v7095_v63, 0.0 }
 0x3a5   : > { %v3202_v1 = vsel %vm2916_vm12, %v3200_v62, 0.0  ;;  %v3193_v39 = vmax.f32 %v3191_v22, %v3192_v57  ;;  %v3222_v18 = vsel %vm2916_vm12, %v3220_v6, 0.0  ;;  %v7101_v57 = vld [vmem:[#allocation4_spill] sm:$0xff] }
 0x3a6   : > { %v3203_v61 = vadd.f32 %v3202_v1, %v3198_v46  ;;  %v3223_v41 = vadd.f32 %v3222_v18, %v3218_v28 }
 0x3a7   : > { %vm3195_vm11 = vcmp.eq.f32.partialorder %v6602_v38, %v3193_v39  ;;  %vm3197_vm5 = vcmp.eq.f32.partialorder %v6605_v59, %v3193_v39 }
 0x3a8   : > { %v3204_v37 = vrot.slane %v3203_v61, 4  ;;  %v3199_v48 = vsel %vm3195_vm11, %v6721_v25, 0.0  ;;  %v3201_v50 = vsel %vm3197_vm5, %v6724_v14, 0.0  ;;  %v3219_v45 = vsel %vm3195_vm11, %v7096_v12, 0.0 }
 0x3a9   : > { %v3221_v33 = vsel %vm3197_vm5, %v7097_v0, 0.0  ;;  %v3210_v63 = vsel %vm2916_vm12, %v3201_v50, 0.0  ;;  %v3224_v24 = vrot.slane %v3223_v41, 4 }
 0x3aa   : > { %v3205_v8 = vadd.f32 %v3204_v37, %v3203_v61  ;;  %v3230_v7 = vsel %vm2916_vm12, %v3221_v33, 0.0  ;;  %v3211_v16 = vadd.f32 %v3210_v63, %v3199_v48 }
 0x3ab   : > { %v3231_v13 = vadd.f32 %v3230_v7, %v3219_v45  ;;  %v3225_v59 = vadd.f32 %v3224_v24, %v3223_v41 }
 0x3ac   : > { %v3206_v38 = vrot.slane %v3205_v8, 2  ;;  %v3212_v20 = vrot.slane %v3211_v16, 4 }
 0x3ad   : > { %v3232_v42 = vrot.slane %v3231_v13, 4  ;;  %v3226_v29 = vrot.slane %v3225_v59, 2 }
 0x3ae   : > { %v3207_v25 = vadd.f32 %v3206_v38, %v3205_v8  ;;  %v3213_v14 = vadd.f32 %v3212_v20, %v3211_v16 }
 0x3af   : > { %v3233_v32 = vadd.f32 %v3232_v42, %v3231_v13  ;;  %v3227_v3 = vadd.f32 %v3226_v29, %v3225_v59 }
 0x3b0   : > { %v3208_v12 = vrot.slane %v3207_v25, 1  ;;  %v3214_v0 = vrot.slane %v3213_v14, 2 }
 0x3b1   : > { %v3234_v53 = vrot.slane %v3233_v32, 2  ;;  %v3228_v21 = vrot.slane %v3227_v3, 1 }
 0x3b2   : > { %v3209_v15 = vadd.f32 %v3208_v12, %v3207_v25  ;;  %v3215_v11 = vadd.f32 %v3214_v0, %v3213_v14 }
 0x3b3   : > { %v3235_v19 = vadd.f32 %v3234_v53, %v3233_v32  ;;  %v3229_v36 = vadd.f32 %v3228_v21, %v3227_v3 }
 0x3b4   : > { %v3240_v26 = vsel %vm2919_vm15, %v6786_v40, %v3209_v15  ;;  %v3216_v10 = vrot.slane %v3215_v11, 1 }
 0x3b5   : > { %v3236_v30 = vrot.slane %v3235_v19, 1  ;;  %v3266_v31 = vrot.slane %v3240_v26, 2  ;;  %v3244_v9 = vsel %vm2919_vm15, %v6789_v2, %v3229_v36 }
 0x3b6   : > { %v3217_v56 = vadd.f32 %v3216_v10, %v3215_v11  ;;  %v3246_v34 = vmul.f32 0.0625, %v3244_v9 }
 0x3b7   : > { %v3237_v27 = vadd.f32 %v3236_v30, %v3235_v19  ;;  %3276 = vst [vmem:[%s6825_s11 + $0x10] sm:$0x1] %v3266_v31 }
 0x3b8   : > { %v3241_v58 = vsel %vm2919_vm15, %v6797_v17, %v3217_v56  ;;  %v3248_v51 = vfloor.f32 %v3246_v34  ;;  %v7100_v17 = vld [vmem:[#allocation6_spill] sm:$0xff] }
 0x3b9   : > { %v3245_v5 = vsel %vm2919_vm15, %v6800_v55, %v3237_v27  ;;  %v3267_v40 = vrot.slane %v3241_v58, 2 }
 0x3ba   : > { %v3247_v52 = vmul.f32 0.0625, %v3245_v5  ;;  %v3250_v4 = vmul.f32 16.0, %v3248_v51  ;;  %v3254_v60 = vsub.f32 %v3248_v51, %v7099_v47 }
 0x3bb   : > { %3277 = vst [vmem:[%s6825_s11 + $0x18] sm:$0x1] %v3267_v40 }
 0x3bc   : > { %v3249_v44 = vfloor.f32 %v3247_v52  ;;  %v3252_v54 = vsub.f32 %v3244_v9, %v3250_v4 }
 0x3be   : > { %v3251_v2 = vmul.f32 16.0, %v3249_v44  ;;  %v3256_v43 = vsub.f32 %v3252_v54, %v7098_v49  ;;  %v3255_v46 = vsub.f32 %v3249_v44, %v7101_v57 }
 0x3c0   : > { %v3253_v35 = vsub.f32 %v3245_v5, %v3251_v2  ;;  %v3260_v23 = vrot.slane %v3256_v43, 5 }
 0x3c2   : > { %v3257_v22 = vsub.f32 %v3253_v35, %v7100_v17  ;;  %v3270_v55 = vsel %vm2922_vm14, %v3254_v60, %v3260_v23 }
 0x3c3   : > { %v3272_v28 = vsel %vm2930_vm9, %v3270_v55, %v3266_v31 }
 0x3c4   : > { %v3261_v62 = vrot.slane %v3257_v22, 5  ;;  %3274 = vst [vmem:[%s6825_s11] sm:$0xff] %v3272_v28 }
 0x3c6   : > { %v3271_v1 = vsel %vm2922_vm14, %v3255_v46, %v3261_v62 }
 0x3c7   : > { %v3273_v6 = vsel %vm2930_vm9, %v3271_v1, %v3267_v40 }
 0x3c8   : > { %3275 = vst [vmem:[%s6825_s11 + $0x8] sm:$0xff] %v3273_v6 }
 0x3c9 PF: > { %s14_s17 = sadd.s32 1, %s3540_s17   ;;  %s7102_s15 = smov %s3536_s16 }
 0x3ca   : > { %p11_p6 = scmp.ge.s32.totalorder %s14_s17, 4   ;;  %s7103_s16 = smov %s7105_s18 }
 0x3cc   :  { %13 = sbr.rel (!%p11_p6) target bundleno = 2 (0x2), region = 76 }

// kernel: tpu_custom_call.1
= control target key start
LH: loop header
LB: loop body
LE: loop exit
PB: predicated region body
PF: predicated region fallthrough
CT: control target
= control target key end

     0   :  { %s3565_s15 = smov 0   ;;  %s3567_s16 = smov 0   ;;  %s6853_s0 = inlined_call_operand.vmem [shape: f32[2,9,256], index: 0, kind: input, shape index: {}]   ;;  %s6854_s1 = inlined_call_operand.vmem [shape: f32[2,9,256], index: 1, kind: input, shape index: {}]   ;;  %s6855_s2 = inlined_call_operand.vmem [shape: bf16[2,4,256], index: 2, kind: input, shape index: {}]   ;;  %s6856_s3 = inlined_call_operand.vmem [shape: bf16[4,512], index: 3, kind: input, shape index: {}]   ;;  %s6857_s4 = inlined_call_operand.vmem [shape: f32[2,9,256], index: 4, kind: output, shape index: {}]  }
   0x1   :  { %s3569_s17 = smov 0  }
   0x2 LB: > { %s26_s18 = sadd.s32 1, %s3533_s16  ;;  %p3417_p0 = scmp.ge.s32.totalorder %s3537_s17, 1  ;;  %s3537_s17 = sphi %s3569_s17, %s14_s17   ;;  %s3533_s16 = sphi %s3567_s16, %s7100_s16   ;;  %s3529_s15 = sphi %s3565_s15, %s7099_s15  }
   0x3   : > { %p28_p1 = scmp.ge.s32.totalorder %s26_s18, 2  ;;  %p228_p2 = scmp.lt.s32.totalorder %s3537_s17, 3 }
   0x5   : > { %s7102_s18 = smov (%p28_p1, %s26_s18), 0  ;;  %p229_p3 = pnand %p3417_p0, %p228_p2 }
   0x7   : > { %232 = sbr.rel (%p229_p3) target bundleno = 969 (0x3c9), region = 36 }
   0xe   : > { %s3424_s19 = sshll.u32 %s3529_s15, 1  ;;  %p286_p4 = scmp.lt.s32.totalorder %s3529_s15, 1  ;;  %v3539_v0 = vmov 0.0   ;;  %vm6858_vm0 = vcmask 1043456   ;;  %vm470_vm1 = vcmask 31744   ;;  %v340_v39 = vlaneseq }
   0xf   : > { %p316_p5 = scmp.lt.s32.totalorder %s3424_s19, 3  ;;  %636 = vmatprep.mubr.f32.mxu0 %v3539_v0  ;;  %732 = vmatprep.mubr.f32.mxu1 %v3539_v0 }
  0x10   : > { %s7104_s15 = smov (!%p286_p4, %s3529_s15), 1  ;;  %v341_v40 = vand.u32 127, %v340_v39 }
  0x11   : > { %s7106_s19 = smov (!%p316_p5, %s3424_s19), 3  ;;  %s3466_s20 = sshll.u32 %s7104_s15, 2 }
  0x12   : > { %s3425_s21 = sshll.u32 %s7106_s19, 1  ;;  %s313_s27 = scalar_lea.vmem %s6855_s2, %s3466_s20  ;;  %v342_v41 = vadd.s32 128, %v341_v40  ;;  %v346_v42 = vcvt.s32.f32 %v341_v40 }
  0x13   : > { %s319_s24 = scalar_lea.vmem %s6856_s3, %s3425_s21  ;;  %v399_v3 = vld [vmem:[%s313_s27] sm:$0xf]  ;;  %s3661_s28 = sshll.u32 %s7104_s15, 5 }
  0x14   : > { %v397_v1 = vld [vmem:[%s319_s24] sm:$0xf]  ;;  %v400_v4 = vunpack.c.l.bf16 %v399_v3  ;;  %v347_v43 = vcvt.s32.f32 %v342_v41  ;;  %v349_v44 = vmul.f32 0.0625, %v346_v42  ;;  %s293_s5 = scalar_lea.vmem %s6853_s0, %s3661_s28  ;;  %s303_s8 = scalar_lea.vmem %s6854_s1, %s3661_s28 }
  0x15   : > { %v398_v2 = vunpack.c.l.bf16 %v397_v1  ;;  %v331_v49 = vld [vmem:[%s293_s5] sm:$0xff]  ;;  %v332_v51 = vld [vmem:[%s293_s5 + $0x8] sm:$0xff]  ;;  %v333_v52 = vld [vmem:[%s293_s5 + $0x10] sm:$0x1]  ;;  %s6822_s11 = scalar_lea.vmem %s6857_s4, %s3661_s28 }
  0x16   : > { %v469_v5 = vcombine.high %v400_v4, %v400_v4  ;;  %v350_v45 = vmul.f32 0.0625, %v347_v43  ;;  %v3663_v46 = vfloor.f32 %v349_v44  ;;  %v334_v55 = vld [vmem:[%s293_s5 + $0x18] sm:$0x1]  ;;  %v335_v56 = vld [vmem:[%s303_s8] sm:$0xff]  ;;  %v336_v59 = vld [vmem:[%s303_s8 + $0x8] sm:$0xff] }
  0x17   : > { %404 = vxpose.xlu0.b32.start.end [1/1] (short) %v398_v2, 128  ;;  %v402_v6 = vcombine.high %v398_v2, %v398_v2  ;;  %v337_v61 = vld [vmem:[%s303_s8 + $0x10] sm:$0x1]  ;;  %v338_v1 = vld [vmem:[%s303_s8 + $0x18] sm:$0x1] }
  0x18   : > { %3428 = vmatprep.subr.msk.mxu0 %vm6858_vm0, %v469_v5  ;;  %3468 = vmatprep.subr.msk.mxu1 %vm6858_vm0, %v469_v5  ;;  %6901 = vst [vmem:[#allocation3_spill] sm:$0xff] %v3663_v46  ;;  %v3665_v47 = vfloor.f32 %v350_v45  ;;  %v353_v48 = vmul.f32 16.0, %v3663_v46  ;;  %v357_v54 = vadd.f32 %v3663_v46, %v331_v49  ;;  %v359_v60 = vadd.f32 %v3663_v46, %v333_v52 }
  0x19   : > { %3429 = vmatpush1.msk.msra.mxu0 %vm6858_vm0, %v400_v4  ;;  %3469 = vmatpush1.msk.msra.mxu1 %vm6858_vm0, %v400_v4 }
  0x1a   : > { %6902 = vst [vmem:[#allocation4_spill] sm:$0xff] %v3665_v47  ;;  %v354_v50 = vmul.f32 16.0, %v3665_v47  ;;  %v3677_v53 = vsub.f32 %v346_v42, %v353_v48  ;;  %v358_v58 = vadd.f32 %v3665_v47, %v332_v51  ;;  %v360_v62 = vadd.f32 %v3665_v47, %v334_v55 }
  0x1b   : > { %v361_v63 = vmax.f32 %v357_v54, 0.0  ;;  %v363_v4 = vmax.f32 %v359_v60, 0.0 }
  0x1c   : > { %6903 = vst [vmem:[#allocation5_spill] sm:$0xff] %v3677_v53  ;;  %v3680_v57 = vsub.f32 %v347_v43, %v354_v50  ;;  %v362_v2 = vmax.f32 %v358_v58, 0.0  ;;  %v371_v5 = vadd.f32 %v3677_v53, %v337_v61 }
  0x1e   : > { %6904 = vst [vmem:[#allocation6_spill] sm:$0xff] %v3680_v57  ;;  %v370_v3 = vadd.f32 %v3680_v57, %v336_v59 }
  0x54   : > { %436 = vxpose.xlu0.b32.start.end [1/1] (short) %v402_v6, 128  ;;  %v364_v6 = vmax.f32 %v360_v62, 0.0 }
  0x97   : > { %v420_v7 = vpop.trf.xlu0 }
  0x98   : > { %3430 = vmatmul.mubr.msk.f32.vlgmr.msra.gmra.mrb[0].mxu0 %vm470_vm1, %v420_v7  ;;  %v365_v7 = vmin.f32 %v361_v63, 15.0 }
  0x99   : > { %642 = vmatprep.mubr.f32.mxu0 %v3539_v0 }
  0x9b   : > { %v421_v8 = vpop.trf.xlu0 }
  0x9c   : > { %3431 = vmatmul.mubr.msk.f32.gmra.mrb[2].mxu0 %vm470_vm1, %v421_v8  ;;  %v372_v8 = vadd.f32 %v3680_v57, %v338_v1 }
  0x9d   : > { %648 = vmatprep.mubr.f32.mxu0 %v3539_v0 }
  0x9f   : > { %v422_v9 = vpop.trf.xlu0 }
  0xa0   : > { %3432 = vmatmul.mubr.msk.f32.gmra.mrb[4].mxu0 %vm470_vm1, %v422_v9 }
  0xa1   : > { %654 = vmatprep.mubr.f32.mxu0 %v3539_v0 }
  0xa3   : > { %v423_v10 = vpop.trf.xlu0 }
  0xa4   : > { %3433 = vmatmul.mubr.msk.f32.gmra.mrb[6].mxu0 %vm470_vm1, %v423_v10  ;;  %v366_v10 = vmin.f32 %v362_v2, 15.0 }
  0xa5   : > { %660 = vmatprep.mubr.f32.mxu0 %v3539_v0 }
  0xa7   : > { %v424_v11 = vpop.trf.xlu0 }
  0xa8   : > { %3434 = vmatmul.mubr.msk.f32.gmra.mrb[8].mxu0 %vm470_vm1, %v424_v11  ;;  %v374_v11 = vmax.f32 %v370_v3, 0.0 }
  0xa9   : > { %666 = vmatprep.mubr.f32.mxu0 %v3539_v0 }
  0xab   : > { %v425_v12 = vpop.trf.xlu0 }
  0xac   : > { %3435 = vmatmul.mubr.msk.f32.gmra.mrb[10].mxu0 %vm470_vm1, %v425_v12  ;;  %v367_v12 = vmin.f32 %v363_v4, 15.0 }
  0xad   : > { %672 = vmatprep.mubr.f32.mxu0 %v3539_v0 }
  0xaf   : > { %v426_v13 = vpop.trf.xlu0 }
  0xb0   : > { %3436 = vmatmul.mubr.msk.f32.gmra.mrb[12].mxu0 %vm470_vm1, %v426_v13  ;;  %v375_v13 = vmax.f32 %v371_v5, 0.0 }
  0xb1   : > { %678 = vmatprep.mubr.f32.mxu0 %v3539_v0 }
  0xb3   : > { %v427_v14 = vpop.trf.xlu0 }
  0xb4   : > { %3437 = vmatmul.mubr.msk.f32.gmra.mrb[14].mxu0 %vm470_vm1, %v427_v14  ;;  %v368_v14 = vmin.f32 %v364_v6, 15.0 }
  0xb5   : > { %684 = vmatprep.mubr.f32.mxu0 %v3539_v0 }
  0xb7   : > { %v428_v15 = vpop.trf.xlu0 }
  0xb8   : > { %3438 = vmatmul.mubr.msk.f32.gmra.mrb[16].mxu0 %vm470_vm1, %v428_v15  ;;  %v376_v15 = vmax.f32 %v372_v8, 0.0 }
  0xb9   : > { %690 = vmatprep.mubr.f32.mxu0 %v3539_v0 }
  0xbb   : > { %v429_v16 = vpop.trf.xlu0 }
  0xbc   : > { %3439 = vmatmul.mubr.msk.f32.gmra.mrb[18].mxu0 %vm470_vm1, %v429_v16 }
  0xbd   : > { %696 = vmatprep.mubr.f32.mxu0 %v3539_v0 }
  0xbf   : > { %v430_v17 = vpop.trf.xlu0 }
  0xc0   : > { %3440 = vmatmul.mubr.msk.f32.gmra.mrb[20].mxu0 %vm470_vm1, %v430_v17  ;;  %v381_v17 = vmul.f32 16.0, %v365_v7 }
  0xc1   : > { %702 = vmatprep.mubr.f32.mxu0 %v3539_v0 }
  0xc3   : > { %v431_v18 = vpop.trf.xlu0 }
  0xc4   : > { %3441 = vmatmul.mubr.msk.f32.gmra.mrb[22].mxu0 %vm470_vm1, %v431_v18  ;;  %v378_v18 = vmin.f32 %v374_v11, 15.0 }
  0xc5   : > { %708 = vmatprep.mubr.f32.mxu0 %v3539_v0 }
  0xc7   : > { %v432_v19 = vpop.trf.xlu0 }
  0xc8   : > { %3442 = vmatmul.mubr.msk.f32.gmra.mrb[24].mxu0 %vm470_vm1, %v432_v19  ;;  %v382_v19 = vmul.f32 16.0, %v366_v10 }
  0xc9   : > { %714 = vmatprep.mubr.f32.mxu0 %v3539_v0 }
  0xcb   : > { %v433_v20 = vpop.trf.xlu0 }
  0xcc   : > { %3443 = vmatmul.mubr.msk.f32.gmra.mrb[26].mxu0 %vm470_vm1, %v433_v20  ;;  %v379_v20 = vmin.f32 %v375_v13, 15.0 }
  0xcd   : > { %720 = vmatprep.mubr.f32.mxu0 %v3539_v0 }
  0xcf   : > { %v434_v21 = vpop.trf.xlu0 }
  0xd0   : > { %3444 = vmatmul.mubr.msk.f32.gmra.mrb[28].mxu0 %vm470_vm1, %v434_v21  ;;  %v383_v21 = vmul.f32 16.0, %v367_v12 }
  0xd1   : > { %726 = vmatprep.mubr.f32.mxu0 %v3539_v0 }
  0xd3   : > { %v435_v22 = vpop.trf.xlu0 }
  0xd4   : > { %3445 = vmatmul.mubr.msk.f32.gmra.mrb[30].mxu0 %vm470_vm1, %v435_v22  ;;  %v380_v22 = vmin.f32 %v376_v15, 15.0 }
  0xd7   : > { %v452_v23 = vpop.trf.xlu0 }
  0xd8   : > { %3446 = vmatmul.mubr.msk.f32.vlgmr.msra.gmra.mrb[0].mxu1 %vm470_vm1, %v452_v23  ;;  %v384_v23 = vmul.f32 16.0, %v368_v14 }
  0xd9   : > { %738 = vmatprep.mubr.f32.mxu1 %v3539_v0 }
  0xdb   : > { %v453_v24 = vpop.trf.xlu0 }
  0xdc   : > { %3447 = vmatmul.mubr.msk.f32.gmra.mrb[2].mxu1 %vm470_vm1, %v453_v24 }
  0xdd   : > { %744 = vmatprep.mubr.f32.mxu1 %v3539_v0 }
  0xdf   : > { %v454_v25 = vpop.trf.xlu0 }
  0xe0   : > { %3448 = vmatmul.mubr.msk.f32.gmra.mrb[4].mxu1 %vm470_vm1, %v454_v25  ;;  %v386_v25 = vadd.f32 %v382_v19, %v378_v18 }
  0xe1   : > { %750 = vmatprep.mubr.f32.mxu1 %v3539_v0 }
  0xe3   : > { %v455_v26 = vpop.trf.xlu0 }
  0xe4   : > { %3449 = vmatmul.mubr.msk.f32.gmra.mrb[6].mxu1 %vm470_vm1, %v455_v26  ;;  %v387_v26 = vadd.f32 %v383_v21, %v379_v20 }
  0xe5   : > { %756 = vmatprep.mubr.f32.mxu1 %v3539_v0 }
  0xe7   : > { %v456_v27 = vpop.trf.xlu0 }
  0xe8   : > { %3450 = vmatmul.mubr.msk.f32.gmra.mrb[8].mxu1 %vm470_vm1, %v456_v27  ;;  %v388_v27 = vadd.f32 %v384_v23, %v380_v22 }
  0xe9   : > { %762 = vmatprep.mubr.f32.mxu1 %v3539_v0 }
  0xeb   : > { %v457_v28 = vpop.trf.xlu0 }
  0xec   : > { %3451 = vmatmul.mubr.msk.f32.gmra.mrb[10].mxu1 %vm470_vm1, %v457_v28 }
  0xed   : > { %768 = vmatprep.mubr.f32.mxu1 %v3539_v0 }
  0xef   : > { %v458_v29 = vpop.trf.xlu0 }
  0xf0   : > { %3452 = vmatmul.mubr.msk.f32.gmra.mrb[12].mxu1 %vm470_vm1, %v458_v29  ;;  %v3691_v29 = vfloor.f32 %v386_v25 }
  0xf1   : > { %774 = vmatprep.mubr.f32.mxu1 %v3539_v0 }
  0xf2   : > { %6906 = vst [vmem:[#allocation8_spill] sm:$0xff] %v3691_v29 }
  0xf3   : > { %v459_v30 = vpop.trf.xlu0 }
  0xf4   : > { %3453 = vmatmul.mubr.msk.f32.gmra.mrb[14].mxu1 %vm470_vm1, %v459_v30  ;;  %v3693_v30 = vfloor.f32 %v387_v26 }
  0xf5   : > { %780 = vmatprep.mubr.f32.mxu1 %v3539_v0 }
  0xf6   : > { %6907 = vst [vmem:[#allocation9_spill] sm:$0xff] %v3693_v30 }
  0xf7   : > { %v460_v31 = vpop.trf.xlu0 }
  0xf8   : > { %3454 = vmatmul.mubr.msk.f32.gmra.mrb[16].mxu1 %vm470_vm1, %v460_v31  ;;  %v3695_v31 = vshrl.u32 %v340_v39, 7 }
  0xf9   : > { %786 = vmatprep.mubr.f32.mxu1 %v3539_v0 }
  0xfa   : > { %6908 = vst [vmem:[#allocation10_spill] sm:$0xff] %v3695_v31  ;;  %v1238_v40 = vsub.s32 1, %v3695_v31  ;;  %v1448_v41 = vsub.s32 2, %v3695_v31  ;;  %v1658_v39 = vsub.s32 3, %v3695_v31  ;;  %v1868_v43 = vsub.s32 4, %v3695_v31 }
  0xfb   : > { %v461_v32 = vpop.trf.xlu0  ;;  %v2078_v44 = vsub.s32 5, %v3695_v31  ;;  %v2288_v45 = vsub.s32 6, %v3695_v31  ;;  %v2498_v48 = vsub.s32 7, %v3695_v31  ;;  %v3756_v7 = vadd.s32 8, %v3695_v31 }
  0xfc   : > { %3455 = vmatmul.mubr.msk.f32.gmra.mrb[18].mxu1 %vm470_vm1, %v461_v32  ;;  %v3697_v32 = vfloor.f32 %v388_v27  ;;  %v3803_v8 = vadd.s32 16, %v3695_v31  ;;  %v3813_v10 = vadd.s32 32, %v3695_v31  ;;  %v3816_v11 = vadd.s32 40, %v3695_v31 }
  0xfd   : > { %792 = vmatprep.mubr.f32.mxu1 %v3539_v0  ;;  %6911 = vst [vmem:[#allocation13_spill] sm:$0xff] %v3756_v7  ;;  %v3819_v12 = vadd.s32 48, %v3695_v31  ;;  %v3822_v13 = vadd.s32 56, %v3695_v31  ;;  %v3829_v14 = vadd.s32 64, %v3695_v31  ;;  %v3832_v15 = vadd.s32 72, %v3695_v31 }
  0xfe   : > { %6909 = vst [vmem:[#allocation11_spill] sm:$0xff] %v3697_v32  ;;  %v3845_v19 = vadd.s32 96, %v3695_v31  ;;  %v3848_v20 = vadd.s32 104, %v3695_v31  ;;  %v3851_v21 = vadd.s32 112, %v3695_v31  ;;  %v3854_v22 = vadd.s32 120, %v3695_v31 }
  0xff   : > { %v462_v33 = vpop.trf.xlu0 }
 0x100   : > { %3456 = vmatmul.mubr.msk.f32.gmra.mrb[20].mxu1 %vm470_vm1, %v462_v33  ;;  %6912 = vst [vmem:[#allocation14_spill] sm:$0xff] %v3848_v20  ;;  %6913 = vst [vmem:[#allocation15_spill] sm:$0xff] %v3851_v21 }
 0x101   : > { %798 = vmatprep.mubr.f32.mxu1 %v3539_v0  ;;  %6914 = vst [vmem:[#allocation16_spill] sm:$0xff] %v3854_v22 }
 0x103   : > { %v463_v34 = vpop.trf.xlu0 }
 0x104   : > { %3457 = vmatmul.mubr.msk.f32.gmra.mrb[22].mxu1 %vm470_vm1, %v463_v34  ;;  %v3472_v34 = vtrunc.f32 %v3691_v29 }
 0x105   : > { %804 = vmatprep.mubr.f32.mxu1 %v3539_v0 }
 0x106   : > { %v3473_v42 = vcvt.f32.s32 %v3472_v34 }
 0x107   : > { %v464_v35 = vpop.trf.xlu0 }
 0x108   : > { %3458 = vmatmul.mubr.msk.f32.gmra.mrb[24].mxu1 %vm470_vm1, %v464_v35  ;;  %v3474_v35 = vtrunc.f32 %v3693_v30  ;;  %v3721_v58 = vrot.slane %v3473_v42, %v1448_v41  ;;  %v3735_v1 = vrot.slane %v3473_v42, %v1868_v43  ;;  %v3737_v2 = vrot.slane %v3473_v42, %v2078_v44 }
 0x109   : > { %810 = vmatprep.mubr.f32.mxu1 %v3539_v0  ;;  %v3741_v4 = vrot.slane %v3473_v42, %v2288_v45  ;;  %v3743_v5 = vrot.slane %v3473_v42, %v2498_v48 }
 0x10a   : > { %v3475_v49 = vcvt.f32.s32 %v3474_v35  ;;  %vm2087_vm13 = vcmp.eq.s32.totalorder %v3756_v7, %v3737_v2 }
 0x10b   : > { %v465_v36 = vpop.trf.xlu0  ;;  %6910 = vst [vmem:[#allocation12_spill] sm:$0xff] %v3743_v5  ;;  %vm2297_vm0 = vcmp.eq.s32.totalorder %v3756_v7, %v3741_v4 }
 0x10c   : > { %3459 = vmatmul.mubr.msk.f32.gmra.mrb[26].mxu1 %vm470_vm1, %v465_v36  ;;  %v1028_v36 = vsub.s32 0, %v3695_v31 }
 0x10d   : > { %816 = vmatprep.mubr.f32.mxu1 %v3539_v0 }
 0x10e   : > { %v3717_v55 = vrot.slane %v3473_v42, %v1028_v36  ;;  %v3739_v3 = vrot.slane %v3475_v49, %v1028_v36 }
 0x10f   : > { %v466_v37 = vpop.trf.xlu0 }
 0x110   : > { %3460 = vmatmul.mubr.msk.f32.gmra.mrb[28].mxu1 %vm470_vm1, %v466_v37  ;;  %vm2714_vm10 = vcmp.eq.s32.totalorder %v3695_v31, %v3739_v3 }
 0x111   : > { %822 = vmatprep.mubr.f32.mxu1 %v3539_v0  ;;  %v369_v0 = vadd.f32 %v3677_v53, %v335_v56  ;;  %v3719_v56 = vrot.slane %v3473_v42, %v1238_v40 }
 0x113   : > { %v467_v38 = vpop.trf.xlu0  ;;  %v373_v9 = vmax.f32 %v369_v0, 0.0  ;;  %v3733_v0 = vrot.slane %v3473_v42, %v1658_v39 }
 0x114   : > { %3461 = vmatmul.mubr.msk.f32.gmra.mrb[30].mxu1 %vm470_vm1, %v467_v38  ;;  %v3476_v38 = vtrunc.f32 %v3697_v32  ;;  %vm1457_vm1 = vcmp.eq.s32.totalorder %v3756_v7, %v3721_v58 }
 0x115   : > { %v377_v16 = vmin.f32 %v373_v9, 15.0  ;;  %v3806_v9 = vadd.s32 24, %v3695_v31 }
 0x116   : > { %v3477_v50 = vcvt.f32.s32 %v3476_v38 }
 0x117   : > { %v385_v24 = vadd.f32 %v381_v17, %v377_v16  ;;  %v3835_v16 = vadd.s32 80, %v3695_v31  ;;  %v3838_v17 = vadd.s32 88, %v3695_v31 }
 0x118   : > { %v3745_v6 = vrot.slane %v3477_v50, %v1028_v36 }
 0x119   : > { %v3689_v28 = vfloor.f32 %v385_v24 }
 0x11b   : > { %6905 = vst [vmem:[#allocation7_spill] sm:$0xff] %v3689_v28  ;;  %v3470_v33 = vtrunc.f32 %v3689_v28 }
 0x11d   : > { %v3471_v37 = vcvt.f32.s32 %v3470_v33 }
 0x11f   : > { %v3711_v51 = vrot.slane %v3471_v37, %v1028_v36  ;;  %v3713_v52 = vrot.slane %v3471_v37, %v1238_v40  ;;  %v3715_v54 = vrot.slane %v3471_v37, %v1448_v41  ;;  %v3723_v59 = vrot.slane %v3471_v37, %v1658_v39 }
 0x120   : > { %v3725_v60 = vrot.slane %v3471_v37, %v1868_v43  ;;  %v3727_v61 = vrot.slane %v3471_v37, %v2078_v44  ;;  %v3729_v62 = vrot.slane %v3471_v37, %v2288_v45  ;;  %v3731_v63 = vrot.slane %v3471_v37, %v2498_v48 }
 0x121   : > { %vm1034_vm2 = vcmp.eq.s32.totalorder %v3695_v31, %v3711_v51  ;;  %vm1244_vm3 = vcmp.eq.s32.totalorder %v3695_v31, %v3713_v52  ;;  %vm1454_vm4 = vcmp.eq.s32.totalorder %v3695_v31, %v3715_v54  ;;  %vm1664_vm5 = vcmp.eq.s32.totalorder %v3695_v31, %v3723_v59 }
 0x122   : > { %vm1874_vm6 = vcmp.eq.s32.totalorder %v3695_v31, %v3725_v60  ;;  %vm2084_vm7 = vcmp.eq.s32.totalorder %v3695_v31, %v3727_v61  ;;  %vm2294_vm8 = vcmp.eq.s32.totalorder %v3695_v31, %v3729_v62  ;;  %vm2504_vm9 = vcmp.eq.s32.totalorder %v3695_v31, %v3731_v63 }
 0x123   : > { %vm1246_vm14 = vcmp.eq.s32.totalorder %v3756_v7, %v3713_v52  ;;  %vm1456_vm15 = vcmp.eq.s32.totalorder %v3756_v7, %v3715_v54  ;;  %vm2086_vm11 = vcmp.eq.s32.totalorder %v3756_v7, %v3727_v61  ;;  %vm2296_vm12 = vcmp.eq.s32.totalorder %v3756_v7, %v3729_v62 }
 0x16b   : > { %v638_v18 = vpop.f32.mrb[0].mxu0 }
 0x16c   : > { %v1098_v23 = vsel %vm1034_vm2, %v638_v18, 0.0  ;;  %v1308_v24 = vsel %vm1244_vm3, %v638_v18, 0.0  ;;  %v1518_v25 = vsel %vm1454_vm4, %v638_v18, 0.0  ;;  %v1728_v26 = vsel %vm1664_vm5, %v638_v18, 0.0  ;;  %v640_v27 = vpop.f32.mrb[1].mxu0 }
 0x16d   : > { %v1938_v33 = vsel %vm1874_vm6, %v638_v18, 0.0  ;;  %v2148_v34 = vsel %vm2084_vm7, %v638_v18, 0.0  ;;  %v2358_v35 = vsel %vm2294_vm8, %v638_v18, 0.0  ;;  %v2568_v36 = vsel %vm2504_vm9, %v638_v18, 0.0 }
 0x16e   : > { %vm2507_vm2 = vcmp.eq.s32.totalorder %v3756_v7, %v3743_v5  ;;  %vm2717_vm3 = vcmp.eq.s32.totalorder %v3756_v7, %v3745_v6  ;;  %v2778_v37 = vsel %vm2714_vm10, %v638_v18, 0.0  ;;  %vm6915_vm4 = vcmp.eq.s32.totalorder %v3695_v31, %v3717_v55 }
 0x16f   : > { %v1099_v38 = vsel %vm6915_vm4, %v640_v27, 0.0  ;;  %vm6916_vm5 = vcmp.eq.s32.totalorder %v3695_v31, %v3719_v56  ;;  %vm6917_vm6 = vcmp.eq.s32.totalorder %v3695_v31, %v3721_v58  ;;  %vm1038_vm7 = vcmp.eq.s32.totalorder %v3803_v8, %v3711_v51  ;;  %v644_v45 = vpop.f32.mrb[2].mxu0 }
 0x170   : > { %v1309_v40 = vsel %vm6916_vm5, %v640_v27, 0.0  ;;  %v1519_v41 = vsel %vm6917_vm6, %v640_v27, 0.0  ;;  %vm6918_vm9 = vcmp.eq.s32.totalorder %v3695_v31, %v3733_v0  ;;  %vm6919_vm10 = vcmp.eq.s32.totalorder %v3695_v31, %v3735_v1  ;;  %v646_v47 = vpop.f32.mrb[3].mxu0 }
 0x171   : > { %v1729_v42 = vsel %vm6918_vm9, %v640_v27, 0.0  ;;  %v1939_v39 = vsel %vm6919_vm10, %v640_v27, 0.0  ;;  %vm6920_vm4 = vcmp.eq.s32.totalorder %v3695_v31, %v3737_v2  ;;  %vm6921_vm5 = vcmp.eq.s32.totalorder %v3695_v31, %v3741_v4 }
 0x172   : > { %v2149_v43 = vsel %vm6920_vm4, %v640_v27, 0.0  ;;  %v2359_v44 = vsel %vm6921_vm5, %v640_v27, 0.0  ;;  %vm1458_vm6 = vcmp.eq.s32.totalorder %v3803_v8, %v3715_v54  ;;  %vm6922_vm9 = vcmp.eq.s32.totalorder %v3695_v31, %v3743_v5 }
 0x173   : > { %v2569_v48 = vsel %vm6922_vm9, %v640_v27, 0.0  ;;  %vm6923_vm10 = vcmp.eq.s32.totalorder %v3695_v31, %v3745_v6  ;;  %vm6924_vm4 = vcmp.eq.s32.totalorder %v3756_v7, %v3711_v51  ;;  %v1310_v18 = vsel %vm1246_vm14, %v644_v45, 0.0 }
 0x174   : > { %v2779_v49 = vsel %vm6923_vm10, %v640_v27, 0.0  ;;  %v1100_v50 = vsel %vm6924_vm4, %v644_v45, 0.0  ;;  %vm1878_vm5 = vcmp.eq.s32.totalorder %v3803_v8, %v3725_v60  ;;  %vm2088_vm8 = vcmp.eq.s32.totalorder %v3803_v8, %v3727_v61 }
 0x175   : > { %v1162_v57 = vadd.f32 %v1100_v50, %v1098_v23  ;;  %v1372_v46 = vadd.f32 %v1310_v18, %v1308_v24  ;;  %v1520_v27 = vsel %vm1456_vm15, %v644_v45, 0.0  ;;  %vm6925_vm9 = vcmp.eq.s32.totalorder %v3756_v7, %v3723_v59 }
 0x176   : > { %v1730_v53 = vsel %vm6925_vm9, %v644_v45, 0.0  ;;  %vm2298_vm14 = vcmp.eq.s32.totalorder %v3803_v8, %v3729_v62  ;;  %v1582_v32 = vadd.f32 %v1520_v27, %v1518_v25  ;;  %vm6926_vm4 = vcmp.eq.s32.totalorder %v3756_v7, %v3725_v60 }
 0x177   : > { %v1792_v29 = vadd.f32 %v1730_v53, %v1728_v26  ;;  %v1940_v23 = vsel %vm6926_vm4, %v644_v45, 0.0  ;;  %v2150_v24 = vsel %vm2086_vm11, %v644_v45, 0.0  ;;  %vm2718_vm15 = vcmp.eq.s32.totalorder %v3803_v8, %v3739_v3  ;;  %v3962_v26 = vpop.f32.mrb[4].mxu0 }
 0x178   : > { %v2002_v50 = vadd.f32 %v1940_v23, %v1938_v33  ;;  %v2212_v18 = vadd.f32 %v2150_v24, %v2148_v34  ;;  %v2360_v53 = vsel %vm2296_vm12, %v644_v45, 0.0  ;;  %vm6927_vm10 = vcmp.eq.s32.totalorder %v3756_v7, %v3731_v63  ;;  %v3974_v23 = vpop.f32.mrb[5].mxu0 }
 0x179   : > { %v2570_v25 = vsel %vm6927_vm10, %v644_v45, 0.0  ;;  %v2422_v27 = vadd.f32 %v2360_v53, %v2358_v35  ;;  %vm6928_vm9 = vcmp.eq.s32.totalorder %v3756_v7, %v3739_v3  ;;  %vm6929_vm12 = vcmp.eq.s32.totalorder %v3756_v7, %v3717_v55 }
 0x17a   : > { %v2632_v30 = vadd.f32 %v2570_v25, %v2568_v36  ;;  %v2780_v33 = vsel %vm6928_vm9, %v644_v45, 0.0  ;;  %v1101_v34 = vsel %vm6929_vm12, %v646_v47, 0.0  ;;  %vm6930_vm4 = vcmp.eq.s32.totalorder %v3756_v7, %v3719_v56 }
 0x17b   : > { %v2842_v24 = vadd.f32 %v2780_v33, %v2778_v37  ;;  %v1199_v28 = vadd.f32 %v1101_v34, %v1099_v38  ;;  %v1311_v35 = vsel %vm6930_vm4, %v646_v47, 0.0  ;;  %v1521_v36 = vsel %vm1457_vm1, %v646_v47, 0.0  ;;  %v4006_v34 = vpop.f32.mrb[6].mxu0 }
 0x17c   : > { %vm2089_vm9 = vcmp.eq.s32.totalorder %v3803_v8, %v3737_v2  ;;  %vm2299_vm12 = vcmp.eq.s32.totalorder %v3803_v8, %v3741_v4  ;;  %v1409_v45 = vadd.f32 %v1311_v35, %v1309_v40  ;;  %v1619_v53 = vadd.f32 %v1521_v36, %v1519_v41 }
 0x17d   : > { %vm6931_vm11 = vcmp.eq.s32.totalorder %v3756_v7, %v3733_v0  ;;  %vm6932_vm10 = vcmp.eq.s32.totalorder %v3756_v7, %v3735_v1  ;;  %vm2509_vm4 = vcmp.eq.s32.totalorder %v3803_v8, %v3743_v5  ;;  %vm2719_vm1 = vcmp.eq.s32.totalorder %v3803_v8, %v3745_v6 }
 0x17e   : > { %v1731_v37 = vsel %vm6931_vm11, %v646_v47, 0.0  ;;  %v1941_v38 = vsel %vm6932_vm10, %v646_v47, 0.0  ;;  %v2151_v40 = vsel %vm2087_vm13, %v646_v47, 0.0  ;;  %v2361_v41 = vsel %vm2297_vm0, %v646_v47, 0.0 }
 0x17f   : > { %v1829_v25 = vadd.f32 %v1731_v37, %v1729_v42  ;;  %v2039_v33 = vadd.f32 %v1941_v38, %v1939_v39  ;;  %vm1040_vm11 = vcmp.eq.s32.totalorder %v3806_v9, %v3711_v51  ;;  %vm1250_vm10 = vcmp.eq.s32.totalorder %v3806_v9, %v3713_v52  ;;  %v4022_v37 = vpop.f32.mrb[7].mxu0 }
 0x180   : > { %v2249_v35 = vadd.f32 %v2151_v40, %v2149_v43  ;;  %v2459_v36 = vadd.f32 %v2361_v41, %v2359_v44  ;;  %v2571_v42 = vsel %vm2507_vm2, %v646_v47, 0.0  ;;  %v2781_v39 = vsel %vm2717_vm3, %v646_v47, 0.0 }
 0x181   : > { %vm1460_vm0 = vcmp.eq.s32.totalorder %v3806_v9, %v3715_v54  ;;  %v2669_v38 = vadd.f32 %v2571_v42, %v2569_v48  ;;  %v2879_v31 = vadd.f32 %v2781_v39, %v2779_v49  ;;  %v1102_v43 = vsel %vm1038_vm7, %v3962_v26, 0.0  ;;  %v4060_v39 = vpop.f32.mrb[8].mxu0 }
 0x182   : > { %vm6933_vm2 = vcmp.eq.s32.totalorder %v3803_v8, %v3713_v52  ;;  %vm2090_vm13 = vcmp.eq.s32.totalorder %v3806_v9, %v3727_v61  ;;  %v1163_v44 = vadd.f32 %v1162_v57, %v1102_v43  ;;  %v1522_v48 = vsel %vm1458_vm6, %v3962_v26, 0.0 }
 0x183   : > { %v1312_v47 = vsel %vm6933_vm2, %v3962_v26, 0.0  ;;  %vm6934_vm7 = vcmp.eq.s32.totalorder %v3803_v8, %v3723_v59  ;;  %vm2300_vm2 = vcmp.eq.s32.totalorder %v3806_v9, %v3729_v62  ;;  %vm2510_vm3 = vcmp.eq.s32.totalorder %v3806_v9, %v3731_v63 }
 0x184   : > { %v1373_v40 = vadd.f32 %v1372_v46, %v1312_v47  ;;  %v1732_v49 = vsel %vm6934_vm7, %v3962_v26, 0.0  ;;  %v1583_v41 = vadd.f32 %v1582_v32, %v1522_v48  ;;  %v1942_v46 = vsel %vm1878_vm5, %v3962_v26, 0.0  ;;  %v4074_v48 = vpop.f32.mrb[9].mxu0 }
 0x185   : > { %v1793_v42 = vadd.f32 %v1792_v29, %v1732_v49  ;;  %v2152_v57 = vsel %vm2088_vm8, %v3962_v26, 0.0  ;;  %vm2720_vm6 = vcmp.eq.s32.totalorder %v3806_v9, %v3739_v3  ;;  %v2003_v32 = vadd.f32 %v2002_v50, %v1942_v46 }
 0x186   : > { %v2213_v29 = vadd.f32 %v2212_v18, %v2152_v57  ;;  %v2362_v43 = vsel %vm2298_vm14, %v3962_v26, 0.0  ;;  %vm6935_vm5 = vcmp.eq.s32.totalorder %v3803_v8, %v3731_v63  ;;  %v2782_v49 = vsel %vm2718_vm15, %v3962_v26, 0.0 }
 0x187   : > { %v2572_v47 = vsel %vm6935_vm5, %v3962_v26, 0.0  ;;  %v2423_v50 = vadd.f32 %v2422_v27, %v2362_v43  ;;  %vm6936_vm14 = vcmp.eq.s32.totalorder %v3803_v8, %v3717_v55  ;;  %v2843_v57 = vadd.f32 %v2842_v24, %v2782_v49 }
 0x188   : > { %v2633_v18 = vadd.f32 %v2632_v30, %v2572_v47  ;;  %v1103_v46 = vsel %vm6936_vm14, %v3974_v23, 0.0  ;;  %vm6937_vm8 = vcmp.eq.s32.totalorder %v3803_v8, %v3719_v56  ;;  %vm6938_vm15 = vcmp.eq.s32.totalorder %v3803_v8, %v3721_v58  ;;  %v4112_v47 = vpop.f32.mrb[10].mxu0 }
 0x189   : > { %v1200_v7 = vadd.f32 %v1199_v28, %v1103_v46  ;;  %v1313_v30 = vsel %vm6937_vm8, %v3974_v23, 0.0  ;;  %v1523_v26 = vsel %vm6938_vm15, %v3974_v23, 0.0  ;;  %vm2301_vm5 = vcmp.eq.s32.totalorder %v3806_v9, %v3741_v4 }
 0x18a   : > { %v1410_v27 = vadd.f32 %v1409_v45, %v1313_v30  ;;  %v1620_v43 = vadd.f32 %v1619_v53, %v1523_v26  ;;  %vm6939_vm7 = vcmp.eq.s32.totalorder %v3803_v8, %v3733_v0  ;;  %vm6940_vm8 = vcmp.eq.s32.totalorder %v3803_v8, %v3735_v1  ;;  %v4126_v30 = vpop.f32.mrb[11].mxu0 }
 0x18b   : > { %v1733_v28 = vsel %vm6939_vm7, %v3974_v23, 0.0  ;;  %v1943_v24 = vsel %vm6940_vm8, %v3974_v23, 0.0  ;;  %vm2511_vm15 = vcmp.eq.s32.totalorder %v3806_v9, %v3743_v5  ;;  %vm2721_vm14 = vcmp.eq.s32.totalorder %v3806_v9, %v3745_v6 }
 0x18c   : > { %v1830_v45 = vadd.f32 %v1829_v25, %v1733_v28  ;;  %v2040_v53 = vadd.f32 %v2039_v33, %v1943_v24  ;;  %v2153_v49 = vsel %vm2089_vm9, %v3974_v23, 0.0  ;;  %v2363_v46 = vsel %vm2299_vm12, %v3974_v23, 0.0 }
 0x18d   : > { %vm1042_vm7 = vcmp.eq.s32.totalorder %v3813_v10, %v3711_v51  ;;  %vm1252_vm8 = vcmp.eq.s32.totalorder %v3813_v10, %v3713_v52  ;;  %v2250_v25 = vadd.f32 %v2249_v35, %v2153_v49  ;;  %v2460_v33 = vadd.f32 %v2459_v36, %v2363_v46  ;;  %v4164_v49 = vpop.f32.mrb[12].mxu0 }
 0x18e   : > { %v2573_v26 = vsel %vm2509_vm4, %v3974_v23, 0.0  ;;  %v2783_v28 = vsel %vm2719_vm1, %v3974_v23, 0.0  ;;  %vm1462_vm9 = vcmp.eq.s32.totalorder %v3813_v10, %v3715_v54  ;;  %vm1672_vm12 = vcmp.eq.s32.totalorder %v3813_v10, %v3723_v59 }
 0x18f   : > { %v2670_v24 = vadd.f32 %v2669_v38, %v2573_v26  ;;  %v2880_v22 = vadd.f32 %v2879_v31, %v2783_v28  ;;  %v1104_v35 = vsel %vm1040_vm11, %v4006_v34, 0.0  ;;  %v1314_v36 = vsel %vm1250_vm10, %v4006_v34, 0.0  ;;  %v4178_v28 = vpop.f32.mrb[13].mxu0 }
 0x190   : > { %v1164_v8 = vadd.f32 %v1163_v44, %v1104_v35  ;;  %v1374_v23 = vadd.f32 %v1373_v40, %v1314_v36  ;;  %v1524_v31 = vsel %vm1460_vm0, %v4006_v34, 0.0  ;;  %vm6941_vm11 = vcmp.eq.s32.totalorder %v3806_v9, %v3723_v59 }
 0x191   : > { %v1734_v38 = vsel %vm6941_vm11, %v4006_v34, 0.0  ;;  %vm2302_vm10 = vcmp.eq.s32.totalorder %v3813_v10, %v3729_v62  ;;  %vm2512_vm4 = vcmp.eq.s32.totalorder %v3813_v10, %v3731_v63  ;;  %v1584_v44 = vadd.f32 %v1583_v41, %v1524_v31 }
 0x192   : > { %v1794_v40 = vadd.f32 %v1793_v42, %v1734_v38  ;;  %vm6942_vm1 = vcmp.eq.s32.totalorder %v3806_v9, %v3725_v60  ;;  %v2154_v26 = vsel %vm2090_vm13, %v4006_v34, 0.0  ;;  %vm2722_vm0 = vcmp.eq.s32.totalorder %v3813_v10, %v3739_v3 }
 0x193   : > { %v1944_v46 = vsel %vm6942_vm1, %v4006_v34, 0.0  ;;  %vm1043_vm11 = vcmp.eq.s32.totalorder %v3813_v10, %v3717_v55  ;;  %v2214_v42 = vadd.f32 %v2213_v29, %v2154_v26  ;;  %v2364_v35 = vsel %vm2300_vm2, %v4006_v34, 0.0 }
 0x194   : > { %v2004_v41 = vadd.f32 %v2003_v32, %v1944_v46  ;;  %v2574_v36 = vsel %vm2510_vm3, %v4006_v34, 0.0  ;;  %v2424_v31 = vadd.f32 %v2423_v50, %v2364_v35  ;;  %v2784_v32 = vsel %vm2720_vm6, %v4006_v34, 0.0 }
 0x195   : > { %v2634_v38 = vadd.f32 %v2633_v18, %v2574_v36  ;;  %vm6943_vm2 = vcmp.eq.s32.totalorder %v3806_v9, %v3717_v55  ;;  %v2844_v46 = vadd.f32 %v2843_v57, %v2784_v32  ;;  %vm6944_vm1 = vcmp.eq.s32.totalorder %v3806_v9, %v3719_v56  ;;  %v4216_v18 = vpop.f32.mrb[14].mxu0 }
 0x196   : > { %v1105_v29 = vsel %vm6943_vm2, %v4022_v37, 0.0  ;;  %v1315_v50 = vsel %vm6944_vm1, %v4022_v37, 0.0  ;;  %vm6945_vm6 = vcmp.eq.s32.totalorder %v3806_v9, %v3721_v58  ;;  %vm6946_vm13 = vcmp.eq.s32.totalorder %v3806_v9, %v3733_v0  ;;  %v4230_v32 = vpop.f32.mrb[15].mxu0 }
 0x197   : > { %v1201_v26 = vadd.f32 %v1200_v7, %v1105_v29  ;;  %v1525_v34 = vsel %vm6945_vm6, %v4022_v37, 0.0  ;;  %v1411_v57 = vadd.f32 %v1410_v27, %v1315_v50  ;;  %v1735_v35 = vsel %vm6946_vm13, %v4022_v37, 0.0 }
 0x198   : > { %v1621_v7 = vadd.f32 %v1620_v43, %v1525_v34  ;;  %vm6947_vm1 = vcmp.eq.s32.totalorder %v3806_v9, %v3735_v1  ;;  %vm2513_vm6 = vcmp.eq.s32.totalorder %v3813_v10, %v3743_v5  ;;  %vm2723_vm3 = vcmp.eq.s32.totalorder %v3813_v10, %v3745_v6 }
 0x199   : > { %v1945_v36 = vsel %vm6947_vm1, %v4022_v37, 0.0  ;;  %v1831_v27 = vadd.f32 %v1830_v45, %v1735_v35  ;;  %vm6948_vm2 = vcmp.eq.s32.totalorder %v3806_v9, %v3737_v2  ;;  %v2365_v50 = vsel %vm2301_vm5, %v4022_v37, 0.0  ;;  %v4268_v9 = vpop.f32.mrb[16].mxu0 }
 0x19a   : > { %v2041_v43 = vadd.f32 %v2040_v53, %v1945_v36  ;;  %v2155_v29 = vsel %vm6948_vm2, %v4022_v37, 0.0  ;;  %vm1044_vm13 = vcmp.eq.s32.totalorder %v3816_v11, %v3711_v51  ;;  %vm1254_vm1 = vcmp.eq.s32.totalorder %v3816_v11, %v3713_v52 }
 0x19b   : > { %v2251_v34 = vadd.f32 %v2250_v25, %v2155_v29  ;;  %v2461_v21 = vadd.f32 %v2460_v33, %v2365_v50  ;;  %v2575_v45 = vsel %vm2511_vm15, %v4022_v37, 0.0  ;;  %v2785_v53 = vsel %vm2721_vm14, %v4022_v37, 0.0  ;;  %v4282_v50 = vpop.f32.mrb[17].mxu0 }
 0x19c   : > { %vm1464_vm5 = vcmp.eq.s32.totalorder %v3816_v11, %v3715_v54  ;;  %vm1674_vm2 = vcmp.eq.s32.totalorder %v3816_v11, %v3723_v59  ;;  %v2671_v35 = vadd.f32 %v2670_v24, %v2575_v45  ;;  %v2881_v36 = vadd.f32 %v2880_v22, %v2785_v53 }
 0x19d   : > { %v1106_v25 = vsel %vm1042_vm7, %v4060_v39, 0.0  ;;  %v1316_v33 = vsel %vm1252_vm8, %v4060_v39, 0.0  ;;  %vm1884_vm14 = vcmp.eq.s32.totalorder %v3816_v11, %v3725_v60  ;;  %v1526_v24 = vsel %vm1462_vm9, %v4060_v39, 0.0 }
 0x19e   : > { %v1165_v37 = vadd.f32 %v1164_v8, %v1106_v25  ;;  %v1375_v22 = vadd.f32 %v1374_v23, %v1316_v33  ;;  %v1736_v29 = vsel %vm1672_vm12, %v4060_v39, 0.0  ;;  %vm2304_vm7 = vcmp.eq.s32.totalorder %v3816_v11, %v3729_v62 }
 0x19f   : > { %v1585_v8 = vadd.f32 %v1584_v44, %v1526_v24  ;;  %v1795_v23 = vadd.f32 %v1794_v40, %v1736_v29  ;;  %vm6949_vm15 = vcmp.eq.s32.totalorder %v3813_v10, %v3725_v60  ;;  %vm6950_vm9 = vcmp.eq.s32.totalorder %v3813_v10, %v3727_v61 }
 0x1a0   : > { %v1946_v45 = vsel %vm6949_vm15, %v4060_v39, 0.0  ;;  %v2156_v53 = vsel %vm6950_vm9, %v4060_v39, 0.0  ;;  %vm2724_vm12 = vcmp.eq.s32.totalorder %v3816_v11, %v3739_v3  ;;  %vm1045_vm8 = vcmp.eq.s32.totalorder %v3816_v11, %v3717_v55 }
 0x1a1   : > { %v2005_v25 = vadd.f32 %v2004_v41, %v1946_v45  ;;  %v2215_v33 = vadd.f32 %v2214_v42, %v2156_v53  ;;  %v2366_v44 = vsel %vm2302_vm10, %v4060_v39, 0.0  ;;  %v2576_v40 = vsel %vm2512_vm4, %v4060_v39, 0.0  ;;  %v4320_v45 = vpop.f32.mrb[18].mxu0 }
 0x1a2   : > { %vm1255_vm15 = vcmp.eq.s32.totalorder %v3816_v11, %v3719_v56  ;;  %v2425_v24 = vadd.f32 %v2424_v31, %v2366_v44  ;;  %v2635_v29 = vadd.f32 %v2634_v38, %v2576_v40  ;;  %v2786_v41 = vsel %vm2722_vm0, %v4060_v39, 0.0  ;;  %v4334_v44 = vpop.f32.mrb[19].mxu0 }
 0x1a3   : > { %v1107_v42 = vsel %vm1043_vm11, %v4074_v48, 0.0  ;;  %v2845_v31 = vadd.f32 %v2844_v46, %v2786_v41  ;;  %vm6951_vm9 = vcmp.eq.s32.totalorder %v3813_v10, %v3719_v56  ;;  %vm6952_vm0 = vcmp.eq.s32.totalorder %v3813_v10, %v3721_v58 }
 0x1a4   : > { %v1202_v38 = vadd.f32 %v1201_v26, %v1107_v42  ;;  %v1317_v39 = vsel %vm6951_vm9, %v4074_v48, 0.0  ;;  %v1527_v53 = vsel %vm6952_vm0, %v4074_v48, 0.0  ;;  %vm6953_vm4 = vcmp.eq.s32.totalorder %v3813_v10, %v3733_v0 }
 0x1a5   : > { %v1412_v46 = vadd.f32 %v1411_v57, %v1317_v39  ;;  %v1622_v26 = vadd.f32 %v1621_v7, %v1527_v53  ;;  %v1737_v40 = vsel %vm6953_vm4, %v4074_v48, 0.0  ;;  %vm6954_vm9 = vcmp.eq.s32.totalorder %v3813_v10, %v3735_v1 }
 0x1a6   : > { %v1947_v41 = vsel %vm6954_vm9, %v4074_v48, 0.0  ;;  %vm2725_vm10 = vcmp.eq.s32.totalorder %v3816_v11, %v3745_v6  ;;  %v1832_v42 = vadd.f32 %v1831_v27, %v1737_v40  ;;  %vm6955_vm11 = vcmp.eq.s32.totalorder %v3813_v10, %v3737_v2  ;;  %v4372_v40 = vpop.f32.mrb[20].mxu0 }
 0x1a7   : > { %v2042_v20 = vadd.f32 %v2041_v43, %v1947_v41  ;;  %v2157_v57 = vsel %vm6955_vm11, %v4074_v48, 0.0  ;;  %vm6956_vm4 = vcmp.eq.s32.totalorder %v3813_v10, %v3741_v4  ;;  %vm1046_vm9 = vcmp.eq.s32.totalorder %v3819_v12, %v3711_v51 }
 0x1a8   : > { %v2367_v7 = vsel %vm6956_vm4, %v4074_v48, 0.0  ;;  %vm1256_vm0 = vcmp.eq.s32.totalorder %v3819_v12, %v3713_v52  ;;  %v2252_v39 = vadd.f32 %v2251_v34, %v2157_v57  ;;  %v2577_v27 = vsel %vm2513_vm6, %v4074_v48, 0.0 }
 0x1a9   : > { %v2462_v53 = vadd.f32 %v2461_v21, %v2367_v7  ;;  %v2787_v43 = vsel %vm2723_vm3, %v4074_v48, 0.0  ;;  %vm1466_vm11 = vcmp.eq.s32.totalorder %v3819_v12, %v3715_v54  ;;  %vm1676_vm4 = vcmp.eq.s32.totalorder %v3819_v12, %v3723_v59  ;;  %v4386_v48 = vpop.f32.mrb[21].mxu0 }
 0x1aa   : > { %v2672_v34 = vadd.f32 %v2671_v35, %v2577_v27  ;;  %v2882_v21 = vadd.f32 %v2881_v36, %v2787_v43  ;;  %v1108_v41 = vsel %vm1044_vm13, %v4112_v47, 0.0  ;;  %v1318_v10 = vsel %vm1254_vm1, %v4112_v47, 0.0 }
 0x1ab   : > { %vm1886_vm3 = vcmp.eq.s32.totalorder %v3819_v12, %v3725_v60  ;;  %vm2096_vm6 = vcmp.eq.s32.totalorder %v3819_v12, %v3727_v61  ;;  %v1166_v35 = vadd.f32 %v1165_v37, %v1108_v41  ;;  %v1376_v36 = vadd.f32 %v1375_v22, %v1318_v10 }
 0x1ac   : > { %v1528_v57 = vsel %vm1464_vm5, %v4112_v47, 0.0  ;;  %v1738_v7 = vsel %vm1674_vm2, %v4112_v47, 0.0  ;;  %vm2516_vm1 = vcmp.eq.s32.totalorder %v3819_v12, %v3731_v63  ;;  %v1948_v37 = vsel %vm1884_vm14, %v4112_v47, 0.0 }
 0x1ad   : > { %v1586_v27 = vadd.f32 %v1585_v8, %v1528_v57  ;;  %v1796_v43 = vadd.f32 %v1795_v23, %v1738_v7  ;;  %vm6957_vm5 = vcmp.eq.s32.totalorder %v3816_v11, %v3727_v61  ;;  %vm1047_vm13 = vcmp.eq.s32.totalorder %v3819_v12, %v3717_v55  ;;  %v4424_v57 = vpop.f32.mrb[22].mxu0 }
 0x1ae   : > { %v2158_v22 = vsel %vm6957_vm5, %v4112_v47, 0.0  ;;  %v2006_v41 = vadd.f32 %v2005_v25, %v1948_v37  ;;  %v2368_v8 = vsel %vm2304_vm7, %v4112_v47, 0.0  ;;  %vm6958_vm14 = vcmp.eq.s32.totalorder %v3816_v11, %v3731_v63 }
 0x1af   : > { %v2216_v10 = vadd.f32 %v2215_v33, %v2158_v22  ;;  %v2578_v23 = vsel %vm6958_vm14, %v4112_v47, 0.0  ;;  %vm1257_vm5 = vcmp.eq.s32.totalorder %v3819_v12, %v3719_v56  ;;  %vm1467_vm2 = vcmp.eq.s32.totalorder %v3819_v12, %v3721_v58  ;;  %v4438_v22 = vpop.f32.mrb[23].mxu0 }
 0x1b0   : > { %v2426_v25 = vadd.f32 %v2425_v24, %v2368_v8  ;;  %v2636_v33 = vadd.f32 %v2635_v29, %v2578_v23  ;;  %v2788_v7 = vsel %vm2724_vm12, %v4112_v47, 0.0  ;;  %v1109_v37 = vsel %vm1045_vm8, %v4126_v30, 0.0  ;;  %6959 = vst [vmem:[#allocation17_spill] sm:$0xff] %v4438_v22 }
 0x1b1   : > { %v2846_v24 = vadd.f32 %v2845_v31, %v2788_v7  ;;  %v1203_v29 = vadd.f32 %v1202_v38, %v1109_v37  ;;  %v1319_v47 = vsel %vm1255_vm15, %v4126_v30, 0.0  ;;  %vm6960_vm12 = vcmp.eq.s32.totalorder %v3816_v11, %v3721_v58 }
 0x1b2   : > { %v1529_v8 = vsel %vm6960_vm12, %v4126_v30, 0.0  ;;  %v1413_v23 = vadd.f32 %v1412_v46, %v1319_v47  ;;  %vm6961_vm7 = vcmp.eq.s32.totalorder %v3816_v11, %v3733_v0  ;;  %vm6962_vm15 = vcmp.eq.s32.totalorder %v3816_v11, %v3735_v1  ;;  %v4476_v47 = vpop.f32.mrb[24].mxu0 }
 0x1b3   : > { %v1623_v22 = vadd.f32 %v1622_v26, %v1529_v8  ;;  %v1739_v31 = vsel %vm6961_vm7, %v4126_v30, 0.0  ;;  %v1949_v38 = vsel %vm6962_vm15, %v4126_v30, 0.0  ;;  %vm6963_vm14 = vcmp.eq.s32.totalorder %v3816_v11, %v3737_v2 }
 0x1b4   : > { %v1833_v7 = vadd.f32 %v1832_v42, %v1739_v31  ;;  %v2043_v37 = vadd.f32 %v2042_v20, %v1949_v38  ;;  %v2159_v46 = vsel %vm6963_vm14, %v4126_v30, 0.0  ;;  %vm6964_vm7 = vcmp.eq.s32.totalorder %v3816_v11, %v3741_v4  ;;  %v4490_v38 = vpop.f32.mrb[25].mxu0 }
 0x1b5   : > { %v2369_v26 = vsel %vm6964_vm7, %v4126_v30, 0.0  ;;  %vm1048_vm15 = vcmp.eq.s32.totalorder %v3822_v13, %v3711_v51  ;;  %vm1258_vm12 = vcmp.eq.s32.totalorder %v3822_v13, %v3713_v52  ;;  %v2253_v42 = vadd.f32 %v2252_v39, %v2159_v46 }
 0x1b6   : > { %v2463_v20 = vadd.f32 %v2462_v53, %v2369_v26  ;;  %vm6965_vm8 = vcmp.eq.s32.totalorder %v3816_v11, %v3743_v5  ;;  %v2789_v31 = vsel %vm2725_vm10, %v4126_v30, 0.0  ;;  %vm1468_vm14 = vcmp.eq.s32.totalorder %v3822_v13, %v3715_v54 }
 0x1b7   : > { %v2579_v8 = vsel %vm6965_vm8, %v4126_v30, 0.0  ;;  %vm1678_vm7 = vcmp.eq.s32.totalorder %v3822_v13, %v3723_v59  ;;  %v2883_v53 = vadd.f32 %v2882_v21, %v2789_v31  ;;  %v1110_v46 = vsel %vm1046_vm9, %v4164_v49, 0.0 }
 0x1b8   : > { %v2673_v39 = vadd.f32 %v2672_v34, %v2579_v8  ;;  %v1320_v11 = vsel %vm1256_vm0, %v4164_v49, 0.0  ;;  %vm1888_vm10 = vcmp.eq.s32.totalorder %v3822_v13, %v3725_v60  ;;  %vm2098_vm8 = vcmp.eq.s32.totalorder %v3822_v13, %v3727_v61 }
 0x1b9   : > { %v1167_v30 = vadd.f32 %v1166_v35, %v1110_v46  ;;  %v1377_v26 = vadd.f32 %v1376_v36, %v1320_v11  ;;  %v1530_v34 = vsel %vm1466_vm11, %v4164_v49, 0.0  ;;  %v1740_v21 = vsel %vm1676_vm4, %v4164_v49, 0.0  ;;  %v4528_v46 = vpop.f32.mrb[26].mxu0 }
 0x1ba   : > { %vm2308_vm0 = vcmp.eq.s32.totalorder %v3822_v13, %v3729_v62  ;;  %v1587_v8 = vadd.f32 %v1586_v27, %v1530_v34  ;;  %v1797_v31 = vadd.f32 %v1796_v43, %v1740_v21  ;;  %v1950_v35 = vsel %vm1886_vm3, %v4164_v49, 0.0  ;;  %6966 = vst [vmem:[#allocation18_spill] sm:$0xff] %v4528_v46  ;;  %v4542_v21 = vpop.f32.mrb[27].mxu0 }
 0x1bb   : > { %v2160_v36 = vsel %vm2096_vm6, %v4164_v49, 0.0  ;;  %vm2728_vm11 = vcmp.eq.s32.totalorder %v3822_v13, %v3739_v3  ;;  %v2007_v27 = vadd.f32 %v2006_v41, %v1950_v35  ;;  %vm6967_vm9 = vcmp.eq.s32.totalorder %v3819_v12, %v3729_v62  ;;  %6968 = vst [vmem:[#allocation19_spill] sm:$0xff] %v4542_v21 }
 0x1bc   : > { %v2217_v43 = vadd.f32 %v2216_v10, %v2160_v36  ;;  %v2370_v11 = vsel %vm6967_vm9, %v4164_v49, 0.0  ;;  %v2580_v34 = vsel %vm2516_vm1, %v4164_v49, 0.0  ;;  %vm1259_vm3 = vcmp.eq.s32.totalorder %v3822_v13, %v3719_v56 }
 0x1bd   : > { %vm1469_vm6 = vcmp.eq.s32.totalorder %v3822_v13, %v3721_v58  ;;  %v2427_v41 = vadd.f32 %v2426_v25, %v2370_v11  ;;  %v2637_v10 = vadd.f32 %v2636_v33, %v2580_v34  ;;  %vm6969_vm4 = vcmp.eq.s32.totalorder %v3819_v12, %v3739_v3  ;;  %v4580_v34 = vpop.f32.mrb[28].mxu0 }
 0x1be   : > { %v2790_v35 = vsel %vm6969_vm4, %v4164_v49, 0.0  ;;  %v1111_v36 = vsel %vm1047_vm13, %v4178_v28, 0.0  ;;  %vm1679_vm1 = vcmp.eq.s32.totalorder %v3822_v13, %v3733_v0  ;;  %v1321_v25 = vsel %vm1257_vm5, %v4178_v28, 0.0 }
 0x1bf   : > { %v2847_v46 = vadd.f32 %v2846_v24, %v2790_v35  ;;  %v1204_v21 = vadd.f32 %v1203_v29, %v1111_v36  ;;  %v1531_v49 = vsel %vm1467_vm2, %v4178_v28, 0.0  ;;  %v1414_v33 = vadd.f32 %v1413_v23, %v1321_v25  ;;  %v4594_v25 = vpop.f32.mrb[29].mxu0 }
 0x1c0   : > { %v1624_v11 = vadd.f32 %v1623_v22, %v1531_v49  ;;  %vm6970_vm9 = vcmp.eq.s32.totalorder %v3819_v12, %v3733_v0  ;;  %vm6971_vm5 = vcmp.eq.s32.totalorder %v3819_v12, %v3735_v1  ;;  %vm6972_vm4 = vcmp.eq.s32.totalorder %v3819_v12, %v3737_v2  ;;  %6974 = vst [vmem:[#allocation20_spill] sm:$0xff] %v4594_v25 }
 0x1c1   : > { %v1741_v24 = vsel %vm6970_vm9, %v4178_v28, 0.0  ;;  %v1951_v29 = vsel %vm6971_vm5, %v4178_v28, 0.0  ;;  %v2161_v35 = vsel %vm6972_vm4, %v4178_v28, 0.0  ;;  %vm6973_vm9 = vcmp.eq.s32.totalorder %v3819_v12, %v3741_v4 }
 0x1c2   : > { %v1834_v23 = vadd.f32 %v1833_v7, %v1741_v24  ;;  %v2044_v22 = vadd.f32 %v2043_v37, %v1951_v29  ;;  %v2371_v36 = vsel %vm6973_vm9, %v4178_v28, 0.0  ;;  %vm1050_vm5 = vcmp.eq.s32.totalorder %v3829_v14, %v3711_v51 }
 0x1c3   : > { %v2254_v7 = vadd.f32 %v2253_v42, %v2161_v35  ;;  %v2464_v37 = vadd.f32 %v2463_v20, %v2371_v36  ;;  %vm6975_vm2 = vcmp.eq.s32.totalorder %v3819_v12, %v3743_v5  ;;  %vm6976_vm4 = vcmp.eq.s32.totalorder %v3819_v12, %v3745_v6  ;;  %v4632_v35 = vpop.f32.mrb[30].mxu0 }
 0x1c4   : > { %v2581_v49 = vsel %vm6975_vm2, %v4178_v28, 0.0  ;;  %v2791_v24 = vsel %vm6976_vm4, %v4178_v28, 0.0  ;;  %vm1470_vm9 = vcmp.eq.s32.totalorder %v3829_v14, %v3715_v54  ;;  %vm1680_vm13 = vcmp.eq.s32.totalorder %v3829_v14, %v3723_v59 }
 0x1c5   : > { %v2674_v29 = vadd.f32 %v2673_v39, %v2581_v49  ;;  %v2884_v25 = vadd.f32 %v2883_v53, %v2791_v24  ;;  %v1112_v42 = vsel %vm1048_vm15, %v4216_v18, 0.0  ;;  %v1322_v20 = vsel %vm1258_vm12, %v4216_v18, 0.0  ;;  %v4646_v24 = vpop.f32.mrb[31].mxu0 }
 0x1c6   : > { %vm1890_vm2 = vcmp.eq.s32.totalorder %v3829_v14, %v3725_v60  ;;  %vm2100_vm4 = vcmp.eq.s32.totalorder %v3829_v14, %v3727_v61  ;;  %v1168_v12 = vadd.f32 %v1167_v30, %v1112_v42  ;;  %v1378_v28 = vadd.f32 %v1377_v26, %v1322_v20 }
 0x1c7   : > { %v1532_v39 = vsel %vm1468_vm14, %v4216_v18, 0.0  ;;  %v1742_v53 = vsel %vm1678_vm7, %v4216_v18, 0.0  ;;  %vm2310_vm12 = vcmp.eq.s32.totalorder %v3829_v14, %v3729_v62  ;;  %vm2520_vm15 = vcmp.eq.s32.totalorder %v3829_v14, %v3731_v63 }
 0x1c8   : > { %v1588_v30 = vadd.f32 %v1587_v8, %v1532_v39  ;;  %v1798_v26 = vadd.f32 %v1797_v31, %v1742_v53  ;;  %v1952_v36 = vsel %vm1888_vm10, %v4216_v18, 0.0  ;;  %v2162_v49 = vsel %vm2098_vm8, %v4216_v18, 0.0 }
 0x1c9   : > { %vm2730_vm14 = vcmp.eq.s32.totalorder %v3829_v14, %v3739_v3  ;;  %v2008_v8 = vadd.f32 %v2007_v27, %v1952_v36  ;;  %v2218_v31 = vadd.f32 %v2217_v43, %v2162_v49  ;;  %v2372_v42 = vsel %vm2308_vm0, %v4216_v18, 0.0 }
 0x1ca   : > { %vm6977_vm10 = vcmp.eq.s32.totalorder %v3822_v13, %v3731_v63  ;;  %vm1471_vm7 = vcmp.eq.s32.totalorder %v3829_v14, %v3721_v58  ;;  %v2428_v39 = vadd.f32 %v2427_v41, %v2372_v42  ;;  %v2792_v27 = vsel %vm2728_vm11, %v4216_v18, 0.0 }
 0x1cb   : > { %v2582_v20 = vsel %vm6977_vm10, %v4216_v18, 0.0  ;;  %vm6978_vm0 = vcmp.eq.s32.totalorder %v3822_v13, %v3717_v55  ;;  %vm1681_vm10 = vcmp.eq.s32.totalorder %v3829_v14, %v3733_v0  ;;  %vm1891_vm8 = vcmp.eq.s32.totalorder %v3829_v14, %v3735_v1 }
 0x1cc   : > { %v2638_v53 = vadd.f32 %v2637_v10, %v2582_v20  ;;  %v1113_v43 = vsel %vm6978_vm0, %v4230_v32, 0.0  ;;  %v2848_v36 = vadd.f32 %v2847_v46, %v2792_v27  ;;  %v1323_v41 = vsel %vm1259_vm3, %v4230_v32, 0.0  ;;  %v4684_v10 = vpop.f32.mrb[0].mxu1 }
 0x1cd   : > { %v1205_v49 = vadd.f32 %v1204_v21, %v1113_v43  ;;  %v1533_v18 = vsel %vm1469_vm6, %v4230_v32, 0.0  ;;  %v1415_v46 = vadd.f32 %v1414_v33, %v1323_v41  ;;  %v1743_v42 = vsel %vm1679_vm1, %v4230_v32, 0.0  ;;  %v4698_v27 = vpop.f32.mrb[1].mxu1 }
 0x1ce   : > { %v1625_v21 = vadd.f32 %v1624_v11, %v1533_v18  ;;  %vm6979_vm3 = vcmp.eq.s32.totalorder %v3822_v13, %v3735_v1  ;;  %6980 = vst [vmem:[#allocation21_spill] sm:$0xff] %v4698_v27  ;;  %v1835_v33 = vadd.f32 %v1834_v23, %v1743_v42  ;;  %vm6981_vm11 = vcmp.eq.s32.totalorder %v3822_v13, %v3737_v2 }
 0x1cf   : > { %v1953_v20 = vsel %vm6979_vm3, %v4230_v32, 0.0  ;;  %v2163_v43 = vsel %vm6981_vm11, %v4230_v32, 0.0  ;;  %vm6982_vm1 = vcmp.eq.s32.totalorder %v3822_v13, %v3741_v4  ;;  %vm1262_vm0 = vcmp.eq.s32.totalorder %v3832_v15, %v3713_v52 }
 0x1d0   : > { %v2045_v11 = vadd.f32 %v2044_v22, %v1953_v20  ;;  %v2373_v41 = vsel %vm6982_vm1, %v4230_v32, 0.0  ;;  %v2255_v18 = vadd.f32 %v2254_v7, %v2163_v43  ;;  %vm6983_vm6 = vcmp.eq.s32.totalorder %v3822_v13, %v3743_v5 }
 0x1d1   : > { %v2465_v27 = vadd.f32 %v2464_v37, %v2373_v41  ;;  %v2583_v23 = vsel %vm6983_vm6, %v4230_v32, 0.0  ;;  %vm6984_vm11 = vcmp.eq.s32.totalorder %v3822_v13, %v3745_v6  ;;  %vm1682_vm3 = vcmp.eq.s32.totalorder %v3832_v15, %v3723_v59  ;;  %v4736_v13 = vpop.f32.mrb[2].mxu1 }
 0x1d2   : > { %v2793_v22 = vsel %vm6984_vm11, %v4230_v32, 0.0  ;;  %v2675_v42 = vadd.f32 %v2674_v29, %v2583_v23  ;;  %v1114_v7 = vsel %vm1050_vm5, %v4268_v9, 0.0  ;;  %vm6985_vm6 = vcmp.eq.s32.totalorder %v3829_v14, %v3713_v52  ;;  %v4750_v41 = vpop.f32.mrb[3].mxu1 }
 0x1d3   : > { %v2885_v20 = vadd.f32 %v2884_v25, %v2793_v22  ;;  %v1324_v37 = vsel %vm6985_vm6, %v4268_v9, 0.0  ;;  %vm1892_vm11 = vcmp.eq.s32.totalorder %v3832_v15, %v3725_v60  ;;  %vm2102_vm1 = vcmp.eq.s32.totalorder %v3832_v15, %v3727_v61 }
 0x1d4   : > { %v1169_v32 = vadd.f32 %v1168_v12, %v1114_v7  ;;  %v1379_v25 = vadd.f32 %v1378_v28, %v1324_v37  ;;  %v1534_v29 = vsel %vm1470_vm9, %v4268_v9, 0.0  ;;  %v1744_v43 = vsel %vm1680_vm13, %v4268_v9, 0.0 }
 0x1d5   : > { %vm2312_vm5 = vcmp.eq.s32.totalorder %v3832_v15, %v3729_v62  ;;  %vm2522_vm6 = vcmp.eq.s32.totalorder %v3832_v15, %v3731_v63  ;;  %v1589_v12 = vadd.f32 %v1588_v30, %v1534_v29  ;;  %v1799_v28 = vadd.f32 %v1798_v26, %v1744_v43 }
 0x1d6   : > { %v1954_v23 = vsel %vm1890_vm2, %v4268_v9, 0.0  ;;  %v2164_v22 = vsel %vm2100_vm4, %v4268_v9, 0.0  ;;  %vm2732_vm13 = vcmp.eq.s32.totalorder %v3832_v15, %v3739_v3  ;;  %vm1053_vm9 = vcmp.eq.s32.totalorder %v3832_v15, %v3717_v55 }
 0x1d7   : > { %v2009_v7 = vadd.f32 %v2008_v8, %v1954_v23  ;;  %v2219_v37 = vadd.f32 %v2218_v31, %v2164_v22  ;;  %v2374_v30 = vsel %vm2310_vm12, %v4268_v9, 0.0  ;;  %v2584_v26 = vsel %vm2520_vm15, %v4268_v9, 0.0  ;;  %v4788_v23 = vpop.f32.mrb[4].mxu1 }
 0x1d8   : > { %v2429_v29 = vadd.f32 %v2428_v39, %v2374_v30  ;;  %v2639_v43 = vadd.f32 %v2638_v53, %v2584_v26  ;;  %v2794_v8 = vsel %vm2730_vm14, %v4268_v9, 0.0  ;;  %vm6986_vm12 = vcmp.eq.s32.totalorder %v3829_v14, %v3717_v55  ;;  %6987 = vst [vmem:[#allocation22_spill] sm:$0xff] %v4788_v23  ;;  %v4802_v30 = vpop.f32.mrb[5].mxu1 }
 0x1d9   : > { %v1115_v31 = vsel %vm6986_vm12, %v4282_v50, 0.0  ;;  %vm1683_vm15 = vcmp.eq.s32.totalorder %v3832_v15, %v3733_v0  ;;  %vm1893_vm2 = vcmp.eq.s32.totalorder %v3832_v15, %v3735_v1  ;;  %v2849_v39 = vadd.f32 %v2848_v36, %v2794_v8  ;;  %6989 = vst [vmem:[#allocation23_spill] sm:$0xff] %v4802_v30 }
 0x1da   : > { %v1206_v53 = vadd.f32 %v1205_v49, %v1115_v31  ;;  %vm6988_vm4 = vcmp.eq.s32.totalorder %v3829_v14, %v3719_v56  ;;  %v1535_v22 = vsel %vm1471_vm7, %v4282_v50, 0.0  ;;  %vm2103_vm14 = vcmp.eq.s32.totalorder %v3832_v15, %v3737_v2 }
 0x1db   : > { %v1325_v9 = vsel %vm6988_vm4, %v4282_v50, 0.0  ;;  %v1626_v49 = vadd.f32 %v1625_v21, %v1535_v22  ;;  %v1745_v26 = vsel %vm1681_vm10, %v4282_v50, 0.0  ;;  %v1955_v8 = vsel %vm1891_vm8, %v4282_v50, 0.0 }
 0x1dc   : > { %v1416_v36 = vadd.f32 %v1415_v46, %v1325_v9  ;;  %v1836_v31 = vadd.f32 %v1835_v33, %v1745_v26  ;;  %v2046_v30 = vadd.f32 %v2045_v11, %v1955_v8  ;;  %vm6990_vm12 = vcmp.eq.s32.totalorder %v3829_v14, %v3737_v2  ;;  %v4840_v26 = vpop.f32.mrb[6].mxu1 }
 0x1dd   : > { %v2165_v46 = vsel %vm6990_vm12, %v4282_v50, 0.0  ;;  %vm6991_vm10 = vcmp.eq.s32.totalorder %v3829_v14, %v3741_v4  ;;  %vm6992_vm4 = vcmp.eq.s32.totalorder %v3829_v14, %v3743_v5  ;;  %vm6993_vm12 = vcmp.eq.s32.totalorder %v3829_v14, %v3745_v6  ;;  %6994 = vst [vmem:[#allocation24_spill] sm:$0xff] %v4840_v26 }
 0x1de   : > { %v2375_v21 = vsel %vm6991_vm10, %v4282_v50, 0.0  ;;  %v2256_v9 = vadd.f32 %v2255_v18, %v2165_v46  ;;  %v2585_v33 = vsel %vm6992_vm4, %v4282_v50, 0.0  ;;  %v2795_v11 = vsel %vm6993_vm12, %v4282_v50, 0.0  ;;  %v4854_v50 = vpop.f32.mrb[7].mxu1 }
 0x1df   : > { %v2466_v22 = vadd.f32 %v2465_v27, %v2375_v21  ;;  %vm1474_vm10 = vcmp.eq.s32.totalorder %v3835_v16, %v3715_v54  ;;  %v2676_v18 = vadd.f32 %v2675_v42, %v2585_v33  ;;  %v2886_v27 = vadd.f32 %v2885_v20, %v2795_v11  ;;  %6996 = vst [vmem:[#allocation25_spill] sm:$0xff] %v4854_v50 }
 0x1e0   : > { %vm6995_vm7 = vcmp.eq.s32.totalorder %v3832_v15, %v3711_v51  ;;  %v1326_v14 = vsel %vm1262_vm0, %v4320_v45, 0.0  ;;  %vm1894_vm4 = vcmp.eq.s32.totalorder %v3835_v16, %v3725_v60  ;;  %vm2104_vm12 = vcmp.eq.s32.totalorder %v3835_v16, %v3727_v61 }
 0x1e1   : > { %v1116_v8 = vsel %vm6995_vm7, %v4320_v45, 0.0  ;;  %v1380_v20 = vadd.f32 %v1379_v25, %v1326_v14  ;;  %vm6997_vm8 = vcmp.eq.s32.totalorder %v3832_v15, %v3715_v54  ;;  %v1746_v21 = vsel %vm1682_vm3, %v4320_v45, 0.0 }
 0x1e2   : > { %v1170_v42 = vadd.f32 %v1169_v32, %v1116_v8  ;;  %v1536_v46 = vsel %vm6997_vm8, %v4320_v45, 0.0  ;;  %vm2314_vm0 = vcmp.eq.s32.totalorder %v3835_v16, %v3729_v62  ;;  %vm2524_vm7 = vcmp.eq.s32.totalorder %v3835_v16, %v3731_v63 }
 0x1e3   : > { %v1590_v33 = vadd.f32 %v1589_v12, %v1536_v46  ;;  %v1800_v11 = vadd.f32 %v1799_v28, %v1746_v21  ;;  %v1956_v32 = vsel %vm1892_vm11, %v4320_v45, 0.0  ;;  %v2166_v25 = vsel %vm2102_vm1, %v4320_v45, 0.0  ;;  %v4892_v46 = vpop.f32.mrb[8].mxu1 }
 0x1e4   : > { %vm2734_vm3 = vcmp.eq.s32.totalorder %v3835_v16, %v3739_v3  ;;  %vm1055_vm8 = vcmp.eq.s32.totalorder %v3835_v16, %v3717_v55  ;;  %v2010_v8 = vadd.f32 %v2009_v7, %v1956_v32  ;;  %v2220_v14 = vadd.f32 %v2219_v37, %v2166_v25  ;;  %6998 = vst [vmem:[#allocation26_spill] sm:$0xff] %v4892_v46  ;;  %v4906_v25 = vpop.f32.mrb[9].mxu1 }
 0x1e5   : > { %v2376_v12 = vsel %vm2312_vm5, %v4320_v45, 0.0  ;;  %v2586_v28 = vsel %vm2522_vm6, %v4320_v45, 0.0  ;;  %vm1265_vm1 = vcmp.eq.s32.totalorder %v3835_v16, %v3719_v56  ;;  %v2796_v21 = vsel %vm2732_vm13, %v4320_v45, 0.0  ;;  %6999 = vst [vmem:[#allocation27_spill] sm:$0xff] %v4906_v25 }
 0x1e6   : > { %v2430_v7 = vadd.f32 %v2429_v29, %v2376_v12  ;;  %v2640_v37 = vadd.f32 %v2639_v43, %v2586_v28  ;;  %v1117_v32 = vsel %vm1053_vm9, %v4334_v44, 0.0  ;;  %vm1685_vm5 = vcmp.eq.s32.totalorder %v3835_v16, %v3733_v0 }
 0x1e7   : > { %v2850_v29 = vadd.f32 %v2849_v39, %v2796_v21  ;;  %v1207_v43 = vadd.f32 %v1206_v53, %v1117_v32  ;;  %vm7000_vm11 = vcmp.eq.s32.totalorder %v3832_v15, %v3719_v56  ;;  %vm7001_vm13 = vcmp.eq.s32.totalorder %v3832_v15, %v3721_v58 }
 0x1e8   : > { %v1327_v45 = vsel %vm7000_vm11, %v4334_v44, 0.0  ;;  %v1537_v12 = vsel %vm7001_vm13, %v4334_v44, 0.0  ;;  %vm2105_vm9 = vcmp.eq.s32.totalorder %v3835_v16, %v3737_v2  ;;  %vm2315_vm6 = vcmp.eq.s32.totalorder %v3835_v16, %v3741_v4 }
 0x1e9   : > { %v1417_v28 = vadd.f32 %v1416_v36, %v1327_v45  ;;  %v1627_v25 = vadd.f32 %v1626_v49, %v1537_v12  ;;  %v1747_v39 = vsel %vm1683_vm15, %v4334_v44, 0.0  ;;  %v1957_v53 = vsel %vm1893_vm2, %v4334_v44, 0.0 }
 0x1ea   : > { %v1837_v21 = vadd.f32 %v1836_v31, %v1747_v39  ;;  %v2047_v32 = vadd.f32 %v2046_v30, %v1957_v53  ;;  %v2167_v36 = vsel %vm2103_vm14, %v4334_v44, 0.0  ;;  %vm7002_vm15 = vcmp.eq.s32.totalorder %v3832_v15, %v3741_v4 }
 0x1eb   : > { %v2377_v49 = vsel %vm7002_vm15, %v4334_v44, 0.0  ;;  %v2257_v45 = vadd.f32 %v2256_v9, %v2167_v36  ;;  %vm7003_vm13 = vcmp.eq.s32.totalorder %v3832_v15, %v3743_v5  ;;  %vm7004_vm14 = vcmp.eq.s32.totalorder %v3832_v15, %v3745_v6  ;;  %v4968_v15 = vpop.f32.mrb[10].mxu1 }
 0x1ec   : > { %v2467_v12 = vadd.f32 %v2466_v22, %v2377_v49  ;;  %v2587_v30 = vsel %vm7003_vm13, %v4334_v44, 0.0  ;;  %v2797_v31 = vsel %vm7004_vm14, %v4334_v44, 0.0  ;;  %vm1686_vm2 = vcmp.eq.s32.totalorder %v3838_v17, %v3723_v59  ;;  %7007 = vst [vmem:[#allocation28_spill] sm:$0xff] %v4968_v15 }
 0x1ed   : > { %v2677_v39 = vadd.f32 %v2676_v18, %v2587_v30  ;;  %v2887_v53 = vadd.f32 %v2886_v27, %v2797_v31  ;;  %vm7005_vm11 = vcmp.eq.s32.totalorder %v3835_v16, %v3711_v51  ;;  %vm7006_vm13 = vcmp.eq.s32.totalorder %v3835_v16, %v3713_v52 }
 0x1ee   : > { %v1118_v9 = vsel %vm7005_vm11, %v4372_v40, 0.0  ;;  %v1328_v22 = vsel %vm7006_vm13, %v4372_v40, 0.0  ;;  %vm1896_vm14 = vcmp.eq.s32.totalorder %v3838_v17, %v3725_v60  ;;  %v1538_v27 = vsel %vm1474_vm10, %v4372_v40, 0.0 }
 0x1ef   : > { %v1171_v44 = vadd.f32 %v1170_v42, %v1118_v9  ;;  %v1381_v18 = vadd.f32 %v1380_v20, %v1328_v22  ;;  %vm7008_vm11 = vcmp.eq.s32.totalorder %v3835_v16, %v3723_v59  ;;  %vm2316_vm13 = vcmp.eq.s32.totalorder %v3838_v17, %v3729_v62 }
 0x1f0   : > { %v1748_v36 = vsel %vm7008_vm11, %v4372_v40, 0.0  ;;  %vm2526_vm15 = vcmp.eq.s32.totalorder %v3838_v17, %v3731_v63  ;;  %v1591_v49 = vadd.f32 %v1590_v33, %v1538_v27  ;;  %v1958_v42 = vsel %vm1894_vm4, %v4372_v40, 0.0 }
 0x1f1   : > { %v1801_v30 = vadd.f32 %v1800_v11, %v1748_v36  ;;  %v2168_v20 = vsel %vm2104_vm12, %v4372_v40, 0.0  ;;  %vm2736_vm10 = vcmp.eq.s32.totalorder %v3838_v17, %v3739_v3  ;;  %vm1057_vm11 = vcmp.eq.s32.totalorder %v3838_v17, %v3717_v55 }
 0x1f2   : > { %v2011_v31 = vadd.f32 %v2010_v8, %v1958_v42  ;;  %v2221_v9 = vadd.f32 %v2220_v14, %v2168_v20  ;;  %v2378_v33 = vsel %vm2314_vm0, %v4372_v40, 0.0  ;;  %v2588_v11 = vsel %vm2524_vm7, %v4372_v40, 0.0 }
 0x1f3   : > { %vm1267_vm4 = vcmp.eq.s32.totalorder %v3838_v17, %v3719_v56  ;;  %vm1477_vm12 = vcmp.eq.s32.totalorder %v3838_v17, %v3721_v58  ;;  %v2431_v22 = vadd.f32 %v2430_v7, %v2378_v33  ;;  %v2641_v27 = vadd.f32 %v2640_v37, %v2588_v11 }
 0x1f4   : > { %v2798_v8 = vsel %vm2734_vm3, %v4372_v40, 0.0  ;;  %v1119_v14 = vsel %vm1055_vm8, %v4386_v48, 0.0  ;;  %vm1897_vm7 = vcmp.eq.s32.totalorder %v3838_v17, %v3735_v1  ;;  %v1329_v7 = vsel %vm1265_vm1, %v4386_v48, 0.0 }
 0x1f5   : > { %v2851_v36 = vadd.f32 %v2850_v29, %v2798_v8  ;;  %v1208_v42 = vadd.f32 %v1207_v43, %v1119_v14  ;;  %vm7009_vm3 = vcmp.eq.s32.totalorder %v3835_v16, %v3721_v58  ;;  %vm2317_vm0 = vcmp.eq.s32.totalorder %v3838_v17, %v3741_v4  ;;  %v5054_v8 = vpop.f32.mrb[11].mxu1 }
 0x1f6   : > { %v1539_v40 = vsel %vm7009_vm3, %v4386_v48, 0.0  ;;  %v1418_v37 = vadd.f32 %v1417_v28, %v1329_v7  ;;  %v1749_v29 = vsel %vm1685_vm5, %v4386_v48, 0.0  ;;  %vm7010_vm1 = vcmp.eq.s32.totalorder %v3835_v16, %v3735_v1  ;;  %7011 = vst [vmem:[#allocation29_spill] sm:$0xff] %v5054_v8 }
 0x1f7   : > { %v1628_v20 = vadd.f32 %v1627_v25, %v1539_v40  ;;  %v1959_v43 = vsel %vm7010_vm1, %v4386_v48, 0.0  ;;  %vm2527_vm3 = vcmp.eq.s32.totalorder %v3838_v17, %v3743_v5  ;;  %v1838_v33 = vadd.f32 %v1837_v21, %v1749_v29 }
 0x1f8   : > { %v2048_v11 = vadd.f32 %v2047_v32, %v1959_v43  ;;  %v2169_v25 = vsel %vm2105_vm9, %v4386_v48, 0.0  ;;  %v2379_v28 = vsel %vm2315_vm6, %v4386_v48, 0.0  ;;  %vm7012_vm8 = vcmp.eq.s32.totalorder %v3835_v16, %v3743_v5 }
 0x1f9   : > { %v2258_v21 = vadd.f32 %v2257_v45, %v2169_v25  ;;  %v2468_v32 = vadd.f32 %v2467_v12, %v2379_v28  ;;  %v2589_v14 = vsel %vm7012_vm8, %v4386_v48, 0.0  ;;  %vm7013_vm9 = vcmp.eq.s32.totalorder %v3835_v16, %v3745_v6 }
 0x1fa   : > { %v2799_v7 = vsel %vm7013_vm9, %v4386_v48, 0.0  ;;  %v2678_v40 = vadd.f32 %v2677_v39, %v2589_v14  ;;  %vm7014_vm5 = vcmp.eq.s32.totalorder %v3838_v17, %v3711_v51  ;;  %vm7015_vm8 = vcmp.eq.s32.totalorder %v3838_v17, %v3713_v52 }
 0x1fb   : > { %v2888_v29 = vadd.f32 %v2887_v53, %v2799_v7  ;;  %v1120_v45 = vsel %vm7014_vm5, %v4424_v57, 0.0  ;;  %v1330_v12 = vsel %vm7015_vm8, %v4424_v57, 0.0  ;;  %vm1898_vm9 = vcmp.eq.s32.totalorder %v3845_v19, %v3725_v60 }
 0x1fc   : > { %vm2108_vm6 = vcmp.eq.s32.totalorder %v3845_v19, %v3727_v61  ;;  %v1172_v16 = vadd.f32 %v1171_v44, %v1120_v45  ;;  %v1382_v48 = vadd.f32 %v1381_v18, %v1330_v12  ;;  %vm7016_vm1 = vcmp.eq.s32.totalorder %v3838_v17, %v3715_v54 }
 0x1fd   : > { %v1540_v39 = vsel %vm7016_vm1, %v4424_v57, 0.0  ;;  %v1750_v53 = vsel %vm1686_vm2, %v4424_v57, 0.0  ;;  %vm2528_vm8 = vcmp.eq.s32.totalorder %v3845_v19, %v3731_v63  ;;  %v1960_v44 = vsel %vm1896_vm14, %v4424_v57, 0.0 }
 0x1fe   : > { %v1592_v43 = vadd.f32 %v1591_v49, %v1540_v39  ;;  %v1802_v25 = vadd.f32 %v1801_v30, %v1750_v53  ;;  %vm7017_vm1 = vcmp.eq.s32.totalorder %v3838_v17, %v3727_v61  ;;  %vm2738_vm2 = vcmp.eq.s32.totalorder %v3845_v19, %v3739_v3 }
 0x1ff   : > { %v2170_v18 = vsel %vm7017_vm1, %v4424_v57, 0.0  ;;  %vm1059_vm5 = vcmp.eq.s32.totalorder %v3845_v19, %v3717_v55  ;;  %v2012_v28 = vadd.f32 %v2011_v31, %v1960_v44  ;;  %v2380_v49 = vsel %vm2316_vm13, %v4424_v57, 0.0 }
 0x200   : > { %v2222_v14 = vadd.f32 %v2221_v9, %v2170_v18  ;;  %v2590_v30 = vsel %vm2526_vm15, %v4424_v57, 0.0  ;;  %vm1269_vm14 = vcmp.eq.s32.totalorder %v3845_v19, %v3719_v56  ;;  %vm1479_vm1 = vcmp.eq.s32.totalorder %v3845_v19, %v3721_v58  ;;  %v7018_v9 = vld [vmem:[#allocation17_spill] sm:$0xff] }
 0x201   : > { %v2432_v7 = vadd.f32 %v2431_v22, %v2380_v49  ;;  %v2642_v45 = vadd.f32 %v2641_v27, %v2590_v30  ;;  %v2800_v31 = vsel %vm2736_vm10, %v4424_v57, 0.0  ;;  %v1121_v12 = vsel %vm1057_vm11, %v7018_v9, 0.0  ;;  %v5140_v27 = vpop.f32.mrb[12].mxu1 }
 0x202   : > { %vm1689_vm15 = vcmp.eq.s32.totalorder %v3845_v19, %v3733_v0  ;;  %v2852_v39 = vadd.f32 %v2851_v36, %v2800_v31  ;;  %v1209_v53 = vadd.f32 %v1208_v42, %v1121_v12  ;;  %v1331_v22 = vsel %vm1267_vm4, %v7018_v9, 0.0  ;;  %7019 = vst [vmem:[#allocation17_spill] sm:$0xff] %v5140_v27  ;;  %v7022_v31 = vld [vmem:[#allocation14_spill] sm:$0xff] }
 0x203   : > { %v1541_v57 = vsel %vm1477_vm12, %v7018_v9, 0.0  ;;  %vm2109_vm10 = vcmp.eq.s32.totalorder %v3845_v19, %v3737_v2  ;;  %v1419_v36 = vadd.f32 %v1418_v37, %v1331_v22  ;;  %vm7020_vm13 = vcmp.eq.s32.totalorder %v3838_v17, %v3733_v0 }
 0x204   : > { %v1629_v42 = vadd.f32 %v1628_v20, %v1541_v57  ;;  %v1751_v44 = vsel %vm7020_vm13, %v7018_v9, 0.0  ;;  %v1961_v18 = vsel %vm1897_vm7, %v7018_v9, 0.0  ;;  %vm2529_vm4 = vcmp.eq.s32.totalorder %v3845_v19, %v3743_v5 }
 0x205   : > { %vm2739_vm12 = vcmp.eq.s32.totalorder %v3845_v19, %v3745_v6  ;;  %v1839_v49 = vadd.f32 %v1838_v33, %v1751_v44  ;;  %v2049_v30 = vadd.f32 %v2048_v11, %v1961_v18  ;;  %vm7021_vm11 = vcmp.eq.s32.totalorder %v3838_v17, %v3737_v2 }
 0x206   : > { %v2171_v37 = vsel %vm7021_vm11, %v7018_v9, 0.0  ;;  %v2381_v20 = vsel %vm2317_vm0, %v7018_v9, 0.0  ;;  %v2591_v33 = vsel %vm2527_vm3, %v7018_v9, 0.0  ;;  %vm7023_vm11 = vcmp.eq.s32.totalorder %v3838_v17, %v3745_v6 }
 0x207   : > { %v2259_v12 = vadd.f32 %v2258_v21, %v2171_v37  ;;  %v2469_v22 = vadd.f32 %v2468_v32, %v2381_v20  ;;  %v2801_v11 = vsel %vm7023_vm11, %v7018_v9, 0.0  ;;  %v2679_v57 = vadd.f32 %v2678_v40, %v2591_v33  ;;  %v5214_v20 = vpop.f32.mrb[13].mxu1 }
 0x208   : > { %v2889_v44 = vadd.f32 %v2888_v29, %v2801_v11  ;;  %vm7024_vm13 = vcmp.eq.s32.totalorder %v3845_v19, %v3711_v51  ;;  %vm7025_vm3 = vcmp.eq.s32.totalorder %v3845_v19, %v3713_v52  ;;  %vm2110_vm0 = vcmp.eq.s32.totalorder %v7022_v31, %v3727_v61  ;;  %7028 = vst [vmem:[#allocation14_spill] sm:$0xff] %v5214_v20 }
 0x209   : > { %v1122_v21 = vsel %vm7024_vm13, %v4476_v47, 0.0  ;;  %v1332_v32 = vsel %vm7025_vm3, %v4476_v47, 0.0  ;;  %vm7026_vm7 = vcmp.eq.s32.totalorder %v3845_v19, %v3715_v54  ;;  %vm7027_vm13 = vcmp.eq.s32.totalorder %v3845_v19, %v3723_v59 }
 0x20a   : > { %v1173_v17 = vadd.f32 %v1172_v16, %v1122_v21  ;;  %v1383_v9 = vadd.f32 %v1382_v48, %v1332_v32  ;;  %v1542_v40 = vsel %vm7026_vm7, %v4476_v47, 0.0  ;;  %v1752_v29 = vsel %vm7027_vm13, %v4476_v47, 0.0 }
 0x20b   : > { %vm2320_vm3 = vcmp.eq.s32.totalorder %v7022_v31, %v3729_v62  ;;  %v1593_v18 = vadd.f32 %v1592_v43, %v1542_v40  ;;  %v1803_v37 = vadd.f32 %v1802_v25, %v1752_v29  ;;  %v1962_v16 = vsel %vm1898_vm9, %v4476_v47, 0.0  ;;  %v7030_v29 = vld [vmem:[#allocation15_spill] sm:$0xff] }
 0x20c   : > { %v2172_v48 = vsel %vm2108_vm6, %v4476_v47, 0.0  ;;  %vm2740_vm7 = vcmp.eq.s32.totalorder %v7022_v31, %v3739_v3  ;;  %v2013_v43 = vadd.f32 %v2012_v28, %v1962_v16  ;;  %vm7029_vm11 = vcmp.eq.s32.totalorder %v3845_v19, %v3729_v62 }
 0x20d   : > { %v2223_v25 = vadd.f32 %v2222_v14, %v2172_v48  ;;  %v2382_v33 = vsel %vm7029_vm11, %v4476_v47, 0.0  ;;  %v2592_v11 = vsel %vm2528_vm8, %v4476_v47, 0.0  ;;  %vm1271_vm6 = vcmp.eq.s32.totalorder %v7022_v31, %v3719_v56 }
 0x20e   : > { %v2433_v28 = vadd.f32 %v2432_v7, %v2382_v33  ;;  %v2643_v14 = vadd.f32 %v2642_v45, %v2592_v11  ;;  %v2802_v21 = vsel %vm2738_vm2, %v4476_v47, 0.0  ;;  %v1123_v32 = vsel %vm1059_vm5, %v4490_v38, 0.0 }
 0x20f   : > { %vm1901_vm8 = vcmp.eq.s32.totalorder %v7022_v31, %v3735_v1  ;;  %vm2111_vm11 = vcmp.eq.s32.totalorder %v7022_v31, %v3737_v2  ;;  %v2853_v7 = vadd.f32 %v2852_v39, %v2802_v21  ;;  %v5246_v45 = vadd.f32 %v1209_v53, %v1123_v32 }
 0x210   : > { %v1333_v47 = vsel %vm1269_vm14, %v4490_v38, 0.0  ;;  %v1543_v40 = vsel %vm1479_vm1, %v4490_v38, 0.0  ;;  %vm2741_vm5 = vcmp.eq.s32.totalorder %v7022_v31, %v3745_v6  ;;  %vm1062_vm2 = vcmp.eq.s32.totalorder %v7030_v29, %v3711_v51 }
 0x211   : > { %vm1272_vm9 = vcmp.eq.s32.totalorder %v7030_v29, %v3713_v52  ;;  %v5264_v39 = vadd.f32 %v1419_v36, %v1333_v47  ;;  %v5266_v53 = vadd.f32 %v1629_v42, %v1543_v40  ;;  %v1753_v16 = vsel %vm1689_vm15, %v4490_v38, 0.0 }
 0x212   : > { %vm7031_vm14 = vcmp.eq.s32.totalorder %v3845_v19, %v3735_v1  ;;  %v5278_v33 = vadd.f32 %v1839_v49, %v1753_v16  ;;  %v2173_v36 = vsel %vm2109_vm10, %v4490_v38, 0.0  ;;  %vm7032_vm15 = vcmp.eq.s32.totalorder %v3845_v19, %v3741_v4  ;;  %v7036_v19 = vld [vmem:[#allocation16_spill] sm:$0xff] }
 0x213   : > { %v1963_v48 = vsel %vm7031_vm14, %v4490_v38, 0.0  ;;  %v2383_v42 = vsel %vm7032_vm15, %v4490_v38, 0.0  ;;  %vm1902_vm14 = vcmp.eq.s32.totalorder %v7030_v29, %v3725_v60  ;;  %vm2112_vm1 = vcmp.eq.s32.totalorder %v7030_v29, %v3727_v61 }
 0x214   : > { %v5280_v11 = vadd.f32 %v2049_v30, %v1963_v48  ;;  %v5296_v49 = vadd.f32 %v2259_v12, %v2173_v36  ;;  %v5298_v30 = vadd.f32 %v2469_v22, %v2383_v42  ;;  %v2593_v21 = vsel %vm2529_vm4, %v4490_v38, 0.0  ;;  %v7033_v12 = vld [vmem:[#allocation18_spill] sm:$0xff] }
 0x215   : > { %v2803_v32 = vsel %vm2739_vm12, %v4490_v38, 0.0  ;;  %v5310_v47 = vadd.f32 %v2679_v57, %v2593_v21  ;;  %vm7034_vm15 = vcmp.eq.s32.totalorder %v7022_v31, %v3711_v51  ;;  %vm7035_vm4 = vcmp.eq.s32.totalorder %v7022_v31, %v3713_v52  ;;  %v5328_v38 = vpop.f32.mrb[14].mxu1 }
 0x216   : > { %v5312_v40 = vadd.f32 %v2889_v44, %v2803_v32  ;;  %v1124_v22 = vsel %vm7034_vm15, %v7033_v12, 0.0  ;;  %v1334_v16 = vsel %vm7035_vm4, %v7033_v12, 0.0  ;;  %vm2742_vm12 = vcmp.eq.s32.totalorder %v7030_v29, %v3739_v3  ;;  %7037 = vst [vmem:[#allocation15_spill] sm:$0xff] %v5328_v38  ;;  %v5432_v8 = vpop.f32.mrb[15].mxu1 }
 0x217   : > { %v1174_v57 = vadd.f32 %v1173_v17, %v1124_v22  ;;  %v1384_v44 = vadd.f32 %v1383_v9, %v1334_v16  ;;  %vm7038_vm15 = vcmp.eq.s32.totalorder %v7022_v31, %v3715_v54  ;;  %vm7039_vm4 = vcmp.eq.s32.totalorder %v7022_v31, %v3723_v59 }
 0x218   : > { %v1544_v48 = vsel %vm7038_vm15, %v7033_v12, 0.0  ;;  %v1754_v36 = vsel %vm7039_vm4, %v7033_v12, 0.0  ;;  %vm7040_vm13 = vcmp.eq.s32.totalorder %v7022_v31, %v3725_v60  ;;  %v2174_v9 = vsel %vm2110_vm0, %v7033_v12, 0.0 }
 0x219   : > { %v1594_v42 = vadd.f32 %v1593_v18, %v1544_v48  ;;  %v1804_v21 = vadd.f32 %v1803_v37, %v1754_v36  ;;  %v1964_v17 = vsel %vm7040_vm13, %v7033_v12, 0.0  ;;  %vm1694_vm15 = vcmp.eq.s32.totalorder %v7036_v19, %v3723_v59 }
 0x21a   : > { %vm1904_vm4 = vcmp.eq.s32.totalorder %v7036_v19, %v3725_v60  ;;  %v2014_v18 = vadd.f32 %v2013_v43, %v1964_v17  ;;  %v2224_v37 = vadd.f32 %v2223_v25, %v2174_v9  ;;  %v2384_v32 = vsel %vm2320_vm3, %v7033_v12, 0.0  ;;  %v7042_v25 = vld [vmem:[#allocation19_spill] sm:$0xff] }
 0x21b   : > { %vm7041_vm0 = vcmp.eq.s32.totalorder %v7022_v31, %v3731_v63  ;;  %vm2324_vm13 = vcmp.eq.s32.totalorder %v7036_v19, %v3729_v62  ;;  %v2434_v16 = vadd.f32 %v2433_v28, %v2384_v32  ;;  %v2804_v43 = vsel %vm2740_vm7, %v7033_v12, 0.0 }
 0x21c   : > { %v2594_v22 = vsel %vm7041_vm0, %v7033_v12, 0.0  ;;  %vm7043_vm10 = vcmp.eq.s32.totalorder %v7022_v31, %v3717_v55  ;;  %vm2534_vm3 = vcmp.eq.s32.totalorder %v7036_v19, %v3731_v63  ;;  %v2854_v17 = vadd.f32 %v2853_v7, %v2804_v43 }
 0x21d   : > { %v2644_v48 = vadd.f32 %v2643_v14, %v2594_v22  ;;  %v1125_v36 = vsel %vm7043_vm10, %v7042_v25, 0.0  ;;  %v1335_v28 = vsel %vm1271_vm6, %v7042_v25, 0.0  ;;  %vm7044_vm0 = vcmp.eq.s32.totalorder %v7022_v31, %v3721_v58 }
 0x21e   : > { %v1545_v14 = vsel %vm7044_vm0, %v7042_v25, 0.0  ;;  %vm7045_vm7 = vcmp.eq.s32.totalorder %v7022_v31, %v3733_v0  ;;  %vm1063_vm10 = vcmp.eq.s32.totalorder %v7030_v29, %v3717_v55  ;;  %v5394_v7 = vsel %vm1901_vm8, %v7042_v25, 0.0 }
 0x21f   : > { %v5386_v12 = vsel %vm7045_vm7, %v7042_v25, 0.0  ;;  %v5400_v9 = vsel %vm2111_vm11, %v7042_v25, 0.0  ;;  %vm7046_vm6 = vcmp.eq.s32.totalorder %v7022_v31, %v3741_v4  ;;  %vm7047_vm0 = vcmp.eq.s32.totalorder %v7022_v31, %v3743_v5 }
 0x220   : > { %v5406_v32 = vsel %vm7046_vm6, %v7042_v25, 0.0  ;;  %v5412_v22 = vsel %vm7047_vm0, %v7042_v25, 0.0  ;;  %v5418_v43 = vsel %vm2741_vm5, %v7042_v25, 0.0  ;;  %v1126_v38 = vsel %vm1062_vm2, %v4580_v34, 0.0 }
 0x221   : > { %v1336_v20 = vsel %vm1272_vm9, %v4580_v34, 0.0  ;;  %vm7048_vm8 = vcmp.eq.s32.totalorder %v7030_v29, %v3715_v54  ;;  %v1175_v31 = vadd.f32 %v1174_v57, %v1126_v38  ;;  %vm7049_vm11 = vcmp.eq.s32.totalorder %v7030_v29, %v3723_v59 }
 0x222   : > { %v1546_v27 = vsel %vm7048_vm8, %v4580_v34, 0.0  ;;  %v1385_v25 = vadd.f32 %v1384_v44, %v1336_v20  ;;  %v1756_v46 = vsel %vm7049_vm11, %v4580_v34, 0.0  ;;  %v1966_v26 = vsel %vm1902_vm14, %v4580_v34, 0.0 }
 0x223   : > { %v1595_v15 = vadd.f32 %v1594_v42, %v1546_v27  ;;  %v1805_v50 = vadd.f32 %v1804_v21, %v1756_v46  ;;  %v2176_v23 = vsel %vm2112_vm1, %v4580_v34, 0.0  ;;  %vm7050_vm9 = vcmp.eq.s32.totalorder %v7030_v29, %v3729_v62 }
 0x224   : > { %v2386_v27 = vsel %vm7050_vm9, %v4580_v34, 0.0  ;;  %v2015_v20 = vadd.f32 %v2014_v18, %v1966_v26  ;;  %v2225_v38 = vadd.f32 %v2224_v37, %v2176_v23  ;;  %vm7051_vm5 = vcmp.eq.s32.totalorder %v7030_v29, %v3731_v63 }
 0x225   : > { %v2435_v57 = vadd.f32 %v2434_v16, %v2386_v27  ;;  %v2596_v46 = vsel %vm7051_vm5, %v4580_v34, 0.0  ;;  %v2806_v42 = vsel %vm2742_vm12, %v4580_v34, 0.0  ;;  %vm7052_vm2 = vcmp.eq.s32.totalorder %v7036_v19, %v3711_v51 }
 0x226   : > { %v2645_v44 = vadd.f32 %v2644_v48, %v2596_v46  ;;  %v1128_v21 = vsel %vm7052_vm2, %v4632_v35, 0.0  ;;  %vm7053_vm1 = vcmp.eq.s32.totalorder %v7036_v19, %v3713_v52  ;;  %v2855_v26 = vadd.f32 %v2854_v17, %v2806_v42  ;;  %v5498_v42 = vpop.f32.mrb[16].mxu1 }
 0x227   : > { %v1338_v23 = vsel %vm7053_vm1, %v4632_v35, 0.0  ;;  %v5466_v18 = vadd.f32 %v1175_v31, %v1128_v21  ;;  %vm7054_vm14 = vcmp.eq.s32.totalorder %v7036_v19, %v3715_v54  ;;  %v1758_v48 = vsel %vm1694_vm15, %v4632_v35, 0.0 }
 0x228   : > { %v5468_v37 = vadd.f32 %v1385_v25, %v1338_v23  ;;  %v1548_v34 = vsel %vm7054_vm14, %v4632_v35, 0.0  ;;  %v1968_v17 = vsel %vm1904_vm4, %v4632_v35, 0.0  ;;  %vm7055_vm12 = vcmp.eq.s32.totalorder %v7036_v19, %v3727_v61 }
 0x229   : > { %v5474_v16 = vadd.f32 %v1595_v15, %v1548_v34  ;;  %v2178_v31 = vsel %vm7055_vm12, %v4632_v35, 0.0  ;;  %v5488_v25 = vadd.f32 %v1805_v50, %v1758_v48  ;;  %v5490_v27 = vadd.f32 %v2015_v20, %v1968_v17 }
 0x22a   : > { %v5492_v15 = vadd.f32 %v2225_v38, %v2178_v31  ;;  %v2388_v46 = vsel %vm2324_vm13, %v4632_v35, 0.0  ;;  %v2598_v23 = vsel %vm2534_vm3, %v4632_v35, 0.0  ;;  %vm2744_vm15 = vcmp.eq.s32.totalorder %v7036_v19, %v3739_v3  ;;  %v7056_v38 = vld [vmem:[#allocation20_spill] sm:$0xff] }
 0x22b   : > { %v5500_v21 = vadd.f32 %v2435_v57, %v2388_v46  ;;  %vm1065_vm4 = vcmp.eq.s32.totalorder %v7036_v19, %v3717_v55  ;;  %v5510_v50 = vadd.f32 %v2645_v44, %v2598_v23  ;;  %v2808_v20 = vsel %vm2744_vm15, %v4632_v35, 0.0 }
 0x22c   : > { %v1127_v57 = vsel %vm1063_vm10, %v7056_v38, 0.0  ;;  %v1129_v34 = vsel %vm1065_vm4, %v4646_v24, 0.0  ;;  %v5518_v48 = vadd.f32 %v2855_v26, %v2808_v20  ;;  %v1211_v17 = vadd.f32 %v5246_v45, %v1125_v36 }
 0x22d   : > { %vm1273_vm13 = vcmp.eq.s32.totalorder %v7030_v29, %v3719_v56  ;;  %vm1275_vm3 = vcmp.eq.s32.totalorder %v7036_v19, %v3719_v56  ;;  %v1421_v31 = vadd.f32 %v5264_v39, %v1335_v28  ;;  %vm1483_vm7 = vcmp.eq.s32.totalorder %v7030_v29, %v3721_v58 }
 0x22e   : > { %v1337_v44 = vsel %vm1273_vm13, %v7056_v38, 0.0  ;;  %v1339_v35 = vsel %vm1275_vm3, %v4646_v24, 0.0  ;;  %v1212_v46 = vadd.f32 %v1211_v17, %v1127_v57  ;;  %vm1485_vm10 = vcmp.eq.s32.totalorder %v7036_v19, %v3721_v58 }
 0x22f   : > { %v1547_v45 = vsel %vm1483_vm7, %v7056_v38, 0.0  ;;  %v1631_v36 = vadd.f32 %v5266_v53, %v1545_v14  ;;  %v1422_v26 = vadd.f32 %v1421_v31, %v1337_v44  ;;  %v1549_v23 = vsel %vm1485_vm10, %v4646_v24, 0.0  ;;  %v5551_v14 = vpop.f32.mrb[17].mxu1 }
 0x230   : > { %vm1693_vm6 = vcmp.eq.s32.totalorder %v7030_v29, %v3733_v0  ;;  %vm1695_vm0 = vcmp.eq.s32.totalorder %v7036_v19, %v3733_v0  ;;  %v5539_v39 = vadd.f32 %v1212_v46, %v1129_v34  ;;  %v1841_v53 = vadd.f32 %v5278_v33, %v5386_v12 }
 0x231   : > { %v1632_v28 = vadd.f32 %v1631_v36, %v1547_v45  ;;  %v1757_v20 = vsel %vm1693_vm6, %v7056_v38, 0.0  ;;  %v1759_v57 = vsel %vm1695_vm0, %v4646_v24, 0.0  ;;  %v5543_v17 = vadd.f32 %v1422_v26, %v1339_v35 }
 0x232   : > { %vm1903_vm8 = vcmp.eq.s32.totalorder %v7030_v29, %v3735_v1  ;;  %vm1905_vm11 = vcmp.eq.s32.totalorder %v7036_v19, %v3735_v1  ;;  %v2051_v35 = vadd.f32 %v5280_v11, %v5394_v7  ;;  %v1842_v46 = vadd.f32 %v1841_v53, %v1757_v20 }
 0x233   : > { %v5553_v34 = vadd.f32 %v1632_v28, %v1549_v23  ;;  %v1967_v44 = vsel %vm1903_vm8, %v7056_v38, 0.0  ;;  %v1969_v31 = vsel %vm1905_vm11, %v4646_v24, 0.0  ;;  %vm2113_vm9 = vcmp.eq.s32.totalorder %v7030_v29, %v3737_v2 }
 0x234   : > { %vm2115_vm5 = vcmp.eq.s32.totalorder %v7036_v19, %v3737_v2  ;;  %v2261_v33 = vadd.f32 %v5296_v49, %v5400_v9  ;;  %v2052_v12 = vadd.f32 %v2051_v35, %v1967_v44  ;;  %v2177_v45 = vsel %vm2113_vm9, %v7056_v38, 0.0 }
 0x235   : > { %v2179_v36 = vsel %vm2115_vm5, %v4646_v24, 0.0  ;;  %vm2323_vm2 = vcmp.eq.s32.totalorder %v7030_v29, %v3741_v4  ;;  %v5569_v26 = vadd.f32 %v1842_v46, %v1759_v57  ;;  %vm2325_vm1 = vcmp.eq.s32.totalorder %v7036_v19, %v3741_v4 }
 0x236   : > { %v2262_v11 = vadd.f32 %v2261_v33, %v2177_v45  ;;  %v2387_v7 = vsel %vm2323_vm2, %v7056_v38, 0.0  ;;  %v5574_v23 = vadd.f32 %v2052_v12, %v1969_v31  ;;  %v2389_v49 = vsel %vm2325_vm1, %v4646_v24, 0.0 }
 0x237   : > { %v2471_v9 = vadd.f32 %v5298_v30, %v5406_v32  ;;  %vm2533_vm14 = vcmp.eq.s32.totalorder %v7030_v29, %v3743_v5  ;;  %vm2535_vm12 = vcmp.eq.s32.totalorder %v7036_v19, %v3743_v5  ;;  %v2681_v57 = vadd.f32 %v5310_v47, %v5412_v22  ;;  %v5593_v30 = vpop.f32.mrb[18].mxu1  ;;  %v7057_v22 = vld [vmem:[#allocation10_spill] sm:$0xff] }
 0x238   : > { %v5581_v28 = vadd.f32 %v2262_v11, %v2179_v36  ;;  %v2597_v20 = vsel %vm2533_vm14, %v7056_v38, 0.0  ;;  %v2599_v44 = vsel %vm2535_vm12, %v4646_v24, 0.0  ;;  %vm2743_vm15 = vcmp.eq.s32.totalorder %v7030_v29, %v3745_v6 }
 0x239   : > { %v2472_v53 = vadd.f32 %v2471_v9, %v2387_v7  ;;  %vm2745_vm4 = vcmp.eq.s32.totalorder %v7036_v19, %v3745_v6  ;;  %v2682_v32 = vadd.f32 %v2681_v57, %v2597_v20  ;;  %v2807_v31 = vsel %vm2743_vm15, %v7056_v38, 0.0  ;;  %v5625_v7 = vpop.f32.mrb[19].mxu1 }
 0x23a   : > { %v2809_v35 = vsel %vm2745_vm4, %v4646_v24, 0.0  ;;  %v2891_v46 = vadd.f32 %v5312_v40, %v5418_v43  ;;  %v5600_v33 = vadd.s32 128, %v7057_v22  ;;  %v5603_v12 = vadd.s32 136, %v7057_v22 }
 0x23b   : > { %v2473_v47 = vadd.f32 %v2472_v53, %v2389_v49  ;;  %v5606_v29 = vadd.s32 144, %v7057_v22  ;;  %v2683_v19 = vadd.f32 %v2682_v32, %v2599_v44  ;;  %v5609_v36 = vadd.s32 152, %v7057_v22 }
 0x23c   : > { %v2892_v45 = vadd.f32 %v2891_v46, %v2807_v31  ;;  %v5612_v24 = vadd.s32 160, %v7057_v22  ;;  %vm1066_vm13 = vcmp.eq.s32.totalorder %v5600_v33, %v3711_v51  ;;  %vm1276_vm3 = vcmp.eq.s32.totalorder %v5600_v33, %v3713_v52 }
 0x23d   : > { %vm1486_vm7 = vcmp.eq.s32.totalorder %v5600_v33, %v3715_v54  ;;  %vm1696_vm10 = vcmp.eq.s32.totalorder %v5600_v33, %v3723_v59  ;;  %v1130_v43 = vsel %vm1066_vm13, %v4684_v10, 0.0  ;;  %v1340_v38 = vsel %vm1276_vm3, %v4684_v10, 0.0 }
 0x23e   : > { %v2893_v40 = vadd.f32 %v2892_v45, %v2809_v35  ;;  %v1550_v11 = vsel %vm1486_vm7, %v4684_v10, 0.0  ;;  %v1177_v49 = vadd.f32 %v5466_v18, %v1130_v43  ;;  %v1387_v9 = vadd.f32 %v5468_v37, %v1340_v38 }
 0x23f   : > { %v1597_v20 = vadd.f32 %v5474_v16, %v1550_v11  ;;  %v1760_v57 = vsel %vm1696_vm10, %v4684_v10, 0.0  ;;  %vm1906_vm6 = vcmp.eq.s32.totalorder %v5600_v33, %v3725_v60  ;;  %vm2116_vm0 = vcmp.eq.s32.totalorder %v5600_v33, %v3727_v61  ;;  %v5663_v11 = vpop.f32.mrb[20].mxu1 }
 0x240   : > { %v1807_v53 = vadd.f32 %v5488_v25, %v1760_v57  ;;  %vm2326_vm8 = vcmp.eq.s32.totalorder %v5600_v33, %v3729_v62  ;;  %v1970_v44 = vsel %vm1906_vm6, %v4684_v10, 0.0  ;;  %v2180_v18 = vsel %vm2116_vm0, %v4684_v10, 0.0 }
 0x241   : > { %v2390_v37 = vsel %vm2326_vm8, %v4684_v10, 0.0  ;;  %vm2536_vm11 = vcmp.eq.s32.totalorder %v5600_v33, %v3731_v63  ;;  %v2017_v16 = vadd.f32 %v5490_v27, %v1970_v44  ;;  %v2227_v25 = vadd.f32 %v5492_v15, %v2180_v18  ;;  %v7058_v27 = vld [vmem:[#allocation21_spill] sm:$0xff] }
 0x242   : > { %v2437_v32 = vadd.f32 %v5500_v21, %v2390_v37  ;;  %v2600_v31 = vsel %vm2536_vm11, %v4684_v10, 0.0  ;;  %vm2746_vm9 = vcmp.eq.s32.totalorder %v5600_v33, %v3739_v3  ;;  %vm1067_vm5 = vcmp.eq.s32.totalorder %v5600_v33, %v3717_v55 }
 0x243   : > { %v2647_v35 = vadd.f32 %v5510_v50, %v2600_v31  ;;  %vm1277_vm2 = vcmp.eq.s32.totalorder %v5600_v33, %v3719_v56  ;;  %v2810_v46 = vsel %vm2746_vm9, %v4684_v10, 0.0  ;;  %v1131_v45 = vsel %vm1067_vm5, %v7058_v27, 0.0 }
 0x244   : > { %v1341_v15 = vsel %vm1277_vm2, %v7058_v27, 0.0  ;;  %vm1487_vm1 = vcmp.eq.s32.totalorder %v5600_v33, %v3721_v58  ;;  %v2857_v21 = vadd.f32 %v5518_v48, %v2810_v46  ;;  %v1214_v50 = vadd.f32 %v5539_v39, %v1131_v45 }
 0x245   : > { %v1424_v43 = vadd.f32 %v5543_v17, %v1341_v15  ;;  %v1551_v38 = vsel %vm1487_vm1, %v7058_v27, 0.0  ;;  %vm1697_vm14 = vcmp.eq.s32.totalorder %v5600_v33, %v3733_v0  ;;  %vm1907_vm12 = vcmp.eq.s32.totalorder %v5600_v33, %v3735_v1 }
 0x246   : > { %v1634_v57 = vadd.f32 %v5553_v34, %v1551_v38  ;;  %vm2117_vm15 = vcmp.eq.s32.totalorder %v5600_v33, %v3737_v2  ;;  %v1761_v10 = vsel %vm1697_vm14, %v7058_v27, 0.0  ;;  %v1971_v48 = vsel %vm1907_vm12, %v7058_v27, 0.0 }
 0x247   : > { %v2181_v39 = vsel %vm2117_vm15, %v7058_v27, 0.0  ;;  %vm2327_vm4 = vcmp.eq.s32.totalorder %v5600_v33, %v3741_v4  ;;  %v1844_v17 = vadd.f32 %v5569_v26, %v1761_v10  ;;  %v2054_v34 = vadd.f32 %v5574_v23, %v1971_v48 }
 0x248   : > { %v2264_v44 = vadd.f32 %v5581_v28, %v2181_v39  ;;  %v2391_v18 = vsel %vm2327_vm4, %v7058_v27, 0.0  ;;  %vm2537_vm13 = vcmp.eq.s32.totalorder %v5600_v33, %v3743_v5  ;;  %vm2747_vm3 = vcmp.eq.s32.totalorder %v5600_v33, %v3745_v6 }
 0x249   : > { %v2474_v37 = vadd.f32 %v2473_v47, %v2391_v18  ;;  %vm1068_vm7 = vcmp.eq.s32.totalorder %v5603_v12, %v3711_v51  ;;  %v2601_v31 = vsel %vm2537_vm13, %v7058_v27, 0.0  ;;  %v2811_v26 = vsel %vm2747_vm3, %v7058_v27, 0.0 }
 0x24a   : > { %v1132_v23 = vsel %vm1068_vm7, %v4736_v13, 0.0  ;;  %vm1278_vm10 = vcmp.eq.s32.totalorder %v5603_v12, %v3713_v52  ;;  %v2684_v28 = vadd.f32 %v2683_v19, %v2601_v31  ;;  %v2894_v47 = vadd.f32 %v2893_v40, %v2811_v26  ;;  %v5704_v40 = vpop.f32.mrb[21].mxu1 }
 0x24b   : > { %v1178_v46 = vadd.f32 %v1177_v49, %v1132_v23  ;;  %v1342_v45 = vsel %vm1278_vm10, %v4736_v13, 0.0  ;;  %vm1488_vm6 = vcmp.eq.s32.totalorder %v5603_v12, %v3715_v54  ;;  %vm1698_vm0 = vcmp.eq.s32.totalorder %v5603_v12, %v3723_v59 }
 0x24c   : > { %v1388_v15 = vadd.f32 %v1387_v9, %v1342_v45  ;;  %vm1908_vm8 = vcmp.eq.s32.totalorder %v5603_v12, %v3725_v60  ;;  %v1552_v33 = vsel %vm1488_vm6, %v4736_v13, 0.0  ;;  %v1762_v27 = vsel %vm1698_vm0, %v4736_v13, 0.0 }
 0x24d   : > { %v1972_v19 = vsel %vm1908_vm8, %v4736_v13, 0.0  ;;  %vm2118_vm11 = vcmp.eq.s32.totalorder %v5603_v12, %v3727_v61  ;;  %v1598_v49 = vadd.f32 %v1597_v20, %v1552_v33  ;;  %v1808_v9 = vadd.f32 %v1807_v53, %v1762_v27  ;;  %v5731_v33 = vpop.f32.mrb[22].mxu1 }
 0x24e   : > { %v2018_v38 = vadd.f32 %v2017_v16, %v1972_v19  ;;  %v2182_v10 = vsel %vm2118_vm11, %v4736_v13, 0.0  ;;  %vm2328_vm9 = vcmp.eq.s32.totalorder %v5603_v12, %v3729_v62  ;;  %vm2538_vm5 = vcmp.eq.s32.totalorder %v5603_v12, %v3731_v63 }
 0x24f   : > { %v2228_v48 = vadd.f32 %v2227_v25, %v2182_v10  ;;  %vm2748_vm2 = vcmp.eq.s32.totalorder %v5603_v12, %v3739_v3  ;;  %v2392_v39 = vsel %vm2328_vm9, %v4736_v13, 0.0  ;;  %v2602_v18 = vsel %vm2538_vm5, %v4736_v13, 0.0 }
 0x250   : > { %v2812_v20 = vsel %vm2748_vm2, %v4736_v13, 0.0  ;;  %vm1069_vm1 = vcmp.eq.s32.totalorder %v5603_v12, %v3717_v55  ;;  %v2438_v53 = vadd.f32 %v2437_v32, %v2392_v39  ;;  %v2648_v16 = vadd.f32 %v2647_v35, %v2602_v18 }
 0x251   : > { %v2858_v25 = vadd.f32 %v2857_v21, %v2812_v20  ;;  %v1133_v31 = vsel %vm1069_vm1, %v4750_v41, 0.0  ;;  %vm1279_vm14 = vcmp.eq.s32.totalorder %v5603_v12, %v3719_v56  ;;  %vm1489_vm12 = vcmp.eq.s32.totalorder %v5603_v12, %v3721_v58  ;;  %v7059_v20 = vld [vmem:[#allocation22_spill] sm:$0xff] }
 0x252   : > { %v1215_v26 = vadd.f32 %v1214_v50, %v1133_v31  ;;  %vm1699_vm15 = vcmp.eq.s32.totalorder %v5603_v12, %v3733_v0  ;;  %v1343_v13 = vsel %vm1279_vm14, %v4750_v41, 0.0  ;;  %v1553_v23 = vsel %vm1489_vm12, %v4750_v41, 0.0 }
 0x253   : > { %v1763_v32 = vsel %vm1699_vm15, %v4750_v41, 0.0  ;;  %vm1909_vm4 = vcmp.eq.s32.totalorder %v5603_v12, %v3735_v1  ;;  %v1425_v35 = vadd.f32 %v1424_v43, %v1343_v13  ;;  %v1635_v21 = vadd.f32 %v1634_v57, %v1553_v23 }
 0x254   : > { %v1845_v50 = vadd.f32 %v1844_v17, %v1763_v32  ;;  %v1973_v45 = vsel %vm1909_vm4, %v4750_v41, 0.0  ;;  %vm2119_vm13 = vcmp.eq.s32.totalorder %v5603_v12, %v3737_v2  ;;  %vm2329_vm3 = vcmp.eq.s32.totalorder %v5603_v12, %v3741_v4 }
 0x255   : > { %v2055_v27 = vadd.f32 %v2054_v34, %v1973_v45  ;;  %vm2539_vm7 = vcmp.eq.s32.totalorder %v5603_v12, %v3743_v5  ;;  %v2183_v19 = vsel %vm2119_vm13, %v4750_v41, 0.0  ;;  %v2393_v43 = vsel %vm2329_vm3, %v4750_v41, 0.0 }
 0x256   : > { %v2603_v57 = vsel %vm2539_vm7, %v4750_v41, 0.0  ;;  %vm2749_vm10 = vcmp.eq.s32.totalorder %v5603_v12, %v3745_v6  ;;  %v2265_v17 = vadd.f32 %v2264_v44, %v2183_v19  ;;  %v2475_v34 = vadd.f32 %v2474_v37, %v2393_v43 }
 0x257   : > { %v2685_v10 = vadd.f32 %v2684_v28, %v2603_v57  ;;  %v2813_v39 = vsel %vm2749_vm10, %v4750_v41, 0.0  ;;  %vm1070_vm6 = vcmp.eq.s32.totalorder %v5606_v29, %v3711_v51  ;;  %vm1280_vm0 = vcmp.eq.s32.totalorder %v5606_v29, %v3713_v52  ;;  %v5756_v41 = vpop.f32.mrb[23].mxu1 }
 0x258   : > { %v2895_v18 = vadd.f32 %v2894_v47, %v2813_v39  ;;  %vm1490_vm8 = vcmp.eq.s32.totalorder %v5606_v29, %v3715_v54  ;;  %v1134_v31 = vsel %vm1070_vm6, %v7059_v20, 0.0  ;;  %v1344_v13 = vsel %vm1280_vm0, %v7059_v20, 0.0  ;;  %v7060_v39 = vld [vmem:[#allocation23_spill] sm:$0xff] }
 0x259   : > { %v1554_v12 = vsel %vm1490_vm8, %v7059_v20, 0.0  ;;  %vm1700_vm11 = vcmp.eq.s32.totalorder %v5606_v29, %v3723_v59  ;;  %v1179_v44 = vadd.f32 %v1178_v46, %v1134_v31  ;;  %v1389_v37 = vadd.f32 %v1388_v15, %v1344_v13 }
 0x25a   : > { %v1599_v28 = vadd.f32 %v1598_v49, %v1554_v12  ;;  %v1764_v47 = vsel %vm1700_vm11, %v7059_v20, 0.0  ;;  %vm1910_vm9 = vcmp.eq.s32.totalorder %v5606_v29, %v3725_v60  ;;  %vm2120_vm5 = vcmp.eq.s32.totalorder %v5606_v29, %v3727_v61  ;;  %v5783_v12 = vpop.f32.mrb[24].mxu1 }
 0x25b   : > { %v1809_v23 = vadd.f32 %v1808_v9, %v1764_v47  ;;  %vm2330_vm2 = vcmp.eq.s32.totalorder %v5606_v29, %v3729_v62  ;;  %v1974_v32 = vsel %vm1910_vm9, %v7059_v20, 0.0  ;;  %v2184_v45 = vsel %vm2120_vm5, %v7059_v20, 0.0 }
 0x25c   : > { %v2394_v46 = vsel %vm2330_vm2, %v7059_v20, 0.0  ;;  %vm2540_vm1 = vcmp.eq.s32.totalorder %v5606_v29, %v3731_v63  ;;  %v2019_v15 = vadd.f32 %v2018_v38, %v1974_v32  ;;  %v2229_v49 = vadd.f32 %v2228_v48, %v2184_v45 }
 0x25d   : > { %v2439_v9 = vadd.f32 %v2438_v53, %v2394_v46  ;;  %v2604_v19 = vsel %vm2540_vm1, %v7059_v20, 0.0  ;;  %vm2750_vm14 = vcmp.eq.s32.totalorder %v5606_v29, %v3739_v3  ;;  %vm1071_vm12 = vcmp.eq.s32.totalorder %v5606_v29, %v3717_v55 }
 0x25e   : > { %v2649_v43 = vadd.f32 %v2648_v16, %v2604_v19  ;;  %vm1281_vm15 = vcmp.eq.s32.totalorder %v5606_v29, %v3719_v56  ;;  %v2814_v57 = vsel %vm2750_vm14, %v7059_v20, 0.0  ;;  %v1135_v31 = vsel %vm1071_vm12, %v7060_v39, 0.0 }
 0x25f   : > { %v1345_v38 = vsel %vm1281_vm15, %v7060_v39, 0.0  ;;  %vm1491_vm4 = vcmp.eq.s32.totalorder %v5606_v29, %v3721_v58  ;;  %v2859_v48 = vadd.f32 %v2858_v25, %v2814_v57  ;;  %v1216_v53 = vadd.f32 %v1215_v26, %v1135_v31  ;;  %v7061_v31 = vld [vmem:[#allocation24_spill] sm:$0xff] }
 0x260   : > { %v1426_v16 = vadd.f32 %v1425_v35, %v1345_v38  ;;  %v1555_v13 = vsel %vm1491_vm4, %v7060_v39, 0.0  ;;  %vm1701_vm13 = vcmp.eq.s32.totalorder %v5606_v29, %v3733_v0  ;;  %vm1911_vm3 = vcmp.eq.s32.totalorder %v5606_v29, %v3735_v1 }
 0x261   : > { %v1636_v47 = vadd.f32 %v1635_v21, %v1555_v13  ;;  %vm2121_vm7 = vcmp.eq.s32.totalorder %v5606_v29, %v3737_v2  ;;  %v1765_v20 = vsel %vm1701_vm13, %v7060_v39, 0.0  ;;  %v1975_v25 = vsel %vm1911_vm3, %v7060_v39, 0.0 }
 0x262   : > { %v2185_v26 = vsel %vm2121_vm7, %v7060_v39, 0.0  ;;  %vm2331_vm10 = vcmp.eq.s32.totalorder %v5606_v29, %v3741_v4  ;;  %v1846_v35 = vadd.f32 %v1845_v50, %v1765_v20  ;;  %v2056_v21 = vadd.f32 %v2055_v27, %v1975_v25 }
 0x263   : > { %v2266_v32 = vadd.f32 %v2265_v17, %v2185_v26  ;;  %v2395_v45 = vsel %vm2331_vm10, %v7060_v39, 0.0  ;;  %vm2541_vm6 = vcmp.eq.s32.totalorder %v5606_v29, %v3743_v5  ;;  %vm2751_vm0 = vcmp.eq.s32.totalorder %v5606_v29, %v3745_v6  ;;  %v5827_v26 = vpop.f32.mrb[25].mxu1 }
 0x264   : > { %v2476_v46 = vadd.f32 %v2475_v34, %v2395_v45  ;;  %vm1072_vm8 = vcmp.eq.s32.totalorder %v5609_v36, %v3711_v51  ;;  %v2605_v19 = vsel %vm2541_vm6, %v7060_v39, 0.0  ;;  %v2815_v57 = vsel %vm2751_vm0, %v7060_v39, 0.0 }
 0x265   : > { %v1136_v50 = vsel %vm1072_vm8, %v7061_v31, 0.0  ;;  %vm1282_vm11 = vcmp.eq.s32.totalorder %v5609_v36, %v3713_v52  ;;  %v2686_v27 = vadd.f32 %v2685_v10, %v2605_v19  ;;  %v2896_v17 = vadd.f32 %v2895_v18, %v2815_v57  ;;  %v7062_v57 = vld [vmem:[#allocation25_spill] sm:$0xff] }
 0x266   : > { %v1180_v34 = vadd.f32 %v1179_v44, %v1136_v50  ;;  %v1346_v38 = vsel %vm1282_vm11, %v7061_v31, 0.0  ;;  %vm1492_vm9 = vcmp.eq.s32.totalorder %v5609_v36, %v3715_v54  ;;  %vm1702_vm5 = vcmp.eq.s32.totalorder %v5609_v36, %v3723_v59 }
 0x267   : > { %v1390_v13 = vadd.f32 %v1389_v37, %v1346_v38  ;;  %vm1912_vm2 = vcmp.eq.s32.totalorder %v5609_v36, %v3725_v60  ;;  %v1556_v29 = vsel %vm1492_vm9, %v7061_v31, 0.0  ;;  %v1766_v39 = vsel %vm1702_vm5, %v7061_v31, 0.0 }
 0x268   : > { %v1976_v10 = vsel %vm1912_vm2, %v7061_v31, 0.0  ;;  %vm2122_vm1 = vcmp.eq.s32.totalorder %v5609_v36, %v3727_v61  ;;  %v1600_v18 = vadd.f32 %v1599_v28, %v1556_v29  ;;  %v1810_v44 = vadd.f32 %v1809_v23, %v1766_v39 }
 0x269   : > { %v2020_v37 = vadd.f32 %v2019_v15, %v1976_v10  ;;  %v2186_v20 = vsel %vm2122_vm1, %v7061_v31, 0.0  ;;  %vm2332_vm14 = vcmp.eq.s32.totalorder %v5609_v36, %v3729_v62  ;;  %vm2542_vm12 = vcmp.eq.s32.totalorder %v5609_v36, %v3731_v63 }
 0x26a   : > { %v2230_v25 = vadd.f32 %v2229_v49, %v2186_v20  ;;  %vm2752_vm15 = vcmp.eq.s32.totalorder %v5609_v36, %v3739_v3  ;;  %v2396_v45 = vsel %vm2332_vm14, %v7061_v31, 0.0  ;;  %v2606_v28 = vsel %vm2542_vm12, %v7061_v31, 0.0 }
 0x26b   : > { %v2816_v23 = vsel %vm2752_vm15, %v7061_v31, 0.0  ;;  %vm1073_vm4 = vcmp.eq.s32.totalorder %v5609_v36, %v3717_v55  ;;  %v2440_v15 = vadd.f32 %v2439_v9, %v2396_v45  ;;  %v2650_v49 = vadd.f32 %v2649_v43, %v2606_v28 }
 0x26c   : > { %v2860_v19 = vadd.f32 %v2859_v48, %v2816_v23  ;;  %v1137_v50 = vsel %vm1073_vm4, %v7062_v57, 0.0  ;;  %vm1283_vm13 = vcmp.eq.s32.totalorder %v5609_v36, %v3719_v56  ;;  %vm1493_vm3 = vcmp.eq.s32.totalorder %v5609_v36, %v3721_v58 }
 0x26d   : > { %v1217_v38 = vadd.f32 %v1216_v53, %v1137_v50  ;;  %vm1703_vm7 = vcmp.eq.s32.totalorder %v5609_v36, %v3733_v0  ;;  %v1347_v31 = vsel %vm1283_vm13, %v7062_v57, 0.0  ;;  %v1557_v29 = vsel %vm1493_vm3, %v7062_v57, 0.0 }
 0x26e   : > { %v1767_v9 = vsel %vm1703_vm7, %v7062_v57, 0.0  ;;  %vm1913_vm10 = vcmp.eq.s32.totalorder %v5609_v36, %v3735_v1  ;;  %v1427_v43 = vadd.f32 %v1426_v16, %v1347_v31  ;;  %v1637_v48 = vadd.f32 %v1636_v47, %v1557_v29  ;;  %v5858_v47 = vpop.f32.mrb[26].mxu1  ;;  %v7064_v31 = vld [vmem:[#allocation26_spill] sm:$0xff] }
 0x26f   : > { %v1847_v53 = vadd.f32 %v1846_v35, %v1767_v9  ;;  %v1977_v39 = vsel %vm1913_vm10, %v7062_v57, 0.0  ;;  %vm2123_vm6 = vcmp.eq.s32.totalorder %v5609_v36, %v3737_v2  ;;  %vm2333_vm0 = vcmp.eq.s32.totalorder %v5609_v36, %v3741_v4  ;;  %7063 = vst [vmem:[#allocation18_spill] sm:$0xff] %v5858_v47 }
 0x270   : > { %v2057_v10 = vadd.f32 %v2056_v21, %v1977_v39  ;;  %vm2543_vm8 = vcmp.eq.s32.totalorder %v5609_v36, %v3743_v5  ;;  %v2187_v20 = vsel %vm2123_vm6, %v7062_v57, 0.0  ;;  %v2397_v45 = vsel %vm2333_vm0, %v7062_v57, 0.0  ;;  %v5879_v39 = vpop.f32.mrb[27].mxu1 }
 0x271   : > { %v2607_v16 = vsel %vm2543_vm8, %v7062_v57, 0.0  ;;  %vm2753_vm11 = vcmp.eq.s32.totalorder %v5609_v36, %v3745_v6  ;;  %v2267_v35 = vadd.f32 %v2266_v32, %v2187_v20  ;;  %v2477_v21 = vadd.f32 %v2476_v46, %v2397_v45  ;;  %7065 = vst [vmem:[#allocation16_spill] sm:$0xff] %v5879_v39 }
 0x272   : > { %v2687_v28 = vadd.f32 %v2686_v27, %v2607_v16  ;;  %v2817_v23 = vsel %vm2753_vm11, %v7062_v57, 0.0  ;;  %vm1074_vm9 = vcmp.eq.s32.totalorder %v5612_v24, %v3711_v51  ;;  %vm1284_vm5 = vcmp.eq.s32.totalorder %v5612_v24, %v3713_v52 }
 0x273   : > { %v2897_v50 = vadd.f32 %v2896_v17, %v2817_v23  ;;  %vm1494_vm2 = vcmp.eq.s32.totalorder %v5612_v24, %v3715_v54  ;;  %v1138_v29 = vsel %vm1074_vm9, %v7064_v31, 0.0  ;;  %v1348_v36 = vsel %vm1284_vm5, %v7064_v31, 0.0 }
 0x274   : > { %v1558_v32 = vsel %vm1494_vm2, %v7064_v31, 0.0  ;;  %vm1704_vm1 = vcmp.eq.s32.totalorder %v5612_v24, %v3723_v59  ;;  %v1181_v46 = vadd.f32 %v1180_v34, %v1138_v29  ;;  %v1391_v27 = vadd.f32 %v1390_v13, %v1348_v36  ;;  %v7066_v36 = vld [vmem:[#allocation27_spill] sm:$0xff] }
 0x275   : > { %v1601_v17 = vadd.f32 %v1600_v18, %v1558_v32  ;;  %v1768_v57 = vsel %vm1704_vm1, %v7064_v31, 0.0  ;;  %vm1914_vm14 = vcmp.eq.s32.totalorder %v5612_v24, %v3725_v60  ;;  %vm2124_vm12 = vcmp.eq.s32.totalorder %v5612_v24, %v3727_v61 }
 0x276   : > { %v1811_v9 = vadd.f32 %v1810_v44, %v1768_v57  ;;  %vm2334_vm15 = vcmp.eq.s32.totalorder %v5612_v24, %v3729_v62  ;;  %v1978_v20 = vsel %vm1914_vm14, %v7064_v31, 0.0  ;;  %v2188_v34 = vsel %vm2124_vm12, %v7064_v31, 0.0 }
 0x277   : > { %v2398_v13 = vsel %vm2334_vm15, %v7064_v31, 0.0  ;;  %vm2544_vm4 = vcmp.eq.s32.totalorder %v5612_v24, %v3731_v63  ;;  %v2021_v18 = vadd.f32 %v2020_v37, %v1978_v20  ;;  %v2231_v44 = vadd.f32 %v2230_v25, %v2188_v34  ;;  %v5899_v20 = vpop.f32.mrb[28].mxu1 }
 0x278   : > { %v2441_v45 = vadd.f32 %v2440_v15, %v2398_v13  ;;  %v2608_v16 = vsel %vm2544_vm4, %v7064_v31, 0.0  ;;  %vm2754_vm13 = vcmp.eq.s32.totalorder %v5612_v24, %v3739_v3  ;;  %vm1075_vm3 = vcmp.eq.s32.totalorder %v5612_v24, %v3717_v55  ;;  %7067 = vst [vmem:[#allocation19_spill] sm:$0xff] %v5899_v20 }
 0x279   : > { %v2651_v23 = vadd.f32 %v2650_v49, %v2608_v16  ;;  %vm1285_vm7 = vcmp.eq.s32.totalorder %v5612_v24, %v3719_v56  ;;  %v2818_v29 = vsel %vm2754_vm13, %v7064_v31, 0.0  ;;  %v1139_v32 = vsel %vm1075_vm3, %v7066_v36, 0.0 }
 0x27a   : > { %v1349_v37 = vsel %vm1285_vm7, %v7066_v36, 0.0  ;;  %vm1495_vm10 = vcmp.eq.s32.totalorder %v5612_v24, %v3721_v58  ;;  %v2861_v25 = vadd.f32 %v2860_v19, %v2818_v29  ;;  %v1218_v15 = vadd.f32 %v1217_v38, %v1139_v32 }
 0x27b   : > { %v1428_v49 = vadd.f32 %v1427_v43, %v1349_v37  ;;  %v1559_v57 = vsel %vm1495_vm10, %v7066_v36, 0.0  ;;  %vm1705_vm6 = vcmp.eq.s32.totalorder %v5612_v24, %v3733_v0  ;;  %vm1915_vm0 = vcmp.eq.s32.totalorder %v5612_v24, %v3735_v1 }
 0x27c   : > { %v1638_v34 = vadd.f32 %v1637_v48, %v1559_v57  ;;  %vm2125_vm8 = vcmp.eq.s32.totalorder %v5612_v24, %v3737_v2  ;;  %v1769_v31 = vsel %vm1705_vm6, %v7066_v36, 0.0  ;;  %v1979_v19 = vsel %vm1915_vm0, %v7066_v36, 0.0 }
 0x27d   : > { %v2189_v38 = vsel %vm2125_vm8, %v7066_v36, 0.0  ;;  %vm2335_vm11 = vcmp.eq.s32.totalorder %v5612_v24, %v3741_v4  ;;  %v1848_v43 = vadd.f32 %v1847_v53, %v1769_v31  ;;  %v2058_v48 = vadd.f32 %v2057_v10, %v1979_v19 }
 0x27e   : > { %v2268_v13 = vadd.f32 %v2267_v35, %v2189_v38  ;;  %v2399_v16 = vsel %vm2335_vm11, %v7066_v36, 0.0  ;;  %vm2545_vm9 = vcmp.eq.s32.totalorder %v5612_v24, %v3743_v5  ;;  %vm2755_vm5 = vcmp.eq.s32.totalorder %v5612_v24, %v3745_v6 }
 0x27f   : > { %v2478_v29 = vadd.f32 %v2477_v21, %v2399_v16  ;;  %v915_v32 = vadd.s32 168, %v7057_v22  ;;  %v2609_v37 = vsel %vm2545_vm9, %v7066_v36, 0.0  ;;  %v2819_v57 = vsel %vm2755_vm5, %v7066_v36, 0.0  ;;  %v7068_v21 = vld [vmem:[#allocation28_spill] sm:$0xff]  ;;  %v5932_v36 = vpop.f32.mrb[29].mxu1 }
 0x280   : > { %v5921_v20 = vadd.s32 176, %v7057_v22  ;;  %v5924_v53 = vadd.s32 184, %v7057_v22  ;;  %v2688_v10 = vadd.f32 %v2687_v28, %v2609_v37  ;;  %v2898_v35 = vadd.f32 %v2897_v50, %v2819_v57  ;;  %7069 = vst [vmem:[#allocation20_spill] sm:$0xff] %v5932_v36  ;;  %v5936_v50 = vpop.f32.mrb[30].mxu1 }
 0x281   : > { %vm1076_vm2 = vcmp.eq.s32.totalorder %v915_v32, %v3711_v51  ;;  %vm1286_vm1 = vcmp.eq.s32.totalorder %v915_v32, %v3713_v52  ;;  %vm1496_vm14 = vcmp.eq.s32.totalorder %v915_v32, %v3715_v54  ;;  %vm1706_vm12 = vcmp.eq.s32.totalorder %v915_v32, %v3723_v59 }
 0x282   : > { %v1140_v24 = vsel %vm1076_vm2, %v7068_v21, 0.0  ;;  %v1350_v31 = vsel %vm1286_vm1, %v7068_v21, 0.0  ;;  %v1560_v16 = vsel %vm1496_vm14, %v7068_v21, 0.0  ;;  %v1770_v28 = vsel %vm1706_vm12, %v7068_v21, 0.0 }
 0x283   : > { %v1182_v19 = vadd.f32 %v1181_v46, %v1140_v24  ;;  %v1392_v38 = vadd.f32 %v1391_v27, %v1350_v31  ;;  %v1602_v37 = vadd.f32 %v1601_v17, %v1560_v16  ;;  %v1812_v57 = vadd.f32 %v1811_v9, %v1770_v28  ;;  %v7070_v28 = vld [vmem:[#allocation29_spill] sm:$0xff] }
 0x284   : > { %vm1916_vm15 = vcmp.eq.s32.totalorder %v915_v32, %v3725_v60  ;;  %vm2126_vm4 = vcmp.eq.s32.totalorder %v915_v32, %v3727_v61  ;;  %vm2336_vm13 = vcmp.eq.s32.totalorder %v915_v32, %v3729_v62  ;;  %vm2546_vm3 = vcmp.eq.s32.totalorder %v915_v32, %v3731_v63 }
 0x285   : > { %v1980_v39 = vsel %vm1916_vm15, %v7068_v21, 0.0  ;;  %v2190_v47 = vsel %vm2126_vm4, %v7068_v21, 0.0  ;;  %v2400_v24 = vsel %vm2336_vm13, %v7068_v21, 0.0  ;;  %v2610_v31 = vsel %vm2546_vm3, %v7068_v21, 0.0 }
 0x286   : > { %v2022_v46 = vadd.f32 %v2021_v18, %v1980_v39  ;;  %v2232_v27 = vadd.f32 %v2231_v44, %v2190_v47  ;;  %v2442_v17 = vadd.f32 %v2441_v45, %v2400_v24  ;;  %v2652_v9 = vadd.f32 %v2651_v23, %v2610_v31 }
 0x287   : > { %vm2756_vm7 = vcmp.eq.s32.totalorder %v915_v32, %v3739_v3  ;;  %vm1077_vm10 = vcmp.eq.s32.totalorder %v915_v32, %v3717_v55  ;;  %vm1287_vm6 = vcmp.eq.s32.totalorder %v915_v32, %v3719_v56  ;;  %vm1497_vm0 = vcmp.eq.s32.totalorder %v915_v32, %v3721_v58 }
 0x288   : > { %v2820_v16 = vsel %vm2756_vm7, %v7068_v21, 0.0  ;;  %v1141_v36 = vsel %vm1077_vm10, %v7070_v28, 0.0  ;;  %v1351_v18 = vsel %vm1287_vm6, %v7070_v28, 0.0  ;;  %v1561_v44 = vsel %vm1497_vm0, %v7070_v28, 0.0 }
 0x289   : > { %v2862_v39 = vadd.f32 %v2861_v25, %v2820_v16  ;;  %v1219_v47 = vadd.f32 %v1218_v15, %v1141_v36  ;;  %v1429_v45 = vadd.f32 %v1428_v49, %v1351_v18  ;;  %v1639_v23 = vadd.f32 %v1638_v34, %v1561_v44  ;;  %v7071_v44 = vld [vmem:[#allocation17_spill] sm:$0xff] }
 0x28a   : > { %vm1707_vm8 = vcmp.eq.s32.totalorder %v915_v32, %v3733_v0  ;;  %vm1917_vm11 = vcmp.eq.s32.totalorder %v915_v32, %v3735_v1  ;;  %vm2127_vm9 = vcmp.eq.s32.totalorder %v915_v32, %v3737_v2  ;;  %vm2337_vm5 = vcmp.eq.s32.totalorder %v915_v32, %v3741_v4 }
 0x28b   : > { %v1771_v21 = vsel %vm1707_vm8, %v7070_v28, 0.0  ;;  %v1981_v24 = vsel %vm1917_vm11, %v7070_v28, 0.0  ;;  %v2191_v36 = vsel %vm2127_vm9, %v7070_v28, 0.0  ;;  %v2401_v31 = vsel %vm2337_vm5, %v7070_v28, 0.0 }
 0x28c   : > { %v1849_v25 = vadd.f32 %v1848_v43, %v1771_v21  ;;  %v2059_v15 = vadd.f32 %v2058_v48, %v1981_v24  ;;  %v2269_v49 = vadd.f32 %v2268_v13, %v2191_v36  ;;  %v2479_v34 = vadd.f32 %v2478_v29, %v2401_v31 }
 0x28d   : > { %vm2547_vm2 = vcmp.eq.s32.totalorder %v915_v32, %v3743_v5  ;;  %vm2757_vm1 = vcmp.eq.s32.totalorder %v915_v32, %v3745_v6  ;;  %vm1078_vm14 = vcmp.eq.s32.totalorder %v5921_v20, %v3711_v51  ;;  %vm1288_vm12 = vcmp.eq.s32.totalorder %v5921_v20, %v3713_v52 }
 0x28e   : > { %v2611_v16 = vsel %vm2547_vm2, %v7070_v28, 0.0  ;;  %v2821_v18 = vsel %vm2757_vm1, %v7070_v28, 0.0  ;;  %v1142_v21 = vsel %vm1078_vm14, %v7071_v44, 0.0  ;;  %v1352_v13 = vsel %vm1288_vm12, %v7071_v44, 0.0 }
 0x28f   : > { %v2689_v43 = vadd.f32 %v2688_v10, %v2611_v16  ;;  %v2899_v48 = vadd.f32 %v2898_v35, %v2821_v18  ;;  %v1183_v29 = vadd.f32 %v1182_v19, %v1142_v21  ;;  %v1393_v24 = vadd.f32 %v1392_v38, %v1352_v13  ;;  %v5996_v13 = vpop.f32.mrb[31].mxu1 }
 0x290   : > { %vm1498_vm15 = vcmp.eq.s32.totalorder %v5921_v20, %v3715_v54  ;;  %vm1708_vm4 = vcmp.eq.s32.totalorder %v5921_v20, %v3723_v59  ;;  %vm1918_vm13 = vcmp.eq.s32.totalorder %v5921_v20, %v3725_v60  ;;  %vm2128_vm3 = vcmp.eq.s32.totalorder %v5921_v20, %v3727_v61  ;;  %7073 = vst [vmem:[#allocation21_spill] sm:$0xff] %v5996_v13 }
 0x291   : > { %v1562_v32 = vsel %vm1498_vm15, %v7071_v44, 0.0  ;;  %v1772_v28 = vsel %vm1708_vm4, %v7071_v44, 0.0  ;;  %v1982_v19 = vsel %vm1918_vm13, %v7071_v44, 0.0  ;;  %v2192_v38 = vsel %vm2128_vm3, %v7071_v44, 0.0 }
 0x292   : > { %v1603_v10 = vadd.f32 %v1602_v37, %v1562_v32  ;;  %v1813_v35 = vadd.f32 %v1812_v57, %v1772_v28  ;;  %v2023_v36 = vadd.f32 %v2022_v46, %v1982_v19  ;;  %v2233_v31 = vadd.f32 %v2232_v27, %v2192_v38  ;;  %v7072_v27 = vld [vmem:[#allocation14_spill] sm:$0xff] }
 0x293   : > { %vm2338_vm7 = vcmp.eq.s32.totalorder %v5921_v20, %v3729_v62  ;;  %vm2548_vm10 = vcmp.eq.s32.totalorder %v5921_v20, %v3731_v63  ;;  %vm2758_vm6 = vcmp.eq.s32.totalorder %v5921_v20, %v3739_v3  ;;  %vm1079_vm0 = vcmp.eq.s32.totalorder %v5921_v20, %v3717_v55 }
 0x294   : > { %v2402_v16 = vsel %vm2338_vm7, %v7071_v44, 0.0  ;;  %v2612_v18 = vsel %vm2548_vm10, %v7071_v44, 0.0  ;;  %v2822_v46 = vsel %vm2758_vm6, %v7071_v44, 0.0  ;;  %v1143_v21 = vsel %vm1079_vm0, %v7072_v27, 0.0 }
 0x295   : > { %v2443_v37 = vadd.f32 %v2442_v17, %v2402_v16  ;;  %v2653_v57 = vadd.f32 %v2652_v9, %v2612_v18  ;;  %v2863_v32 = vadd.f32 %v2862_v39, %v2822_v46  ;;  %v1220_v28 = vadd.f32 %v1219_v47, %v1143_v21 }
 0x296   : > { %vm1289_vm8 = vcmp.eq.s32.totalorder %v5921_v20, %v3719_v56  ;;  %vm1499_vm11 = vcmp.eq.s32.totalorder %v5921_v20, %v3721_v58  ;;  %vm1709_vm9 = vcmp.eq.s32.totalorder %v5921_v20, %v3733_v0  ;;  %vm1919_vm5 = vcmp.eq.s32.totalorder %v5921_v20, %v3735_v1 }
 0x297   : > { %v1353_v19 = vsel %vm1289_vm8, %v7072_v27, 0.0  ;;  %v1563_v38 = vsel %vm1499_vm11, %v7072_v27, 0.0  ;;  %v1773_v39 = vsel %vm1709_vm9, %v7072_v27, 0.0  ;;  %v1983_v47 = vsel %vm1919_vm5, %v7072_v27, 0.0 }
 0x298   : > { %v1430_v17 = vadd.f32 %v1429_v45, %v1353_v19  ;;  %v1640_v9 = vadd.f32 %v1639_v23, %v1563_v38  ;;  %v1850_v44 = vadd.f32 %v1849_v25, %v1773_v39  ;;  %v2060_v16 = vadd.f32 %v2059_v15, %v1983_v47  ;;  %v7074_v38 = vld [vmem:[#allocation15_spill] sm:$0xff] }
 0x299   : > { %vm2129_vm2 = vcmp.eq.s32.totalorder %v5921_v20, %v3737_v2  ;;  %vm2339_vm1 = vcmp.eq.s32.totalorder %v5921_v20, %v3741_v4  ;;  %vm2549_vm14 = vcmp.eq.s32.totalorder %v5921_v20, %v3743_v5  ;;  %vm2759_vm12 = vcmp.eq.s32.totalorder %v5921_v20, %v3745_v6 }
 0x29a   : > { %v2193_v18 = vsel %vm2129_vm2, %v7072_v27, 0.0  ;;  %v2403_v46 = vsel %vm2339_vm1, %v7072_v27, 0.0  ;;  %v2613_v25 = vsel %vm2549_vm14, %v7072_v27, 0.0  ;;  %v2823_v15 = vsel %vm2759_vm12, %v7072_v27, 0.0 }
 0x29b   : > { %v2270_v45 = vadd.f32 %v2269_v49, %v2193_v18  ;;  %v2480_v23 = vadd.f32 %v2479_v34, %v2403_v46  ;;  %v2690_v21 = vadd.f32 %v2689_v43, %v2613_v25  ;;  %v2900_v19 = vadd.f32 %v2899_v48, %v2823_v15 }
 0x29c   : > { %vm1080_vm15 = vcmp.eq.s32.totalorder %v5924_v53, %v3711_v51  ;;  %vm1290_vm4 = vcmp.eq.s32.totalorder %v5924_v53, %v3713_v52  ;;  %vm1500_vm13 = vcmp.eq.s32.totalorder %v5924_v53, %v3715_v54  ;;  %vm1710_vm3 = vcmp.eq.s32.totalorder %v5924_v53, %v3723_v59 }
 0x29d   : > { %v1144_v39 = vsel %vm1080_vm15, %v7074_v38, 0.0  ;;  %v1354_v47 = vsel %vm1290_vm4, %v7074_v38, 0.0  ;;  %v1564_v34 = vsel %vm1500_vm13, %v7074_v38, 0.0  ;;  %v1774_v43 = vsel %vm1710_vm3, %v7074_v38, 0.0 }
 0x29e   : > { %v1184_v20 = vadd.f32 %v1183_v29, %v1144_v39  ;;  %v1394_v49 = vadd.f32 %v1393_v24, %v1354_v47  ;;  %v1604_v48 = vadd.f32 %v1603_v10, %v1564_v34  ;;  %v1814_v27 = vadd.f32 %v1813_v35, %v1774_v43 }
 0x29f   : > { %vm1920_vm7 = vcmp.eq.s32.totalorder %v5924_v53, %v3725_v60  ;;  %vm2130_vm10 = vcmp.eq.s32.totalorder %v5924_v53, %v3727_v61  ;;  %vm2340_vm6 = vcmp.eq.s32.totalorder %v5924_v53, %v3729_v62  ;;  %vm2550_vm0 = vcmp.eq.s32.totalorder %v5924_v53, %v3731_v63 }
 0x2a0   : > { %v1984_v18 = vsel %vm1920_vm7, %v7074_v38, 0.0  ;;  %v2194_v46 = vsel %vm2130_vm10, %v7074_v38, 0.0  ;;  %v2404_v10 = vsel %vm2340_vm6, %v7074_v38, 0.0  ;;  %v2614_v35 = vsel %vm2550_vm0, %v7074_v38, 0.0 }
 0x2a1   : > { %v2024_v29 = vadd.f32 %v2023_v36, %v1984_v18  ;;  %v2234_v24 = vadd.f32 %v2233_v31, %v2194_v46  ;;  %v2444_v25 = vadd.f32 %v2443_v37, %v2404_v10  ;;  %v2654_v15 = vadd.f32 %v2653_v57, %v2614_v35 }
 0x2a2   : > { %vm2760_vm8 = vcmp.eq.s32.totalorder %v5924_v53, %v3739_v3  ;;  %vm1081_vm11 = vcmp.eq.s32.totalorder %v5924_v53, %v3717_v55  ;;  %vm1291_vm9 = vcmp.eq.s32.totalorder %v5924_v53, %v3719_v56  ;;  %vm1501_vm5 = vcmp.eq.s32.totalorder %v5924_v53, %v3721_v58 }
 0x2a3   : > { %v2824_v39 = vsel %vm2760_vm8, %v7074_v38, 0.0  ;;  %v1145_v47 = vsel %vm1081_vm11, %v5432_v8, 0.0  ;;  %v1355_v37 = vsel %vm1291_vm9, %v5432_v8, 0.0  ;;  %v1565_v57 = vsel %vm1501_vm5, %v5432_v8, 0.0 }
 0x2a4   : > { %v2864_v36 = vadd.f32 %v2863_v32, %v2824_v39  ;;  %v1221_v31 = vadd.f32 %v1220_v28, %v1145_v47  ;;  %v1431_v34 = vadd.f32 %v1430_v17, %v1355_v37  ;;  %v1641_v43 = vadd.f32 %v1640_v9, %v1565_v57 }
 0x2a5   : > { %vm1711_vm2 = vcmp.eq.s32.totalorder %v5924_v53, %v3733_v0  ;;  %vm1921_vm1 = vcmp.eq.s32.totalorder %v5924_v53, %v3735_v1  ;;  %vm2131_vm14 = vcmp.eq.s32.totalorder %v5924_v53, %v3737_v2  ;;  %vm2341_vm12 = vcmp.eq.s32.totalorder %v5924_v53, %v3741_v4 }
 0x2a6   : > { %v1775_v38 = vsel %vm1711_vm2, %v5432_v8, 0.0  ;;  %v1985_v18 = vsel %vm1921_vm1, %v5432_v8, 0.0  ;;  %v2195_v17 = vsel %vm2131_vm14, %v5432_v8, 0.0  ;;  %v2405_v9 = vsel %vm2341_vm12, %v5432_v8, 0.0 }
 0x2a7   : > { %v1851_v32 = vadd.f32 %v1850_v44, %v1775_v38  ;;  %v2061_v28 = vadd.f32 %v2060_v16, %v1985_v18  ;;  %v2271_v46 = vadd.f32 %v2270_v45, %v2195_v17  ;;  %v2481_v10 = vadd.f32 %v2480_v23, %v2405_v9 }
 0x2a8   : > { %vm2551_vm15 = vcmp.eq.s32.totalorder %v5924_v53, %v3743_v5  ;;  %vm2761_vm4 = vcmp.eq.s32.totalorder %v5924_v53, %v3745_v6  ;;  %v918_v47 = vadd.s32 192, %v7057_v22  ;;  %v6078_v44 = vadd.s32 200, %v7057_v22 }
 0x2a9   : > { %v2615_v35 = vsel %vm2551_vm15, %v5432_v8, 0.0  ;;  %v2825_v39 = vsel %vm2761_vm4, %v5432_v8, 0.0  ;;  %v6081_v45 = vadd.s32 208, %v7057_v22  ;;  %v6084_v23 = vadd.s32 216, %v7057_v22 }
 0x2aa   : > { %v2691_v16 = vadd.f32 %v2690_v21, %v2615_v35  ;;  %v2901_v37 = vadd.f32 %v2900_v19, %v2825_v39  ;;  %vm1082_vm13 = vcmp.eq.s32.totalorder %v918_v47, %v3711_v51  ;;  %vm1292_vm3 = vcmp.eq.s32.totalorder %v918_v47, %v3713_v52 }
 0x2ab   : > { %vm1502_vm7 = vcmp.eq.s32.totalorder %v918_v47, %v3715_v54  ;;  %vm1712_vm10 = vcmp.eq.s32.totalorder %v918_v47, %v3723_v59  ;;  %v1146_v8 = vsel %vm1082_vm13, %v5498_v42, 0.0  ;;  %v1356_v53 = vsel %vm1292_vm3, %v5498_v42, 0.0 }
 0x2ac   : > { %v1566_v21 = vsel %vm1502_vm7, %v5498_v42, 0.0  ;;  %v1776_v19 = vsel %vm1712_vm10, %v5498_v42, 0.0  ;;  %v1185_v57 = vadd.f32 %v1184_v20, %v1146_v8  ;;  %v1395_v38 = vadd.f32 %v1394_v49, %v1356_v53 }
 0x2ad   : > { %v1605_v18 = vadd.f32 %v1604_v48, %v1566_v21  ;;  %v1815_v17 = vadd.f32 %v1814_v27, %v1776_v19  ;;  %vm1922_vm6 = vcmp.eq.s32.totalorder %v918_v47, %v3725_v60  ;;  %vm2132_vm0 = vcmp.eq.s32.totalorder %v918_v47, %v3727_v61 }
 0x2ae   : > { %vm2342_vm8 = vcmp.eq.s32.totalorder %v918_v47, %v3729_v62  ;;  %vm2552_vm11 = vcmp.eq.s32.totalorder %v918_v47, %v3731_v63  ;;  %v1986_v9 = vsel %vm1922_vm6, %v5498_v42, 0.0  ;;  %v2196_v35 = vsel %vm2132_vm0, %v5498_v42, 0.0 }
 0x2af   : > { %v2406_v39 = vsel %vm2342_vm8, %v5498_v42, 0.0  ;;  %v2616_v13 = vsel %vm2552_vm11, %v5498_v42, 0.0  ;;  %v2025_v20 = vadd.f32 %v2024_v29, %v1986_v9  ;;  %v2235_v49 = vadd.f32 %v2234_v24, %v2196_v35 }
 0x2b0   : > { %v2445_v48 = vadd.f32 %v2444_v25, %v2406_v39  ;;  %v2655_v27 = vadd.f32 %v2654_v15, %v2616_v13  ;;  %vm2762_vm9 = vcmp.eq.s32.totalorder %v918_v47, %v3739_v3  ;;  %vm1083_vm5 = vcmp.eq.s32.totalorder %v918_v47, %v3717_v55 }
 0x2b1   : > { %vm1293_vm2 = vcmp.eq.s32.totalorder %v918_v47, %v3719_v56  ;;  %vm1503_vm1 = vcmp.eq.s32.totalorder %v918_v47, %v3721_v58  ;;  %v2826_v8 = vsel %vm2762_vm9, %v5498_v42, 0.0  ;;  %v1147_v53 = vsel %vm1083_vm5, %v5551_v14, 0.0 }
 0x2b2   : > { %v1357_v21 = vsel %vm1293_vm2, %v5551_v14, 0.0  ;;  %v1567_v19 = vsel %vm1503_vm1, %v5551_v14, 0.0  ;;  %v2865_v29 = vadd.f32 %v2864_v36, %v2826_v8  ;;  %v1222_v24 = vadd.f32 %v1221_v31, %v1147_v53 }
 0x2b3   : > { %v1432_v25 = vadd.f32 %v1431_v34, %v1357_v21  ;;  %v1642_v13 = vadd.f32 %v1641_v43, %v1567_v19  ;;  %vm1713_vm14 = vcmp.eq.s32.totalorder %v918_v47, %v3733_v0  ;;  %vm1923_vm12 = vcmp.eq.s32.totalorder %v918_v47, %v3735_v1 }
 0x2b4   : > { %vm2133_vm15 = vcmp.eq.s32.totalorder %v918_v47, %v3737_v2  ;;  %vm2343_vm4 = vcmp.eq.s32.totalorder %v918_v47, %v3741_v4  ;;  %v1777_v42 = vsel %vm1713_vm14, %v5551_v14, 0.0  ;;  %v1987_v15 = vsel %vm1923_vm12, %v5551_v14, 0.0 }
 0x2b5   : > { %v2197_v9 = vsel %vm2133_vm15, %v5551_v14, 0.0  ;;  %v2407_v35 = vsel %vm2343_vm4, %v5551_v14, 0.0  ;;  %v1852_v36 = vadd.f32 %v1851_v32, %v1777_v42  ;;  %v2062_v31 = vadd.f32 %v2061_v28, %v1987_v15 }
 0x2b6   : > { %v2272_v34 = vadd.f32 %v2271_v46, %v2197_v9  ;;  %v2482_v43 = vadd.f32 %v2481_v10, %v2407_v35  ;;  %vm2553_vm13 = vcmp.eq.s32.totalorder %v918_v47, %v3743_v5  ;;  %vm2763_vm3 = vcmp.eq.s32.totalorder %v918_v47, %v3745_v6 }
 0x2b7   : > { %vm1084_vm7 = vcmp.eq.s32.totalorder %v6078_v44, %v3711_v51  ;;  %vm1294_vm10 = vcmp.eq.s32.totalorder %v6078_v44, %v3713_v52  ;;  %v2617_v39 = vsel %vm2553_vm13, %v5551_v14, 0.0  ;;  %v2827_v8 = vsel %vm2763_vm3, %v5551_v14, 0.0 }
 0x2b8   : > { %v1148_v53 = vsel %vm1084_vm7, %v5593_v30, 0.0  ;;  %v1358_v32 = vsel %vm1294_vm10, %v5593_v30, 0.0  ;;  %v2692_v28 = vadd.f32 %v2691_v16, %v2617_v39  ;;  %v2902_v46 = vadd.f32 %v2901_v37, %v2827_v8 }
 0x2b9   : > { %v1186_v10 = vadd.f32 %v1185_v57, %v1148_v53  ;;  %v1396_v21 = vadd.f32 %v1395_v38, %v1358_v32  ;;  %vm1504_vm6 = vcmp.eq.s32.totalorder %v6078_v44, %v3715_v54  ;;  %vm1714_vm0 = vcmp.eq.s32.totalorder %v6078_v44, %v3723_v59 }
 0x2ba   : > { %vm1924_vm8 = vcmp.eq.s32.totalorder %v6078_v44, %v3725_v60  ;;  %vm2134_vm11 = vcmp.eq.s32.totalorder %v6078_v44, %v3727_v61  ;;  %v1568_v14 = vsel %vm1504_vm6, %v5593_v30, 0.0  ;;  %v1778_v47 = vsel %vm1714_vm0, %v5593_v30, 0.0 }
 0x2bb   : > { %v1988_v16 = vsel %vm1924_vm8, %v5593_v30, 0.0  ;;  %v2198_v37 = vsel %vm2134_vm11, %v5593_v30, 0.0  ;;  %v1606_v57 = vadd.f32 %v1605_v18, %v1568_v14  ;;  %v1816_v38 = vadd.f32 %v1815_v17, %v1778_v47 }
 0x2bc   : > { %v2026_v19 = vadd.f32 %v2025_v20, %v1988_v16  ;;  %v2236_v42 = vadd.f32 %v2235_v49, %v2198_v37  ;;  %vm2344_vm9 = vcmp.eq.s32.totalorder %v6078_v44, %v3729_v62  ;;  %vm2554_vm5 = vcmp.eq.s32.totalorder %v6078_v44, %v3731_v63 }
 0x2bd   : > { %vm2764_vm2 = vcmp.eq.s32.totalorder %v6078_v44, %v3739_v3  ;;  %vm1085_vm1 = vcmp.eq.s32.totalorder %v6078_v44, %v3717_v55  ;;  %v2408_v15 = vsel %vm2344_vm9, %v5593_v30, 0.0  ;;  %v2618_v9 = vsel %vm2554_vm5, %v5593_v30, 0.0 }
 0x2be   : > { %v2828_v18 = vsel %vm2764_vm2, %v5593_v30, 0.0  ;;  %v1149_v17 = vsel %vm1085_vm1, %v5625_v7, 0.0  ;;  %v2446_v20 = vadd.f32 %v2445_v48, %v2408_v15  ;;  %v2656_v49 = vadd.f32 %v2655_v27, %v2618_v9 }
 0x2bf   : > { %v2866_v35 = vadd.f32 %v2865_v29, %v2828_v18  ;;  %v1223_v39 = vadd.f32 %v1222_v24, %v1149_v17  ;;  %vm1295_vm14 = vcmp.eq.s32.totalorder %v6078_v44, %v3719_v56  ;;  %vm1505_vm12 = vcmp.eq.s32.totalorder %v6078_v44, %v3721_v58 }
 0x2c0   : > { %vm1715_vm15 = vcmp.eq.s32.totalorder %v6078_v44, %v3733_v0  ;;  %vm1925_vm4 = vcmp.eq.s32.totalorder %v6078_v44, %v3735_v1  ;;  %v1359_v30 = vsel %vm1295_vm14, %v5625_v7, 0.0  ;;  %v1569_v8 = vsel %vm1505_vm12, %v5625_v7, 0.0 }
 0x2c1   : > { %v1779_v48 = vsel %vm1715_vm15, %v5625_v7, 0.0  ;;  %v1989_v27 = vsel %vm1925_vm4, %v5625_v7, 0.0  ;;  %v1433_v29 = vadd.f32 %v1432_v25, %v1359_v30  ;;  %v1643_v24 = vadd.f32 %v1642_v13, %v1569_v8 }
 0x2c2   : > { %v1853_v53 = vadd.f32 %v1852_v36, %v1779_v48  ;;  %v2063_v32 = vadd.f32 %v2062_v31, %v1989_v27  ;;  %vm2135_vm13 = vcmp.eq.s32.totalorder %v6078_v44, %v3737_v2  ;;  %vm2345_vm3 = vcmp.eq.s32.totalorder %v6078_v44, %v3741_v4 }
 0x2c3   : > { %vm2555_vm7 = vcmp.eq.s32.totalorder %v6078_v44, %v3743_v5  ;;  %vm2765_vm10 = vcmp.eq.s32.totalorder %v6078_v44, %v3745_v6  ;;  %v2199_v14 = vsel %vm2135_vm13, %v5625_v7, 0.0  ;;  %v2409_v47 = vsel %vm2345_vm3, %v5625_v7, 0.0 }
 0x2c4   : > { %v2619_v25 = vsel %vm2555_vm7, %v5625_v7, 0.0  ;;  %v2829_v13 = vsel %vm2765_vm10, %v5625_v7, 0.0  ;;  %v2273_v36 = vadd.f32 %v2272_v34, %v2199_v14  ;;  %v2483_v31 = vadd.f32 %v2482_v43, %v2409_v47 }
 0x2c5   : > { %v2693_v16 = vadd.f32 %v2692_v28, %v2619_v25  ;;  %v2903_v37 = vadd.f32 %v2902_v46, %v2829_v13  ;;  %vm1086_vm6 = vcmp.eq.s32.totalorder %v6081_v45, %v3711_v51  ;;  %vm1296_vm0 = vcmp.eq.s32.totalorder %v6081_v45, %v3713_v52 }
 0x2c6   : > { %vm1506_vm8 = vcmp.eq.s32.totalorder %v6081_v45, %v3715_v54  ;;  %vm1716_vm11 = vcmp.eq.s32.totalorder %v6081_v45, %v3723_v59  ;;  %v1150_v44 = vsel %vm1086_vm6, %v5663_v11, 0.0  ;;  %v1360_v7 = vsel %vm1296_vm0, %v5663_v11, 0.0 }
 0x2c7   : > { %v1570_v34 = vsel %vm1506_vm8, %v5663_v11, 0.0  ;;  %v1780_v43 = vsel %vm1716_vm11, %v5663_v11, 0.0  ;;  %v1187_v28 = vadd.f32 %v1186_v10, %v1150_v44  ;;  %v1397_v46 = vadd.f32 %v1396_v21, %v1360_v7 }
 0x2c8   : > { %v1607_v15 = vadd.f32 %v1606_v57, %v1570_v34  ;;  %v1817_v9 = vadd.f32 %v1816_v38, %v1780_v43  ;;  %vm1926_vm9 = vcmp.eq.s32.totalorder %v6081_v45, %v3725_v60  ;;  %vm2136_vm5 = vcmp.eq.s32.totalorder %v6081_v45, %v3727_v61 }
 0x2c9   : > { %vm2346_vm2 = vcmp.eq.s32.totalorder %v6081_v45, %v3729_v62  ;;  %vm2556_vm1 = vcmp.eq.s32.totalorder %v6081_v45, %v3731_v63  ;;  %v1990_v18 = vsel %vm1926_vm9, %v5663_v11, 0.0  ;;  %v2200_v17 = vsel %vm2136_vm5, %v5663_v11, 0.0 }
 0x2ca   : > { %v2410_v10 = vsel %vm2346_vm2, %v5663_v11, 0.0  ;;  %v2620_v21 = vsel %vm2556_vm1, %v5663_v11, 0.0  ;;  %v2027_v57 = vadd.f32 %v2026_v19, %v1990_v18  ;;  %v2237_v38 = vadd.f32 %v2236_v42, %v2200_v17 }
 0x2cb   : > { %v2447_v30 = vadd.f32 %v2446_v20, %v2410_v10  ;;  %v2657_v8 = vadd.f32 %v2656_v49, %v2620_v21  ;;  %vm2766_vm14 = vcmp.eq.s32.totalorder %v6081_v45, %v3739_v3  ;;  %vm1087_vm12 = vcmp.eq.s32.totalorder %v6081_v45, %v3717_v55 }
 0x2cc   : > { %vm1297_vm15 = vcmp.eq.s32.totalorder %v6081_v45, %v3719_v56  ;;  %vm1507_vm4 = vcmp.eq.s32.totalorder %v6081_v45, %v3721_v58  ;;  %v2830_v48 = vsel %vm2766_vm14, %v5663_v11, 0.0  ;;  %v1151_v27 = vsel %vm1087_vm12, %v5704_v40, 0.0 }
 0x2cd   : > { %v1361_v19 = vsel %vm1297_vm15, %v5704_v40, 0.0  ;;  %v1571_v42 = vsel %vm1507_vm4, %v5704_v40, 0.0  ;;  %v2867_v20 = vadd.f32 %v2866_v35, %v2830_v48  ;;  %v1224_v49 = vadd.f32 %v1223_v39, %v1151_v27 }
 0x2ce   : > { %v1434_v14 = vadd.f32 %v1433_v29, %v1361_v19  ;;  %v1644_v47 = vadd.f32 %v1643_v24, %v1571_v42  ;;  %vm1717_vm13 = vcmp.eq.s32.totalorder %v6081_v45, %v3733_v0  ;;  %vm1927_vm3 = vcmp.eq.s32.totalorder %v6081_v45, %v3735_v1 }
 0x2cf   : > { %vm2137_vm7 = vcmp.eq.s32.totalorder %v6081_v45, %v3737_v2  ;;  %vm2347_vm10 = vcmp.eq.s32.totalorder %v6081_v45, %v3741_v4  ;;  %v1781_v11 = vsel %vm1717_vm13, %v5704_v40, 0.0  ;;  %v1991_v25 = vsel %vm1927_vm3, %v5704_v40, 0.0 }
 0x2d0   : > { %v2201_v35 = vsel %vm2137_vm7, %v5704_v40, 0.0  ;;  %v2411_v39 = vsel %vm2347_vm10, %v5704_v40, 0.0  ;;  %v1854_v29 = vadd.f32 %v1853_v53, %v1781_v11  ;;  %v2064_v24 = vadd.f32 %v2063_v32, %v1991_v25 }
 0x2d1   : > { %v2274_v13 = vadd.f32 %v2273_v36, %v2201_v35  ;;  %v2484_v44 = vadd.f32 %v2483_v31, %v2411_v39  ;;  %vm2557_vm6 = vcmp.eq.s32.totalorder %v6081_v45, %v3743_v5  ;;  %vm2767_vm0 = vcmp.eq.s32.totalorder %v6081_v45, %v3745_v6 }
 0x2d2   : > { %vm1088_vm8 = vcmp.eq.s32.totalorder %v6084_v23, %v3711_v51  ;;  %vm1298_vm11 = vcmp.eq.s32.totalorder %v6084_v23, %v3713_v52  ;;  %v2621_v7 = vsel %vm2557_vm6, %v5704_v40, 0.0  ;;  %v2831_v34 = vsel %vm2767_vm0, %v5704_v40, 0.0 }
 0x2d3   : > { %v1152_v53 = vsel %vm1088_vm8, %v5731_v33, 0.0  ;;  %v1362_v32 = vsel %vm1298_vm11, %v5731_v33, 0.0  ;;  %v2694_v36 = vadd.f32 %v2693_v16, %v2621_v7  ;;  %v2904_v31 = vadd.f32 %v2903_v37, %v2831_v34 }
 0x2d4   : > { %v1188_v43 = vadd.f32 %v1187_v28, %v1152_v53  ;;  %v1398_v18 = vadd.f32 %v1397_v46, %v1362_v32  ;;  %vm1508_vm9 = vcmp.eq.s32.totalorder %v6084_v23, %v3715_v54  ;;  %vm1718_vm5 = vcmp.eq.s32.totalorder %v6084_v23, %v3723_v59 }
 0x2d5   : > { %vm1928_vm2 = vcmp.eq.s32.totalorder %v6084_v23, %v3725_v60  ;;  %vm2138_vm1 = vcmp.eq.s32.totalorder %v6084_v23, %v3727_v61  ;;  %v1572_v40 = vsel %vm1508_vm9, %v5731_v33, 0.0  ;;  %v1782_v45 = vsel %vm1718_vm5, %v5731_v33, 0.0 }
 0x2d6   : > { %v1992_v16 = vsel %vm1928_vm2, %v5731_v33, 0.0  ;;  %v2202_v37 = vsel %vm2138_vm1, %v5731_v33, 0.0  ;;  %v1608_v28 = vadd.f32 %v1607_v15, %v1572_v40  ;;  %v1818_v46 = vadd.f32 %v1817_v9, %v1782_v45 }
 0x2d7   : > { %v2028_v17 = vadd.f32 %v2027_v57, %v1992_v16  ;;  %v2238_v10 = vadd.f32 %v2237_v38, %v2202_v37  ;;  %vm2348_vm14 = vcmp.eq.s32.totalorder %v6084_v23, %v3729_v62  ;;  %vm2558_vm12 = vcmp.eq.s32.totalorder %v6084_v23, %v3731_v63 }
 0x2d8   : > { %vm2768_vm15 = vcmp.eq.s32.totalorder %v6084_v23, %v3739_v3  ;;  %vm1089_vm4 = vcmp.eq.s32.totalorder %v6084_v23, %v3717_v55  ;;  %v2412_v21 = vsel %vm2348_vm14, %v5731_v33, 0.0  ;;  %v2622_v48 = vsel %vm2558_vm12, %v5731_v33, 0.0 }
 0x2d9   : > { %v2832_v15 = vsel %vm2768_vm15, %v5731_v33, 0.0  ;;  %v1153_v9 = vsel %vm1089_vm4, %v5756_v41, 0.0  ;;  %v2448_v57 = vadd.f32 %v2447_v30, %v2412_v21  ;;  %v2658_v38 = vadd.f32 %v2657_v8, %v2622_v48 }
 0x2da   : > { %v2868_v27 = vadd.f32 %v2867_v20, %v2832_v15  ;;  %v1225_v19 = vadd.f32 %v1224_v49, %v1153_v9  ;;  %vm1299_vm13 = vcmp.eq.s32.totalorder %v6084_v23, %v3719_v56  ;;  %vm1509_vm3 = vcmp.eq.s32.totalorder %v6084_v23, %v3721_v58 }
 0x2db   : > { %vm1719_vm7 = vcmp.eq.s32.totalorder %v6084_v23, %v3733_v0  ;;  %vm1929_vm10 = vcmp.eq.s32.totalorder %v6084_v23, %v3735_v1  ;;  %v1363_v33 = vsel %vm1299_vm13, %v5756_v41, 0.0  ;;  %v1573_v42 = vsel %vm1509_vm3, %v5756_v41, 0.0 }
 0x2dc   : > { %v1783_v30 = vsel %vm1719_vm7, %v5756_v41, 0.0  ;;  %v1993_v8 = vsel %vm1929_vm10, %v5756_v41, 0.0  ;;  %v1435_v20 = vadd.f32 %v1434_v14, %v1363_v33  ;;  %v1645_v49 = vadd.f32 %v1644_v47, %v1573_v42 }
 0x2dd   : > { %v1855_v11 = vadd.f32 %v1854_v29, %v1783_v30  ;;  %v2065_v25 = vadd.f32 %v2064_v24, %v1993_v8  ;;  %vm2139_vm6 = vcmp.eq.s32.totalorder %v6084_v23, %v3737_v2  ;;  %vm2349_vm0 = vcmp.eq.s32.totalorder %v6084_v23, %v3741_v4 }
 0x2de   : > { %vm2559_vm8 = vcmp.eq.s32.totalorder %v6084_v23, %v3743_v5  ;;  %vm2769_vm11 = vcmp.eq.s32.totalorder %v6084_v23, %v3745_v6  ;;  %v2203_v35 = vsel %vm2139_vm6, %v5756_v41, 0.0  ;;  %v2413_v39 = vsel %vm2349_vm0, %v5756_v41, 0.0 }
 0x2df   : > { %v2623_v14 = vsel %vm2559_vm8, %v5756_v41, 0.0  ;;  %v2833_v47 = vsel %vm2769_vm11, %v5756_v41, 0.0  ;;  %v2275_v29 = vadd.f32 %v2274_v13, %v2203_v35  ;;  %v2485_v24 = vadd.f32 %v2484_v44, %v2413_v39 }
 0x2e0   : > { %v2695_v7 = vadd.f32 %v2694_v36, %v2623_v14  ;;  %v2905_v34 = vadd.f32 %v2904_v31, %v2833_v47  ;;  %v922_v53 = vadd.s32 224, %v7057_v22  ;;  %v6286_v32 = vadd.s32 232, %v7057_v22 }
 0x2e2   : > { %vm1090_vm9 = vcmp.eq.s32.totalorder %v922_v53, %v3711_v51  ;;  %vm1300_vm5 = vcmp.eq.s32.totalorder %v922_v53, %v3713_v52  ;;  %vm1510_vm2 = vcmp.eq.s32.totalorder %v922_v53, %v3715_v54  ;;  %vm1720_vm1 = vcmp.eq.s32.totalorder %v922_v53, %v3723_v59 }
 0x2e3   : > { %v1154_v23 = vsel %vm1090_vm9, %v5783_v12, 0.0  ;;  %v1364_v41 = vsel %vm1300_vm5, %v5783_v12, 0.0  ;;  %v1574_v13 = vsel %vm1510_vm2, %v5783_v12, 0.0  ;;  %v1784_v44 = vsel %vm1720_vm1, %v5783_v12, 0.0 }
 0x2e4   : > { %v1189_v36 = vadd.f32 %v1188_v43, %v1154_v23  ;;  %v1399_v31 = vadd.f32 %v1398_v18, %v1364_v41  ;;  %v1609_v40 = vadd.f32 %v1608_v28, %v1574_v13  ;;  %v1819_v45 = vadd.f32 %v1818_v46, %v1784_v44 }
 0x2e5   : > { %vm1930_vm14 = vcmp.eq.s32.totalorder %v922_v53, %v3725_v60  ;;  %vm2140_vm12 = vcmp.eq.s32.totalorder %v922_v53, %v3727_v61  ;;  %vm2350_vm15 = vcmp.eq.s32.totalorder %v922_v53, %v3729_v62  ;;  %vm2560_vm4 = vcmp.eq.s32.totalorder %v922_v53, %v3731_v63 }
 0x2e6   : > { %v1994_v16 = vsel %vm1930_vm14, %v5783_v12, 0.0  ;;  %v2204_v37 = vsel %vm2140_vm12, %v5783_v12, 0.0  ;;  %v2414_v21 = vsel %vm2350_vm15, %v5783_v12, 0.0  ;;  %v2624_v48 = vsel %vm2560_vm4, %v5783_v12, 0.0 }
 0x2e7   : > { %v2029_v43 = vadd.f32 %v2028_v17, %v1994_v16  ;;  %v2239_v18 = vadd.f32 %v2238_v10, %v2204_v37  ;;  %v2449_v28 = vadd.f32 %v2448_v57, %v2414_v21  ;;  %v2659_v46 = vadd.f32 %v2658_v38, %v2624_v48 }
 0x2e8   : > { %vm2770_vm13 = vcmp.eq.s32.totalorder %v922_v53, %v3739_v3  ;;  %vm1091_vm3 = vcmp.eq.s32.totalorder %v922_v53, %v3717_v55  ;;  %vm1301_vm7 = vcmp.eq.s32.totalorder %v922_v53, %v3719_v56  ;;  %vm1511_vm10 = vcmp.eq.s32.totalorder %v922_v53, %v3721_v58 }
 0x2e9   : > { %v2834_v15 = vsel %vm2770_vm13, %v5783_v12, 0.0  ;;  %v1155_v9 = vsel %vm1091_vm3, %v5827_v26, 0.0  ;;  %v1365_v33 = vsel %vm1301_vm7, %v5827_v26, 0.0  ;;  %v1575_v42 = vsel %vm1511_vm10, %v5827_v26, 0.0 }
 0x2ea   : > { %v2869_v17 = vadd.f32 %v2868_v27, %v2834_v15  ;;  %v6312_v10 = vadd.f32 %v1225_v19, %v1155_v9  ;;  %v6314_v57 = vadd.f32 %v1435_v20, %v1365_v33  ;;  %v6316_v38 = vadd.f32 %v1645_v49, %v1575_v42  ;;  %v7078_v15 = vld [vmem:[#allocation16_spill] sm:$0xff] }
 0x2eb   : > { %vm1721_vm6 = vcmp.eq.s32.totalorder %v922_v53, %v3733_v0  ;;  %vm1931_vm0 = vcmp.eq.s32.totalorder %v922_v53, %v3735_v1  ;;  %vm2141_vm8 = vcmp.eq.s32.totalorder %v922_v53, %v3737_v2  ;;  %vm2351_vm11 = vcmp.eq.s32.totalorder %v922_v53, %v3741_v4 }
 0x2ec   : > { %v1785_v12 = vsel %vm1721_vm6, %v5827_v26, 0.0  ;;  %v1995_v30 = vsel %vm1931_vm0, %v5827_v26, 0.0  ;;  %v2205_v27 = vsel %vm2141_vm8, %v5827_v26, 0.0  ;;  %v2415_v19 = vsel %vm2351_vm11, %v5827_v26, 0.0 }
 0x2ed   : > { %v6326_v8 = vadd.f32 %v1855_v11, %v1785_v12  ;;  %v6328_v20 = vadd.f32 %v2065_v25, %v1995_v30  ;;  %v6330_v49 = vadd.f32 %v2275_v29, %v2205_v27  ;;  %v6332_v35 = vadd.f32 %v2485_v24, %v2415_v19  ;;  %v7075_v25 = vld [vmem:[#allocation18_spill] sm:$0xff]  ;;  %v7080_v27 = vld [vmem:[#allocation19_spill] sm:$0xff] }
 0x2ee   : > { %vm2561_vm9 = vcmp.eq.s32.totalorder %v922_v53, %v3743_v5  ;;  %vm2771_vm5 = vcmp.eq.s32.totalorder %v922_v53, %v3745_v6  ;;  %vm1092_vm2 = vcmp.eq.s32.totalorder %v6286_v32, %v3711_v51  ;;  %vm1302_vm1 = vcmp.eq.s32.totalorder %v6286_v32, %v3713_v52 }
 0x2ef   : > { %v2625_v39 = vsel %vm2561_vm9, %v5827_v26, 0.0  ;;  %v2835_v11 = vsel %vm2771_vm5, %v5827_v26, 0.0  ;;  %v1156_v14 = vsel %vm1092_vm2, %v7075_v25, 0.0  ;;  %v1366_v47 = vsel %vm1302_vm1, %v7075_v25, 0.0 }
 0x2f0   : > { %v6344_v29 = vadd.f32 %v2695_v7, %v2625_v39  ;;  %v6346_v24 = vadd.f32 %v2905_v34, %v2835_v11  ;;  %v1190_v23 = vadd.f32 %v1189_v36, %v1156_v14  ;;  %v1400_v53 = vadd.f32 %v1399_v31, %v1366_v47 }
 0x2f1   : > { %vm1512_vm14 = vcmp.eq.s32.totalorder %v6286_v32, %v3715_v54  ;;  %vm1722_vm12 = vcmp.eq.s32.totalorder %v6286_v32, %v3723_v59  ;;  %vm1932_vm15 = vcmp.eq.s32.totalorder %v6286_v32, %v3725_v60  ;;  %vm2142_vm4 = vcmp.eq.s32.totalorder %v6286_v32, %v3727_v61 }
 0x2f2   : > { %7076 = vst [vmem:[#allocation22_spill] sm:$0xff] %v6344_v29  ;;  %7077 = vst [vmem:[#allocation23_spill] sm:$0xff] %v6346_v24  ;;  %v1576_v26 = vsel %vm1512_vm14, %v7075_v25, 0.0  ;;  %v1786_v7 = vsel %vm1722_vm12, %v7075_v25, 0.0  ;;  %v1996_v34 = vsel %vm1932_vm15, %v7075_v25, 0.0  ;;  %v2206_v41 = vsel %vm2142_vm4, %v7075_v25, 0.0 }
 0x2f3   : > { %v1610_v13 = vadd.f32 %v1609_v40, %v1576_v26  ;;  %v1820_v44 = vadd.f32 %v1819_v45, %v1786_v7  ;;  %v2030_v36 = vadd.f32 %v2029_v43, %v1996_v34  ;;  %v2240_v31 = vadd.f32 %v2239_v18, %v2206_v41 }
 0x2f4   : > { %vm2352_vm13 = vcmp.eq.s32.totalorder %v6286_v32, %v3729_v62  ;;  %vm2562_vm3 = vcmp.eq.s32.totalorder %v6286_v32, %v3731_v63  ;;  %vm2772_vm7 = vcmp.eq.s32.totalorder %v6286_v32, %v3739_v3  ;;  %v6367_v16 = vadd.s32 240, %v7057_v22 }
 0x2f5   : > { %v2416_v37 = vsel %vm2352_vm13, %v7075_v25, 0.0  ;;  %v2626_v21 = vsel %vm2562_vm3, %v7075_v25, 0.0  ;;  %v2836_v40 = vsel %vm2772_vm7, %v7075_v25, 0.0  ;;  %vm1093_vm10 = vcmp.eq.s32.totalorder %v6286_v32, %v3717_v55 }
 0x2f6   : > { %v2450_v45 = vadd.f32 %v2449_v28, %v2416_v37  ;;  %v2660_v48 = vadd.f32 %v2659_v46, %v2626_v21  ;;  %v2870_v43 = vadd.f32 %v2869_v17, %v2836_v40  ;;  %vm1303_vm6 = vcmp.eq.s32.totalorder %v6286_v32, %v3719_v56 }
 0x2f7   : > { %vm1513_vm0 = vcmp.eq.s32.totalorder %v6286_v32, %v3721_v58  ;;  %vm1723_vm8 = vcmp.eq.s32.totalorder %v6286_v32, %v3733_v0  ;;  %vm1933_vm11 = vcmp.eq.s32.totalorder %v6286_v32, %v3735_v1  ;;  %v6383_v18 = vadd.s32 248, %v7057_v22 }
 0x2f8   : > { %v6386_v9 = vsel %vm1093_vm10, %v7078_v15, 0.0  ;;  %v6389_v28 = vsel %vm1303_vm6, %v7078_v15, 0.0  ;;  %v6392_v46 = vsel %vm1513_vm0, %v7078_v15, 0.0  ;;  %vm2143_vm9 = vcmp.eq.s32.totalorder %v6286_v32, %v3737_v2 }
 0x2f9   : > { %v6397_v33 = vsel %vm1723_vm8, %v7078_v15, 0.0  ;;  %v6400_v42 = vsel %vm1933_vm11, %v7078_v15, 0.0  ;;  %vm2353_vm5 = vcmp.eq.s32.totalorder %v6286_v32, %v3741_v4  ;;  %vm2563_vm2 = vcmp.eq.s32.totalorder %v6286_v32, %v3743_v5 }
 0x2fa   : > { %v6407_v17 = vsel %vm2143_vm9, %v7078_v15, 0.0  ;;  %v6410_v12 = vsel %vm2353_vm5, %v7078_v15, 0.0  ;;  %v6413_v30 = vsel %vm2563_vm2, %v7078_v15, 0.0  ;;  %vm1094_vm1 = vcmp.eq.s32.totalorder %v6367_v16, %v3711_v51 }
 0x2fb   : > { %7079 = vst [vmem:[#allocation24_spill] sm:$0xff] %v6413_v30  ;;  %v1158_v19 = vsel %vm1094_vm1, %v7080_v27, 0.0  ;;  %vm1304_vm14 = vcmp.eq.s32.totalorder %v6367_v16, %v3713_v52  ;;  %vm1514_vm12 = vcmp.eq.s32.totalorder %v6367_v16, %v3715_v54  ;;  %vm1724_vm15 = vcmp.eq.s32.totalorder %v6367_v16, %v3723_v59 }
 0x2fc   : > { %v1191_v39 = vadd.f32 %v1190_v23, %v1158_v19  ;;  %v1368_v11 = vsel %vm1304_vm14, %v7080_v27, 0.0  ;;  %v1578_v25 = vsel %vm1514_vm12, %v7080_v27, 0.0  ;;  %v1788_v14 = vsel %vm1724_vm15, %v7080_v27, 0.0 }
 0x2fd   : > { %v1401_v47 = vadd.f32 %v1400_v53, %v1368_v11  ;;  %v1611_v26 = vadd.f32 %v1610_v13, %v1578_v25  ;;  %v1821_v7 = vadd.f32 %v1820_v44, %v1788_v14  ;;  %vm1934_vm4 = vcmp.eq.s32.totalorder %v6367_v16, %v3725_v60 }
 0x2fe   : > { %v1998_v34 = vsel %vm1934_vm4, %v7080_v27, 0.0  ;;  %vm2144_vm13 = vcmp.eq.s32.totalorder %v6367_v16, %v3727_v61  ;;  %vm2354_vm3 = vcmp.eq.s32.totalorder %v6367_v16, %v3729_v62  ;;  %vm2564_vm7 = vcmp.eq.s32.totalorder %v6367_v16, %v3731_v63 }
 0x2ff   : > { %v2031_v23 = vadd.f32 %v2030_v36, %v1998_v34  ;;  %v2208_v41 = vsel %vm2144_vm13, %v7080_v27, 0.0  ;;  %v2418_v53 = vsel %vm2354_vm3, %v7080_v27, 0.0  ;;  %v2628_v13 = vsel %vm2564_vm7, %v7080_v27, 0.0 }
 0x300   : > { %v2241_v44 = vadd.f32 %v2240_v31, %v2208_v41  ;;  %v2451_v37 = vadd.f32 %v2450_v45, %v2418_v53  ;;  %v2661_v21 = vadd.f32 %v2660_v48, %v2628_v13  ;;  %vm2774_vm10 = vcmp.eq.s32.totalorder %v6367_v16, %v3739_v3 }
 0x301   : > { %v2838_v40 = vsel %vm2774_vm10, %v7080_v27, 0.0  ;;  %vm1096_vm6 = vcmp.eq.s32.totalorder %v6383_v18, %v3711_v51  ;;  %vm1306_vm0 = vcmp.eq.s32.totalorder %v6383_v18, %v3713_v52  ;;  %vm1516_vm8 = vcmp.eq.s32.totalorder %v6383_v18, %v3715_v54 }
 0x302   : > { %v6448_v36 = vadd.f32 %v2870_v43, %v2838_v40  ;;  %v1160_v31 = vsel %vm1096_vm6, %v5936_v50, 0.0  ;;  %v1370_v45 = vsel %vm1306_vm0, %v5936_v50, 0.0  ;;  %v1580_v48 = vsel %vm1516_vm8, %v5936_v50, 0.0 }
 0x303   : > { %v1192_v19 = vadd.f32 %v1191_v39, %v1160_v31  ;;  %v1402_v11 = vadd.f32 %v1401_v47, %v1370_v45  ;;  %v1612_v27 = vadd.f32 %v1611_v26, %v1580_v48  ;;  %vm1726_vm11 = vcmp.eq.s32.totalorder %v6383_v18, %v3723_v59 }
 0x304   : > { %v1790_v51 = vsel %vm1726_vm11, %v5936_v50, 0.0  ;;  %vm1936_vm9 = vcmp.eq.s32.totalorder %v6383_v18, %v3725_v60  ;;  %vm2146_vm5 = vcmp.eq.s32.totalorder %v6383_v18, %v3727_v61  ;;  %vm2356_vm2 = vcmp.eq.s32.totalorder %v6383_v18, %v3729_v62 }
 0x305   : > { %v1193_v52 = vrot.slane %v1192_v19, 4  ;;  %v1403_v54 = vrot.slane %v1402_v11, 4  ;;  %v1613_v43 = vrot.slane %v1612_v27, 4  ;;  %v1822_v39 = vadd.f32 %v1821_v7, %v1790_v51 }
 0x306   : > { %vm2773_vm1 = vcmp.eq.s32.totalorder %v6286_v32, %v3745_v6  ;;  %v2000_v59 = vsel %vm1936_vm9, %v5936_v50, 0.0  ;;  %v2210_v25 = vsel %vm2146_vm5, %v5936_v50, 0.0  ;;  %v2420_v14 = vsel %vm2356_vm2, %v5936_v50, 0.0 }
 0x307   : > { %vm2566_vm14 = vcmp.eq.s32.totalorder %v6383_v18, %v3731_v63  ;;  %vm2916_vm12 = vcmask 1040384   ;;  %v1194_v60 = vadd.f32 %v1193_v52, %v1192_v19  ;;  %v1404_v61 = vadd.f32 %v1403_v54, %v1402_v11 }
 0x308   : > { %v1614_v62 = vadd.f32 %v1613_v43, %v1612_v27  ;;  %v1823_v47 = vrot.slane %v1822_v39, 4  ;;  %v2032_v26 = vadd.f32 %v2031_v23, %v2000_v59  ;;  %v2242_v34 = vadd.f32 %v2241_v44, %v2210_v25 }
 0x309   : > { %v2452_v7 = vadd.f32 %v2451_v37, %v2420_v14  ;;  %v2630_v41 = vsel %vm2566_vm14, %v5936_v50, 0.0  ;;  %vm2919_vm15 = vcmask 1041408   ;;  %v1195_v53 = vrot.slane %v1194_v60, 2 }
 0x30a   : > { %v1405_v13 = vrot.slane %v1404_v61, 2  ;;  %v1615_v40 = vrot.slane %v1614_v62, 2  ;;  %v1824_v31 = vadd.f32 %v1823_v47, %v1822_v39  ;;  %v2033_v45 = vrot.slane %v2032_v26, 4 }
 0x30b   : > { %v2243_v48 = vrot.slane %v2242_v34, 4  ;;  %v2453_v51 = vrot.slane %v2452_v7, 4  ;;  %v2662_v22 = vadd.f32 %v2661_v21, %v2630_v41  ;;  %v1196_v63 = vadd.f32 %v1195_v53, %v1194_v60 }
 0x30c   : > { %v1406_v24 = vadd.f32 %v1405_v13, %v1404_v61  ;;  %v1616_v19 = vadd.f32 %v1615_v40, %v1614_v62  ;;  %v1825_v11 = vrot.slane %v1824_v31, 2  ;;  %v2034_v27 = vadd.f32 %v2033_v45, %v2032_v26  ;;  %v7081_v40 = vld [vmem:[#allocation20_spill] sm:$0xff] }
 0x30d   : > { %v2244_v52 = vadd.f32 %v2243_v48, %v2242_v34  ;;  %v2454_v23 = vadd.f32 %v2453_v51, %v2452_v7  ;;  %v2663_v44 = vrot.slane %v2662_v22, 4  ;;  %v1197_v37 = vrot.slane %v1196_v63, 1 }
 0x30e   : > { %v1407_v54 = vrot.slane %v1406_v24, 1  ;;  %v1617_v43 = vrot.slane %v1616_v19, 1  ;;  %v1826_v59 = vadd.f32 %v1825_v11, %v1824_v31  ;;  %v2035_v25 = vrot.slane %v2034_v27, 2 }
 0x30f   : > { %v2245_v14 = vrot.slane %v2244_v52, 2  ;;  %v2455_v29 = vrot.slane %v2454_v23, 2  ;;  %v2664_v39 = vadd.f32 %v2663_v44, %v2662_v22  ;;  %v1198_v47 = vadd.f32 %v1197_v37, %v1196_v63 }
 0x310   : > { %v1408_v30 = vadd.f32 %v1407_v54, %v1406_v24  ;;  %v1618_v5 = vadd.f32 %v1617_v43, %v1616_v19  ;;  %v1827_v21 = vrot.slane %v1826_v59, 1  ;;  %v2036_v60 = vadd.f32 %v2035_v25, %v2034_v27 }
 0x311   : > { %v2246_v61 = vadd.f32 %v2245_v14, %v2244_v52  ;;  %v2456_v62 = vadd.f32 %v2455_v29, %v2454_v23  ;;  %v2665_v41 = vrot.slane %v2664_v39, 2  ;;  %v6474_v26 = vsel %vm2773_vm1, %v7078_v15, 0.0 }
 0x312   : > { %vm2776_vm4 = vcmp.eq.s32.totalorder %v6383_v18, %v3739_v3  ;;  %v2917_v34 = vsel %vm2916_vm12, %v1198_v47, %v1408_v30  ;;  %vm1095_vm13 = vcmp.eq.s32.totalorder %v6367_v16, %v3717_v55  ;;  %v2037_v22 = vrot.slane %v2036_v60, 1 }
 0x313   : > { %v2247_v24 = vrot.slane %v2246_v61, 1  ;;  %v2457_v7 = vrot.slane %v2456_v62, 1  ;;  %v2666_v53 = vadd.f32 %v2665_v41, %v2664_v39  ;;  %v6481_v29 = vadd.f32 %v1827_v21, %v1826_v59 }
 0x314   : > { %v2840_v13 = vsel %vm2776_vm4, %v5936_v50, 0.0  ;;  %v6485_v32 = vsel %vm2919_vm15, %v2917_v34, %v1618_v5  ;;  %vm1097_vm3 = vcmp.eq.s32.totalorder %v6383_v18, %v3717_v55  ;;  %v6489_v3 = vadd.f32 %v2037_v22, %v2036_v60  ;;  %v7082_v5 = vld [vmem:[#allocation21_spill] sm:$0xff] }
 0x315   : > { %v6491_v15 = vadd.f32 %v2247_v24, %v2246_v61  ;;  %v6493_v30 = vadd.f32 %v2457_v7, %v2456_v62  ;;  %v1159_v31 = vsel %vm1095_vm13, %v7081_v40, 0.0  ;;  %v2667_v45 = vrot.slane %v2666_v53, 1 }
 0x316   : > { %v2872_v48 = vadd.f32 %v6448_v36, %v2840_v13  ;;  %v1227_v50 = vadd.f32 %v6312_v10, %v6386_v9  ;;  %vm1305_vm7 = vcmp.eq.s32.totalorder %v6367_v16, %v3719_v56  ;;  %v1161_v51 = vsel %vm1097_vm3, %v7082_v5, 0.0 }
 0x317   : > { %vm1307_vm10 = vcmp.eq.s32.totalorder %v6383_v18, %v3719_v56  ;;  %v1369_v55 = vsel %vm1305_vm7, %v7081_v40, 0.0  ;;  %v1437_v63 = vadd.f32 %v6314_v57, %v6389_v28  ;;  %vm1515_vm6 = vcmp.eq.s32.totalorder %v6367_v16, %v3721_v58 }
 0x318   : > { %v2873_v19 = vrot.slane %v2872_v48, 4  ;;  %v1228_v11 = vadd.f32 %v1227_v50, %v1159_v31  ;;  %v1371_v36 = vsel %vm1307_vm10, %v7082_v5, 0.0  ;;  %vm1517_vm0 = vcmp.eq.s32.totalorder %v6383_v18, %v3721_v58 }
 0x319   : > { %v1438_v10 = vadd.f32 %v1437_v63, %v1369_v55  ;;  %v1579_v9 = vsel %vm1515_vm6, %v7081_v40, 0.0  ;;  %v1647_v56 = vadd.f32 %v6316_v38, %v6392_v46  ;;  %v1581_v57 = vsel %vm1517_vm0, %v7082_v5, 0.0 }
 0x31a   : > { %v2874_v27 = vadd.f32 %v2873_v19, %v2872_v48  ;;  %v1229_v52 = vadd.f32 %v1228_v11, %v1161_v51  ;;  %vm1725_vm8 = vcmp.eq.s32.totalorder %v6367_v16, %v3733_v0  ;;  %vm1727_vm11 = vcmp.eq.s32.totalorder %v6383_v18, %v3733_v0 }
 0x31b   : > { %v1439_v28 = vadd.f32 %v1438_v10, %v1371_v36  ;;  %v1648_v23 = vadd.f32 %v1647_v56, %v1579_v9  ;;  %v1789_v44 = vsel %vm1725_vm8, %v7081_v40, 0.0  ;;  %v1791_v54 = vsel %vm1727_vm11, %v7082_v5, 0.0 }
 0x31c   : > { %v2875_v58 = vrot.slane %v2874_v27, 2  ;;  %v1230_v37 = vrot.slane %v1229_v52, 4  ;;  %v1857_v38 = vadd.f32 %v6326_v8, %v6397_v33  ;;  %vm1935_vm9 = vcmp.eq.s32.totalorder %v6367_v16, %v3735_v1 }
 0x31d   : > { %v1440_v46 = vrot.slane %v1439_v28, 4  ;;  %v1649_v43 = vadd.f32 %v1648_v23, %v1581_v57  ;;  %vm1937_vm5 = vcmp.eq.s32.totalorder %v6383_v18, %v3735_v1  ;;  %v1999_v14 = vsel %vm1935_vm9, %v7081_v40, 0.0  ;;  %v7083_v23 = vld [vmem:[#allocation12_spill] sm:$0xff] }
 0x31e   : > { %v2876_v59 = vadd.f32 %v2875_v58, %v2874_v27  ;;  %v1231_v25 = vadd.f32 %v1230_v37, %v1229_v52  ;;  %v1858_v0 = vadd.f32 %v1857_v38, %v1789_v44  ;;  %v2001_v21 = vsel %vm1937_vm5, %v7082_v5, 0.0 }
 0x31f   : > { %v1441_v39 = vadd.f32 %v1440_v46, %v1439_v28  ;;  %v1650_v47 = vrot.slane %v1649_v43, 4  ;;  %v2067_v8 = vadd.f32 %v6328_v20, %v6400_v42  ;;  %vm2145_vm2 = vcmp.eq.s32.totalorder %v6367_v16, %v3737_v2  ;;  %v7084_v46 = vld [vmem:[#allocation24_spill] sm:$0xff] }
 0x320   : > { %v2877_v33 = vrot.slane %v2876_v59, 1  ;;  %v1232_v60 = vrot.slane %v1231_v25, 2  ;;  %v1859_v61 = vadd.f32 %v1858_v0, %v1791_v54  ;;  %vm2147_vm1 = vcmp.eq.s32.totalorder %v6383_v18, %v3737_v2 }
 0x321   : > { %v1442_v62 = vrot.slane %v1441_v39, 2  ;;  %v1651_v1 = vadd.f32 %v1650_v47, %v1649_v43  ;;  %v2068_v41 = vadd.f32 %v2067_v8, %v1999_v14  ;;  %v6536_v34 = vadd.f32 %v2667_v45, %v2666_v53  ;;  %v7085_v43 = vld [vmem:[#allocation22_spill] sm:$0xff] }
 0x322   : > { %v6538_v22 = vadd.f32 %v2877_v33, %v2876_v59  ;;  %v1233_v24 = vadd.f32 %v1232_v60, %v1231_v25  ;;  %v1860_v7 = vrot.slane %v1859_v61, 4  ;;  %v2209_v31 = vsel %vm2145_vm2, %v7081_v40, 0.0  ;;  %v7086_v33 = vld [vmem:[#allocation23_spill] sm:$0xff] }
 0x323   : > { %v1443_v13 = vadd.f32 %v1442_v62, %v1441_v39  ;;  %v1652_v20 = vrot.slane %v1651_v1, 2  ;;  %v2069_v42 = vadd.f32 %v2068_v41, %v2001_v21  ;;  %v2211_v51 = vsel %vm2147_vm1, %v7082_v5, 0.0 }
 0x324   : > { %v1234_v48 = vrot.slane %v1233_v24, 1  ;;  %v1861_v50 = vadd.f32 %v1860_v7, %v1859_v61  ;;  %v2277_v55 = vadd.f32 %v6330_v49, %v6407_v17  ;;  %vm2922_vm14 = vcmask 1042432  }
 0x325   : > { %v1444_v2 = vrot.slane %v1443_v13, 1  ;;  %v1653_v53 = vadd.f32 %v1652_v20, %v1651_v1  ;;  %v2070_v45 = vrot.slane %v2069_v42, 4  ;;  %vm2355_vm4 = vcmp.eq.s32.totalorder %v6367_v16, %v3741_v4 }
 0x326   : > { %v1235_v63 = vadd.f32 %v1234_v48, %v1233_v24  ;;  %v1862_v19 = vrot.slane %v1861_v50, 2  ;;  %v2278_v11 = vadd.f32 %v2277_v55, %v2209_v31  ;;  %vm2357_vm13 = vcmp.eq.s32.totalorder %v6383_v18, %v3741_v4 }
 0x327   : > { %v1445_v36 = vadd.f32 %v1444_v2, %v1443_v13  ;;  %v1654_v10 = vrot.slane %v1653_v53, 1  ;;  %v2071_v9 = vadd.f32 %v2070_v45, %v2069_v42  ;;  %v2419_v56 = vsel %vm2355_vm4, %v7081_v40, 0.0 }
 0x328   : > { %vm2927_vm3 = vcmask 1044480   ;;  %v1863_v49 = vadd.f32 %v1862_v19, %v1861_v50  ;;  %v2279_v17 = vadd.f32 %v2278_v11, %v2211_v51  ;;  %v2421_v27 = vsel %vm2357_vm13, %v7082_v5, 0.0 }
 0x329   : > { %v2487_v52 = vadd.f32 %v6332_v35, %v6410_v12  ;;  %v1655_v57 = vadd.f32 %v1654_v10, %v1653_v53  ;;  %v2072_v28 = vrot.slane %v2071_v9, 2  ;;  %vm2565_vm7 = vcmp.eq.s32.totalorder %v6367_v16, %v7083_v23 }
 0x32a   : > { %vm2567_vm10 = vcmp.eq.s32.totalorder %v6383_v18, %v7083_v23  ;;  %v1864_v4 = vrot.slane %v1863_v49, 1  ;;  %v2280_v44 = vrot.slane %v2279_v17, 4  ;;  %v2629_v37 = vsel %vm2565_vm7, %v7081_v40, 0.0 }
 0x32b   : > { %v2488_v58 = vadd.f32 %v2487_v52, %v2419_v56  ;;  %v2073_v54 = vadd.f32 %v2072_v28, %v2071_v9  ;;  %v2631_v38 = vsel %vm2567_vm10, %v7082_v5, 0.0  ;;  %v2697_v59 = vadd.f32 %v7085_v43, %v7084_v46  ;;  %v7089_v52 = vld [vmem:[#allocation10_spill] sm:$0xff] }
 0x32c   : > { %vm2775_vm6 = vcmp.eq.s32.totalorder %v6367_v16, %v3745_v6  ;;  %v1865_v35 = vadd.f32 %v1864_v4, %v1863_v49  ;;  %v2281_v12 = vadd.f32 %v2280_v44, %v2279_v17  ;;  %vm2777_vm0 = vcmp.eq.s32.totalorder %v6383_v18, %v3745_v6  ;;  %v7090_v4 = vld [vmem:[#allocation13_spill] sm:$0xff] }
 0x32d   : > { %v2489_v25 = vadd.f32 %v2488_v58, %v2421_v27  ;;  %v2074_v0 = vrot.slane %v2073_v54, 1  ;;  %v2698_v14 = vadd.f32 %v2697_v59, %v2629_v37  ;;  %v2839_v39 = vsel %vm2775_vm6, %v7081_v40, 0.0 }
 0x32e   : > { %v2841_v47 = vsel %vm2777_vm0, %v7082_v5, 0.0  ;;  %v2282_v21 = vrot.slane %v2281_v12, 2  ;;  %v2907_v60 = vadd.f32 %v7086_v33, %v6474_v26  ;;  %v2918_v61 = vsel %vm2916_vm12, %v1235_v63, %v1445_v36 }
 0x32f   : > { %v2490_v8 = vrot.slane %v2489_v25, 4  ;;  %v2075_v16 = vadd.f32 %v2074_v0, %v2073_v54  ;;  %v2699_v62 = vadd.f32 %v2698_v14, %v2631_v38  ;;  %v2921_v1 = vsel %vm2919_vm15, %v2918_v61, %v1655_v57 }
 0x330   : > { %v2923_v6 = vsel %vm2922_vm14, %v6485_v32, %v6481_v29  ;;  %v2283_v18 = vadd.f32 %v2282_v21, %v2281_v12  ;;  %v2908_v40 = vadd.f32 %v2907_v60, %v2839_v39  ;;  %v2924_v5 = vsel %vm2922_vm14, %v2921_v1, %v1865_v35 }
 0x331   : > { %v2491_v41 = vadd.f32 %v2490_v8, %v2489_v25  ;;  %v2700_v24 = vrot.slane %v2699_v62, 4  ;;  %vm7087_vm8 = vcmask 1043456   ;;  %vm2930_vm9 = vcmask 1045504  }
 0x332   : > { %v2925_v7 = vsel %vm7087_vm8, %v2923_v6, %v6489_v3  ;;  %vm7088_vm11 = vmmov %vm7087_vm8  ;;  %v2284_v13 = vrot.slane %v2283_v18, 1  ;;  %v2909_v42 = vadd.f32 %v2908_v40, %v2841_v47  ;;  %v2940_v29 = vsel %vm2916_vm12, %v6538_v22, -inf }
 0x333   : > { %v2926_v26 = vsel %vm7088_vm11, %v2924_v5, %v2075_v16  ;;  %v2492_v20 = vrot.slane %v2491_v41, 2  ;;  %v2928_v31 = vsel %vm2927_vm3, %v2925_v7, %v6491_v15  ;;  %v2701_v32 = vadd.f32 %v2700_v24, %v2699_v62 }
 0x334   : > { %v2931_v48 = vsel %vm2930_vm9, %v2928_v31, %v6493_v30  ;;  %vm2933_vm5 = vcmask 1046528   ;;  %v2285_v50 = vadd.f32 %v2284_v13, %v2283_v18  ;;  %v2910_v3 = vrot.slane %v2909_v42, 4 }
 0x335   : > { %v2493_v51 = vadd.f32 %v2492_v20, %v2491_v41  ;;  %v6585_v55 = vsel %vm2933_vm5, %v2931_v48, %v6536_v34  ;;  %v2702_v2 = vrot.slane %v2701_v32, 2  ;;  %v2990_v57 = vcvt.s32.f32 %v7089_v52 }
 0x336   : > { %v2941_v53 = vmax.f32 %v6585_v55, %v2940_v29  ;;  %v2911_v15 = vadd.f32 %v2910_v3, %v2909_v42  ;;  %v2929_v63 = vsel %vm2927_vm3, %v2926_v26, %v2285_v50  ;;  %v2991_v44 = vcvt.s32.f32 %v7090_v4 }
 0x337   : > { %v2494_v45 = vrot.slane %v2493_v51, 1  ;;  %v2703_v19 = vadd.f32 %v2702_v2, %v2701_v32  ;;  %v6599_v38 = vsub.f32 8.0, %v2990_v57 }
 0x338   : > { %v2942_v11 = vrot.slane %v2941_v53, 4  ;;  %v2912_v10 = vrot.slane %v2911_v15, 2  ;;  %v6602_v59 = vsub.f32 8.0, %v2991_v44 }
 0x339   : > { %v2495_v36 = vadd.f32 %v2494_v45, %v2493_v51  ;;  %v2704_v30 = vrot.slane %v2703_v19, 1  ;;  %v7091_v45 = vld [vmem:[#allocation7_spill] sm:$0xff] }
 0x33a   : > { %v2943_v9 = vmax.f32 %v2941_v53, %v2942_v11  ;;  %v2913_v56 = vadd.f32 %v2912_v10, %v2911_v15 }
 0x33b   : > { %v2932_v49 = vsel %vm2930_vm9, %v2929_v63, %v2495_v36  ;;  %v2705_v17 = vadd.f32 %v2704_v30, %v2703_v19  ;;  %v7092_v63 = vld [vmem:[#allocation9_spill] sm:$0xff] }
 0x33c   : > { %v2944_v27 = vrot.slane %v2943_v9, 2  ;;  %v2914_v34 = vrot.slane %v2913_v56, 1 }
 0x33d   : > { %v6592_v28 = vsel %vm2933_vm5, %v2932_v49, %v2705_v17 }
 0x33e   : > { %v2945_v23 = vmax.f32 %v2943_v9, %v2944_v27  ;;  %v6595_v58 = vadd.f32 %v2914_v34, %v2913_v56 }
 0x340   : > { %v2946_v37 = vrot.slane %v2945_v23, 1  ;;  %v2948_v54 = vsel %vm2916_vm12, %v6595_v58, -inf }
 0x341   : > { %v2949_v43 = vmax.f32 %v6592_v28, %v2948_v54 }
 0x342   : > { %v2947_v46 = vmax.f32 %v2945_v23, %v2946_v37 }
 0x343   : > { %v2950_v35 = vrot.slane %v2949_v43, 4 }
 0x344   : > { %v2956_v12 = vsub.f32 %v6585_v55, %v2947_v46  ;;  %v2958_v25 = vsub.f32 %v6538_v22, %v2947_v46  ;;  %vm2994_vm2 = vcmp.eq.f32.partialorder %v6585_v55, %v2947_v46  ;;  %vm2996_vm1 = vcmp.eq.f32.partialorder %v6538_v22, %v2947_v46 }
 0x345   : > { %v2998_v0 = vsel %vm2994_vm2, %v6599_v38, -1.0  ;;  %v2951_v14 = vmax.f32 %v2949_v43, %v2950_v35  ;;  %v3000_v21 = vsel %vm2996_vm1, %v6602_v59, -1.0 }
 0x346   : > { %v2960_v39 = vmul.f32 1.442695, %v2956_v12  ;;  %v2964_v47 = vmul.f32 1.442695, %v2958_v25  ;;  %v3002_v8 = vsel %vm2916_vm12, %v3000_v21, -inf  ;;  %v7093_v12 = vld [vmem:[#allocation8_spill] sm:$0xff] }
 0x347   : > { %v2952_v33 = vrot.slane %v2951_v14, 2  ;;  %v3003_v60 = vmax.f32 %v2998_v0, %v3002_v8  ;;  %v7094_v0 = vld [vmem:[#allocation11_spill] sm:$0xff] }
 0x348   : > { %3503 = vpow2.f32 %v2960_v39 }
 0x349   : > { %3505 = vpow2.f32 %v2964_v47  ;;  %v2953_v61 = vmax.f32 %v2951_v14, %v2952_v33  ;;  %v3004_v16 = vrot.slane %v3003_v60, 4 }
 0x34b   : > { %v2954_v62 = vrot.slane %v2953_v61, 1  ;;  %v3005_v1 = vmax.f32 %v3003_v60, %v3004_v16 }
 0x34d   : > { %v2955_v6 = vmax.f32 %v2953_v61, %v2954_v62  ;;  %v3006_v18 = vrot.slane %v3005_v1, 2 }
 0x34f   : > { %v2957_v41 = vsub.f32 %v6592_v28, %v2955_v6  ;;  %v2959_v40 = vsub.f32 %v6595_v58, %v2955_v6  ;;  %vm2995_vm4 = vcmp.eq.f32.partialorder %v6592_v28, %v2955_v6  ;;  %vm2997_vm13 = vcmp.eq.f32.partialorder %v6595_v58, %v2955_v6 }
 0x350   : > { %v2999_v5 = vsel %vm2995_vm4, %v6599_v38, -1.0  ;;  %v3001_v24 = vsel %vm2997_vm13, %v6602_v59, -1.0  ;;  %v3007_v7 = vmax.f32 %v3005_v1, %v3006_v18 }
 0x351   : > { %v2962_v13 = vmul.f32 1.442695, %v2957_v41  ;;  %v2966_v20 = vmul.f32 1.442695, %v2959_v40  ;;  %v3010_v42 = vsel %vm2916_vm12, %v3001_v24, -inf }
 0x352   : > { %v6617_v26 = vpop.eup %3503  ;;  %v3008_v29 = vrot.slane %v3007_v7, 1  ;;  %v3011_v32 = vmax.f32 %v2999_v5, %v3010_v42 }
 0x353   : > { %v6620_v31 = vpop.eup %3505  ;;  %3507 = vpow2.f32 %v2962_v13 }
 0x354   : > { %v2968_v48 = vsel %vm2916_vm12, %v6620_v31, 0.0  ;;  %3509 = vpow2.f32 %v2966_v20  ;;  %v6625_v51 = vmax.f32 %v3007_v7, %v3008_v29  ;;  %v3012_v3 = vrot.slane %v3011_v32, 4 }
 0x355   : > { %v2969_v50 = vadd.f32 %v6617_v26, %v2968_v48 }
 0x356   : > { %v3013_v53 = vmax.f32 %v3011_v32, %v3012_v3  ;;  %vm3018_vm3 = vcmp.eq.f32.partialorder %v6599_v38, %v6625_v51  ;;  %vm3020_vm7 = vcmp.eq.f32.partialorder %v6602_v59, %v6625_v51 }
 0x357   : > { %v2970_v2 = vrot.slane %v2969_v50, 4  ;;  %v3042_v15 = vsel %vm3018_vm3, %v7091_v45, 0.0  ;;  %v3044_v19 = vsel %vm3020_vm7, %v7092_v63, 0.0  ;;  %v6643_v11 = vsel %vm3018_vm3, -inf, %v6585_v55 }
 0x358   : > { %v6649_v36 = vsel %vm3020_vm7, -inf, %v6538_v22  ;;  %v3014_v30 = vrot.slane %v3013_v53, 2  ;;  %v3046_v9 = vsel %vm2916_vm12, %v3044_v19, 0.0 }
 0x359   : > { %v2971_v10 = vadd.f32 %v2970_v2, %v2969_v50  ;;  %v3066_v56 = vsel %vm2916_vm12, %v6649_v36, -inf  ;;  %v3047_v49 = vadd.f32 %v3046_v9, %v3042_v15 }
 0x35a   : > { %v3067_v17 = vmax.f32 %v6643_v11, %v3066_v56  ;;  %v3015_v34 = vmax.f32 %v3013_v53, %v3014_v30 }
 0x35b   : > { %v2972_v27 = vrot.slane %v2971_v10, 2  ;;  %v3048_v3 = vrot.slane %v3047_v49, 4 }
 0x35c   : > { %v3068_v55 = vrot.slane %v3067_v17, 4  ;;  %v3016_v57 = vrot.slane %v3015_v34, 1 }
 0x35d   : > { %v2973_v52 = vadd.f32 %v2972_v27, %v2971_v10  ;;  %v6655_v23 = vpop.eup %3507  ;;  %v3049_v9 = vadd.f32 %v3048_v3, %v3047_v49 }
 0x35e   : > { %v3069_v4 = vmax.f32 %v3067_v17, %v3068_v55  ;;  %v6657_v22 = vpop.eup %3509  ;;  %v6659_v37 = vmax.f32 %v3015_v34, %v3016_v57 }
 0x35f   : > { %v2974_v44 = vrot.slane %v2973_v52, 1  ;;  %v2976_v54 = vsel %vm2916_vm12, %v6657_v22, 0.0 }
 0x360   : > { %v3070_v46 = vrot.slane %v3069_v4, 2  ;;  %v2977_v35 = vadd.f32 %v6655_v23, %v2976_v54  ;;  %vm3019_vm10 = vcmp.eq.f32.partialorder %v6599_v38, %v6659_v37  ;;  %vm3021_vm6 = vcmp.eq.f32.partialorder %v6602_v59, %v6659_v37 }
 0x361   : > { %v2975_v43 = vadd.f32 %v2974_v44, %v2973_v52  ;;  %v3043_v25 = vsel %vm3019_vm10, %v7093_v12, 0.0  ;;  %v3045_v14 = vsel %vm3021_vm6, %v7094_v0, 0.0  ;;  %v6680_v39 = vsel %vm3019_vm10, -inf, %v6592_v28 }
 0x362   : > { %v2978_v47 = vrot.slane %v2977_v35, 4  ;;  %v3054_v21 = vsel %vm2916_vm12, %v3045_v14, 0.0  ;;  %v6687_v8 = vsel %vm3021_vm6, -inf, %v6595_v58  ;;  %v3071_v60 = vmax.f32 %v3069_v4, %v3070_v46 }
 0x363   : > { %3511 = vrcp.f32 %v2975_v43  ;;  %v3055_v33 = vadd.f32 %v3054_v21, %v3043_v25  ;;  %v3074_v61 = vsel %vm2916_vm12, %v6687_v8, -inf  ;;  %v3050_v4 = vrot.slane %v3049_v9, 2 }
 0x364   : > { %v2979_v16 = vadd.f32 %v2978_v47, %v2977_v35  ;;  %v3075_v62 = vmax.f32 %v6680_v39, %v3074_v61  ;;  %v3072_v28 = vrot.slane %v3071_v60, 1 }
 0x365   : > { %v3056_v54 = vrot.slane %v3055_v33, 4  ;;  %v6723_v21 = vadd.f32 %v3050_v4, %v3049_v9 }
 0x366   : > { %v2980_v1 = vrot.slane %v2979_v16, 2  ;;  %v3076_v6 = vrot.slane %v3075_v62, 4  ;;  %v3073_v18 = vmax.f32 %v3071_v60, %v3072_v28 }
 0x367   : > { %v3057_v61 = vadd.f32 %v3056_v54, %v3055_v33 }
 0x368   : > { %v2981_v41 = vadd.f32 %v2980_v1, %v2979_v16  ;;  %v3077_v40 = vmax.f32 %v3075_v62, %v3076_v6  ;;  %vm3082_vm0 = vcmp.eq.f32.partialorder %v6643_v11, %v3073_v18  ;;  %vm3084_vm8 = vcmp.eq.f32.partialorder %v6649_v36, %v3073_v18 }
 0x369   : > { %v3086_v24 = vsel %vm3082_vm0, %v6599_v38, -1.0  ;;  %v3088_v7 = vsel %vm3084_vm8, %v6602_v59, -1.0 }
 0x36a   : > { %v2982_v58 = vrot.slane %v2981_v41, 1  ;;  %v3078_v5 = vrot.slane %v3077_v40, 2  ;;  %v3090_v13 = vsel %vm2916_vm12, %v3088_v7, -inf }
 0x36b   : > { %v3091_v32 = vmax.f32 %v3086_v24, %v3090_v13 }
 0x36c   : > { %v2983_v42 = vadd.f32 %v2982_v58, %v2981_v41  ;;  %v3079_v29 = vmax.f32 %v3077_v40, %v3078_v5 }
 0x36d   : > { %v3512_v20 = vpop.eup %3511  ;;  %v3092_v53 = vrot.slane %v3091_v32, 4 }
 0x36e   : > { %v6698_v48 = vmul.f32 %v3512_v20, %v6617_v26  ;;  %v6701_v50 = vmul.f32 %v3512_v20, %v6620_v31  ;;  %3513 = vrcp.f32 %v2983_v42  ;;  %v3080_v2 = vrot.slane %v3079_v29, 1 }
 0x36f   : > { %v3093_v30 = vmax.f32 %v3091_v32, %v3092_v53  ;;  %v3058_v53 = vrot.slane %v3057_v61, 2 }
 0x370   : > { %v3022_v15 = vsel %vm3018_vm3, %v6698_v48, 0.0  ;;  %v3024_v19 = vsel %vm3020_vm7, %v6701_v50, 0.0  ;;  %v3081_v10 = vmax.f32 %v3079_v29, %v3080_v2 }
 0x371   : > { %v3026_v26 = vsel %vm2916_vm12, %v3024_v19, 0.0  ;;  %v3094_v56 = vrot.slane %v3093_v30, 2  ;;  %v3059_v4 = vadd.f32 %v3058_v53, %v3057_v61 }
 0x372   : > { %v3027_v31 = vadd.f32 %v3026_v26, %v3022_v15  ;;  %vm3083_vm11 = vcmp.eq.f32.partialorder %v6680_v39, %v3081_v10  ;;  %vm3085_vm5 = vcmp.eq.f32.partialorder %v6687_v8, %v3081_v10 }
 0x373   : > { %v3087_v27 = vsel %vm3083_vm11, %v6599_v38, -1.0  ;;  %v3089_v34 = vsel %vm3085_vm5, %v6602_v59, -1.0  ;;  %v3095_v55 = vmax.f32 %v3093_v30, %v3094_v56 }
 0x374   : > { %v3028_v17 = vrot.slane %v3027_v31, 4  ;;  %v3098_v51 = vsel %vm2916_vm12, %v3089_v34, -inf }
 0x375   : > { %v3099_v57 = vmax.f32 %v3087_v27, %v3098_v51  ;;  %v3096_v44 = vrot.slane %v3095_v55, 1 }
 0x376   : > { %v3029_v52 = vadd.f32 %v3028_v17, %v3027_v31 }
 0x377   : > { %v3100_v46 = vrot.slane %v3099_v57, 4  ;;  %v3097_v35 = vmax.f32 %v3095_v55, %v3096_v44 }
 0x378   : > { %v3514_v49 = vpop.eup %3513  ;;  %v3030_v43 = vrot.slane %v3029_v52, 2 }
 0x379   : > { %v6718_v25 = vmul.f32 %v3514_v49, %v6655_v23  ;;  %v6721_v14 = vmul.f32 %v3514_v49, %v6657_v22  ;;  %v3101_v47 = vmax.f32 %v3099_v57, %v3100_v46  ;;  %vm3106_vm2 = vcmp.eq.f32.partialorder %v6599_v38, %v3097_v35 }
 0x37a   : > { %vm3108_vm1 = vcmp.eq.f32.partialorder %v6602_v59, %v3097_v35  ;;  %v3031_v16 = vadd.f32 %v3030_v43, %v3029_v52  ;;  %v3110_v28 = vsel %vm3106_vm2, %v6698_v48, 0.0  ;;  %v3130_v37 = vsel %vm3106_vm2, %v7091_v45, 0.0 }
 0x37b   : > { %v3023_v60 = vsel %vm3019_vm10, %v6718_v25, 0.0  ;;  %v3025_v23 = vsel %vm3021_vm6, %v6721_v14, 0.0  ;;  %v3102_v22 = vrot.slane %v3101_v47, 2  ;;  %v3112_v1 = vsel %vm3108_vm1, %v6701_v50, 0.0 }
 0x37c   : > { %v3034_v62 = vsel %vm2916_vm12, %v3025_v23, 0.0  ;;  %v3114_v41 = vsel %vm2916_vm12, %v3112_v1, 0.0  ;;  %v3132_v40 = vsel %vm3108_vm1, %v7092_v63, 0.0  ;;  %v6752_v58 = vsel %vm3106_vm2, -inf, %v6643_v11 }
 0x37d   : > { %v3035_v6 = vadd.f32 %v3034_v62, %v3023_v60  ;;  %v3103_v18 = vmax.f32 %v3101_v47, %v3102_v22  ;;  %v3115_v33 = vadd.f32 %v3114_v41, %v3110_v28  ;;  %v6757_v5 = vsel %vm3108_vm1, -inf, %v6649_v36 }
 0x37e   : > { %v3134_v13 = vsel %vm2916_vm12, %v3132_v40, 0.0  ;;  %v3154_v20 = vsel %vm2916_vm12, %v6757_v5, -inf  ;;  %v3052_v11 = vrot.slane %v6723_v21, 1  ;;  %v3032_v36 = vrot.slane %v3031_v16, 1 }
 0x37f   : > { %v3036_v24 = vrot.slane %v3035_v6, 4  ;;  %v3104_v7 = vrot.slane %v3103_v18, 1  ;;  %v3116_v42 = vrot.slane %v3115_v33, 4  ;;  %v3135_v29 = vadd.f32 %v3134_v13, %v3130_v37 }
 0x380   : > { %v3155_v32 = vmax.f32 %v6752_v58, %v3154_v20  ;;  %v3033_v60 = vadd.f32 %v3032_v36, %v3031_v16  ;;  %v3053_v37 = vadd.f32 %v3052_v11, %v6723_v21 }
 0x381   : > { %v3037_v3 = vadd.f32 %v3036_v24, %v3035_v6  ;;  %v3105_v2 = vmax.f32 %v3103_v18, %v3104_v7  ;;  %v3117_v15 = vadd.f32 %v3116_v42, %v3115_v33  ;;  %v3136_v19 = vrot.slane %v3135_v29, 4 }
 0x382   : > { %v3156_v26 = vrot.slane %v3155_v32, 4  ;;  %v3060_v24 = vrot.slane %v3059_v4, 1 }
 0x383   : > { %vm3107_vm4 = vcmp.eq.f32.partialorder %v6599_v38, %v3105_v2  ;;  %vm3109_vm13 = vcmp.eq.f32.partialorder %v6602_v59, %v3105_v2  ;;  %v3118_v31 = vrot.slane %v3117_v15, 2  ;;  %v3038_v56 = vrot.slane %v3037_v3, 2 }
 0x384   : > { %v3111_v10 = vsel %vm3107_vm4, %v6718_v25, 0.0  ;;  %v3113_v30 = vsel %vm3109_vm13, %v6721_v14, 0.0  ;;  %v3131_v9 = vsel %vm3107_vm4, %v7093_v12, 0.0  ;;  %v3133_v27 = vsel %vm3109_vm13, %v7094_v0, 0.0 }
 0x385   : > { %v3122_v17 = vsel %vm2916_vm12, %v3113_v30, 0.0  ;;  %v3137_v34 = vadd.f32 %v3136_v19, %v3135_v29  ;;  %v3119_v55 = vadd.f32 %v3118_v31, %v3117_v15  ;;  %v3142_v52 = vsel %vm2916_vm12, %v3133_v27, 0.0 }
 0x386   : > { %v3123_v51 = vadd.f32 %v3122_v17, %v3111_v10  ;;  %v3151_v57 = vsel %vm3107_vm4, -inf, %v6680_v39  ;;  %v3143_v54 = vadd.f32 %v3142_v52, %v3131_v9  ;;  %v3153_v46 = vsel %vm3109_vm13, -inf, %v6687_v8 }
 0x387   : > { %v3138_v44 = vrot.slane %v3137_v34, 2  ;;  %v3120_v49 = vrot.slane %v3119_v55, 1  ;;  %v3157_v35 = vmax.f32 %v3155_v32, %v3156_v26  ;;  %v3162_v47 = vsel %vm2916_vm12, %v3153_v46, -inf }
 0x388   : > { %v3124_v43 = vrot.slane %v3123_v51, 4  ;;  %v3144_v22 = vrot.slane %v3143_v54, 4  ;;  %v3163_v62 = vmax.f32 %v3151_v57, %v3162_v47  ;;  %v3039_v28 = vadd.f32 %v3038_v56, %v3037_v3 }
 0x389   : > { %v3139_v23 = vadd.f32 %v3138_v44, %v3137_v34  ;;  %v3121_v1 = vadd.f32 %v3120_v49, %v3119_v55  ;;  %v3158_v39 = vrot.slane %v3157_v35, 2  ;;  %v3061_v21 = vadd.f32 %v3060_v24, %v3059_v4 }
 0x38a   : > { %v3125_v6 = vadd.f32 %v3124_v43, %v3123_v51  ;;  %v3145_v18 = vadd.f32 %v3144_v22, %v3143_v54  ;;  %v3164_v41 = vrot.slane %v3163_v62, 4  ;;  %v3040_v20 = vrot.slane %v3039_v28, 1 }
 0x38b   : > { %v3140_v61 = vrot.slane %v3139_v23, 1  ;;  %v3159_v8 = vmax.f32 %v3157_v35, %v3158_v39  ;;  %v6783_v40 = vsel %vm2916_vm12, %v3033_v60, %v3121_v1 }
 0x38c   : > { %v3126_v33 = vrot.slane %v3125_v6, 2  ;;  %v3146_v16 = vrot.slane %v3145_v18, 2  ;;  %v3165_v13 = vmax.f32 %v3163_v62, %v3164_v41  ;;  %v3041_v36 = vadd.f32 %v3040_v20, %v3039_v28 }
 0x38d   : > { %v3141_v7 = vadd.f32 %v3140_v61, %v3139_v23  ;;  %v3160_v29 = vrot.slane %v3159_v8, 1 }
 0x38e   : > { %v3127_v42 = vadd.f32 %v3126_v33, %v3125_v6  ;;  %v3147_v32 = vadd.f32 %v3146_v16, %v3145_v18  ;;  %v3166_v3 = vrot.slane %v3165_v13, 2 }
 0x38f   : > { %v6786_v2 = vsel %vm2916_vm12, %v3053_v37, %v3141_v7  ;;  %v3161_v15 = vmax.f32 %v3159_v8, %v3160_v29 }
 0x390   : > { %v3128_v53 = vrot.slane %v3127_v42, 1  ;;  %v3148_v11 = vrot.slane %v3147_v32, 1  ;;  %v3167_v19 = vmax.f32 %v3165_v13, %v3166_v3 }
 0x391   : > { %vm3170_vm3 = vcmp.eq.f32.partialorder %v6752_v58, %v3161_v15  ;;  %vm3172_vm7 = vcmp.eq.f32.partialorder %v6757_v5, %v3161_v15 }
 0x392   : > { %v3129_v26 = vadd.f32 %v3128_v53, %v3127_v42  ;;  %v3149_v10 = vadd.f32 %v3148_v11, %v3147_v32  ;;  %v3168_v30 = vrot.slane %v3167_v19, 1  ;;  %v3174_v31 = vsel %vm3170_vm3, %v6599_v38, -1.0 }
 0x393   : > { %v3176_v9 = vsel %vm3172_vm7, %v6602_v59, -1.0 }
 0x394   : > { %v3178_v56 = vsel %vm2916_vm12, %v3176_v9, -inf  ;;  %v6794_v17 = vsel %vm2916_vm12, %v3041_v36, %v3129_v26  ;;  %v3169_v27 = vmax.f32 %v3167_v19, %v3168_v30  ;;  %v6797_v55 = vsel %vm2916_vm12, %v3061_v21, %v3149_v10 }
 0x395   : > { %v3179_v34 = vmax.f32 %v3174_v31, %v3178_v56 }
 0x396   : > { %vm3171_vm10 = vcmp.eq.f32.partialorder %v3151_v57, %v3169_v27  ;;  %vm3173_vm6 = vcmp.eq.f32.partialorder %v3153_v46, %v3169_v27 }
 0x397   : > { %v3180_v58 = vrot.slane %v3179_v34, 4  ;;  %v3175_v5 = vsel %vm3171_vm10, %v6599_v38, -1.0  ;;  %v3177_v51 = vsel %vm3173_vm6, %v6602_v59, -1.0 }
 0x398   : > { %v3186_v4 = vsel %vm2916_vm12, %v3177_v51, -inf }
 0x399   : > { %v3181_v52 = vmax.f32 %v3179_v34, %v3180_v58  ;;  %v3187_v44 = vmax.f32 %v3175_v5, %v3186_v4 }
 0x39b   : > { %v3182_v54 = vrot.slane %v3181_v52, 2  ;;  %v3188_v49 = vrot.slane %v3187_v44, 4 }
 0x39d   : > { %v3183_v43 = vmax.f32 %v3181_v52, %v3182_v54  ;;  %v3189_v35 = vmax.f32 %v3187_v44, %v3188_v49  ;;  %v7095_v49 = vld [vmem:[#allocation5_spill] sm:$0xff] }
 0x39f   : > { %v3184_v47 = vrot.slane %v3183_v43, 1  ;;  %v3190_v60 = vrot.slane %v3189_v35, 2 }
 0x3a1   : > { %v3185_v23 = vmax.f32 %v3183_v43, %v3184_v47  ;;  %v3191_v22 = vmax.f32 %v3189_v35, %v3190_v60  ;;  %v7096_v47 = vld [vmem:[#allocation3_spill] sm:$0xff] }
 0x3a3   : > { %vm3194_vm0 = vcmp.eq.f32.partialorder %v6599_v38, %v3185_v23  ;;  %vm3196_vm8 = vcmp.eq.f32.partialorder %v6602_v59, %v3185_v23  ;;  %v3192_v57 = vrot.slane %v3191_v22, 1 }
 0x3a4   : > { %v3198_v46 = vsel %vm3194_vm0, %v6698_v48, 0.0  ;;  %v3200_v62 = vsel %vm3196_vm8, %v6701_v50, 0.0  ;;  %v3218_v28 = vsel %vm3194_vm0, %v7091_v45, 0.0  ;;  %v3220_v6 = vsel %vm3196_vm8, %v7092_v63, 0.0 }
 0x3a5   : > { %v3202_v1 = vsel %vm2916_vm12, %v3200_v62, 0.0  ;;  %v3193_v39 = vmax.f32 %v3191_v22, %v3192_v57  ;;  %v3222_v18 = vsel %vm2916_vm12, %v3220_v6, 0.0  ;;  %v7098_v57 = vld [vmem:[#allocation4_spill] sm:$0xff] }
 0x3a6   : > { %v3203_v61 = vadd.f32 %v3202_v1, %v3198_v46  ;;  %v3223_v41 = vadd.f32 %v3222_v18, %v3218_v28 }
 0x3a7   : > { %vm3195_vm11 = vcmp.eq.f32.partialorder %v6599_v38, %v3193_v39  ;;  %vm3197_vm5 = vcmp.eq.f32.partialorder %v6602_v59, %v3193_v39 }
 0x3a8   : > { %v3204_v37 = vrot.slane %v3203_v61, 4  ;;  %v3199_v48 = vsel %vm3195_vm11, %v6718_v25, 0.0  ;;  %v3201_v50 = vsel %vm3197_vm5, %v6721_v14, 0.0  ;;  %v3219_v45 = vsel %vm3195_vm11, %v7093_v12, 0.0 }
 0x3a9   : > { %v3221_v33 = vsel %vm3197_vm5, %v7094_v0, 0.0  ;;  %v3210_v63 = vsel %vm2916_vm12, %v3201_v50, 0.0  ;;  %v3224_v24 = vrot.slane %v3223_v41, 4 }
 0x3aa   : > { %v3205_v8 = vadd.f32 %v3204_v37, %v3203_v61  ;;  %v3230_v7 = vsel %vm2916_vm12, %v3221_v33, 0.0  ;;  %v3211_v16 = vadd.f32 %v3210_v63, %v3199_v48 }
 0x3ab   : > { %v3231_v13 = vadd.f32 %v3230_v7, %v3219_v45  ;;  %v3225_v59 = vadd.f32 %v3224_v24, %v3223_v41 }
 0x3ac   : > { %v3206_v38 = vrot.slane %v3205_v8, 2  ;;  %v3212_v20 = vrot.slane %v3211_v16, 4 }
 0x3ad   : > { %v3232_v42 = vrot.slane %v3231_v13, 4  ;;  %v3226_v29 = vrot.slane %v3225_v59, 2 }
 0x3ae   : > { %v3207_v25 = vadd.f32 %v3206_v38, %v3205_v8  ;;  %v3213_v14 = vadd.f32 %v3212_v20, %v3211_v16 }
 0x3af   : > { %v3233_v32 = vadd.f32 %v3232_v42, %v3231_v13  ;;  %v3227_v3 = vadd.f32 %v3226_v29, %v3225_v59 }
 0x3b0   : > { %v3208_v12 = vrot.slane %v3207_v25, 1  ;;  %v3214_v0 = vrot.slane %v3213_v14, 2 }
 0x3b1   : > { %v3234_v53 = vrot.slane %v3233_v32, 2  ;;  %v3228_v21 = vrot.slane %v3227_v3, 1 }
 0x3b2   : > { %v3209_v15 = vadd.f32 %v3208_v12, %v3207_v25  ;;  %v3215_v11 = vadd.f32 %v3214_v0, %v3213_v14 }
 0x3b3   : > { %v3235_v19 = vadd.f32 %v3234_v53, %v3233_v32  ;;  %v3229_v36 = vadd.f32 %v3228_v21, %v3227_v3 }
 0x3b4   : > { %v3240_v26 = vsel %vm2919_vm15, %v6783_v40, %v3209_v15  ;;  %v3216_v10 = vrot.slane %v3215_v11, 1 }
 0x3b5   : > { %v3236_v30 = vrot.slane %v3235_v19, 1  ;;  %v3266_v31 = vrot.slane %v3240_v26, 2  ;;  %v3244_v9 = vsel %vm2919_vm15, %v6786_v2, %v3229_v36 }
 0x3b6   : > { %v3217_v56 = vadd.f32 %v3216_v10, %v3215_v11  ;;  %v3246_v34 = vmul.f32 0.0625, %v3244_v9 }
 0x3b7   : > { %v3237_v27 = vadd.f32 %v3236_v30, %v3235_v19  ;;  %3276 = vst [vmem:[%s6822_s11 + $0x10] sm:$0x1] %v3266_v31 }
 0x3b8   : > { %v3241_v58 = vsel %vm2919_vm15, %v6794_v17, %v3217_v56  ;;  %v3248_v51 = vfloor.f32 %v3246_v34  ;;  %v7097_v17 = vld [vmem:[#allocation6_spill] sm:$0xff] }
 0x3b9   : > { %v3245_v5 = vsel %vm2919_vm15, %v6797_v55, %v3237_v27  ;;  %v3267_v40 = vrot.slane %v3241_v58, 2 }
 0x3ba   : > { %v3247_v52 = vmul.f32 0.0625, %v3245_v5  ;;  %v3250_v4 = vmul.f32 16.0, %v3248_v51  ;;  %v3254_v60 = vsub.f32 %v3248_v51, %v7096_v47 }
 0x3bb   : > { %3277 = vst [vmem:[%s6822_s11 + $0x18] sm:$0x1] %v3267_v40 }
 0x3bc   : > { %v3249_v44 = vfloor.f32 %v3247_v52  ;;  %v3252_v54 = vsub.f32 %v3244_v9, %v3250_v4 }
 0x3be   : > { %v3251_v2 = vmul.f32 16.0, %v3249_v44  ;;  %v3256_v43 = vsub.f32 %v3252_v54, %v7095_v49  ;;  %v3255_v46 = vsub.f32 %v3249_v44, %v7098_v57 }
 0x3c0   : > { %v3253_v35 = vsub.f32 %v3245_v5, %v3251_v2  ;;  %v3260_v23 = vrot.slane %v3256_v43, 5 }
 0x3c2   : > { %v3257_v22 = vsub.f32 %v3253_v35, %v7097_v17  ;;  %v3270_v55 = vsel %vm2922_vm14, %v3254_v60, %v3260_v23 }
 0x3c3   : > { %v3272_v28 = vsel %vm2930_vm9, %v3270_v55, %v3266_v31 }
 0x3c4   : > { %v3261_v62 = vrot.slane %v3257_v22, 5  ;;  %3274 = vst [vmem:[%s6822_s11] sm:$0xff] %v3272_v28 }
 0x3c6   : > { %v3271_v1 = vsel %vm2922_vm14, %v3255_v46, %v3261_v62 }
 0x3c7   : > { %v3273_v6 = vsel %vm2930_vm9, %v3271_v1, %v3267_v40 }
 0x3c8   : > { %3275 = vst [vmem:[%s6822_s11 + $0x8] sm:$0xff] %v3273_v6 }
 0x3c9 PF: > { %s14_s17 = sadd.s32 1, %s3537_s17   ;;  %s7099_s15 = smov %s3533_s16 }
 0x3ca   : > { %p11_p6 = scmp.ge.s32.totalorder %s14_s17, 4   ;;  %s7100_s16 = smov %s7102_s18 }
 0x3cc   :  { %13 = sbr.rel (!%p11_p6) target bundleno = 2 (0x2), region = 76 }

</bundles_post_ra>
